<compile_context>
chip_gen: v5e
topology: v5e:2x2
jax: 0.10.0
libtpu: 0.0.40
codegen_flags: <defaults>
</compile_context>

<pallas_src>
import math

import jax
import jax.numpy as jnp
from jax.experimental import pallas as pl
from jax.experimental.pallas import tpu as pltpu

# Pin f32 matmul precision so the Pallas kernel (interpret or compiled) and the
# pure-JAX reference accumulate identically (TPU default would use bf16 passes).
jax.config.update("jax_default_matmul_precision", "highest")

D_MODEL = 32
N_HEADS = 4
HEAD_DIM = D_MODEL // N_HEADS
FF_HIDDEN = 64            # feedforward_hidden_dim (small for the demo)
EPS = 1e-5                # torch LayerNorm default
SCALE = 1.0 / math.sqrt(HEAD_DIM)
# Finite large-negative mask value: identical softmax to -inf when >=1 key is
# valid, but no NaN if a row ever ends up fully masked.
NEG_BIG = -1e9


# --------------------------------- kernel ---------------------------------- #
def _decoder_block_kernel(
    x_ref, enc_ref, padb_ref, causal_ref,
    ln_ref, w_in_ref, w_out_ref, w1_ref, b1_ref, w2_ref, b2_ref,
    o_ref,
):
    bb, t, d = x_ref.shape
    s = enc_ref.shape[1]
    h, hd = N_HEADS, HEAD_DIM

    # Whole batch block as one tall activation slab (bb*t, d).
    x = x_ref[...].reshape(bb * t, d)
    enc = enc_ref[...].reshape(bb * s, d)

    ln = ln_ref[...]          # (4, 2, d): [layer, {gamma, beta}, d]
    w_in = w_in_ref[...]      # (2, 3h, d, hd): [self|cross][q heads|k heads|v heads]
    w_out = w_out_ref[...]    # (2, h, hd, d): per-head rows of W_out

    def layer_norm(z, idx):
        mu = jnp.mean(z, axis=-1, keepdims=True)
        zc = z - mu
        var = jnp.mean(zc * zc, axis=-1, keepdims=True)
        return zc * jax.lax.rsqrt(var + EPS) * ln[idx, 0:1, :] + ln[idx, 1:2, :]

    def project_heads(z, w_h):
        # z: (n, d), w_h: (g, d, hd) -> (g, n, hd).
        # One batched dot_general covers Q, K and V for all heads at once; the
        # head axis is a leading batch dim, so no 8-lane slices / lane concats.
        g = w_h.shape[0]
        zb = jnp.broadcast_to(z[None], (g,) + z.shape)
        return jnp.einsum("gnd,gdh->gnh", zb, w_h,
                          preferred_element_type=jnp.float32)

    def attention(q_h, k_h, v_h, bias, w_o, t_q, t_k):
        # q_h: (h, bb*t_q, hd)  k_h, v_h: (h, bb*t_k, hd)
        # bias: broadcastable to (h*bb, t_q, t_k)  w_o: (h, hd, d)
        # Reshapes below are sublane-tile aligned (t_q, t_k multiples of 8).
        qb = q_h.reshape(h * bb, t_q, hd)
        kb = k_h.reshape(h * bb, t_k, hd)
        vb = v_h.reshape(h * bb, t_k, hd)
        sc = jnp.einsum("gqc,gkc->gqk", qb, kb,
                        preferred_element_type=jnp.float32) * SCALE + bias
        sc = sc - jnp.max(sc, axis=-1, keepdims=True)
        p = jnp.exp(sc)
        # Exact softmax normalization (approx reciprocal removed for accuracy).
        p = p / jnp.sum(p, axis=-1, keepdims=True)
        ctx = jnp.einsum("gqk,gkc->gqc", p, vb,
                         preferred_element_type=jnp.float32)     # (h*bb, t_q, hd)
        ctx = ctx.reshape(h, bb * t_q, hd)
        y = jnp.einsum("gnc,gcd->gnd", ctx, w_o,
                       preferred_element_type=jnp.float32)       # (h, bb*t_q, d)
        out = y[0]
        for i in range(1, h):    # static unrolled reduction over the head axis
            out = out + y[i]
        return out               # (bb*t_q, d)

    # ---- masked multi-head self-attention (residual taken from LN0(x), exactly
    #      as the reference forward reassigns x before the residual add) ----
    x = layer_norm(x, 0)
    qkv = project_heads(x, w_in[0])                               # (3h, bb*t, hd)
    x = x + attention(qkv[0:h], qkv[h:2 * h], qkv[2 * h:],
                      causal_ref[...][None, :, :], w_out[0], t, t)

    # ---- cross-attention with key-padding bias (precomputed in wrapper) ----
    # PyTorch forward reassigns x = layer_norm[1](x) BEFORE the residual add,
    # so the residual base here is the normalized tensor.
    x = layer_norm(x, 1)
    encn = layer_norm(enc, 2)
    q_c = project_heads(x, w_in[1, 0:h])                          # (h, bb*t, hd)
    kv_c = project_heads(encn, w_in[1, h:3 * h])                  # (2h, bb*s, hd)
    padb = jnp.broadcast_to(padb_ref[...][None], (h, bb, 1, s)).reshape(h * bb, 1, s)
    x = x + attention(q_c, kv_c[0:h], kv_c[h:2 * h], padb, w_out[1], t, s)

    # ---- MLP: Linear -> GELU -> Linear (dropout == 0.0 so omitted) ----
    # TODO(synk): MLP class body is not in the provided source; assuming
    # Linear(d, hidden) -> GELU (tanh approx) -> Linear(hidden, d).
    y = layer_norm(x, 3)
    y = jnp.dot(y, w1_ref[...], preferred_element_type=jnp.float32) + b1_ref[...]
    y = jax.nn.gelu(y)
    y = jnp.dot(y, w2_ref[...], preferred_element_type=jnp.float32) + b2_ref[...]

    o_ref[...] = (x + y).reshape(bb, t, d).astype(o_ref.dtype)


# ----------------------------- parameter packing ---------------------------- #
def pack_params(p):
    """Pack the 20 natural parameter arrays into 7 kernel inputs."""
    D, H, hd = D_MODEL, N_HEADS, HEAD_DIM

    def in_heads(w):          # (D, D) -> (H, D, hd): per-head input projection
        return w.reshape(D, H, hd).transpose(1, 0, 2)

    def out_heads(w):         # (D, D) -> (H, hd, D): per-head rows of W_out
        return w.reshape(H, hd, D)

    w_in = jnp.stack([
        jnp.concatenate([in_heads(p["wq_s"]), in_heads(p["wk_s"]),
                         in_heads(p["wv_s"])], axis=0),
        jnp.concatenate([in_heads(p["wq_c"]), in_heads(p["wk_c"]),
                         in_heads(p["wv_c"])], axis=0),
    ])                                                           # (2, 3H, D, hd)
    w_out = jnp.stack([out_heads(p["wo_s"]), out_heads(p["wo_c"])])  # (2, H, hd, D)
    ln = jnp.stack([jnp.stack([p[f"ln{i}_w"][0], p[f"ln{i}_b"][0]])
                    for i in range(4)])                          # (4, 2, D)
    return {"ln": ln, "w_in": w_in, "w_out": w_out,
            "w1": p["w1"], "b1": p["b1"], "w2": p["w2"], "b2": p["b2"]}


# --------------------------------- wrapper ----------------------------------- #
def decoder_block(x, encoder_out, input_pad_mask, packed, *, batch_block=None):
    B, T, D = x.shape
    S = encoder_out.shape[1]
    assert D == D_MODEL
    assert T % 8 == 0 and S % 8 == 0, "kernel reshapes assume T, S % 8 == 0"

    bb = batch_block if batch_block is not None else min(B, 16)
    assert B % bb == 0
    nb = B // bb

    neg = jnp.float32(NEG_BIG)
    # Masks hoisted out of the kernel body: built once here.
    causal = jnp.where(jnp.arange(T)[:, None] >= jnp.arange(T)[None, :],
                       0.0, neg).astype(jnp.float32)             # (T, T)
    pad_bias = jnp.where(input_pad_mask, 0.0, neg).astype(jnp.float32)
    pad_bias = pad_bias.reshape(B, 1, S)                         # (B, 1, S)

    ln_p, w_in, w_out = packed["ln"], packed["w_in"], packed["w_out"]
    w1, b1, w2, b2 = packed["w1"], packed["b1"], packed["w2"], packed["b2"]

    def full_spec(shape):
        n = len(shape)
        return pl.BlockSpec(shape, lambda b, n=n: (0,) * n)

    in_specs = [
        pl.BlockSpec((bb, T, D), lambda b: (b, 0, 0)),
        pl.BlockSpec((bb, S, D), lambda b: (b, 0, 0)),
        pl.BlockSpec((bb, 1, S), lambda b: (b, 0, 0)),
        full_spec(causal.shape),
        full_spec(ln_p.shape),
        full_spec(w_in.shape),
        full_spec(w_out.shape),
        full_spec(w1.shape),
        full_spec(b1.shape),
        full_spec(w2.shape),
        full_spec(b2.shape),
    ]

    return pl.pallas_call(
        _decoder_block_kernel,
        out_shape=jax.ShapeDtypeStruct((B, T, D), jnp.float32),
        grid=(nb,),
        in_specs=in_specs,
        out_specs=pl.BlockSpec((bb, T, D), lambda b: (b, 0, 0)),
        compiler_params=pltpu.CompilerParams(
            dimension_semantics=("parallel",)),
    )(x, encoder_out, pad_bias, causal, ln_p, w_in, w_out, w1, b1, w2, b2)


# -------------------------- deterministic params ---------------------------- #
def init_params(key):
    ks = jax.random.split(key, 20)
    D, H = D_MODEL, FF_HIDDEN
    p = {}
    for i in range(4):
        p[f"ln{i}_w"] = (1.0 + 0.1 * jax.random.normal(ks[i], (1, D))).astype(jnp.float32)
        p[f"ln{i}_b"] = (0.1 * jax.random.normal(ks[4 + i], (1, D))).astype(jnp.float32)
    sc = 1.0 / math.sqrt(D)
    names = ["wq_s", "wk_s", "wv_s", "wo_s", "wq_c", "wk_c", "wv_c", "wo_c"]
    for j, n in enumerate(names):
        p[n] = (sc * jax.random.normal(ks[8 + j], (D, D))).astype(jnp.float32)
    p["w1"] = (sc * jax.random.normal(ks[16], (D, H))).astype(jnp.float32)
    p["b1"] = (0.05 * jax.random.normal(ks[17], (1, H))).astype(jnp.float32)
    p["w2"] = ((1.0 / math.sqrt(H)) * jax.random.normal(ks[18], (H, D))).astype(jnp.float32)
    p["b2"] = (0.05 * jax.random.normal(ks[19], (1, D))).astype(jnp.float32)
    return p


# ---------------------------- pure-JAX reference ---------------------------- #
def reference(x, enc, pad_mask, p):
    def ln(z, w, b):
        mu = jnp.mean(z, -1, keepdims=True)
        var = jnp.mean((z - mu) ** 2, -1, keepdims=True)
        return (z - mu) / jnp.sqrt(var + EPS) * w[0] + b[0]

    def mha(q_in, k_in, v_in, wq, wk, wv, wo, bias):
        B_, Tq, _ = q_in.shape
        def split(z):
            return z.reshape(B_, -1, N_HEADS, HEAD_DIM).transpose(0, 2, 1, 3)
        q, k, v = split(q_in @ wq), split(k_in @ wk), split(v_in @ wv)
        s = jnp.einsum("bhqd,bhkd->bhqk", q, k) / math.sqrt(HEAD_DIM)
        s = s + bias[:, None]
        a = jax.nn.softmax(s, axis=-1)
        o = jnp.einsum("bhqk,bhkd->bhqd", a, v)
        o = o.transpose(0, 2, 1, 3).reshape(B_, Tq, D_MODEL)
        return o @ wo

    B_, T, _ = x.shape
    S_ = enc.shape[1]
    # Matches the PyTorch forward exactly: x is reassigned to the LayerNorm
    # output before each residual add.
    x = ln(x, p["ln0_w"], p["ln0_b"])
    causal = jnp.where(jnp.arange(T)[None, :] <= jnp.arange(T)[:, None], 0.0, -jnp.inf)
    causal = jnp.broadcast_to(causal, (B_, T, T))
    x = x + mha(x, x, x, p["wq_s"], p["wk_s"], p["wv_s"], p["wo_s"], causal)
    x = ln(x, p["ln1_w"], p["ln1_b"])
    encn = ln(enc, p["ln2_w"], p["ln2_b"])
    kp = jnp.where(pad_mask, 0.0, -jnp.inf)[:, None, :]
    kp = jnp.broadcast_to(kp, (B_, T, S_))
    x = x + mha(x, encn, encn, p["wq_c"], p["wk_c"], p["wv_c"], p["wo_c"], kp)
    h = ln(x, p["ln3_w"], p["ln3_b"])
    h = jax.nn.gelu(h @ p["w1"] + p["b1"][0])
    h = h @ p["w2"] + p["b2"][0]
    return x + h


# ----------------------------------- main ----------------------------------- #
if __name__ == "__main__":
    key = jax.random.PRNGKey(0)
    k_x, k_enc, k_p = jax.random.split(key, 3)

    B, T, S = 2, 8, 8
    x = jax.random.normal(k_x, (B, T, D_MODEL), jnp.float32)
    encoder_out = jax.random.normal(k_enc, (B, S, D_MODEL), jnp.float32)
    # input_pad_mask: True = real token (forward passes ~mask as key_padding_mask)
    lengths = jnp.array([S, S - 3])
    input_pad_mask = jnp.arange(S)[None, :] < lengths[:, None]   # (B, S) bool

    params = init_params(k_p)
    packed = pack_params(params)

    out = decoder_block(x, encoder_out, input_pad_mask, packed)
    out = jax.block_until_ready(out)

    ref = reference(x, encoder_out, input_pad_mask, params)
    max_err = float(jnp.max(jnp.abs(out - ref)))
    # All matmuls run at "highest" f32 precision and the softmax normalization
    # is exact, so kernel and reference should agree to ~1e-5.
    assert max_err < 2e-3, f"max_err={max_err}"
    print("KERNEL_OK")
</pallas_src>

<mosaic_0001>
module attributes {stable_mosaic.version = 11 : i64} {
  func.func @_decoder_block_kernel(%arg0: i32, %arg1: memref<2x8x32xf32, #tpu.memory_space<vmem>>, %arg2: memref<2x8x32xf32, #tpu.memory_space<vmem>>, %arg3: memref<2x1x8xf32, #tpu.memory_space<vmem>>, %arg4: memref<8x8xf32, #tpu.memory_space<vmem>>, %arg5: memref<4x2x32xf32, #tpu.memory_space<vmem>>, %arg6: memref<2x12x32x8xf32, #tpu.memory_space<vmem>>, %arg7: memref<2x4x8x32xf32, #tpu.memory_space<vmem>>, %arg8: memref<32x64xf32, #tpu.memory_space<vmem>>, %arg9: memref<1x64xf32, #tpu.memory_space<vmem>>, %arg10: memref<64x32xf32, #tpu.memory_space<vmem>>, %arg11: memref<1x32xf32, #tpu.memory_space<vmem>>, %arg12: memref<2x8x32xf32, #tpu.memory_space<vmem>>) attributes {dimension_semantics = [#tpu.dimension_semantics<parallel>], iteration_bounds = array<i64: 1>, scalar_prefetch = 0 : i64, scratch_operands = 0 : i64, tpu.core_type = #tpu.core_type<tc>, window_params = [{transform_indices = @transform_0, window_bounds = array<i64: 2, 8, 32>}, {transform_indices = @transform_1, window_bounds = array<i64: 2, 8, 32>}, {transform_indices = @transform_2, window_bounds = array<i64: 2, 1, 8>}, {pipeline_mode = #tpu.pipeline_mode<synchronous>, transform_indices = @transform_3, window_bounds = array<i64: 8, 8>}, {pipeline_mode = #tpu.pipeline_mode<synchronous>, transform_indices = @transform_4, window_bounds = array<i64: 4, 2, 32>}, {pipeline_mode = #tpu.pipeline_mode<synchronous>, transform_indices = @transform_5, window_bounds = array<i64: 2, 12, 32, 8>}, {pipeline_mode = #tpu.pipeline_mode<synchronous>, transform_indices = @transform_6, window_bounds = array<i64: 2, 4, 8, 32>}, {pipeline_mode = #tpu.pipeline_mode<synchronous>, transform_indices = @transform_7, window_bounds = array<i64: 32, 64>}, {pipeline_mode = #tpu.pipeline_mode<synchronous>, transform_indices = @transform_8, window_bounds = array<i64: 1, 64>}, {pipeline_mode = #tpu.pipeline_mode<synchronous>, transform_indices = @transform_9, window_bounds = array<i64: 64, 32>}, {pipeline_mode = #tpu.pipeline_mode<synchronous>, transform_indices = @transform_10, window_bounds = array<i64: 1, 32>}, {transform_indices = @transform_11, window_bounds = array<i64: 2, 8, 32>}]} {
    %c0 = arith.constant 0 : index
    %c0_0 = arith.constant 0 : index
    %c0_1 = arith.constant 0 : index
    %0 = vector.load %arg1[%c0, %c0_0, %c0_1] : memref<2x8x32xf32, #tpu.memory_space<vmem>>, vector<2x8x32xf32>
    %1 = vector.shape_cast %0 : vector<2x8x32xf32> to vector<16x32xf32>
    %c0_2 = arith.constant 0 : index
    %c0_3 = arith.constant 0 : index
    %c0_4 = arith.constant 0 : index
    %2 = vector.load %arg2[%c0_2, %c0_3, %c0_4] : memref<2x8x32xf32, #tpu.memory_space<vmem>>, vector<2x8x32xf32>
    %3 = vector.shape_cast %2 : vector<2x8x32xf32> to vector<16x32xf32>
    %c0_5 = arith.constant 0 : index
    %c0_6 = arith.constant 0 : index
    %c0_7 = arith.constant 0 : index
    %4 = vector.load %arg5[%c0_5, %c0_6, %c0_7] : memref<4x2x32xf32, #tpu.memory_space<vmem>>, vector<4x2x32xf32>
    %c0_8 = arith.constant 0 : index
    %c0_9 = arith.constant 0 : index
    %c0_10 = arith.constant 0 : index
    %c0_11 = arith.constant 0 : index
    %5 = vector.load %arg6[%c0_8, %c0_9, %c0_10, %c0_11] : memref<2x12x32x8xf32, #tpu.memory_space<vmem>>, vector<2x12x32x8xf32>
    %c0_12 = arith.constant 0 : index
    %c0_13 = arith.constant 0 : index
    %c0_14 = arith.constant 0 : index
    %c0_15 = arith.constant 0 : index
    %6 = vector.load %arg7[%c0_12, %c0_13, %c0_14, %c0_15] : memref<2x4x8x32xf32, #tpu.memory_space<vmem>>, vector<2x4x8x32xf32>
    %cst = arith.constant dense<0.000000e+00> : vector<16xf32>
    %7 = vector.multi_reduction <add>, %1, %cst [1] : vector<16x32xf32> to vector<16xf32>
    %8 = vector.shape_cast %7 : vector<16xf32> to vector<16x1xf32>
    %cst_16 = arith.constant 3.200000e+01 : f32
    %9 = vector.broadcast %cst_16 : f32 to vector<16x1xf32>
    %10 = arith.divf %8, %9 : vector<16x1xf32>
    %11 = vector.broadcast %10 : vector<16x1xf32> to vector<16x32xf32>
    %12 = arith.subf %1, %11 : vector<16x32xf32>
    %13 = arith.mulf %12, %12 : vector<16x32xf32>
    %cst_17 = arith.constant dense<0.000000e+00> : vector<16xf32>
    %14 = vector.multi_reduction <add>, %13, %cst_17 [1] : vector<16x32xf32> to vector<16xf32>
    %15 = vector.shape_cast %14 : vector<16xf32> to vector<16x1xf32>
    %cst_18 = arith.constant 3.200000e+01 : f32
    %16 = vector.broadcast %cst_18 : f32 to vector<16x1xf32>
    %17 = arith.divf %15, %16 : vector<16x1xf32>
    %cst_19 = arith.constant 9.99999974E-6 : f32
    %18 = vector.broadcast %cst_19 : f32 to vector<16x1xf32>
    %19 = arith.addf %17, %18 : vector<16x1xf32>
    %20 = math.rsqrt %19 : vector<16x1xf32>
    %21 = vector.broadcast %20 : vector<16x1xf32> to vector<16x32xf32>
    %22 = arith.mulf %12, %21 : vector<16x32xf32>
    %23 = vector.extract_strided_slice %4 {offsets = [0, 0, 0], sizes = [1, 1, 32], strides = [1, 1, 1]} : vector<4x2x32xf32> to vector<1x1x32xf32>
    %24 = vector.shape_cast %23 : vector<1x1x32xf32> to vector<1x32xf32>
    %25 = vector.broadcast %24 : vector<1x32xf32> to vector<16x32xf32>
    %26 = arith.mulf %22, %25 : vector<16x32xf32>
    %27 = vector.extract_strided_slice %4 {offsets = [0, 1, 0], sizes = [1, 1, 32], strides = [1, 1, 1]} : vector<4x2x32xf32> to vector<1x1x32xf32>
    %28 = vector.shape_cast %27 : vector<1x1x32xf32> to vector<1x32xf32>
    %29 = vector.broadcast %28 : vector<1x32xf32> to vector<16x32xf32>
    %30 = arith.addf %26, %29 : vector<16x32xf32>
    %31 = vector.extract_strided_slice %5 {offsets = [0, 0, 0, 0], sizes = [1, 12, 32, 8], strides = [1, 1, 1, 1]} : vector<2x12x32x8xf32> to vector<1x12x32x8xf32>
    %32 = vector.shape_cast %31 : vector<1x12x32x8xf32> to vector<12x32x8xf32>
    %33 = vector.shape_cast %30 : vector<16x32xf32> to vector<1x16x32xf32>
    %34 = vector.shape_cast %33 : vector<1x16x32xf32> to vector<1x16x32xf32>
    %35 = vector.broadcast %34 : vector<1x16x32xf32> to vector<12x16x32xf32>
    "tpu.trace_start"() <{level = 10 : i32, message = "gnd,gdh->gnh"}> : () -> ()
    %cst_20 = arith.constant dense<0.000000e+00> : vector<12x16x8xf32>
    %36 = tpu.matmul %35, %32, %cst_20 {dimension_numbers = #tpu.dot_dimension_numbers<[2], [1], [1], [2], [0, 0, 0, 1, 1, 2], [0], [0]>, precision = #tpu.contract_precision<fp32>} : vector<12x16x32xf32>, vector<12x32x8xf32>, vector<12x16x8xf32> -> vector<12x16x8xf32>
    "tpu.trace_stop"() : () -> ()
    %37 = vector.extract_strided_slice %36 {offsets = [0, 0, 0], sizes = [4, 16, 8], strides = [1, 1, 1]} : vector<12x16x8xf32> to vector<4x16x8xf32>
    %38 = vector.extract_strided_slice %36 {offsets = [4, 0, 0], sizes = [4, 16, 8], strides = [1, 1, 1]} : vector<12x16x8xf32> to vector<4x16x8xf32>
    %39 = vector.extract_strided_slice %36 {offsets = [8, 0, 0], sizes = [4, 16, 8], strides = [1, 1, 1]} : vector<12x16x8xf32> to vector<4x16x8xf32>
    %c0_21 = arith.constant 0 : index
    %c0_22 = arith.constant 0 : index
    %40 = vector.load %arg4[%c0_21, %c0_22] : memref<8x8xf32, #tpu.memory_space<vmem>>, vector<8x8xf32>
    %41 = vector.shape_cast %40 : vector<8x8xf32> to vector<1x8x8xf32>
    %42 = vector.extract_strided_slice %6 {offsets = [0, 0, 0, 0], sizes = [1, 4, 8, 32], strides = [1, 1, 1, 1]} : vector<2x4x8x32xf32> to vector<1x4x8x32xf32>
    %43 = vector.shape_cast %42 : vector<1x4x8x32xf32> to vector<4x8x32xf32>
    %44 = vector.shape_cast %37 : vector<4x16x8xf32> to vector<8x8x8xf32>
    %45 = vector.shape_cast %38 : vector<4x16x8xf32> to vector<8x8x8xf32>
    %46 = vector.shape_cast %39 : vector<4x16x8xf32> to vector<8x8x8xf32>
    "tpu.trace_start"() <{level = 10 : i32, message = "gqc,gkc->gqk"}> : () -> ()
    %cst_23 = arith.constant dense<0.000000e+00> : vector<8x8x8xf32>
    %47 = tpu.matmul %44, %45, %cst_23 {dimension_numbers = #tpu.dot_dimension_numbers<[2], [2], [1], [1], [0, 0, 0, 1, 1, 1], [0], [0]>, precision = #tpu.contract_precision<fp32>} : vector<8x8x8xf32>, vector<8x8x8xf32>, vector<8x8x8xf32> -> vector<8x8x8xf32>
    "tpu.trace_stop"() : () -> ()
    %cst_24 = arith.constant 0.353553385 : f32
    %48 = vector.broadcast %cst_24 : f32 to vector<8x8x8xf32>
    %49 = arith.mulf %47, %48 : vector<8x8x8xf32>
    %50 = vector.broadcast %41 : vector<1x8x8xf32> to vector<8x8x8xf32>
    %51 = arith.addf %49, %50 : vector<8x8x8xf32>
    %cst_25 = arith.constant dense<0xFF800000> : vector<8x8xf32>
    %52 = vector.multi_reduction <maximumf>, %51, %cst_25 [2] : vector<8x8x8xf32> to vector<8x8xf32>
    %53 = vector.shape_cast %52 : vector<8x8xf32> to vector<8x8x1xf32>
    %54 = vector.broadcast %53 : vector<8x8x1xf32> to vector<8x8x8xf32>
    %55 = arith.subf %51, %54 : vector<8x8x8xf32>
    %56 = math.exp %55 : vector<8x8x8xf32>
    %cst_26 = arith.constant dense<0.000000e+00> : vector<8x8xf32>
    %57 = vector.multi_reduction <add>, %56, %cst_26 [2] : vector<8x8x8xf32> to vector<8x8xf32>
    %58 = vector.shape_cast %57 : vector<8x8xf32> to vector<8x8x1xf32>
    %59 = vector.broadcast %58 : vector<8x8x1xf32> to vector<8x8x8xf32>
    %60 = arith.divf %56, %59 : vector<8x8x8xf32>
    "tpu.trace_start"() <{level = 10 : i32, message = "gqk,gkc->gqc"}> : () -> ()
    %cst_27 = arith.constant dense<0.000000e+00> : vector<8x8x8xf32>
    %61 = tpu.matmul %60, %46, %cst_27 {dimension_numbers = #tpu.dot_dimension_numbers<[2], [1], [1], [2], [0, 0, 0, 1, 1, 2], [0], [0]>, precision = #tpu.contract_precision<fp32>} : vector<8x8x8xf32>, vector<8x8x8xf32>, vector<8x8x8xf32> -> vector<8x8x8xf32>
    "tpu.trace_stop"() : () -> ()
    %62 = vector.shape_cast %61 : vector<8x8x8xf32> to vector<4x16x8xf32>
    "tpu.trace_start"() <{level = 10 : i32, message = "gnc,gcd->gnd"}> : () -> ()
    %cst_28 = arith.constant dense<0.000000e+00> : vector<4x16x32xf32>
    %63 = tpu.matmul %62, %43, %cst_28 {dimension_numbers = #tpu.dot_dimension_numbers<[2], [1], [1], [2], [0, 0, 0, 1, 1, 2], [0], [0]>, precision = #tpu.contract_precision<fp32>} : vector<4x16x8xf32>, vector<4x8x32xf32>, vector<4x16x32xf32> -> vector<4x16x32xf32>
    "tpu.trace_stop"() : () -> ()
    %64 = vector.extract_strided_slice %63 {offsets = [0, 0, 0], sizes = [1, 16, 32], strides = [1, 1, 1]} : vector<4x16x32xf32> to vector<1x16x32xf32>
    %65 = vector.shape_cast %64 : vector<1x16x32xf32> to vector<16x32xf32>
    %66 = vector.extract_strided_slice %63 {offsets = [1, 0, 0], sizes = [1, 16, 32], strides = [1, 1, 1]} : vector<4x16x32xf32> to vector<1x16x32xf32>
    %67 = vector.shape_cast %66 : vector<1x16x32xf32> to vector<16x32xf32>
    %68 = arith.addf %65, %67 : vector<16x32xf32>
    %69 = vector.extract_strided_slice %63 {offsets = [2, 0, 0], sizes = [1, 16, 32], strides = [1, 1, 1]} : vector<4x16x32xf32> to vector<1x16x32xf32>
    %70 = vector.shape_cast %69 : vector<1x16x32xf32> to vector<16x32xf32>
    %71 = arith.addf %68, %70 : vector<16x32xf32>
    %72 = vector.extract_strided_slice %63 {offsets = [3, 0, 0], sizes = [1, 16, 32], strides = [1, 1, 1]} : vector<4x16x32xf32> to vector<1x16x32xf32>
    %73 = vector.shape_cast %72 : vector<1x16x32xf32> to vector<16x32xf32>
    %74 = arith.addf %71, %73 : vector<16x32xf32>
    %75 = arith.addf %30, %74 : vector<16x32xf32>
    %cst_29 = arith.constant dense<0.000000e+00> : vector<16xf32>
    %76 = vector.multi_reduction <add>, %75, %cst_29 [1] : vector<16x32xf32> to vector<16xf32>
    %77 = vector.shape_cast %76 : vector<16xf32> to vector<16x1xf32>
    %cst_30 = arith.constant 3.200000e+01 : f32
    %78 = vector.broadcast %cst_30 : f32 to vector<16x1xf32>
    %79 = arith.divf %77, %78 : vector<16x1xf32>
    %80 = vector.broadcast %79 : vector<16x1xf32> to vector<16x32xf32>
    %81 = arith.subf %75, %80 : vector<16x32xf32>
    %82 = arith.mulf %81, %81 : vector<16x32xf32>
    %cst_31 = arith.constant dense<0.000000e+00> : vector<16xf32>
    %83 = vector.multi_reduction <add>, %82, %cst_31 [1] : vector<16x32xf32> to vector<16xf32>
    %84 = vector.shape_cast %83 : vector<16xf32> to vector<16x1xf32>
    %cst_32 = arith.constant 3.200000e+01 : f32
    %85 = vector.broadcast %cst_32 : f32 to vector<16x1xf32>
    %86 = arith.divf %84, %85 : vector<16x1xf32>
    %cst_33 = arith.constant 9.99999974E-6 : f32
    %87 = vector.broadcast %cst_33 : f32 to vector<16x1xf32>
    %88 = arith.addf %86, %87 : vector<16x1xf32>
    %89 = math.rsqrt %88 : vector<16x1xf32>
    %90 = vector.broadcast %89 : vector<16x1xf32> to vector<16x32xf32>
    %91 = arith.mulf %81, %90 : vector<16x32xf32>
    %92 = vector.extract_strided_slice %4 {offsets = [1, 0, 0], sizes = [1, 1, 32], strides = [1, 1, 1]} : vector<4x2x32xf32> to vector<1x1x32xf32>
    %93 = vector.shape_cast %92 : vector<1x1x32xf32> to vector<1x32xf32>
    %94 = vector.broadcast %93 : vector<1x32xf32> to vector<16x32xf32>
    %95 = arith.mulf %91, %94 : vector<16x32xf32>
    %96 = vector.extract_strided_slice %4 {offsets = [1, 1, 0], sizes = [1, 1, 32], strides = [1, 1, 1]} : vector<4x2x32xf32> to vector<1x1x32xf32>
    %97 = vector.shape_cast %96 : vector<1x1x32xf32> to vector<1x32xf32>
    %98 = vector.broadcast %97 : vector<1x32xf32> to vector<16x32xf32>
    %99 = arith.addf %95, %98 : vector<16x32xf32>
    %cst_34 = arith.constant dense<0.000000e+00> : vector<16xf32>
    %100 = vector.multi_reduction <add>, %3, %cst_34 [1] : vector<16x32xf32> to vector<16xf32>
    %101 = vector.shape_cast %100 : vector<16xf32> to vector<16x1xf32>
    %cst_35 = arith.constant 3.200000e+01 : f32
    %102 = vector.broadcast %cst_35 : f32 to vector<16x1xf32>
    %103 = arith.divf %101, %102 : vector<16x1xf32>
    %104 = vector.broadcast %103 : vector<16x1xf32> to vector<16x32xf32>
    %105 = arith.subf %3, %104 : vector<16x32xf32>
    %106 = arith.mulf %105, %105 : vector<16x32xf32>
    %cst_36 = arith.constant dense<0.000000e+00> : vector<16xf32>
    %107 = vector.multi_reduction <add>, %106, %cst_36 [1] : vector<16x32xf32> to vector<16xf32>
    %108 = vector.shape_cast %107 : vector<16xf32> to vector<16x1xf32>
    %cst_37 = arith.constant 3.200000e+01 : f32
    %109 = vector.broadcast %cst_37 : f32 to vector<16x1xf32>
    %110 = arith.divf %108, %109 : vector<16x1xf32>
    %cst_38 = arith.constant 9.99999974E-6 : f32
    %111 = vector.broadcast %cst_38 : f32 to vector<16x1xf32>
    %112 = arith.addf %110, %111 : vector<16x1xf32>
    %113 = math.rsqrt %112 : vector<16x1xf32>
    %114 = vector.broadcast %113 : vector<16x1xf32> to vector<16x32xf32>
    %115 = arith.mulf %105, %114 : vector<16x32xf32>
    %116 = vector.extract_strided_slice %4 {offsets = [2, 0, 0], sizes = [1, 1, 32], strides = [1, 1, 1]} : vector<4x2x32xf32> to vector<1x1x32xf32>
    %117 = vector.shape_cast %116 : vector<1x1x32xf32> to vector<1x32xf32>
    %118 = vector.broadcast %117 : vector<1x32xf32> to vector<16x32xf32>
    %119 = arith.mulf %115, %118 : vector<16x32xf32>
    %120 = vector.extract_strided_slice %4 {offsets = [2, 1, 0], sizes = [1, 1, 32], strides = [1, 1, 1]} : vector<4x2x32xf32> to vector<1x1x32xf32>
    %121 = vector.shape_cast %120 : vector<1x1x32xf32> to vector<1x32xf32>
    %122 = vector.broadcast %121 : vector<1x32xf32> to vector<16x32xf32>
    %123 = arith.addf %119, %122 : vector<16x32xf32>
    %124 = vector.extract_strided_slice %5 {offsets = [1, 0, 0, 0], sizes = [1, 4, 32, 8], strides = [1, 1, 1, 1]} : vector<2x12x32x8xf32> to vector<1x4x32x8xf32>
    %125 = vector.shape_cast %124 : vector<1x4x32x8xf32> to vector<4x32x8xf32>
    %126 = vector.shape_cast %99 : vector<16x32xf32> to vector<1x16x32xf32>
    %127 = vector.shape_cast %126 : vector<1x16x32xf32> to vector<1x16x32xf32>
    %128 = vector.broadcast %127 : vector<1x16x32xf32> to vector<4x16x32xf32>
    "tpu.trace_start"() <{level = 10 : i32, message = "gnd,gdh->gnh"}> : () -> ()
    %cst_39 = arith.constant dense<0.000000e+00> : vector<4x16x8xf32>
    %129 = tpu.matmul %128, %125, %cst_39 {dimension_numbers = #tpu.dot_dimension_numbers<[2], [1], [1], [2], [0, 0, 0, 1, 1, 2], [0], [0]>, precision = #tpu.contract_precision<fp32>} : vector<4x16x32xf32>, vector<4x32x8xf32>, vector<4x16x8xf32> -> vector<4x16x8xf32>
    "tpu.trace_stop"() : () -> ()
    %130 = vector.extract_strided_slice %5 {offsets = [1, 4, 0, 0], sizes = [1, 8, 32, 8], strides = [1, 1, 1, 1]} : vector<2x12x32x8xf32> to vector<1x8x32x8xf32>
    %131 = vector.shape_cast %130 : vector<1x8x32x8xf32> to vector<8x32x8xf32>
    %132 = vector.shape_cast %123 : vector<16x32xf32> to vector<1x16x32xf32>
    %133 = vector.shape_cast %132 : vector<1x16x32xf32> to vector<1x16x32xf32>
    %134 = vector.broadcast %133 : vector<1x16x32xf32> to vector<8x16x32xf32>
    "tpu.trace_start"() <{level = 10 : i32, message = "gnd,gdh->gnh"}> : () -> ()
    %cst_40 = arith.constant dense<0.000000e+00> : vector<8x16x8xf32>
    %135 = tpu.matmul %134, %131, %cst_40 {dimension_numbers = #tpu.dot_dimension_numbers<[2], [1], [1], [2], [0, 0, 0, 1, 1, 2], [0], [0]>, precision = #tpu.contract_precision<fp32>} : vector<8x16x32xf32>, vector<8x32x8xf32>, vector<8x16x8xf32> -> vector<8x16x8xf32>
    "tpu.trace_stop"() : () -> ()
    %c0_41 = arith.constant 0 : index
    %c0_42 = arith.constant 0 : index
    %c0_43 = arith.constant 0 : index
    %136 = vector.load %arg3[%c0_41, %c0_42, %c0_43] : memref<2x1x8xf32, #tpu.memory_space<vmem>>, vector<2x1x8xf32>
    %137 = vector.shape_cast %136 : vector<2x1x8xf32> to vector<1x2x1x8xf32>
    %138 = vector.shape_cast %137 : vector<1x2x1x8xf32> to vector<1x2x1x8xf32>
    %139 = vector.broadcast %138 : vector<1x2x1x8xf32> to vector<4x2x1x8xf32>
    %140 = vector.shape_cast %139 : vector<4x2x1x8xf32> to vector<8x1x8xf32>
    %141 = vector.extract_strided_slice %135 {offsets = [0, 0, 0], sizes = [4, 16, 8], strides = [1, 1, 1]} : vector<8x16x8xf32> to vector<4x16x8xf32>
    %142 = vector.extract_strided_slice %135 {offsets = [4, 0, 0], sizes = [4, 16, 8], strides = [1, 1, 1]} : vector<8x16x8xf32> to vector<4x16x8xf32>
    %143 = vector.extract_strided_slice %6 {offsets = [1, 0, 0, 0], sizes = [1, 4, 8, 32], strides = [1, 1, 1, 1]} : vector<2x4x8x32xf32> to vector<1x4x8x32xf32>
    %144 = vector.shape_cast %143 : vector<1x4x8x32xf32> to vector<4x8x32xf32>
    %145 = vector.shape_cast %129 : vector<4x16x8xf32> to vector<8x8x8xf32>
    %146 = vector.shape_cast %141 : vector<4x16x8xf32> to vector<8x8x8xf32>
    %147 = vector.shape_cast %142 : vector<4x16x8xf32> to vector<8x8x8xf32>
    "tpu.trace_start"() <{level = 10 : i32, message = "gqc,gkc->gqk"}> : () -> ()
    %cst_44 = arith.constant dense<0.000000e+00> : vector<8x8x8xf32>
    %148 = tpu.matmul %145, %146, %cst_44 {dimension_numbers = #tpu.dot_dimension_numbers<[2], [2], [1], [1], [0, 0, 0, 1, 1, 1], [0], [0]>, precision = #tpu.contract_precision<fp32>} : vector<8x8x8xf32>, vector<8x8x8xf32>, vector<8x8x8xf32> -> vector<8x8x8xf32>
    "tpu.trace_stop"() : () -> ()
    %cst_45 = arith.constant 0.353553385 : f32
    %149 = vector.broadcast %cst_45 : f32 to vector<8x8x8xf32>
    %150 = arith.mulf %148, %149 : vector<8x8x8xf32>
    %151 = vector.broadcast %140 : vector<8x1x8xf32> to vector<8x8x8xf32>
    %152 = arith.addf %150, %151 : vector<8x8x8xf32>
    %cst_46 = arith.constant dense<0xFF800000> : vector<8x8xf32>
    %153 = vector.multi_reduction <maximumf>, %152, %cst_46 [2] : vector<8x8x8xf32> to vector<8x8xf32>
    %154 = vector.shape_cast %153 : vector<8x8xf32> to vector<8x8x1xf32>
    %155 = vector.broadcast %154 : vector<8x8x1xf32> to vector<8x8x8xf32>
    %156 = arith.subf %152, %155 : vector<8x8x8xf32>
    %157 = math.exp %156 : vector<8x8x8xf32>
    %cst_47 = arith.constant dense<0.000000e+00> : vector<8x8xf32>
    %158 = vector.multi_reduction <add>, %157, %cst_47 [2] : vector<8x8x8xf32> to vector<8x8xf32>
    %159 = vector.shape_cast %158 : vector<8x8xf32> to vector<8x8x1xf32>
    %160 = vector.broadcast %159 : vector<8x8x1xf32> to vector<8x8x8xf32>
    %161 = arith.divf %157, %160 : vector<8x8x8xf32>
    "tpu.trace_start"() <{level = 10 : i32, message = "gqk,gkc->gqc"}> : () -> ()
    %cst_48 = arith.constant dense<0.000000e+00> : vector<8x8x8xf32>
    %162 = tpu.matmul %161, %147, %cst_48 {dimension_numbers = #tpu.dot_dimension_numbers<[2], [1], [1], [2], [0, 0, 0, 1, 1, 2], [0], [0]>, precision = #tpu.contract_precision<fp32>} : vector<8x8x8xf32>, vector<8x8x8xf32>, vector<8x8x8xf32> -> vector<8x8x8xf32>
    "tpu.trace_stop"() : () -> ()
    %163 = vector.shape_cast %162 : vector<8x8x8xf32> to vector<4x16x8xf32>
    "tpu.trace_start"() <{level = 10 : i32, message = "gnc,gcd->gnd"}> : () -> ()
    %cst_49 = arith.constant dense<0.000000e+00> : vector<4x16x32xf32>
    %164 = tpu.matmul %163, %144, %cst_49 {dimension_numbers = #tpu.dot_dimension_numbers<[2], [1], [1], [2], [0, 0, 0, 1, 1, 2], [0], [0]>, precision = #tpu.contract_precision<fp32>} : vector<4x16x8xf32>, vector<4x8x32xf32>, vector<4x16x32xf32> -> vector<4x16x32xf32>
    "tpu.trace_stop"() : () -> ()
    %165 = vector.extract_strided_slice %164 {offsets = [0, 0, 0], sizes = [1, 16, 32], strides = [1, 1, 1]} : vector<4x16x32xf32> to vector<1x16x32xf32>
    %166 = vector.shape_cast %165 : vector<1x16x32xf32> to vector<16x32xf32>
    %167 = vector.extract_strided_slice %164 {offsets = [1, 0, 0], sizes = [1, 16, 32], strides = [1, 1, 1]} : vector<4x16x32xf32> to vector<1x16x32xf32>
    %168 = vector.shape_cast %167 : vector<1x16x32xf32> to vector<16x32xf32>
    %169 = arith.addf %166, %168 : vector<16x32xf32>
    %170 = vector.extract_strided_slice %164 {offsets = [2, 0, 0], sizes = [1, 16, 32], strides = [1, 1, 1]} : vector<4x16x32xf32> to vector<1x16x32xf32>
    %171 = vector.shape_cast %170 : vector<1x16x32xf32> to vector<16x32xf32>
    %172 = arith.addf %169, %171 : vector<16x32xf32>
    %173 = vector.extract_strided_slice %164 {offsets = [3, 0, 0], sizes = [1, 16, 32], strides = [1, 1, 1]} : vector<4x16x32xf32> to vector<1x16x32xf32>
    %174 = vector.shape_cast %173 : vector<1x16x32xf32> to vector<16x32xf32>
    %175 = arith.addf %172, %174 : vector<16x32xf32>
    %176 = arith.addf %99, %175 : vector<16x32xf32>
    %cst_50 = arith.constant dense<0.000000e+00> : vector<16xf32>
    %177 = vector.multi_reduction <add>, %176, %cst_50 [1] : vector<16x32xf32> to vector<16xf32>
    %178 = vector.shape_cast %177 : vector<16xf32> to vector<16x1xf32>
    %cst_51 = arith.constant 3.200000e+01 : f32
    %179 = vector.broadcast %cst_51 : f32 to vector<16x1xf32>
    %180 = arith.divf %178, %179 : vector<16x1xf32>
    %181 = vector.broadcast %180 : vector<16x1xf32> to vector<16x32xf32>
    %182 = arith.subf %176, %181 : vector<16x32xf32>
    %183 = arith.mulf %182, %182 : vector<16x32xf32>
    %cst_52 = arith.constant dense<0.000000e+00> : vector<16xf32>
    %184 = vector.multi_reduction <add>, %183, %cst_52 [1] : vector<16x32xf32> to vector<16xf32>
    %185 = vector.shape_cast %184 : vector<16xf32> to vector<16x1xf32>
    %cst_53 = arith.constant 3.200000e+01 : f32
    %186 = vector.broadcast %cst_53 : f32 to vector<16x1xf32>
    %187 = arith.divf %185, %186 : vector<16x1xf32>
    %cst_54 = arith.constant 9.99999974E-6 : f32
    %188 = vector.broadcast %cst_54 : f32 to vector<16x1xf32>
    %189 = arith.addf %187, %188 : vector<16x1xf32>
    %190 = math.rsqrt %189 : vector<16x1xf32>
    %191 = vector.broadcast %190 : vector<16x1xf32> to vector<16x32xf32>
    %192 = arith.mulf %182, %191 : vector<16x32xf32>
    %193 = vector.extract_strided_slice %4 {offsets = [3, 0, 0], sizes = [1, 1, 32], strides = [1, 1, 1]} : vector<4x2x32xf32> to vector<1x1x32xf32>
    %194 = vector.shape_cast %193 : vector<1x1x32xf32> to vector<1x32xf32>
    %195 = vector.broadcast %194 : vector<1x32xf32> to vector<16x32xf32>
    %196 = arith.mulf %192, %195 : vector<16x32xf32>
    %197 = vector.extract_strided_slice %4 {offsets = [3, 1, 0], sizes = [1, 1, 32], strides = [1, 1, 1]} : vector<4x2x32xf32> to vector<1x1x32xf32>
    %198 = vector.shape_cast %197 : vector<1x1x32xf32> to vector<1x32xf32>
    %199 = vector.broadcast %198 : vector<1x32xf32> to vector<16x32xf32>
    %200 = arith.addf %196, %199 : vector<16x32xf32>
    %c0_55 = arith.constant 0 : index
    %c0_56 = arith.constant 0 : index
    %201 = vector.load %arg8[%c0_55, %c0_56] : memref<32x64xf32, #tpu.memory_space<vmem>>, vector<32x64xf32>
    %cst_57 = arith.constant dense<0.000000e+00> : vector<16x64xf32>
    %202 = tpu.matmul %200, %201, %cst_57 {dimension_numbers = #tpu.dot_dimension_numbers<[1], [0], [0], [1], [0, 0, 1, 1], [], []>, precision = #tpu.contract_precision<fp32>} : vector<16x32xf32>, vector<32x64xf32>, vector<16x64xf32> -> vector<16x64xf32>
    %c0_58 = arith.constant 0 : index
    %c0_59 = arith.constant 0 : index
    %203 = vector.load %arg9[%c0_58, %c0_59] : memref<1x64xf32, #tpu.memory_space<vmem>>, vector<1x64xf32>
    %204 = vector.broadcast %203 : vector<1x64xf32> to vector<16x64xf32>
    %205 = arith.addf %202, %204 : vector<16x64xf32>
    %206 = arith.mulf %205, %205 : vector<16x64xf32>
    %207 = arith.mulf %205, %206 : vector<16x64xf32>
    %cst_60 = arith.constant 4.471500e-02 : f32
    %208 = vector.broadcast %cst_60 : f32 to vector<16x64xf32>
    %209 = arith.mulf %208, %207 : vector<16x64xf32>
    %210 = arith.addf %205, %209 : vector<16x64xf32>
    %cst_61 = arith.constant 0.797884583 : f32
    %211 = vector.broadcast %cst_61 : f32 to vector<16x64xf32>
    %212 = arith.mulf %211, %210 : vector<16x64xf32>
    %213 = math.tanh %212 : vector<16x64xf32>
    %cst_62 = arith.constant 1.000000e+00 : f32
    %214 = vector.broadcast %cst_62 : f32 to vector<16x64xf32>
    %215 = arith.addf %214, %213 : vector<16x64xf32>
    %cst_63 = arith.constant 5.000000e-01 : f32
    %216 = vector.broadcast %cst_63 : f32 to vector<16x64xf32>
    %217 = arith.mulf %216, %215 : vector<16x64xf32>
    %218 = arith.mulf %205, %217 : vector<16x64xf32>
    %c0_64 = arith.constant 0 : index
    %c0_65 = arith.constant 0 : index
    %219 = vector.load %arg10[%c0_64, %c0_65] : memref<64x32xf32, #tpu.memory_space<vmem>>, vector<64x32xf32>
    %cst_66 = arith.constant dense<0.000000e+00> : vector<16x32xf32>
    %220 = tpu.matmul %218, %219, %cst_66 {dimension_numbers = #tpu.dot_dimension_numbers<[1], [0], [0], [1], [0, 0, 1, 1], [], []>, precision = #tpu.contract_precision<fp32>} : vector<16x64xf32>, vector<64x32xf32>, vector<16x32xf32> -> vector<16x32xf32>
    %c0_67 = arith.constant 0 : index
    %c0_68 = arith.constant 0 : index
    %221 = vector.load %arg11[%c0_67, %c0_68] : memref<1x32xf32, #tpu.memory_space<vmem>>, vector<1x32xf32>
    %222 = vector.broadcast %221 : vector<1x32xf32> to vector<16x32xf32>
    %223 = arith.addf %220, %222 : vector<16x32xf32>
    %224 = arith.addf %176, %223 : vector<16x32xf32>
    %225 = vector.shape_cast %224 : vector<16x32xf32> to vector<2x8x32xf32>
    %c0_69 = arith.constant 0 : index
    %c0_70 = arith.constant 0 : index
    %c0_71 = arith.constant 0 : index
    %226 = vector.load %arg12[%c0_69, %c0_70, %c0_71] : memref<2x8x32xf32, #tpu.memory_space<vmem>>, vector<2x8x32xf32>
    tpu.vector_store %arg12[%c0_69, %c0_70, %c0_71], %225 {strides = array<i32>} : memref<2x8x32xf32, #tpu.memory_space<vmem>>, vector<2x8x32xf32>,
    return
  }
  func.func @transform_0(%arg0: i32) -> (i32, i32, i32) {
    %c0_i32 = arith.constant 0 : i32
    %c0_i32_0 = arith.constant 0 : i32
    %c0_i32_1 = arith.constant 0 : i32
    return %arg0, %c0_i32, %c0_i32_0 : i32, i32, i32
  }
  func.func @transform_1(%arg0: i32) -> (i32, i32, i32) {
    %c0_i32 = arith.constant 0 : i32
    %c0_i32_0 = arith.constant 0 : i32
    %c0_i32_1 = arith.constant 0 : i32
    return %arg0, %c0_i32, %c0_i32_0 : i32, i32, i32
  }
  func.func @transform_2(%arg0: i32) -> (i32, i32, i32) {
    %c0_i32 = arith.constant 0 : i32
    %c0_i32_0 = arith.constant 0 : i32
    %c0_i32_1 = arith.constant 0 : i32
    return %arg0, %c0_i32, %c0_i32_0 : i32, i32, i32
  }
  func.func @transform_3(%arg0: i32) -> (i32, i32) {
    %c0_i32 = arith.constant 0 : i32
    %c0_i32_0 = arith.constant 0 : i32
    %c0_i32_1 = arith.constant 0 : i32
    return %c0_i32, %c0_i32_0 : i32, i32
  }
  func.func @transform_4(%arg0: i32) -> (i32, i32, i32) {
    %c0_i32 = arith.constant 0 : i32
    %c0_i32_0 = arith.constant 0 : i32
    %c0_i32_1 = arith.constant 0 : i32
    %c0_i32_2 = arith.constant 0 : i32
    return %c0_i32, %c0_i32_0, %c0_i32_1 : i32, i32, i32
  }
  func.func @transform_5(%arg0: i32) -> (i32, i32, i32, i32) {
    %c0_i32 = arith.constant 0 : i32
    %c0_i32_0 = arith.constant 0 : i32
    %c0_i32_1 = arith.constant 0 : i32
    %c0_i32_2 = arith.constant 0 : i32
    %c0_i32_3 = arith.constant 0 : i32
    return %c0_i32, %c0_i32_0, %c0_i32_1, %c0_i32_2 : i32, i32, i32, i32
  }
  func.func @transform_6(%arg0: i32) -> (i32, i32, i32, i32) {
    %c0_i32 = arith.constant 0 : i32
    %c0_i32_0 = arith.constant 0 : i32
    %c0_i32_1 = arith.constant 0 : i32
    %c0_i32_2 = arith.constant 0 : i32
    %c0_i32_3 = arith.constant 0 : i32
    return %c0_i32, %c0_i32_0, %c0_i32_1, %c0_i32_2 : i32, i32, i32, i32
  }
  func.func @transform_7(%arg0: i32) -> (i32, i32) {
    %c0_i32 = arith.constant 0 : i32
    %c0_i32_0 = arith.constant 0 : i32
    %c0_i32_1 = arith.constant 0 : i32
    return %c0_i32, %c0_i32_0 : i32, i32
  }
  func.func @transform_8(%arg0: i32) -> (i32, i32) {
    %c0_i32 = arith.constant 0 : i32
    %c0_i32_0 = arith.constant 0 : i32
    %c0_i32_1 = arith.constant 0 : i32
    return %c0_i32, %c0_i32_0 : i32, i32
  }
  func.func @transform_9(%arg0: i32) -> (i32, i32) {
    %c0_i32 = arith.constant 0 : i32
    %c0_i32_0 = arith.constant 0 : i32
    %c0_i32_1 = arith.constant 0 : i32
    return %c0_i32, %c0_i32_0 : i32, i32
  }
  func.func @transform_10(%arg0: i32) -> (i32, i32) {
    %c0_i32 = arith.constant 0 : i32
    %c0_i32_0 = arith.constant 0 : i32
    %c0_i32_1 = arith.constant 0 : i32
    return %c0_i32, %c0_i32_0 : i32, i32
  }
  func.func @transform_11(%arg0: i32) -> (i32, i32, i32) {
    %c0_i32 = arith.constant 0 : i32
    %c0_i32_0 = arith.constant 0 : i32
    %c0_i32_1 = arith.constant 0 : i32
    return %arg0, %c0_i32, %c0_i32_0 : i32, i32, i32
  }
}

</mosaic_0001>

<bundles_post_ra>
// kernel: tpu_custom_call.1
= control target key start
LH: loop header
LB: loop body
LE: loop exit
PB: predicated region body
PF: predicated region fallthrough
CT: control target
= control target key end

     0   :  { %vm151_vm0 = vcmask 261120   ;;  %s16521_s0 = inlined_call_operand.vmem [shape: f32[2,8,32], index: 0, kind: input, shape index: {}]   ;;  %s16522_s1 = inlined_call_operand.vmem [shape: f32[2,8,32], index: 1, kind: input, shape index: {}]   ;;  %s16523_s2 = inlined_call_operand.vmem [shape: f32[2,1,8], index: 2, kind: input, shape index: {}]   ;;  %s16524_s3 = inlined_call_operand.vmem [shape: f32[8,8], index: 3, kind: input, shape index: {}]   ;;  %s16525_s4 = inlined_call_operand.vmem [shape: f32[4,2,32], index: 4, kind: input, shape index: {}]   ;;  %s16526_s5 = inlined_call_operand.vmem [shape: f32[2,12,32,8], index: 5, kind: input, shape index: {}]   ;;  %s16527_s6 = inlined_call_operand.vmem [shape: f32[2,4,8,32], index: 6, kind: input, shape index: {}]   ;;  %s16528_s7 = inlined_call_operand.vmem [shape: f32[32,64], index: 7, kind: input, shape index: {}]   ;;  %s16529_s8 = inlined_call_operand.vmem [shape: f32[1,64], index: 8, kind: input, shape index: {}]   ;;  %s16530_s9 = inlined_call_operand.vmem [shape: f32[64,32], index: 9, kind: input, shape index: {}]   ;;  %s16531_s10 = inlined_call_operand.vmem [shape: f32[1,32], index: 10, kind: input, shape index: {}]   ;;  %s16532_s11 = inlined_call_operand.hbm [shape: f32[2,8,32], index: 11, kind: output, shape index: {}]  }
   0x1   :  { %v39_v0 = vld [vmem:[%s16521_s0] sm:$0xff] }
   0x2   :  { %v152_v1 = vsel %vm151_vm0, %v39_v0, 0.0 }
   0x3   :  { %153 = vadd.xlane.f32.xlu0 %v152_v1 }
   0x4   :  { %16 = vsyncpa [#allocation3], 0  ;;  %v40_v2 = vld [vmem:[%s16521_s0 + $0x8] sm:$0xff]  ;;  %v12960_v4 = vmov 32.0   ;;  %v50_v21 = vld [vmem:[%s16526_s5 + $0x18] sm:$0xff]  ;;  %vm2808_vm8 = vcmask 64512  }
   0x5   :  { %v155_v3 = vsel %vm151_vm0, %v40_v2, 0.0  ;;  %12848 = vrcp.f32 %v12960_v4  ;;  %v227_v22 = vand.u32 4294901760, %v50_v21  ;;  %v49_v23 = vld [vmem:[%s16526_s5 + $0x10] sm:$0xff]  ;;  %v48_v26 = vld [vmem:[%s16526_s5 + $0x8] sm:$0xff]  ;;  %v47_v30 = vld [vmem:[%s16526_s5] sm:$0xff]  ;;  %s12828_s14 = sshll.u32 %s16532_s11, 4  ;;  %s12829_s14 = int_to_ptr.hbm [resolvable:$true] %s12828_s14 }
   0x6   :  { %v229_v25 = vand.u32 4294901760, %v49_v23  ;;  %v231_v29 = vand.u32 4294901760, %v48_v26  ;;  %v233_v34 = vand.u32 4294901760, %v47_v30  ;;  %v54_v47 = vld [vmem:[%s16526_s5 + $0x38] sm:$0xff]  ;;  %v53_v50 = vld [vmem:[%s16526_s5 + $0x30] sm:$0xff]  ;;  %v52_v53 = vld [vmem:[%s16526_s5 + $0x28] sm:$0xff] }
   0x7   :  { %v265_v24 = vsub.f32 %v50_v21, %v227_v22  ;;  %345 = vmatpush.msra.mxu3 %v227_v22  ;;  %228 = vmatpush.msra.mxu0 %v227_v22  ;;  %v13062_v49 = vand.u32 4294901760, %v54_v47  ;;  %v13071_v52 = vand.u32 4294901760, %v53_v50  ;;  %v13081_v56 = vand.u32 4294901760, %v52_v53  ;;  %v51_v58 = vld [vmem:[%s16526_s5 + $0x20] sm:$0xff]  ;;  %s12962_s15 = smov 128   ;;  %s12963_s16 = smov 8  }
   0x8   :  { %v271_v28 = vsub.f32 %v49_v23, %v229_v25  ;;  %v277_v33 = vsub.f32 %v48_v26, %v231_v29  ;;  %v283_v38 = vsub.f32 %v47_v30, %v233_v34  ;;  %v13095_v63 = vand.u32 4294901760, %v51_v58 }
   0x9   :  { %v266_v27 = vand.u32 4294901760, %v265_v24  ;;  %311 = vmatpush.msra.mxu2 %v265_v24  ;;  %347 = vmatpush.msra.mxu3 %v229_v25  ;;  %v13069_v51 = vsub.f32 %v54_v47, %v13062_v49  ;;  %v13079_v55 = vsub.f32 %v53_v50, %v13071_v52  ;;  %v13093_v62 = vsub.f32 %v52_v53, %v13081_v56 }
   0xa   :  { %230 = vmatpush.msra.mxu0 %v229_v25  ;;  %v272_v32 = vand.u32 4294901760, %v271_v28  ;;  %v278_v37 = vand.u32 4294901760, %v277_v33  ;;  %v284_v41 = vand.u32 4294901760, %v283_v38 }
   0xb   :  { %156 = vadd.xlane.f32.xlu0 %v155_v3  ;;  %v12849_v5 = vpop.eup %12848  ;;  %v267_v31 = vsub.f32 %v265_v24, %v266_v27  ;;  %314 = vmatpush.msra.mxu2 %v271_v28  ;;  %v482_v54 = vand.u32 4294901760, %v13069_v51  ;;  %v488_v61 = vand.u32 4294901760, %v13079_v55  ;;  %v494_v4 = vand.u32 4294901760, %v13093_v62 }
   0xc   :  { %v159_v6 = vmul.f32 32.0, %v12849_v5  ;;  %vm163_vm1 = vweird.f32 %v12849_v5  ;;  %349 = vmatpush.msra.mxu3 %v231_v29  ;;  %232 = vmatpush.msra.mxu0 %v231_v29  ;;  %v273_v36 = vsub.f32 %v271_v28, %v272_v32  ;;  %v279_v40 = vsub.f32 %v277_v33, %v278_v37 }
   0xd   :  { %v268_v35 = vand.u32 4294901760, %v267_v31  ;;  %317 = vmatpush.msra.mxu2 %v277_v33  ;;  %v285_v43 = vsub.f32 %v283_v38, %v284_v41  ;;  %v483_v60 = vsub.f32 %v13069_v51, %v482_v54  ;;  %v489_v3 = vsub.f32 %v13079_v55, %v488_v61 }
   0xe   :  { %v160_v7 = vsub.f32 1.0, %v159_v6  ;;  %351 = vmatpush.msra.mxu3 %v233_v34  ;;  %234 = vmatpush.msra.mxu0 %v233_v34  ;;  %v274_v39 = vand.u32 4294901760, %v273_v36  ;;  %v280_v42 = vand.u32 4294901760, %v279_v40  ;;  %v13103_v6 = vsub.f32 %v51_v58, %v13095_v63  ;;  %v58_v36 = vld [vmem:[%s16526_s5 + $0x58] sm:$0xff] }
   0xf   :  { %269 = vmatpush.msra.mxu1 %v268_v35  ;;  %320 = vmatpush.msra.mxu2 %v283_v38  ;;  %v286_v44 = vand.u32 4294901760, %v285_v43  ;;  %v56_v43 = vld [vmem:[%s16526_s5 + $0x48] sm:$0xff] }
  0x10   :  { %v161_v8 = vmul.f32 %v12849_v5, %v160_v7  ;;  %380 = vmatpush.msrb.mxu0 %v266_v27  ;;  %v490_v7 = vand.u32 4294901760, %v489_v3 }
  0x11   :  { %275 = vmatpush.msra.mxu1 %v274_v39  ;;  %444 = vmatpush.msrb.mxu2 %v13062_v49  ;;  %v57_v39 = vld [vmem:[%s16526_s5 + $0x50] sm:$0xff] }
  0x12   :  { %v162_v9 = vadd.f32 %v12849_v5, %v161_v8  ;;  %384 = vmatpush.msrb.mxu0 %v272_v32  ;;  %v495_v8 = vsub.f32 %v13093_v62, %v494_v4 }
  0x13   :  { %281 = vmatpush.msra.mxu1 %v280_v42  ;;  %446 = vmatpush.msrb.mxu2 %v13071_v52  ;;  %v13139_v42 = vand.u32 4294901760, %v57_v39 }
  0x14   :  { %v13032_v10 = vsel %vm163_vm1, %v12849_v5, %v162_v9  ;;  %388 = vmatpush.msrb.mxu0 %v278_v37  ;;  %v13126_v37 = vand.u32 4294901760, %v58_v36 }
  0x15   :  { %16552 = vst [vmem:[#allocation5_spill] sm:$0xff] %v13032_v10  ;;  %287 = vmatpush.msra.mxu1 %v286_v44  ;;  %448 = vmatpush.msrb.mxu2 %v13081_v56 }
  0x16   :  { %392 = vmatpush.msrb.mxu0 %v284_v41  ;;  %v13137_v41 = vsub.f32 %v58_v36, %v13126_v37  ;;  %v66_v36 = vld [vmem:[%s16526_s5 + $0x98] sm:$0xff] }
  0x17   :  { %415 = vmatpush.msrb.mxu1 %v227_v22  ;;  %450 = vmatpush.msrb.mxu2 %v13095_v63 }
  0x18   :  { %v698_v53 = vand.u32 4294901760, %v13137_v41 }
  0x19   :  { %417 = vmatpush.msrb.mxu1 %v229_v25 }
  0x1b   :  { %419 = vmatpush.msrb.mxu1 %v231_v29 }
  0x1d   :  { %421 = vmatpush.msrb.mxu1 %v233_v34 }
  0x76   :  { %v154_v11 = vpop.xlane.xlu0 %153 }
  0x77   :  { %v165_v12 = vmul.f32 %v13032_v10, %v154_v11  ;;  %v500_v11 = vand.u32 4294901760, %v13103_v6 }
  0x79   :  { %v13035_v13 = vsub.f32 %v39_v0, %v165_v12  ;;  %v496_v12 = vand.u32 4294901760, %v495_v8  ;;  %v61_v8 = vld [vmem:[%s16526_s5 + $0x70] sm:$0xff] }
  0x7b   :  { %v169_v14 = vmul.f32 %v13035_v13, %v13035_v13 }
  0x7d   :  { %v171_v15 = vsel %vm151_vm0, %v169_v14, 0.0 }
  0x7e   :  { %172 = vadd.xlane.f32.xlu1 %v171_v15  ;;  %v157_v16 = vpop.xlane.xlu0 %156  ;;  %v501_v15 = vsub.f32 %v13103_v6, %v500_v11 }
  0x7f   :  { %v166_v17 = vmul.f32 %v13032_v10, %v157_v16  ;;  %v43_v16 = vld [vmem:[%s16525_s4] sm:$0x3] }
  0x80   :  { %v203_v23 = vperm.slane %v43_v16, 0  ;;  %v206_v26 = vperm.slane %v43_v16, 1 }
  0x81   :  { %v13041_v18 = vsub.f32 %v40_v2, %v166_v17  ;;  %v484_v2 = vand.u32 4294901760, %v483_v60 }
  0x83   :  { %v170_v19 = vmul.f32 %v13041_v18, %v13041_v18  ;;  %485 = vmatpush.msrb.mxu3 %v484_v2 }
  0x85   :  { %v174_v20 = vsel %vm151_vm0, %v170_v19, 0.0  ;;  %491 = vmatpush.msrb.mxu3 %v490_v7  ;;  %v502_v19 = vand.u32 4294901760, %v501_v15  ;;  %v62_v7 = vld [vmem:[%s16526_s5 + $0x78] sm:$0xff] }
  0x86   :  { %175 = vadd.xlane.f32.xlu1 %v174_v20 }
  0x87   :  { %497 = vmatpush.msrb.mxu3 %v496_v12  ;;  %v13242_v12 = vand.u32 4294901760, %v61_v8 }
  0x89   :  { %503 = vmatpush.msrb.mxu3 %v502_v19  ;;  %v13250_v15 = vsub.f32 %v61_v8, %v13242_v12 }
  0xf1   :  { %v173_v45 = vpop.xlane.xlu1 %172 }
  0xf2   :  { %v177_v46 = vmul.f32 %v173_v45, %v13032_v10  ;;  %v13154_v45 = vsub.f32 %v57_v39, %v13139_v42 }
  0xf4   :  { %v179_v48 = vadd.f32 1e-05, %v177_v46  ;;  %v13156_v46 = vand.u32 4294901760, %v56_v43 }
  0xf6   :  { %12850 = vrsqrt.f32 %v179_v48  ;;  %vm187_vm3 = vweird.f32 %v179_v48  ;;  %v13176_v58 = vsub.f32 %v56_v43, %v13156_v46 }
  0xf9   :  { %v176_v57 = vpop.xlane.xlu1 %175 }
  0xfa   :  { %v178_v59 = vmul.f32 %v176_v57, %v13032_v10 }
  0xfc   :  { %v12851_v0 = vpop.eup %12850  ;;  %v180_v1 = vadd.f32 1e-05, %v178_v59 }
  0xfd   :  { %v182_v5 = vmul.f32 %v12851_v0, %v179_v48  ;;  %vm188_vm2 = vweird.f32 %v12851_v0  ;;  %v55_v48 = vld [vmem:[%s16526_s5 + $0x40] sm:$0xff] }
  0xfe   :  { %12852 = vrsqrt.f32 %v180_v1  ;;  %vm189_vm4 = vmor %vm187_vm3, %vm188_vm2  ;;  %vm197_vm6 = vweird.f32 %v180_v1  ;;  %v13178_v59 = vand.u32 4294901760, %v55_v48 }
  0xff   :  { %v183_v9 = vmul.f32 %v12851_v0, %v182_v5 }
 0x101   :  { %v184_v14 = vmul.f32 0.5, %v183_v9 }
 0x103   :  { %v185_v17 = vsub.f32 1.5, %v184_v14  ;;  %v60_v14 = vld [vmem:[%s16526_s5 + $0x68] sm:$0xff] }
 0x104   :  { %v12853_v20 = vpop.eup %12852  ;;  %v13252_v16 = vand.u32 4294901760, %v60_v14 }
 0x105   :  { %v186_v21 = vmul.f32 %v12851_v0, %v185_v17  ;;  %v192_v22 = vmul.f32 %v12853_v20, %v180_v1  ;;  %vm198_vm5 = vweird.f32 %v12853_v20  ;;  %v710_v1 = vand.u32 4294901760, %v13176_v58  ;;  %v59_v17 = vld [vmem:[%s16526_s5 + $0x60] sm:$0xff] }
 0x106   :  { %vm199_vm7 = vmor %vm197_vm6, %vm198_vm5 }
 0x107   :  { %v190_v24 = vsel %vm189_vm4, %v12851_v0, %v186_v21  ;;  %v193_v25 = vmul.f32 %v12853_v20, %v192_v22  ;;  %v13266_v21 = vsub.f32 %v60_v14, %v13252_v16  ;;  %v920_v22 = vand.u32 4294901760, %v13250_v15 }
 0x108   :  { %v201_v27 = vmul.f32 %v190_v24, %v13035_v13 }
 0x109   :  { %v194_v28 = vmul.f32 0.5, %v193_v25  ;;  %v926_v25 = vand.u32 4294901760, %v13266_v21 }
 0x10a   :  { %v204_v29 = vmul.f32 %v203_v23, %v201_v27 }
 0x10b   :  { %v195_v30 = vsub.f32 1.5, %v194_v28 }
 0x10c   :  { %v13116_v31 = vadd.f32 %v206_v26, %v204_v29  ;;  %v927_v29 = vsub.f32 %v13266_v21, %v926_v25 }
 0x10d   :  { %v196_v32 = vmul.f32 %v12853_v20, %v195_v30 }
 0x10e   :  { %16553 = vst [vmem:[#allocation6_spill] sm:$0xff] %v13116_v31  ;;  %v210_v33 = vsel %vm151_vm0, %v13116_v31, 0 }
 0x10f   :  { %v13120_v34 = vand.u32 4294901760, %v210_v33  ;;  %v200_v35 = vsel %vm199_vm7, %v12853_v20, %v196_v32  ;;  %v13261_v20 = vand.u32 4294901760, %v59_v17 }
 0x110   :  { %v202_v13 = vmul.f32 %v200_v35, %v13041_v18 }
 0x111   :  { %v13129_v38 = vsub.f32 %v210_v33, %v13120_v34  ;;  %289 = vmatmul.f32.vlgmr.msra.gmra.mxu1 %v13120_v34  ;;  %v13276_v24 = vsub.f32 %v59_v17, %v13261_v20  ;;  %v928_v33 = vand.u32 4294901760, %v927_v29  ;;  %v74_v29 = vld [vmem:[%s16526_s5 + $0xd8] sm:$0xff] }
 0x112   :  { %v205_v40 = vmul.f32 %v203_v23, %v202_v13  ;;  %561 = vmatpush.msra.mxu1 %v13062_v49  ;;  %v13311_v13 = vand.u32 4294901760, %v66_v36 }
 0x113   :  { %323 = vmatmul.f32.vlgmr.msra.gmra.mxu2 %v13129_v38  ;;  %v13143_v18 = vand.u32 4294901760, %v13129_v38  ;;  %v932_v28 = vand.u32 4294901760, %v13276_v24 }
 0x114   :  { %v13148_v44 = vadd.f32 %v206_v26, %v205_v40  ;;  %596 = vmatpush.msra.mxu2 %v482_v54  ;;  %563 = vmatpush.msra.mxu1 %v13071_v52  ;;  %v921_v26 = vsub.f32 %v13250_v15, %v920_v22  ;;  %v13320_v39 = vsub.f32 %v66_v36, %v13311_v13  ;;  %v72_v36 = vld [vmem:[%s16526_s5 + $0xc8] sm:$0xff] }
 0x115   :  { %355 = vmatmul.f32.vlgmr.msra.gmra.mxu3 %v13143_v18  ;;  %v238_v47 = vsub.f32 %v13129_v38, %v13143_v18  ;;  %v933_v32 = vsub.f32 %v13276_v24, %v932_v28 }
 0x116   :  { %16554 = vst [vmem:[#allocation7_spill] sm:$0xff] %v13148_v44  ;;  %v213_v50 = vsel %vm151_vm0, %v13148_v44, 0  ;;  %631 = vmatpush.msra.mxu3 %v13062_v49  ;;  %600 = vmatpush.msra.mxu2 %v488_v61  ;;  %v704_v49 = vand.u32 4294901760, %v13154_v45  ;;  %v13195_v61 = vsub.f32 %v55_v48, %v13178_v59  ;;  %v922_v30 = vand.u32 4294901760, %v921_v26 }
 0x117   :  { %v13170_v54 = vand.u32 4294901760, %v213_v50  ;;  %v13172_v57 = vand.u32 4294901760, %v238_v47  ;;  %565 = vmatpush.msra.mxu1 %v13081_v56  ;;  %v934_v35 = vand.u32 4294901760, %v933_v32  ;;  %v73_v32 = vld [vmem:[%s16526_s5 + $0xd0] sm:$0xff] }
 0x118   :  { %633 = vmatpush.msra.mxu3 %v13071_v52  ;;  %604 = vmatpush.msra.mxu2 %v494_v4  ;;  %v699_v52 = vsub.f32 %v13137_v41, %v698_v53  ;;  %v716_v3 = vand.u32 4294901760, %v13195_v61  ;;  %v711_v4 = vsub.f32 %v13176_v58, %v710_v1 }
 0x119   :  { %v13185_v60 = vsub.f32 %v213_v50, %v13170_v54  ;;  %240 = vmatmul.f32.vlgmr.msra.gmra.mxu0 %v13172_v57  ;;  %293 = vmatmul.f32.gmra.mxu1 %v13170_v54 }
 0x11a   :  { %527 = vmatpush.msra.mxu0 %v13069_v51  ;;  %567 = vmatpush.msra.mxu1 %v13095_v63  ;;  %v705_v51 = vsub.f32 %v13154_v45, %v704_v49 }
 0x11b   :  { %328 = vmatmul.f32.gmra.mxu2 %v13185_v60  ;;  %v13199_v0 = vand.u32 4294901760, %v13185_v60  ;;  %635 = vmatpush.msra.mxu3 %v13081_v56  ;;  %v700_v56 = vand.u32 4294901760, %v699_v52 }
 0x11c   :  { %530 = vmatpush.msra.mxu0 %v13079_v55  ;;  %608 = vmatpush.msra.mxu2 %v500_v11  ;;  %v706_v5 = vand.u32 4294901760, %v705_v51 }
 0x11d   :  { %361 = vmatmul.f32.gmra.mxu3 %v13199_v0  ;;  %v246_v2 = vsub.f32 %v13185_v60, %v13199_v0 }
 0x11e   :  { %533 = vmatpush.msra.mxu0 %v13093_v62  ;;  %637 = vmatpush.msra.mxu3 %v13095_v63  ;;  %v717_v62 = vsub.f32 %v13195_v61, %v716_v3  ;;  %v712_v63 = vand.u32 4294901760, %v711_v4 }
 0x11f   :  { %v13215_v55 = vand.u32 4294901760, %v246_v2 }
 0x120   :  { %536 = vmatpush.msra.mxu0 %v13103_v6  ;;  %v13231_v6 = vand.u32 4294901760, %v62_v7  ;;  %v718_v9 = vand.u32 4294901760, %v717_v62 }
 0x121   :  { %248 = vmatmul.f32.gmra.mxu0 %v13215_v55  ;;  %423 = vmatmul.f32.vlgmr.msrb.gmra.mxu1 %v13120_v34 }
 0x122   :  { %701 = vmatpush.msrb.mxu1 %v700_v56  ;;  %v13240_v11 = vsub.f32 %v62_v7, %v13231_v6 }
 0x123   :  { %456 = vmatmul.f32.vlgmr.msrb.gmra.mxu2 %v13172_v57 }
 0x124   :  { %743 = vmatpush.msrb.mxu2 %v13137_v41  ;;  %707 = vmatpush.msrb.mxu1 %v706_v5  ;;  %v914_v19 = vand.u32 4294901760, %v13240_v11  ;;  %v64_v41 = vld [vmem:[%s16526_s5 + $0x88] sm:$0xff]  ;;  %v69_v5 = vld [vmem:[%s16526_s5 + $0xb0] sm:$0xff] }
 0x125   :  { %505 = vmatmul.f32.vlgmr.msrb.gmra.mxu3 %v13120_v34  ;;  %v13332_v43 = vand.u32 4294901760, %v64_v41  ;;  %v13394_v7 = vand.u32 4294901760, %v69_v5 }
 0x126   :  { %777 = vmatpush.msrb.mxu3 %v13126_v37  ;;  %746 = vmatpush.msrb.mxu2 %v13154_v45  ;;  %v915_v23 = vsub.f32 %v13240_v11, %v914_v19  ;;  %v63_v45 = vld [vmem:[%s16526_s5 + $0x80] sm:$0xff] }
 0x127   :  { %713 = vmatpush.msrb.mxu1 %v712_v63  ;;  %v13340_v47 = vand.u32 4294901760, %v63_v45  ;;  %v13344_v48 = vsub.f32 %v64_v41, %v13332_v43  ;;  %v13402_v8 = vsub.f32 %v69_v5, %v13394_v7 }
 0x128   :  { %779 = vmatpush.msrb.mxu3 %v13139_v42  ;;  %749 = vmatpush.msrb.mxu2 %v13176_v58  ;;  %v916_v27 = vand.u32 4294901760, %v915_v23 }
 0x129   :  { %394 = vmatmul.f32.vlgmr.msrb.gmra.mxu0 %v13120_v34  ;;  %427 = vmatmul.f32.gmra.mxu1 %v13170_v54  ;;  %v13356_v58 = vsub.f32 %v63_v45, %v13340_v47 }
 0x12a   :  { %660 = vmatpush.msrb.mxu0 %v13126_v37  ;;  %719 = vmatpush.msrb.mxu1 %v718_v9 }
 0x12b   :  { %464 = vmatmul.f32.gmra.mxu2 %v13215_v55  ;;  %781 = vmatpush.msrb.mxu3 %v13156_v46 }
 0x12c   :  { %662 = vmatpush.msrb.mxu0 %v13139_v42  ;;  %752 = vmatpush.msrb.mxu2 %v13195_v61  ;;  %v1148_v61 = vand.u32 4294901760, %v13356_v58 }
 0x12d   :  { %509 = vmatmul.f32.gmra.mxu3 %v13170_v54 }
 0x12e   :  { %664 = vmatpush.msrb.mxu0 %v13156_v46  ;;  %783 = vmatpush.msrb.mxu3 %v13178_v59  ;;  %v1149_v2 = vsub.f32 %v13356_v58, %v1148_v61 }
 0x130   :  { %666 = vmatpush.msrb.mxu0 %v13178_v59  ;;  %v1150_v62 = vand.u32 4294901760, %v1149_v2  ;;  %v77_v2 = vld [vmem:[%s16526_s5 + $0xf0] sm:$0xff] }
 0x131   :  { %398 = vmatmul.f32.gmra.mxu0 %v13170_v54  ;;  %571 = vmatmul.f32.vlgmr.msra.gmra.mxu1 %v13143_v18 }
 0x132   :  { %847 = vmatpush.msra.mxu1 %v13126_v37  ;;  %v65_v37 = vld [vmem:[%s16526_s5 + $0x90] sm:$0xff] }
 0x133   :  { %610 = vmatmul.f32.vlgmr.msra.gmra.mxu2 %v13120_v34  ;;  %v13322_v40 = vand.u32 4294901760, %v65_v37 }
 0x134   :  { %876 = vmatpush.msra.mxu2 %v13231_v6  ;;  %849 = vmatpush.msra.mxu1 %v13139_v42 }
 0x135   :  { %639 = vmatmul.f32.vlgmr.msra.gmra.mxu3 %v13120_v34  ;;  %v13330_v42 = vsub.f32 %v65_v37, %v13322_v40  ;;  %v13485_v37 = vand.u32 4294901760, %v72_v36 }
 0x136   :  { %917 = vmatpush.msra.mxu3 %v916_v27  ;;  %878 = vmatpush.msra.mxu2 %v13242_v12 }
 0x137   :  { %851 = vmatpush.msra.mxu1 %v13156_v46  ;;  %v1130_v46 = vand.u32 4294901760, %v13320_v39  ;;  %v1136_v50 = vand.u32 4294901760, %v13330_v42  ;;  %v13494_v41 = vsub.f32 %v72_v36, %v13485_v37 }
 0x138   :  { %923 = vmatpush.msra.mxu3 %v922_v30  ;;  %880 = vmatpush.msra.mxu2 %v13252_v16  ;;  %v13465_v30 = vand.u32 4294901760, %v74_v29 }
 0x139   :  { %539 = vmatmul.f32.vlgmr.msra.gmra.mxu0 %v13129_v38  ;;  %577 = vmatmul.f32.gmra.mxu1 %v13199_v0 }
 0x13a   :  { %812 = vmatpush.msra.mxu0 %v698_v53  ;;  %853 = vmatpush.msra.mxu1 %v13178_v59  ;;  %v1131_v53 = vsub.f32 %v13320_v39, %v1130_v46  ;;  %v1142_v59 = vand.u32 4294901760, %v13344_v48 }
 0x13b   :  { %614 = vmatmul.f32.gmra.mxu2 %v13170_v54  ;;  %929 = vmatpush.msra.mxu3 %v928_v33  ;;  %v13473_v33 = vsub.f32 %v74_v29, %v13465_v30 }
 0x13c   :  { %816 = vmatpush.msra.mxu0 %v704_v49  ;;  %882 = vmatpush.msra.mxu2 %v13261_v20  ;;  %v1137_v49 = vsub.f32 %v13330_v42, %v1136_v50  ;;  %v1132_v52 = vand.u32 4294901760, %v1131_v53 }
 0x13d   :  { %643 = vmatmul.f32.gmra.mxu3 %v13170_v54 }
 0x13e   :  { %820 = vmatpush.msra.mxu0 %v710_v1  ;;  %935 = vmatpush.msra.mxu3 %v934_v35  ;;  %v1143_v1 = vsub.f32 %v13344_v48, %v1142_v59  ;;  %v1138_v51 = vand.u32 4294901760, %v1137_v49  ;;  %v13475_v35 = vand.u32 4294901760, %v73_v32 }
 0x140   :  { %824 = vmatpush.msra.mxu0 %v716_v3  ;;  %v1144_v56 = vand.u32 4294901760, %v1143_v1  ;;  %v70_v3 = vld [vmem:[%s16526_s5 + $0xb8] sm:$0xff] }
 0x141   :  { %544 = vmatmul.f32.gmra.mxu0 %v13185_v60  ;;  %721 = vmatmul.f32.vlgmr.msrb.gmra.mxu1 %v13120_v34  ;;  %v13383_v4 = vand.u32 4294901760, %v70_v3 }
 0x142   :  { %993 = vmatpush.msrb.mxu1 %v13231_v6 }
 0x143   :  { %755 = vmatmul.f32.vlgmr.msrb.gmra.mxu2 %v13129_v38  ;;  %v13392_v63 = vsub.f32 %v70_v3, %v13383_v4  ;;  %v13546_v3 = vand.u32 4294901760, %v77_v2 }
 0x144   :  { %1028 = vmatpush.msrb.mxu2 %v914_v19  ;;  %995 = vmatpush.msrb.mxu1 %v13242_v12 }
 0x145   :  { %787 = vmatmul.f32.vlgmr.msrb.gmra.mxu3 %v13143_v18  ;;  %v13556_v5 = vsub.f32 %v77_v2, %v13546_v3 }
 0x146   :  { %1063 = vmatpush.msrb.mxu3 %v13231_v6  ;;  %1032 = vmatpush.msrb.mxu2 %v920_v22  ;;  %v68_v6 = vld [vmem:[%s16526_s5 + $0xa8] sm:$0xff] }
 0x147   :  { %997 = vmatpush.msrb.mxu1 %v13252_v16  ;;  %v13404_v9 = vand.u32 4294901760, %v68_v6 }
 0x148   :  { %1065 = vmatpush.msrb.mxu3 %v13242_v12  ;;  %1036 = vmatpush.msrb.mxu2 %v926_v25  ;;  %v1346_v12 = vand.u32 4294901760, %v13392_v63 }
 0x149   :  { %672 = vmatmul.f32.vlgmr.msrb.gmra.mxu0 %v13172_v57  ;;  %725 = vmatmul.f32.gmra.mxu1 %v13170_v54 }
 0x14a   :  { %959 = vmatpush.msrb.mxu0 %v13240_v11  ;;  %999 = vmatpush.msrb.mxu1 %v13261_v20  ;;  %v67_v11 = vld [vmem:[%s16526_s5 + $0xa0] sm:$0xff]  ;;  %v1347_v17 = vsub.f32 %v13392_v63, %v1346_v12 }
 0x14b   :  { %760 = vmatmul.f32.gmra.mxu2 %v13185_v60  ;;  %1067 = vmatpush.msrb.mxu3 %v13252_v16  ;;  %v13413_v14 = vand.u32 4294901760, %v67_v11  ;;  %v1352_v16 = vand.u32 4294901760, %v13402_v8 }
 0x14c   :  { %962 = vmatpush.msrb.mxu0 %v13250_v15  ;;  %1040 = vmatpush.msrb.mxu2 %v932_v28  ;;  %v13418_v15 = vsub.f32 %v68_v6, %v13404_v9  ;;  %v1348_v22 = vand.u32 4294901760, %v1347_v17 }
 0x14d   :  { %793 = vmatmul.f32.gmra.mxu3 %v13199_v0  ;;  %v13428_v19 = vsub.f32 %v67_v11, %v13413_v14 }
 0x14e   :  { %965 = vmatpush.msrb.mxu0 %v13266_v21  ;;  %1069 = vmatpush.msrb.mxu3 %v13261_v20  ;;  %v1358_v20 = vand.u32 4294901760, %v13418_v15  ;;  %v1353_v21 = vsub.f32 %v13402_v8, %v1352_v16 }
 0x14f   :  { %v1364_v23 = vand.u32 4294901760, %v13428_v19 }
 0x150   :  { %968 = vmatpush.msrb.mxu0 %v13276_v24  ;;  %v1359_v24 = vsub.f32 %v13418_v15, %v1358_v20  ;;  %v1354_v25 = vand.u32 4294901760, %v1353_v21 }
 0x151   :  { %680 = vmatmul.f32.gmra.mxu0 %v13215_v55  ;;  %855 = vmatmul.f32.vlgmr.msra.gmra.mxu1 %v13120_v34  ;;  %v1365_v26 = vsub.f32 %v13428_v19, %v1364_v23 }
 0x152   :  { %1133 = vmatpush.msra.mxu1 %v1132_v52  ;;  %v1360_v27 = vand.u32 4294901760, %v1359_v24 }
 0x153   :  { %888 = vmatmul.f32.vlgmr.msra.gmra.mxu2 %v13172_v57  ;;  %v1366_v28 = vand.u32 4294901760, %v1365_v26 }
 0x154   :  { %1175 = vmatpush.msra.mxu2 %v13320_v39  ;;  %1139 = vmatpush.msra.mxu1 %v1138_v51  ;;  %v1562_v39 = vand.u32 4294901760, %v13473_v33 }
 0x155   :  { %937 = vmatmul.f32.vlgmr.msra.gmra.mxu3 %v13120_v34 }
 0x156   :  { %1209 = vmatpush.msra.mxu3 %v13311_v13  ;;  %1178 = vmatpush.msra.mxu2 %v13330_v42  ;;  %v1563_v45 = vsub.f32 %v13473_v33, %v1562_v39 }
 0x157   :  { %1145 = vmatpush.msra.mxu1 %v1144_v56 }
 0x158   :  { %1211 = vmatpush.msra.mxu3 %v13322_v40  ;;  %1181 = vmatpush.msra.mxu2 %v13344_v48 }
 0x159   :  { %826 = vmatmul.f32.vlgmr.msra.gmra.mxu0 %v13120_v34  ;;  %859 = vmatmul.f32.gmra.mxu1 %v13170_v54 }
 0x15a   :  { %1092 = vmatpush.msra.mxu0 %v13311_v13  ;;  %1151 = vmatpush.msra.mxu1 %v1150_v62 }
 0x15b   :  { %896 = vmatmul.f32.gmra.mxu2 %v13215_v55  ;;  %1213 = vmatpush.msra.mxu3 %v13332_v43 }
 0x15c   :  { %1094 = vmatpush.msra.mxu0 %v13322_v40  ;;  %1184 = vmatpush.msra.mxu2 %v13356_v58 }
 0x15d   :  { %941 = vmatmul.f32.gmra.mxu3 %v13170_v54 }
 0x15e   :  { %1096 = vmatpush.msra.mxu0 %v13332_v43  ;;  %1215 = vmatpush.msra.mxu3 %v13340_v47 }
 0x160   :  { %1098 = vmatpush.msra.mxu0 %v13340_v47 }
 0x161   :  { %830 = vmatmul.f32.gmra.mxu0 %v13170_v54  ;;  %1003 = vmatmul.f32.vlgmr.msrb.gmra.mxu1 %v13143_v18 }
 0x162   :  { %1279 = vmatpush.msrb.mxu1 %v13311_v13  ;;  %v13483_v13 = vsub.f32 %v73_v32, %v13475_v35 }
 0x163   :  { %1042 = vmatmul.f32.vlgmr.msrb.gmra.mxu2 %v13120_v34 }
 0x164   :  { %1308 = vmatpush.msrb.mxu2 %v13383_v4  ;;  %1281 = vmatpush.msrb.mxu1 %v13322_v40  ;;  %v71_v40 = vld [vmem:[%s16526_s5 + $0xc0] sm:$0xff] }
 0x165   :  { %1071 = vmatmul.f32.vlgmr.msrb.gmra.mxu3 %v13120_v34  ;;  %v13496_v42 = vand.u32 4294901760, %v71_v40 }
 0x166   :  { %1349 = vmatpush.msrb.mxu3 %v1348_v22  ;;  %1310 = vmatpush.msrb.mxu2 %v13394_v7 }
 0x167   :  { %1283 = vmatpush.msrb.mxu1 %v13332_v43  ;;  %v1568_v43 = vand.u32 4294901760, %v13483_v13 }
 0x168   :  { %1355 = vmatpush.msrb.mxu3 %v1354_v25  ;;  %1312 = vmatpush.msrb.mxu2 %v13404_v9 }
 0x169   :  { %971 = vmatmul.f32.vlgmr.msrb.gmra.mxu0 %v13129_v38  ;;  %1009 = vmatmul.f32.gmra.mxu1 %v13199_v0  ;;  %v1569_v48 = vsub.f32 %v13483_v13, %v1568_v43 }
 0x16a   :  { %1244 = vmatpush.msrb.mxu0 %v1130_v46  ;;  %1285 = vmatpush.msrb.mxu1 %v13340_v47  ;;  %v13508_v46 = vsub.f32 %v71_v40, %v13496_v42  ;;  %v1574_v47 = vand.u32 4294901760, %v13494_v41 }
 0x16b   :  { %1046 = vmatmul.f32.gmra.mxu2 %v13170_v54  ;;  %1361 = vmatpush.msrb.mxu3 %v1360_v27 }
 0x16c   :  { %1248 = vmatpush.msrb.mxu0 %v1136_v50  ;;  %1314 = vmatpush.msrb.mxu2 %v13413_v14  ;;  %v1564_v50 = vand.u32 4294901760, %v1563_v45  ;;  %v1580_v53 = vand.u32 4294901760, %v13508_v46  ;;  %v1575_v58 = vsub.f32 %v13494_v41, %v1574_v47 }
 0x16d   :  { %1075 = vmatmul.f32.gmra.mxu3 %v13170_v54 }
 0x16e   :  { %1252 = vmatpush.msrb.mxu0 %v1142_v59  ;;  %1367 = vmatpush.msrb.mxu3 %v1366_v28  ;;  %v1570_v59 = vand.u32 4294901760, %v1569_v48  ;;  %v1581_v49 = vsub.f32 %v13508_v46, %v1580_v53  ;;  %v1576_v52 = vand.u32 4294901760, %v1575_v58 }
 0x170   :  { %1256 = vmatpush.msrb.mxu0 %v1148_v61  ;;  %v78_v61 = vld [vmem:[%s16526_s5 + $0xf8] sm:$0xff]  ;;  %v1582_v51 = vand.u32 4294901760, %v1581_v49  ;;  %v79_v49 = vld [vmem:[%s16526_s5 + $0x100] sm:$0xff] }
 0x171   :  { %976 = vmatmul.f32.gmra.mxu0 %v13185_v60  ;;  %1153 = vmatmul.f32.vlgmr.msra.gmra.mxu1 %v13120_v34  ;;  %v13536_v1 = vand.u32 4294901760, %v78_v61 }
 0x172   :  { %1425 = vmatpush.msra.mxu1 %v13383_v4 }
 0x173   :  { %1187 = vmatmul.f32.vlgmr.msra.gmra.mxu2 %v13129_v38  ;;  %v13544_v56 = vsub.f32 %v78_v61, %v13536_v1 }
 0x174   :  { %1460 = vmatpush.msra.mxu2 %v1346_v12  ;;  %1427 = vmatpush.msra.mxu1 %v13394_v7 }
 0x175   :  { %1219 = vmatmul.f32.vlgmr.msra.gmra.mxu3 %v13143_v18 }
 0x176   :  { %1495 = vmatpush.msra.mxu3 %v13383_v4  ;;  %1464 = vmatpush.msra.mxu2 %v1352_v16  ;;  %v76_v4 = vld [vmem:[%s16526_s5 + $0xe8] sm:$0xff] }
 0x177   :  { %1429 = vmatpush.msra.mxu1 %v13404_v9  ;;  %v13558_v62 = vand.u32 4294901760, %v76_v4 }
 0x178   :  { %1497 = vmatpush.msra.mxu3 %v13394_v7  ;;  %1468 = vmatpush.msra.mxu2 %v1358_v20  ;;  %v75_v7 = vld [vmem:[%s16526_s5 + $0xe0] sm:$0xff] }
 0x179   :  { %1104 = vmatmul.f32.vlgmr.msra.gmra.mxu0 %v13172_v57  ;;  %1157 = vmatmul.f32.gmra.mxu1 %v13170_v54  ;;  %v13568_v6 = vsub.f32 %v76_v4, %v13558_v62  ;;  %v13664_v4 = vand.u32 4294901760, %v79_v49 }
 0x17a   :  { %1391 = vmatpush.msra.mxu0 %v13392_v63  ;;  %1431 = vmatpush.msra.mxu1 %v13413_v14  ;;  %v1778_v63 = vand.u32 4294901760, %v13544_v56 }
 0x17b   :  { %1192 = vmatmul.f32.gmra.mxu2 %v13185_v60  ;;  %1499 = vmatpush.msra.mxu3 %v13404_v9  ;;  %v1784_v9 = vand.u32 4294901760, %v13556_v5 }
 0x17c   :  { %1394 = vmatpush.msra.mxu0 %v13402_v8  ;;  %1472 = vmatpush.msra.mxu2 %v1364_v23  ;;  %v13570_v8 = vand.u32 4294901760, %v75_v7  ;;  %v1779_v12 = vsub.f32 %v13544_v56, %v1778_v63 }
 0x17d   :  { %1225 = vmatmul.f32.gmra.mxu3 %v13199_v0  ;;  %v1785_v16 = vsub.f32 %v13556_v5, %v1784_v9 }
 0x17e   :  { %1397 = vmatpush.msra.mxu0 %v13418_v15  ;;  %1501 = vmatpush.msra.mxu3 %v13413_v14  ;;  %v13582_v14 = vsub.f32 %v75_v7, %v13570_v8  ;;  %v1790_v15 = vand.u32 4294901760, %v13568_v6  ;;  %v1780_v17 = vand.u32 4294901760, %v1779_v12 }
 0x17f   :  { %v1786_v21 = vand.u32 4294901760, %v1785_v16 }
 0x180   :  { %1400 = vmatpush.msra.mxu0 %v13428_v19  ;;  %v1796_v19 = vand.u32 4294901760, %v13582_v14  ;;  %v1791_v20 = vsub.f32 %v13568_v6, %v1790_v15 }
 0x181   :  { %1112 = vmatmul.f32.gmra.mxu0 %v13215_v55  ;;  %1287 = vmatmul.f32.vlgmr.msrb.gmra.mxu1 %v13120_v34 }
 0x182   :  { %1565 = vmatpush.msrb.mxu1 %v1564_v50  ;;  %v1797_v24 = vsub.f32 %v13582_v14, %v1796_v19  ;;  %v1792_v27 = vand.u32 4294901760, %v1791_v20 }
 0x183   :  { %1320 = vmatmul.f32.vlgmr.msrb.gmra.mxu2 %v13172_v57 }
 0x184   :  { %1607 = vmatpush.msrb.mxu2 %v13473_v33  ;;  %1571 = vmatpush.msrb.mxu1 %v1570_v59 }
 0x185   :  { %1369 = vmatmul.f32.vlgmr.msrb.gmra.mxu3 %v13120_v34 }
 0x186   :  { %1641 = vmatpush.msrb.mxu3 %v13465_v30  ;;  %1610 = vmatpush.msrb.mxu2 %v13483_v13  ;;  %v82_v13 = vld [vmem:[%s16526_s5 + $0x118] sm:$0xff] }
 0x187   :  { %1577 = vmatpush.msrb.mxu1 %v1576_v52 }
 0x188   :  { %1643 = vmatpush.msrb.mxu3 %v13475_v35  ;;  %1613 = vmatpush.msrb.mxu2 %v13494_v41  ;;  %v81_v41 = vld [vmem:[%s16526_s5 + $0x110] sm:$0xff] }
 0x189   :  { %1258 = vmatmul.f32.vlgmr.msrb.gmra.mxu0 %v13120_v34  ;;  %1291 = vmatmul.f32.gmra.mxu1 %v13170_v54 }
 0x18a   :  { %1524 = vmatpush.msrb.mxu0 %v13465_v30  ;;  %1583 = vmatpush.msrb.mxu1 %v1582_v51 }
 0x18b   :  { %1328 = vmatmul.f32.gmra.mxu2 %v13215_v55  ;;  %1645 = vmatpush.msrb.mxu3 %v13485_v37 }
 0x18c   :  { %1526 = vmatpush.msrb.mxu0 %v13475_v35  ;;  %1616 = vmatpush.msrb.mxu2 %v13508_v46  ;;  %v13635_v46 = vand.u32 4294901760, %v81_v41 }
 0x18d   :  { %1373 = vmatmul.f32.gmra.mxu3 %v13170_v54 }
 0x18e   :  { %v290_v11 = vpop.f32.mrf.mxu1  ;;  %1528 = vmatpush.msrb.mxu0 %v13485_v37  ;;  %1647 = vmatpush.msrb.mxu3 %v13496_v42  ;;  %v13645_v48 = vsub.f32 %v81_v41, %v13635_v46  ;;  %v83_v41 = vld [vmem:[%s16526_s5 + $0x120] sm:$0xff] }
 0x190   :  { %1530 = vmatpush.msrb.mxu0 %v13496_v42 }
 0x191   :  { %1262 = vmatmul.f32.gmra.mxu0 %v13170_v54  ;;  %1435 = vmatmul.f32.vlgmr.msra.gmra.mxu1 %v13143_v18 }
 0x192   :  { %1711 = vmatpush.msra.mxu1 %v13465_v30  ;;  %v1798_v30 = vand.u32 4294901760, %v1797_v24 }
 0x193   :  { %1474 = vmatmul.f32.vlgmr.msra.gmra.mxu2 %v13120_v34 }
 0x194   :  { %1740 = vmatpush.msra.mxu2 %v13536_v1  ;;  %1713 = vmatpush.msra.mxu1 %v13475_v35 }
 0x195   :  { %1503 = vmatmul.f32.vlgmr.msra.gmra.mxu3 %v13120_v34 }
 0x196   :  { %v241_v22 = vpop.f32.mrf.mxu0  ;;  %v294_v23 = vpop.f32.mrf.mxu1  ;;  %1781 = vmatpush.msra.mxu3 %v1780_v17  ;;  %1742 = vmatpush.msra.mxu2 %v13546_v3 }
 0x197   :  { %v291_v25 = vadd.f32 %v290_v11, %v241_v22  ;;  %v324_v26 = vpop.f32.mrf.mxu2  ;;  %1715 = vmatpush.msra.mxu1 %v13485_v37 }
 0x198   :  { %v356_v28 = vpop.f32.mrf.mxu3  ;;  %1787 = vmatpush.msra.mxu3 %v1786_v21  ;;  %1744 = vmatpush.msra.mxu2 %v13558_v62 }
 0x199   :  { %v325_v29 = vadd.f32 %v324_v26, %v291_v25  ;;  %1403 = vmatmul.f32.vlgmr.msra.gmra.mxu0 %v13129_v38  ;;  %1441 = vmatmul.f32.gmra.mxu1 %v13199_v0 }
 0x19a   :  { %1676 = vmatpush.msra.mxu0 %v1562_v39  ;;  %1717 = vmatpush.msra.mxu1 %v13496_v42  ;;  %v13625_v42 = vand.u32 4294901760, %v82_v13 }
 0x19b   :  { %v357_v32 = vadd.f32 %v356_v28, %v325_v29  ;;  %1478 = vmatmul.f32.gmra.mxu2 %v13170_v54  ;;  %1793 = vmatpush.msra.mxu3 %v1792_v27  ;;  %v85_v28 = vld [vmem:[%s16526_s5 + $0x130] sm:$0xff] }
 0x19c   :  { %1680 = vmatpush.msra.mxu0 %v1568_v43  ;;  %1746 = vmatpush.msra.mxu2 %v13570_v8  ;;  %v13633_v45 = vsub.f32 %v82_v13, %v13625_v42 }
 0x19d   :  { %1507 = vmatmul.f32.gmra.mxu3 %v13170_v54 }
 0x19e   :  { %v249_v35 = vpop.f32.mrf.mxu0  ;;  %v424_v36 = vpop.f32.mrf.mxu1  ;;  %1684 = vmatpush.msra.mxu0 %v1574_v47  ;;  %1799 = vmatpush.msra.mxu3 %v1798_v30  ;;  %v80_v47 = vld [vmem:[%s16526_s5 + $0x108] sm:$0xff]  ;;  %v1994_v59 = vand.u32 4294901760, %v13633_v45 }
 0x19f   :  { %v295_v33 = vadd.f32 %v294_v23, %v249_v35  ;;  %v329_v37 = vpop.f32.mrf.mxu2  ;;  %v13647_v50 = vand.u32 4294901760, %v80_v47  ;;  %v13718_v35 = vand.u32 4294901760, %v85_v28 }
 0x1a0   :  { %v362_v39 = vpop.f32.mrf.mxu3  ;;  %1688 = vmatpush.msra.mxu0 %v1580_v53 }
 0x1a1   :  { %v330_v40 = vadd.f32 %v329_v37, %v295_v33  ;;  %1408 = vmatmul.f32.gmra.mxu0 %v13185_v60  ;;  %1585 = vmatmul.f32.vlgmr.msrb.gmra.mxu1 %v13120_v34  ;;  %v13658_v51 = vsub.f32 %v80_v47, %v13647_v50  ;;  %v84_v33 = vld [vmem:[%s16526_s5 + $0x128] sm:$0xff] }
 0x1a2   :  { %1857 = vmatpush.msrb.mxu1 %v13536_v1  ;;  %v13730_v13 = vand.u32 4294901760, %v84_v33 }
 0x1a3   :  { %v363_v43 = vadd.f32 %v362_v39, %v330_v40  ;;  %1619 = vmatmul.f32.vlgmr.msrb.gmra.mxu2 %v13129_v38  ;;  %v2006_v11 = vand.u32 4294901760, %v13658_v51  ;;  %v13728_v39 = vsub.f32 %v85_v28, %v13718_v35 }
 0x1a4   :  { %1892 = vmatpush.msrb.mxu2 %v1778_v63  ;;  %1859 = vmatpush.msrb.mxu1 %v13546_v3  ;;  %v13740_v47 = vsub.f32 %v84_v33, %v13730_v13 }
 0x1a5   :  { %1651 = vmatmul.f32.vlgmr.msrb.gmra.mxu3 %v13143_v18 }
 0x1a6   :  { %v395_v53 = vpop.f32.mrf.mxu0  ;;  %v428_v58 = vpop.f32.mrf.mxu1  ;;  %1927 = vmatpush.msrb.mxu3 %v13536_v1  ;;  %1896 = vmatpush.msrb.mxu2 %v1784_v9  ;;  %v2000_v1 = vand.u32 4294901760, %v13645_v48  ;;  %v13676_v9 = vsub.f32 %v79_v49, %v13664_v4 }
 0x1a7   :  { %v396_v52 = vadd.f32 %v395_v53, %v357_v32  ;;  %v457_v61 = vpop.f32.mrf.mxu2  ;;  %1861 = vmatpush.msrb.mxu1 %v13558_v62  ;;  %v2216_v53 = vand.u32 4294901760, %v13728_v39 }
 0x1a8   :  { %v506_v2 = vpop.f32.mrf.mxu3  ;;  %1929 = vmatpush.msrb.mxu3 %v13546_v3  ;;  %1900 = vmatpush.msrb.mxu2 %v1790_v15  ;;  %v1995_v3 = vsub.f32 %v13633_v45, %v1994_v59  ;;  %v2012_v16 = vand.u32 4294901760, %v13676_v9 }
 0x1a9   :  { %v13666_v63 = vadd.f32 %v424_v36, %v396_v52  ;;  %v507_v7 = vadd.f32 %v506_v2, %v457_v61  ;;  %1536 = vmatmul.f32.vlgmr.msrb.gmra.mxu0 %v13172_v57  ;;  %1589 = vmatmul.f32.gmra.mxu1 %v13170_v54 }
 0x1aa   :  { %1823 = vmatpush.msrb.mxu0 %v13544_v56  ;;  %1863 = vmatpush.msrb.mxu1 %v13570_v8  ;;  %v2001_v56 = vsub.f32 %v13645_v48, %v2000_v1 }
 0x1ab   :  { %1624 = vmatmul.f32.gmra.mxu2 %v13185_v60  ;;  %1931 = vmatpush.msrb.mxu3 %v13558_v62  ;;  %v1996_v62 = vand.u32 4294901760, %v1995_v3 }
 0x1ac   :  { %1826 = vmatpush.msrb.mxu0 %v13556_v5  ;;  %1904 = vmatpush.msrb.mxu2 %v1796_v19  ;;  %v2007_v19 = vsub.f32 %v13658_v51, %v2006_v11  ;;  %v2002_v21 = vand.u32 4294901760, %v2001_v56 }
 0x1ad   :  { %1657 = vmatmul.f32.gmra.mxu3 %v13199_v0 }
 0x1ae   :  { %v399_v12 = vpop.f32.mrf.mxu0  ;;  %v572_v15 = vpop.f32.mrf.mxu1  ;;  %1829 = vmatpush.msrb.mxu0 %v13568_v6  ;;  %1933 = vmatpush.msrb.mxu3 %v13570_v8  ;;  %v2013_v6 = vsub.f32 %v13676_v9, %v2012_v16  ;;  %v2008_v8 = vand.u32 4294901760, %v2007_v19 }
 0x1af   :  { %v400_v17 = vadd.f32 %v399_v12, %v363_v43  ;;  %v465_v5 = vpop.f32.mrf.mxu2  ;;  %v2222_v12 = vand.u32 4294901760, %v13740_v47 }
 0x1b0   :  { %v510_v20 = vpop.f32.mrf.mxu3  ;;  %1832 = vmatpush.msrb.mxu0 %v13582_v14  ;;  %v86_v14 = vld [vmem:[%s16526_s5 + $0x138] sm:$0xff]  ;;  %v2014_v27 = vand.u32 4294901760, %v2013_v6 }
 0x1b1   :  { %v13695_v22 = vadd.f32 %v428_v58, %v400_v17  ;;  %v511_v23 = vadd.f32 %v510_v20, %v465_v5  ;;  %1544 = vmatmul.f32.gmra.mxu0 %v13215_v55  ;;  %1719 = vmatmul.f32.vlgmr.msra.gmra.mxu1 %v13120_v34  ;;  %v13708_v24 = vand.u32 4294901760, %v86_v14  ;;  %v13745_v58 = vand.u32 4294901760, %v83_v41 }
 0x1b2   :  { %1997 = vmatpush.msra.mxu1 %v1996_v62  ;;  %v2217_v62 = vsub.f32 %v13728_v39, %v2216_v53 }
 0x1b3   :  { %1752 = vmatmul.f32.vlgmr.msra.gmra.mxu2 %v13172_v57  ;;  %v13716_v32 = vsub.f32 %v86_v14, %v13708_v24 }
 0x1b4   :  { %2039 = vmatpush.msra.mxu2 %v13633_v45  ;;  %2003 = vmatpush.msra.mxu1 %v2002_v21  ;;  %v2223_v21 = vsub.f32 %v13740_v47, %v2222_v12 }
 0x1b5   :  { %1801 = vmatmul.f32.vlgmr.msra.gmra.mxu3 %v13120_v34  ;;  %v2210_v40 = vand.u32 4294901760, %v13716_v32 }
 0x1b6   :  { %v540_v25 = vpop.f32.mrf.mxu0  ;;  %v578_v26 = vpop.f32.mrf.mxu1  ;;  %2073 = vmatpush.msra.mxu3 %v13625_v42  ;;  %2042 = vmatpush.msra.mxu2 %v13645_v48  ;;  %v90_v48 = vld [vmem:[%s16526_s5 + $0x158] sm:$0xff] }
 0x1b7   :  { %v541_v29 = vadd.f32 %v540_v25, %v507_v7  ;;  %v611_v30 = vpop.f32.mrf.mxu2  ;;  %2009 = vmatpush.msra.mxu1 %v2008_v8  ;;  %v2211_v2 = vsub.f32 %v13716_v32, %v2210_v40  ;;  %v13756_v7 = vsub.f32 %v83_v41, %v13745_v58  ;;  %v13801_v33 = vand.u32 4294901760, %v90_v48 }
 0x1b8   :  { %v640_v36 = vpop.f32.mrf.mxu3  ;;  %2075 = vmatpush.msra.mxu3 %v13635_v46  ;;  %2045 = vmatpush.msra.mxu2 %v13658_v51  ;;  %v89_v51 = vld [vmem:[%s16526_s5 + $0x150] sm:$0xff] }
 0x1b9   :  { %v573_v37 = vadd.f32 %v572_v15, %v541_v29  ;;  %1690 = vmatmul.f32.vlgmr.msra.gmra.mxu0 %v13120_v34  ;;  %1723 = vmatmul.f32.gmra.mxu1 %v13170_v54  ;;  %v2212_v5 = vand.u32 4294901760, %v2211_v2  ;;  %v2228_v19 = vand.u32 4294901760, %v13756_v7  ;;  %v87_v2 = vld [vmem:[%s16526_s5 + $0x140] sm:$0xff] }
 0x1ba   :  { %1956 = vmatpush.msra.mxu0 %v13625_v42  ;;  %2015 = vmatpush.msra.mxu1 %v2014_v27  ;;  %v2224_v27 = vand.u32 4294901760, %v2223_v21 }
 0x1bb   :  { %v612_v43 = vadd.f32 %v611_v30, %v573_v37  ;;  %1760 = vmatmul.f32.gmra.mxu2 %v13215_v55  ;;  %2077 = vmatpush.msra.mxu3 %v13647_v50  ;;  %v2229_v14 = vsub.f32 %v13756_v7, %v2228_v19  ;;  %v88_v37 = vld [vmem:[%s16526_s5 + $0x148] sm:$0xff] }
 0x1bc   :  { %1958 = vmatpush.msra.mxu0 %v13635_v46  ;;  %2048 = vmatpush.msra.mxu2 %v13676_v9  ;;  %v13809_v9 = vsub.f32 %v90_v48, %v13801_v33 }
 0x1bd   :  { %v13747_v49 = vadd.f32 %v640_v36, %v612_v43  ;;  %1805 = vmatmul.f32.gmra.mxu3 %v13170_v54  ;;  %v2230_v29 = vand.u32 4294901760, %v2229_v14  ;;  %v13823_v43 = vand.u32 4294901760, %v88_v37  ;;  %v94_v14 = vld [vmem:[%s16526_s5 + $0x178] sm:$0xff] }
 0x1be   :  { %v545_v52 = vpop.f32.mrf.mxu0  ;;  %v722_v61 = vpop.f32.mrf.mxu1  ;;  %1960 = vmatpush.msra.mxu0 %v13647_v50  ;;  %2079 = vmatpush.msra.mxu3 %v13664_v4 }
 0x1bf   :  { %v546_v3 = vadd.f32 %v545_v52, %v511_v23  ;;  %v615_v56 = vpop.f32.mrf.mxu2  ;;  %v2218_v23 = vand.u32 4294901760, %v2217_v62 }
 0x1c0   :  { %v644_v15 = vpop.f32.mrf.mxu3  ;;  %1962 = vmatpush.msra.mxu0 %v13664_v4 }
 0x1c1   :  { %v579_v17 = vadd.f32 %v578_v26, %v546_v3  ;;  %1694 = vmatmul.f32.gmra.mxu0 %v13170_v54  ;;  %1867 = vmatmul.f32.vlgmr.msrb.gmra.mxu1 %v13143_v18 }
 0x1c2   :  { %2143 = vmatpush.msrb.mxu1 %v13625_v42 }
 0x1c3   :  { %v616_v20 = vadd.f32 %v615_v56, %v579_v17  ;;  %1906 = vmatmul.f32.vlgmr.msrb.gmra.mxu2 %v13120_v34 }
 0x1c4   :  { %2172 = vmatpush.msrb.mxu2 %v13708_v24  ;;  %2145 = vmatpush.msrb.mxu1 %v13635_v46 }
 0x1c5   :  { %v13773_v6 = vadd.f32 %v644_v15, %v616_v20  ;;  %1935 = vmatmul.f32.vlgmr.msrb.gmra.mxu3 %v13120_v34  ;;  %v13834_v15 = vsub.f32 %v88_v37, %v13823_v43 }
 0x1c6   :  { %v673_v8 = vpop.f32.mrf.mxu0  ;;  %v726_v42 = vpop.f32.mrf.mxu1  ;;  %2213 = vmatpush.msrb.mxu3 %v2212_v5  ;;  %2174 = vmatpush.msrb.mxu2 %v13718_v35 }
 0x1c7   :  { %v723_v25 = vadd.f32 %v722_v61, %v673_v8  ;;  %v756_v26 = vpop.f32.mrf.mxu2  ;;  %2147 = vmatpush.msrb.mxu1 %v13647_v50  ;;  %v2438_v20 = vand.u32 4294901760, %v13834_v15 }
 0x1c8   :  { %v788_v46 = vpop.f32.mrf.mxu3  ;;  %2219 = vmatpush.msrb.mxu3 %v2218_v23  ;;  %2176 = vmatpush.msrb.mxu2 %v13730_v13 }
 0x1c9   :  { %v757_v28 = vadd.f32 %v756_v26, %v723_v25  ;;  %1835 = vmatmul.f32.vlgmr.msrb.gmra.mxu0 %v13129_v38  ;;  %1873 = vmatmul.f32.gmra.mxu1 %v13199_v0 }
 0x1ca   :  { %2108 = vmatpush.msrb.mxu0 %v1994_v59  ;;  %2149 = vmatpush.msrb.mxu1 %v13664_v4 }
 0x1cb   :  { %v789_v30 = vadd.f32 %v788_v46, %v757_v28  ;;  %1910 = vmatmul.f32.gmra.mxu2 %v13170_v54  ;;  %2225 = vmatpush.msrb.mxu3 %v2224_v27  ;;  %v93_v27 = vld [vmem:[%s16526_s5 + $0x170] sm:$0xff]  ;;  %v13884_v28 = vand.u32 4294901760, %v94_v14 }
 0x1cc   :  { %2112 = vmatpush.msrb.mxu0 %v2000_v1  ;;  %2178 = vmatpush.msrb.mxu2 %v13745_v58 }
 0x1cd   :  { %1939 = vmatmul.f32.gmra.mxu3 %v13170_v54 }
 0x1ce   :  { %v681_v50 = vpop.f32.mrf.mxu0  ;;  %v856_v36 = vpop.f32.mrf.mxu1  ;;  %2116 = vmatpush.msrb.mxu0 %v2006_v11  ;;  %2231 = vmatpush.msrb.mxu3 %v2230_v29  ;;  %v13888_v29 = vand.u32 4294901760, %v93_v27 }
 0x1cf   :  { %v727_v45 = vadd.f32 %v726_v42, %v681_v50  ;;  %v761_v59 = vpop.f32.mrf.mxu2 }
 0x1d0   :  { %v794_v4 = vpop.f32.mrf.mxu3  ;;  %2120 = vmatpush.msrb.mxu0 %v2012_v16  ;;  %v13811_v16 = vand.u32 4294901760, %v89_v51  ;;  %v13907_v37 = vsub.f32 %v93_v27, %v13888_v29 }
 0x1d1   :  { %v762_v1 = vadd.f32 %v761_v59, %v727_v45  ;;  %1840 = vmatmul.f32.gmra.mxu0 %v13185_v60  ;;  %2017 = vmatmul.f32.vlgmr.msra.gmra.mxu1 %v13120_v34  ;;  %v13897_v59 = vsub.f32 %v94_v14, %v13884_v28 }
 0x1d2   :  { %2289 = vmatpush.msra.mxu1 %v13708_v24  ;;  %v13821_v41 = vsub.f32 %v89_v51, %v13811_v16  ;;  %v91_v51 = vld [vmem:[%s16526_s5 + $0x160] sm:$0xff] }
 0x1d3   :  { %v795_v11 = vadd.f32 %v794_v4, %v762_v1  ;;  %2051 = vmatmul.f32.vlgmr.msra.gmra.mxu2 %v13129_v38 }
 0x1d4   :  { %2324 = vmatpush.msra.mxu2 %v2210_v40  ;;  %2291 = vmatpush.msra.mxu1 %v13718_v35  ;;  %v2426_v40 = vand.u32 4294901760, %v13809_v9 }
 0x1d5   :  { %2083 = vmatmul.f32.vlgmr.msra.gmra.mxu3 %v13143_v18 }
 0x1d6   :  { %v827_v52 = vpop.f32.mrf.mxu0  ;;  %v860_v61 = vpop.f32.mrf.mxu1  ;;  %2359 = vmatpush.msra.mxu3 %v13708_v24  ;;  %2328 = vmatpush.msra.mxu2 %v2216_v53  ;;  %v2432_v24 = vand.u32 4294901760, %v13821_v41  ;;  %v13840_v53 = vand.u32 4294901760, %v87_v2 }
 0x1d7   :  { %v828_v3 = vadd.f32 %v827_v52, %v789_v30  ;;  %v889_v56 = vpop.f32.mrf.mxu2  ;;  %2293 = vmatpush.msra.mxu1 %v13730_v13  ;;  %v92_v30 = vld [vmem:[%s16526_s5 + $0x168] sm:$0xff] }
 0x1d8   :  { %v938_v62 = vpop.f32.mrf.mxu3  ;;  %2361 = vmatpush.msra.mxu3 %v13718_v35  ;;  %2332 = vmatpush.msra.mxu2 %v2222_v12  ;;  %v2427_v35 = vsub.f32 %v13809_v9, %v2426_v40  ;;  %v13852_v12 = vsub.f32 %v87_v2, %v13840_v53  ;;  %v13899_v1 = vand.u32 4294901760, %v92_v30  ;;  %v13913_v2 = vand.u32 4294901760, %v91_v51 }
 0x1d9   :  { %v13842_v17 = vadd.f32 %v856_v36, %v828_v3  ;;  %v939_v5 = vadd.f32 %v938_v62, %v889_v56  ;;  %1968 = vmatmul.f32.vlgmr.msra.gmra.mxu0 %v13172_v57  ;;  %2021 = vmatmul.f32.gmra.mxu1 %v13170_v54  ;;  %v2648_v62 = vand.u32 4294901760, %v13907_v37 }
 0x1da   :  { %2255 = vmatpush.msra.mxu0 %v13716_v32  ;;  %2295 = vmatpush.msra.mxu1 %v13745_v58  ;;  %v2433_v32 = vsub.f32 %v13821_v41, %v2432_v24  ;;  %v2444_v8 = vand.u32 4294901760, %v13852_v12  ;;  %v13918_v56 = vsub.f32 %v92_v30, %v13899_v1 }
 0x1db   :  { %2056 = vmatmul.f32.gmra.mxu2 %v13185_v60  ;;  %2363 = vmatpush.msra.mxu3 %v13730_v13  ;;  %v2428_v13 = vand.u32 4294901760, %v2427_v35  ;;  %v2649_v14 = vsub.f32 %v13907_v37, %v2648_v62 }
 0x1dc   :  { %2258 = vmatpush.msra.mxu0 %v13728_v39  ;;  %2336 = vmatpush.msra.mxu2 %v2228_v19  ;;  %v2439_v19 = vsub.f32 %v13834_v15, %v2438_v20  ;;  %v2434_v26 = vand.u32 4294901760, %v2433_v32  ;;  %v2445_v46 = vsub.f32 %v13852_v12, %v2444_v8 }
 0x1dd   :  { %2089 = vmatmul.f32.gmra.mxu3 %v13199_v0 }
 0x1de   :  { %v831_v21 = vpop.f32.mrf.mxu0  ;;  %v1004_v23 = vpop.f32.mrf.mxu1  ;;  %2261 = vmatpush.msra.mxu0 %v13740_v47  ;;  %2365 = vmatpush.msra.mxu3 %v13745_v58  ;;  %v2446_v45 = vand.u32 4294901760, %v2445_v46 }
 0x1df   :  { %v832_v42 = vadd.f32 %v831_v21, %v795_v11  ;;  %v897_v39 = vpop.f32.mrf.mxu2 }
 0x1e0   :  { %v942_v25 = vpop.f32.mrf.mxu3  ;;  %2264 = vmatpush.msra.mxu0 %v13756_v7  ;;  %v2440_v7 = vand.u32 4294901760, %v2439_v19 }
 0x1e1   :  { %v13874_v47 = vadd.f32 %v860_v61, %v832_v42  ;;  %v943_v58 = vadd.f32 %v942_v25, %v897_v39  ;;  %1976 = vmatmul.f32.gmra.mxu0 %v13215_v55  ;;  %2151 = vmatmul.f32.vlgmr.msrb.gmra.mxu1 %v13120_v34  ;;  %v2642_v61 = vand.u32 4294901760, %v13897_v59  ;;  %v2654_v39 = vand.u32 4294901760, %v13918_v56 }
 0x1e2   :  { %2429 = vmatpush.msrb.mxu1 %v2428_v13 }
 0x1e3   :  { %2184 = vmatmul.f32.vlgmr.msrb.gmra.mxu2 %v13172_v57  ;;  %v2643_v21 = vsub.f32 %v13897_v59, %v2642_v61  ;;  %v2655_v46 = vsub.f32 %v13918_v56, %v2654_v39 }
 0x1e4   :  { %2471 = vmatpush.msrb.mxu2 %v13809_v9  ;;  %2435 = vmatpush.msrb.mxu1 %v2434_v26 }
 0x1e5   :  { %2233 = vmatmul.f32.vlgmr.msrb.gmra.mxu3 %v13120_v34  ;;  %v2644_v26 = vand.u32 4294901760, %v2643_v21 }
 0x1e6   :  { %v972_v50 = vpop.f32.mrf.mxu0  ;;  %v1010_v36 = vpop.f32.mrf.mxu1  ;;  %2505 = vmatpush.msrb.mxu3 %v13801_v33  ;;  %2474 = vmatpush.msrb.mxu2 %v13821_v41 }
 0x1e7   :  { %v973_v4 = vadd.f32 %v972_v50, %v939_v5  ;;  %v1043_v48 = vpop.f32.mrf.mxu2  ;;  %2441 = vmatpush.msrb.mxu1 %v2440_v7  ;;  %v2650_v7 = vand.u32 4294901760, %v2649_v14 }
 0x1e8   :  { %v1072_v11 = vpop.f32.mrf.mxu3  ;;  %2507 = vmatpush.msrb.mxu3 %v13811_v16  ;;  %2477 = vmatpush.msrb.mxu2 %v13834_v15 }
 0x1e9   :  { %v1005_v52 = vadd.f32 %v1004_v23, %v973_v4  ;;  %2122 = vmatmul.f32.vlgmr.msrb.gmra.mxu0 %v13120_v34  ;;  %2155 = vmatmul.f32.gmra.mxu1 %v13170_v54  ;;  %v13932_v23 = vsub.f32 %v91_v51, %v13913_v2  ;;  %v2656_v4 = vand.u32 4294901760, %v2655_v46 }
 0x1ea   :  { %2388 = vmatpush.msrb.mxu0 %v13801_v33  ;;  %2447 = vmatpush.msrb.mxu1 %v2446_v45 }
 0x1eb   :  { %v1044_v3 = vadd.f32 %v1043_v48, %v1005_v52  ;;  %2192 = vmatmul.f32.gmra.mxu2 %v13215_v55  ;;  %2509 = vmatpush.msrb.mxu3 %v13823_v43 }
 0x1ec   :  { %2390 = vmatpush.msrb.mxu0 %v13811_v16  ;;  %2480 = vmatpush.msrb.mxu2 %v13852_v12 }
 0x1ed   :  { %v13923_v5 = vadd.f32 %v1072_v11, %v1044_v3  ;;  %2237 = vmatmul.f32.gmra.mxu3 %v13170_v54 }
 0x1ee   :  { %v977_v35 = vpop.f32.mrf.mxu0  ;;  %v1154_v32 = vpop.f32.mrf.mxu1  ;;  %2392 = vmatpush.msrb.mxu0 %v13823_v43  ;;  %2511 = vmatpush.msrb.mxu3 %v13840_v53 }
 0x1ef   :  { %v978_v13 = vadd.f32 %v977_v35, %v943_v58  ;;  %v1047_v42 = vpop.f32.mrf.mxu2  ;;  %v2660_v58 = vand.u32 4294901760, %v13932_v23 }
 0x1f0   :  { %v1076_v19 = vpop.f32.mrf.mxu3  ;;  %2394 = vmatpush.msrb.mxu0 %v13840_v53 }
 0x1f1   :  { %v1011_v25 = vadd.f32 %v1010_v36, %v978_v13  ;;  %2126 = vmatmul.f32.gmra.mxu0 %v13170_v54  ;;  %2299 = vmatmul.f32.vlgmr.msra.gmra.mxu1 %v13143_v18  ;;  %v2661_v36 = vsub.f32 %v13932_v23, %v2660_v58 }
 0x1f2   :  { %2575 = vmatpush.msra.mxu1 %v13801_v33 }
 0x1f3   :  { %v1048_v27 = vadd.f32 %v1047_v42, %v1011_v25  ;;  %2338 = vmatmul.f32.vlgmr.msra.gmra.mxu2 %v13120_v34 }
 0x1f4   :  { %2604 = vmatpush.msra.mxu2 %v13884_v28  ;;  %2577 = vmatpush.msra.mxu1 %v13811_v16  ;;  %v2662_v16 = vand.u32 4294901760, %v2661_v36 }
 0x1f5   :  { %v13949_v30 = vadd.f32 %v1076_v19, %v1048_v27  ;;  %2367 = vmatmul.f32.vlgmr.msra.gmra.mxu3 %v13120_v34 }
 0x1f6   :  { %v1105_v50 = vpop.f32.mrf.mxu0  ;;  %v1158_v33 = vpop.f32.mrf.mxu1  ;;  %2606 = vmatpush.msra.mxu2 %v13888_v29  ;;  %2645 = vmatpush.msra.mxu3 %v2644_v26 }
 0x1f7   :  { %v1188_v45 = vpop.f32.mrf.mxu2  ;;  %2579 = vmatpush.msra.mxu1 %v13823_v43  ;;  %v1155_v43 = vadd.f32 %v1154_v32, %v1105_v50 }
 0x1f8   :  { %v1220_v48 = vpop.f32.mrf.mxu3  ;;  %2608 = vmatpush.msra.mxu2 %v13899_v1  ;;  %2651 = vmatpush.msra.mxu3 %v2650_v7 }
 0x1f9   :  { %2267 = vmatmul.f32.vlgmr.msra.gmra.mxu0 %v13129_v38  ;;  %2305 = vmatmul.f32.gmra.mxu1 %v13199_v0  ;;  %v1189_v52 = vadd.f32 %v1188_v45, %v1155_v43 }
 0x1fa   :  { %2540 = vmatpush.msra.mxu0 %v2426_v40  ;;  %2610 = vmatpush.msra.mxu2 %v13913_v2 }
 0x1fb   :  { %2342 = vmatmul.f32.gmra.mxu2 %v13170_v54  ;;  %2657 = vmatpush.msra.mxu3 %v2656_v4  ;;  %v1221_v41 = vadd.f32 %v1220_v48, %v1189_v52  ;;  %v2962_v52 = vsel %vm2808_vm8, %v13695_v22, 0 }
 0x1fc   :  { %2544 = vmatpush.msra.mxu0 %v2432_v24  ;;  %2581 = vmatpush.msra.mxu1 %v13840_v53 }
 0x1fd   :  { %2371 = vmatmul.f32.gmra.mxu3 %v13170_v54 }
 0x1fe   :  { %v1113_v51 = vpop.f32.mrf.mxu0  ;;  %v1288_v11 = vpop.f32.mrf.mxu1  ;;  %2663 = vmatpush.msra.mxu3 %v2662_v16  ;;  %2548 = vmatpush.msra.mxu0 %v2438_v20 }
 0x1ff   :  { %v1193_v9 = vpop.f32.mrf.mxu2  ;;  %v1159_v15 = vadd.f32 %v1158_v33, %v1113_v51 }
 0x200   :  { %v1226_v40 = vpop.f32.mrf.mxu3  ;;  %2552 = vmatpush.msra.mxu0 %v2444_v8 }
 0x201   :  { %2272 = vmatmul.f32.gmra.mxu0 %v13185_v60  ;;  %2449 = vmatmul.f32.vlgmr.msrb.gmra.mxu1 %v13120_v34 }
 0x202   :  { %2721 = vmatpush.msrb.mxu1 %v13884_v28 }
 0x203   :  { %2483 = vmatmul.f32.vlgmr.msrb.gmra.mxu2 %v13129_v38 }
 0x204   :  { %2756 = vmatpush.msrb.mxu2 %v2642_v61  ;;  %2723 = vmatpush.msrb.mxu1 %v13888_v29  ;;  %v1194_v61 = vadd.f32 %v1193_v9, %v1159_v15 }
 0x205   :  { %2515 = vmatmul.f32.vlgmr.msrb.gmra.mxu3 %v13143_v18 }
 0x206   :  { %v1259_v24 = vpop.f32.mrf.mxu0  ;;  %v1292_v53 = vpop.f32.mrf.mxu1  ;;  %2760 = vmatpush.msrb.mxu2 %v2648_v62  ;;  %2791 = vmatpush.msrb.mxu3 %v13884_v28 }
 0x207   :  { %v1260_v12 = vadd.f32 %v1259_v24, %v1221_v41  ;;  %v1321_v20 = vpop.f32.mrf.mxu2  ;;  %2725 = vmatpush.msrb.mxu1 %v13899_v1 }
 0x208   :  { %v1370_v8 = vpop.f32.mrf.mxu3  ;;  %2764 = vmatpush.msrb.mxu2 %v2654_v39  ;;  %2793 = vmatpush.msrb.mxu3 %v13888_v29  ;;  %v1227_v29 = vadd.f32 %v1226_v40, %v1194_v61 }
 0x209   :  { %v1289_v3 = vadd.f32 %v1288_v11, %v1260_v12  ;;  %2400 = vmatmul.f32.vlgmr.msrb.gmra.mxu0 %v13172_v57  ;;  %2453 = vmatmul.f32.gmra.mxu1 %v13170_v54  ;;  %v1371_v14 = vadd.f32 %v1370_v8, %v1321_v20  ;;  %v14036_v12 = vand.u32 4294901760, %v2962_v52 }
 0x20a   :  { %2687 = vmatpush.msrb.mxu0 %v13897_v59  ;;  %2768 = vmatpush.msrb.mxu2 %v2660_v58 }
 0x20b   :  { %v2813_v28 = vsel %vm2808_vm8, %v1289_v3, 0  ;;  %2488 = vmatmul.f32.gmra.mxu2 %v13185_v60  ;;  %2795 = vmatpush.msrb.mxu3 %v13899_v1  ;;  %v14046_v8 = vsub.f32 %v2962_v52, %v14036_v12 }
 0x20c   :  { %v2830_v62 = vand.u32 4294901760, %v2813_v28  ;;  %2690 = vmatpush.msrb.mxu0 %v13907_v37  ;;  %2727 = vmatpush.msrb.mxu1 %v13913_v2 }
 0x20d   :  { %2521 = vmatmul.f32.gmra.mxu3 %v13199_v0 }
 0x20e   :  { %v13998_v35 = vsub.f32 %v2813_v28, %v2830_v62  ;;  %v1263_v59 = vpop.f32.mrf.mxu0  ;;  %v1436_v32 = vpop.f32.mrf.mxu1  ;;  %2797 = vmatpush.msrb.mxu3 %v13913_v2  ;;  %2693 = vmatpush.msrb.mxu0 %v13918_v56 }
 0x20f   :  { %v1264_v21 = vadd.f32 %v1263_v59, %v1227_v29  ;;  %v1329_v13 = vpop.f32.mrf.mxu2  ;;  %v2986_v59 = vand.u32 4294901760, %v14046_v8 }
 0x210   :  { %v1374_v42 = vpop.f32.mrf.mxu3  ;;  %v2858_v1 = vand.u32 4294901760, %v13998_v35  ;;  %2696 = vmatpush.msrb.mxu0 %v13932_v23 }
 0x211   :  { %v1293_v37 = vadd.f32 %v1292_v53, %v1264_v21  ;;  %2408 = vmatmul.f32.gmra.mxu0 %v13215_v55  ;;  %2583 = vmatmul.f32.vlgmr.msra.gmra.mxu1 %v13120_v34  ;;  %v1375_v45 = vadd.f32 %v1374_v42, %v1329_v13 }
 0x212   :  { %v2859_v39 = vsub.f32 %v13998_v35, %v2858_v1 }
 0x213   :  { %v2965_v19 = vsel %vm2808_vm8, %v1293_v37, 0  ;;  %2616 = vmatmul.f32.vlgmr.msra.gmra.mxu2 %v13172_v57 }
 0x214   :  { %v14009_v2 = vand.u32 4294901760, %v2965_v19  ;;  %2884 = vmatpush.xpose.msra.mxu2 %v13998_v35  ;;  %v2860_v56 = vand.u32 4294901760, %v2859_v39 }
 0x215   :  { %2665 = vmatmul.f32.vlgmr.msra.gmra.mxu3 %v13120_v34 }
 0x216   :  { %2907 = vmatpush.xpose.msra.mxu3 %v2830_v62  ;;  %v1404_v23 = vpop.f32.mrf.mxu0  ;;  %v1442_v25 = vpop.f32.mrf.mxu1  ;;  %2861 = vmatpush.xpose.msra.mxu1 %v2860_v56  ;;  %v14014_v27 = vsub.f32 %v2965_v19, %v14009_v2 }
 0x217   :  { %v1405_v26 = vadd.f32 %v1404_v23, %v1371_v14  ;;  %v1475_v58 = vpop.f32.mrf.mxu2 }
 0x218   :  { %v1504_v46 = vpop.f32.mrf.mxu3  ;;  %v3010_v57 = vand.u32 4294901760, %v14014_v27 }
 0x219   :  { %v1437_v7 = vadd.f32 %v1436_v32, %v1405_v26  ;;  %2554 = vmatmul.f32.vlgmr.msra.gmra.mxu0 %v13120_v34  ;;  %2587 = vmatmul.f32.gmra.mxu1 %v13170_v54 }
 0x21a   :  { %2831 = vmatpush.xpose.msra.mxu0 %v2830_v62  ;;  %v3011_v16 = vsub.f32 %v14014_v27, %v3010_v57 }
 0x21b   :  { %2624 = vmatmul.f32.gmra.mxu2 %v13215_v55  ;;  %v1476_v50 = vadd.f32 %v1475_v58, %v1437_v7  ;;  %v2810_v55 = vsel %vm2808_vm8, %v13666_v63, 0 }
 0x21c   :  { %v3012_v11 = vand.u32 4294901760, %v3011_v16  ;;  %v14032_v15 = vand.u32 4294901760, %v2810_v55 }
 0x21d   :  { %2669 = vmatmul.f32.gmra.mxu3 %v13170_v54  ;;  %v1505_v43 = vadd.f32 %v1504_v46, %v1476_v50 }
 0x21e   :  { %v1409_v33 = vpop.f32.mrf.mxu0  ;;  %v1586_v36 = vpop.f32.mrf.mxu1 }
 0x21f   :  { %v1479_v4 = vpop.f32.mrf.mxu2  ;;  %v1410_v51 = vadd.f32 %v1409_v33, %v1375_v45  ;;  %v3117_v9 = vsel %vm2808_vm8, %v1505_v43, 0 }
 0x220   :  { %v1508_v48 = vpop.f32.mrf.mxu3  ;;  %v14034_v53 = vand.u32 4294901760, %v3117_v9 }
 0x221   :  { %2558 = vmatmul.f32.gmra.mxu0 %v13170_v54  ;;  %2731 = vmatmul.f32.vlgmr.msrb.gmra.mxu1 %v13143_v18  ;;  %v1443_v40 = vadd.f32 %v1442_v25, %v1410_v51 }
 0x222   :  { %2955 = vmatpush.xpose.msrb.mxu1 %v2830_v62  ;;  %v14043_v22 = vsub.f32 %v3117_v9, %v14034_v53 }
 0x223   :  { %2770 = vmatmul.f32.vlgmr.msrb.gmra.mxu2 %v13120_v34  ;;  %v1480_v20 = vadd.f32 %v1479_v4, %v1443_v40 }
 0x224   :  { %2983 = vmatpush.xpose.msrb.mxu2 %v14009_v2 }
 0x225   :  { %2799 = vmatmul.f32.vlgmr.msrb.gmra.mxu3 %v13120_v34  ;;  %v2833_v34 = vsub.f32 %v2810_v55, %v14032_v15  ;;  %v1509_v61 = vadd.f32 %v1508_v48, %v1480_v20 }
 0x226   :  { %3013 = vmatpush.xpose.msrb.mxu3 %v3012_v11  ;;  %v1537_v41 = vpop.f32.mrf.mxu0  ;;  %v1590_v18 = vpop.f32.mrf.mxu1 }
 0x227   :  { %v1620_v24 = vpop.f32.mrf.mxu2  ;;  %v1587_v3 = vadd.f32 %v1586_v36, %v1537_v41  ;;  %v3269_v32 = vsel %vm2808_vm8, %v1509_v61, 0  ;;  %v3266_v36 = vsel %vm2808_vm8, %v13773_v6, 0 }
 0x228   :  { %v1652_v63 = vpop.f32.mrf.mxu3  ;;  %v14081_v55 = vand.u32 4294901760, %v3266_v36 }
 0x229   :  { %2699 = vmatmul.f32.vlgmr.msrb.gmra.mxu0 %v13129_v38  ;;  %2737 = vmatmul.f32.gmra.mxu1 %v13199_v0  ;;  %v2834_v38 = vand.u32 4294901760, %v2833_v34  ;;  %v3162_v0 = vand.u32 4294901760, %v14043_v22  ;;  %v1621_v21 = vadd.f32 %v1620_v24, %v1587_v3 }
 0x22a   :  { %2933 = vmatpush.xpose.msrb.mxu0 %v2858_v1  ;;  %v2987_v1 = vsub.f32 %v14046_v8, %v2986_v59  ;;  %v14093_v52 = vsub.f32 %v3266_v36, %v14081_v55 }
 0x22b   :  { %2774 = vmatmul.f32.gmra.mxu2 %v13170_v54  ;;  %v2835_v13 = vsub.f32 %v2833_v34, %v2834_v38  ;;  %v3163_v42 = vsub.f32 %v14043_v22, %v3162_v0  ;;  %v1653_v37 = vadd.f32 %v1652_v63, %v1621_v21 }
 0x22c   :  { %v2988_v46 = vand.u32 4294901760, %v2987_v1  ;;  %v3290_v3 = vand.u32 4294901760, %v14093_v52 }
 0x22d   :  { %2803 = vmatmul.f32.gmra.mxu3 %v13170_v54  ;;  %v14055_v54 = vand.u32 4294901760, %v3269_v32  ;;  %v2836_v19 = vand.u32 4294901760, %v2835_v13  ;;  %v3164_v58 = vand.u32 4294901760, %v3163_v42 }
 0x22e   :  { %v1545_v28 = vpop.f32.mrf.mxu0  ;;  %v1720_v62 = vpop.f32.mrf.mxu1 }
 0x22f   :  { %v1625_v29 = vpop.f32.mrf.mxu2  ;;  %v1591_v56 = vadd.f32 %v1590_v18, %v1545_v28  ;;  %v14063_v25 = vsub.f32 %v3269_v32, %v14055_v54 }
 0x230   :  { %v1658_v35 = vpop.f32.mrf.mxu3 }
 0x231   :  { %2704 = vmatmul.f32.gmra.mxu0 %v13185_v60  ;;  %2863 = vmatmul.f32.vlgmr.msra.gmra.mxu1 %v14032_v15  ;;  %v3314_v50 = vand.u32 4294901760, %v14063_v25 }
 0x232   :  { %3059 = vmatpush.xpose.msra.mxu1 %v14009_v2 }
 0x233   :  { %2887 = vmatmul.f32.vlgmr.msra.gmra.mxu2 %v2833_v34  ;;  %v3315_v51 = vsub.f32 %v14063_v25, %v3314_v50 }
 0x234   :  { %3085 = vmatpush.xpose.msra.mxu2 %v3010_v57  ;;  %v3114_v57 = vsel %vm2808_vm8, %v13747_v49, 0 }
 0x235   :  { %2911 = vmatmul.f32.vlgmr.msra.gmra.mxu3 %v2834_v38  ;;  %v14076_v4 = vand.u32 4294901760, %v3114_v57  ;;  %v3316_v40 = vand.u32 4294901760, %v3315_v51 }
 0x236   :  { %3107 = vmatpush.xpose.msra.mxu3 %v14009_v2  ;;  %v1691_v60 = vpop.f32.mrf.mxu0  ;;  %v1724_v39 = vpop.f32.mrf.mxu1  ;;  %v1626_v2 = vadd.f32 %v1625_v29, %v1591_v56 }
 0x237   :  { %v1692_v14 = vadd.f32 %v1691_v60, %v1653_v37  ;;  %v1753_v23 = vpop.f32.mrf.mxu2  ;;  %v3137_v6 = vsub.f32 %v3114_v57, %v14076_v4 }
 0x238   :  { %v1802_v26 = vpop.f32.mrf.mxu3  ;;  %v1659_v48 = vadd.f32 %v1658_v35, %v1626_v2  ;;  %v3291_v35 = vsub.f32 %v14093_v52, %v3290_v3 }
 0x239   :  { %v1721_v7 = vadd.f32 %v1720_v62, %v1692_v14  ;;  %2837 = vmatmul.f32.vlgmr.msra.gmra.mxu0 %v2836_v19  ;;  %2957 = vmatmul.f32.vlgmr.msrb.gmra.mxu1 %v14032_v15  ;;  %v1803_v41 = vadd.f32 %v1802_v26, %v1753_v23  ;;  %v3570_v23 = vsel %vm2808_vm8, %v13874_v47, 0 }
 0x23a   :  { %3036 = vmatpush.xpose.msra.mxu0 %v14014_v27  ;;  %3165 = vmatpush.xpose.msrb.mxu1 %v3164_v58  ;;  %v3292_v37 = vand.u32 4294901760, %v3291_v35  ;;  %v14130_v57 = vand.u32 4294901760, %v3570_v23 }
 0x23b   :  { %2989 = vmatmul.f32.vlgmr.msrb.gmra.mxu2 %v2988_v46  ;;  %v3421_v33 = vsel %vm2808_vm8, %v1721_v7, 0 }
 0x23c   :  { %3188 = vmatpush.xpose.msrb.mxu2 %v14043_v22  ;;  %v14078_v49 = vand.u32 4294901760, %v3421_v33 }
 0x23d   :  { %3015 = vmatmul.f32.vlgmr.msrb.gmra.mxu3 %v14036_v12 }
 0x23e   :  { %3211 = vmatpush.xpose.msrb.mxu3 %v14034_v53  ;;  %v1695_v27 = vpop.f32.mrf.mxu0  ;;  %v1868_v45 = vpop.f32.mrf.mxu1  ;;  %v14089_v9 = vsub.f32 %v3421_v33, %v14078_v49 }
 0x23f   :  { %v1761_v16 = vpop.f32.mrf.mxu2  ;;  %v1696_v11 = vadd.f32 %v1695_v27, %v1659_v48  ;;  %v14142_v27 = vsub.f32 %v3570_v23, %v14130_v57 }
 0x240   :  { %v1806_v43 = vpop.f32.mrf.mxu3  ;;  %v3466_v61 = vand.u32 4294901760, %v14089_v9 }
 0x241   :  { %2935 = vmatmul.f32.vlgmr.msrb.gmra.mxu0 %v14032_v15  ;;  %3063 = vmatmul.f32.vlgmr.msra.gmra.mxu1 %v2986_v59  ;;  %v1725_v18 = vadd.f32 %v1724_v39, %v1696_v11  ;;  %v1807_v32 = vadd.f32 %v1806_v43, %v1761_v16 }
 0x242   :  { %3135 = vmatpush.xpose.msrb.mxu0 %v14034_v53  ;;  %3259 = vmatpush.xpose.msra.mxu1 %v14034_v53  ;;  %v3138_v53 = vand.u32 4294901760, %v3137_v6  ;;  %v3467_v29 = vsub.f32 %v14089_v9, %v3466_v61 }
 0x243   :  { %3087 = vmatmul.f32.vlgmr.msra.gmra.mxu2 %v14036_v12  ;;  %v3573_v28 = vsel %vm2808_vm8, %v1725_v18, 0 }
 0x244   :  { %3287 = vmatpush.xpose.msra.mxu2 %v14055_v54  ;;  %v14104_v38 = vand.u32 4294901760, %v3573_v28  ;;  %v3468_v1 = vand.u32 4294901760, %v3467_v29 }
 0x245   :  { %3109 = vmatmul.f32.vlgmr.msra.gmra.mxu3 %v14036_v12  ;;  %v3139_v12 = vsub.f32 %v3137_v6, %v3138_v53 }
 0x246   :  { %3317 = vmatpush.xpose.msra.mxu3 %v3316_v40  ;;  %v1836_v15 = vpop.f32.mrf.mxu0  ;;  %v1874_v24 = vpop.f32.mrf.mxu1  ;;  %v14112_v13 = vsub.f32 %v3573_v28, %v14104_v38 }
 0x247   :  { %v1837_v63 = vadd.f32 %v1836_v15, %v1803_v41  ;;  %v1907_v20 = vpop.f32.mrf.mxu2 }
 0x248   :  { %v1936_v34 = vpop.f32.mrf.mxu3  ;;  %v3618_v19 = vand.u32 4294901760, %v14112_v13 }
 0x249   :  { %v1869_v62 = vadd.f32 %v1868_v45, %v1837_v63  ;;  %3039 = vmatmul.f32.vlgmr.msra.gmra.mxu0 %v14046_v8  ;;  %3167 = vmatmul.f32.vlgmr.msrb.gmra.mxu1 %v14076_v4 }
 0x24a   :  { %3237 = vmatpush.xpose.msra.mxu0 %v3162_v0  ;;  %3363 = vmatpush.xpose.msrb.mxu1 %v14055_v54  ;;  %v3140_v0 = vand.u32 4294901760, %v3139_v12  ;;  %v3619_v2 = vsub.f32 %v14112_v13, %v3618_v19 }
 0x24b   :  { %3191 = vmatmul.f32.vlgmr.msrb.gmra.mxu2 %v3137_v6  ;;  %v1908_v59 = vadd.f32 %v1907_v20, %v1869_v62  ;;  %v3594_v6 = vand.u32 4294901760, %v14142_v27 }
 0x24c   :  { %3389 = vmatpush.xpose.msrb.mxu2 %v3314_v50  ;;  %v3620_v36 = vand.u32 4294901760, %v3619_v2 }
 0x24d   :  { %3215 = vmatmul.f32.vlgmr.msrb.gmra.mxu3 %v3138_v53  ;;  %v1937_v60 = vadd.f32 %v1936_v34, %v1908_v59  ;;  %v3874_v59 = vsel %vm2808_vm8, %v13949_v30, 0 }
 0x24e   :  { %3411 = vmatpush.xpose.msrb.mxu3 %v14055_v54  ;;  %v1841_v8 = vpop.f32.mrf.mxu0  ;;  %v2018_v22 = vpop.f32.mrf.mxu1  ;;  %v3418_v54 = vsel %vm2808_vm8, %v13842_v17, 0 }
 0x24f   :  { %v1911_v21 = vpop.f32.mrf.mxu2  ;;  %v1842_v39 = vadd.f32 %v1841_v8, %v1807_v32  ;;  %v3725_v56 = vsel %vm2808_vm8, %v1937_v60, 0  ;;  %v14125_v58 = vand.u32 4294901760, %v3418_v54 }
 0x250   :  { %v1940_v42 = vpop.f32.mrf.mxu3  ;;  %v14127_v17 = vand.u32 4294901760, %v3725_v56 }
 0x251   :  { %3141 = vmatmul.f32.vlgmr.msrb.gmra.mxu0 %v3140_v0  ;;  %3261 = vmatmul.f32.vlgmr.msra.gmra.mxu1 %v14076_v4  ;;  %v1875_v14 = vadd.f32 %v1874_v24, %v1842_v39  ;;  %v3441_v47 = vsub.f32 %v3418_v54, %v14125_v58  ;;  %v3595_v24 = vsub.f32 %v14142_v27, %v3594_v6 }
 0x252   :  { %3340 = vmatpush.xpose.msrb.mxu0 %v14063_v25  ;;  %3469 = vmatpush.xpose.msra.mxu1 %v3468_v1  ;;  %v14138_v33 = vsub.f32 %v3725_v56, %v14127_v17  ;;  %v14184_v1 = vand.u32 4294901760, %v3874_v59 }
 0x253   :  { %3293 = vmatmul.f32.vlgmr.msra.gmra.mxu2 %v3292_v37  ;;  %v1912_v50 = vadd.f32 %v1911_v21, %v1875_v14  ;;  %v3596_v62 = vand.u32 4294901760, %v3595_v24 }
 0x254   :  { %3492 = vmatpush.xpose.msra.mxu2 %v14089_v9  ;;  %v3770_v51 = vand.u32 4294901760, %v14138_v33 }
 0x255   :  { %3319 = vmatmul.f32.vlgmr.msra.gmra.mxu3 %v14081_v55  ;;  %v1941_v45 = vadd.f32 %v1940_v42, %v1912_v50 }
 0x256   :  { %3515 = vmatpush.xpose.msra.mxu3 %v14078_v49  ;;  %v1969_v25 = vpop.f32.mrf.mxu0  ;;  %v2022_v26 = vpop.f32.mrf.mxu1  ;;  %v3771_v15 = vsub.f32 %v14138_v33, %v3770_v51 }
 0x257   :  { %v2052_v46 = vpop.f32.mrf.mxu2  ;;  %v3877_v40 = vsel %vm2808_vm8, %v1941_v45, 0 }
 0x258   :  { %v2084_v7 = vpop.f32.mrf.mxu3  ;;  %v14153_v18 = vand.u32 4294901760, %v3877_v40  ;;  %v3772_v28 = vand.u32 4294901760, %v3771_v15 }
 0x259   :  { %3239 = vmatmul.f32.vlgmr.msra.gmra.mxu0 %v14076_v4  ;;  %3367 = vmatmul.f32.vlgmr.msrb.gmra.mxu1 %v3290_v3  ;;  %v2019_v4 = vadd.f32 %v2018_v22, %v1969_v25 }
 0x25a   :  { %3439 = vmatpush.xpose.msra.mxu0 %v14078_v49  ;;  %3563 = vmatpush.xpose.msrb.mxu1 %v14078_v49  ;;  %v3442_v49 = vand.u32 4294901760, %v3441_v47  ;;  %v14163_v34 = vsub.f32 %v3877_v40, %v14153_v18 }
 0x25b   :  { %3391 = vmatmul.f32.vlgmr.msrb.gmra.mxu2 %v14081_v55  ;;  %v2053_v41 = vadd.f32 %v2052_v46, %v2019_v4 }
 0x25c   :  { %3591 = vmatpush.xpose.msrb.mxu2 %v14104_v38  ;;  %v3922_v29 = vand.u32 4294901760, %v14163_v34 }
 0x25d   :  { %3413 = vmatmul.f32.vlgmr.msrb.gmra.mxu3 %v14081_v55  ;;  %v3443_v55 = vsub.f32 %v3441_v47, %v3442_v49 }
 0x25e   :  { %3621 = vmatpush.xpose.msrb.mxu3 %v3620_v36  ;;  %v1977_v48 = vpop.f32.mrf.mxu0  ;;  %v2152_v16 = vpop.f32.mrf.mxu1  ;;  %v3923_v42 = vsub.f32 %v14163_v34, %v3922_v29 }
 0x25f   :  { %v2057_v43 = vpop.f32.mrf.mxu2  ;;  %v3444_v63 = vand.u32 4294901760, %v3443_v55  ;;  %v2023_v12 = vadd.f32 %v2022_v26, %v1977_v48 }
 0x260   :  { %v2090_v11 = vpop.f32.mrf.mxu3  ;;  %v3924_v54 = vand.u32 4294901760, %v3923_v42 }
 0x261   :  { %3343 = vmatmul.f32.vlgmr.msrb.gmra.mxu0 %v14093_v52  ;;  %3471 = vmatmul.f32.vlgmr.msra.gmra.mxu1 %v14125_v58  ;;  %v2085_v52 = vadd.f32 %v2084_v7, %v2053_v41  ;;  %v2058_v8 = vadd.f32 %v2057_v43, %v2023_v12 }
 0x262   :  { %3541 = vmatpush.xpose.msrb.mxu0 %v3466_v61  ;;  %3667 = vmatpush.xpose.msra.mxu1 %v14104_v38 }
 0x263   :  { %3495 = vmatmul.f32.vlgmr.msra.gmra.mxu2 %v3441_v47  ;;  %v2091_v30 = vadd.f32 %v2090_v11, %v2058_v8 }
 0x264   :  { %3693 = vmatpush.xpose.msra.mxu2 %v3618_v19  ;;  %v3897_v19 = vsub.f32 %v3874_v59, %v14184_v1 }
 0x265   :  { %3519 = vmatmul.f32.vlgmr.msra.gmra.mxu3 %v3442_v49 }
 0x266   :  { %3715 = vmatpush.xpose.msra.mxu3 %v14104_v38  ;;  %v2123_v53 = vpop.f32.mrf.mxu0  ;;  %v2156_v9 = vpop.f32.mrf.mxu1  ;;  %v3722_v38 = vsel %vm2808_vm8, %v13923_v5, 0 }
 0x267   :  { %v14160_v20 = vpop.f32.mrf.mxu2  ;;  %v2124_v61 = vadd.f32 %v2123_v53, %v2085_v52  ;;  %v3744_v32 = vand.u32 4294901760, %v3722_v38 }
 0x268   :  { %v14165_v3 = vpop.f32.mrf.mxu3 }
 0x269   :  { %3445 = vmatmul.f32.vlgmr.msra.gmra.mxu0 %v3444_v63  ;;  %3565 = vmatmul.f32.vlgmr.msrb.gmra.mxu1 %v14125_v58  ;;  %v2153_v35 = vadd.f32 %v2152_v16, %v2124_v61  ;;  %v3745_v37 = vsub.f32 %v3722_v38, %v3744_v32 }
 0x26a   :  { %3644 = vmatpush.xpose.msra.mxu0 %v14112_v13  ;;  %3773 = vmatpush.xpose.msrb.mxu1 %v3772_v28 }
 0x26b   :  { %3597 = vmatmul.f32.vlgmr.msrb.gmra.mxu2 %v3596_v62  ;;  %v4251_v5 = vand.u32 4294901760, %v2153_v35  ;;  %v3746_v23 = vand.u32 4294901760, %v3745_v37 }
 0x26c   :  { %3796 = vmatpush.xpose.msrb.mxu2 %v14138_v33 }
 0x26d   :  { %3623 = vmatmul.f32.vlgmr.msrb.gmra.mxu3 %v14130_v57  ;;  %v14190_v60 = vsub.f32 %v2153_v35, %v4251_v5  ;;  %v3747_v7 = vsub.f32 %v3745_v37, %v3746_v23 }
 0x26e   :  { %3819 = vmatpush.xpose.msrb.mxu3 %v14127_v17  ;;  %v2127_v22 = vpop.f32.mrf.mxu0  ;;  %v14177_v0 = vpop.f32.mrf.mxu1 }
 0x26f   :  { %v14179_v21 = vpop.f32.mrf.mxu2  ;;  %v2128_v39 = vadd.f32 %v2127_v22, %v2091_v30  ;;  %v4279_v46 = vand.u32 4294901760, %v14190_v60 }
 0x270   :  { %v14181_v13 = vpop.f32.mrf.mxu3 }
 0x271   :  { %3543 = vmatmul.f32.vlgmr.msrb.gmra.mxu0 %v14125_v58  ;;  %3671 = vmatmul.f32.vlgmr.msra.gmra.mxu1 %v3594_v6  ;;  %v2157_v26 = vadd.f32 %v2156_v9, %v2128_v39 }
 0x272   :  { %3743 = vmatpush.xpose.msrb.mxu0 %v14127_v17  ;;  %3867 = vmatpush.xpose.msra.mxu1 %v14127_v17  ;;  %v3898_v17 = vand.u32 4294901760, %v3897_v19 }
 0x273   :  { %3695 = vmatmul.f32.vlgmr.msra.gmra.mxu2 %v14130_v57  ;;  %v14208_v2 = vand.u32 4294901760, %v2157_v26 }
 0x274   :  { %3895 = vmatpush.xpose.msra.mxu2 %v14153_v18  ;;  %v3899_v50 = vsub.f32 %v3897_v19, %v3898_v17 }
 0x275   :  { %3717 = vmatmul.f32.vlgmr.msra.gmra.mxu3 %v14130_v57  ;;  %v4280_v57 = vsub.f32 %v14190_v60, %v4279_v46  ;;  %v14219_v45 = vsub.f32 %v2157_v26, %v14208_v2 }
 0x276   :  { %3925 = vmatpush.xpose.msra.mxu3 %v3924_v54  ;;  %v14195_v56 = vpop.f32.mrf.mxu0  ;;  %v14197_v14 = vpop.f32.mrf.mxu1  ;;  %v3900_v16 = vand.u32 4294901760, %v3899_v50 }
 0x277   :  { %v14199_v25 = vpop.f32.mrf.mxu2  ;;  %v4281_v48 = vand.u32 4294901760, %v4280_v57  ;;  %v16533_v49 = vand.u32 4294901760, %v14219_v45 }
 0x278   :  { %v14201_v58 = vpop.f32.mrf.mxu3 }
 0x279   :  { %3647 = vmatmul.f32.vlgmr.msra.gmra.mxu0 %v14142_v27  ;;  %3775 = vmatmul.f32.vlgmr.msrb.gmra.mxu1 %v3744_v32  ;;  %v3748_v27 = vand.u32 4294901760, %v3747_v7  ;;  %v4429_v40 = vsub.f32 %v14219_v45, %v16533_v49  ;;  %v14282_v7 = vld [vmem:[%s16524_s3] sm:$0xff] }
 0x27a   :  { %3845 = vmatpush.xpose.msra.mxu0 %v3770_v51  ;;  %3971 = vmatpush.xpose.msrb.mxu1 %v14153_v18 }
 0x27b   :  { %3799 = vmatmul.f32.vlgmr.msrb.gmra.mxu2 %v3745_v37  ;;  %v4430_v41 = vand.u32 4294901760, %v4429_v40 }
 0x27c   :  { %3997 = vmatpush.xpose.msrb.mxu2 %v3922_v29 }
 0x27d   :  { %3823 = vmatmul.f32.vlgmr.msrb.gmra.mxu3 %v3746_v23 }
 0x27e   :  { %4019 = vmatpush.xpose.msrb.mxu3 %v14153_v18  ;;  %v14212_v47 = vpop.f32.mrf.mxu0  ;;  %v14214_v36 = vpop.f32.mrf.mxu1 }
 0x27f   :  { %v14216_v33 = vpop.f32.mrf.mxu2 }
 0x280   :  { %v14221_v4 = vpop.f32.mrf.mxu3 }
 0x281   :  { %3749 = vmatmul.f32.vlgmr.msrb.gmra.mxu0 %v3748_v27  ;;  %3869 = vmatmul.f32.vlgmr.msra.gmra.mxu1 %v3744_v32 }
 0x282   :  { %3948 = vmatpush.xpose.msrb.mxu0 %v14163_v34  ;;  %4282 = vmatpush.msra.mxu1 %v4281_v48 }
 0x283   :  { %3901 = vmatmul.f32.vlgmr.msra.gmra.mxu2 %v3900_v16 }
 0x284   :  { %4305 = vmatpush.msra.mxu2 %v14190_v60 }
 0x285   :  { %3927 = vmatmul.f32.vlgmr.msra.gmra.mxu3 %v14184_v1 }
 0x286   :  { %4328 = vmatpush.msra.mxu3 %v4251_v5  ;;  %v14227_v43 = vpop.f32.mrf.mxu0  ;;  %v14229_v51 = vpop.f32.mrf.mxu1 }
 0x287   :  { %v14231_v11 = vpop.f32.mrf.mxu2 }
 0x288   :  { %v14233_v6 = vpop.f32.mrf.mxu3 }
 0x289   :  { %3847 = vmatmul.f32.vlgmr.msra.gmra.mxu0 %v3744_v32  ;;  %3975 = vmatmul.f32.vlgmr.msrb.gmra.mxu1 %v3898_v17 }
 0x28a   :  { %4252 = vmatpush.msra.mxu0 %v4251_v5  ;;  %4376 = vmatpush.msrb.mxu1 %v4251_v5 }
 0x28b   :  { %3999 = vmatmul.f32.vlgmr.msrb.gmra.mxu2 %v14184_v1 }
 0x28c   :  { %4401 = vmatpush.msrb.mxu2 %v14208_v2 }
 0x28d   :  { %4021 = vmatmul.f32.vlgmr.msrb.gmra.mxu3 %v14184_v1 }
 0x28e   :  { %4431 = vmatpush.msrb.mxu3 %v4430_v41  ;;  %v14241_v55 = vpop.f32.mrf.mxu0  ;;  %v14243_v18 = vpop.f32.mrf.mxu1 }
 0x28f   :  { %v14245_v15 = vpop.f32.mrf.mxu2 }
 0x290   :  { %v14247_v24 = vpop.f32.mrf.mxu3 }
 0x291   :  { %3951 = vmatmul.f32.vlgmr.msrb.gmra.mxu0 %v3897_v19 }
 0x292   :  { %4354 = vmatpush.msrb.mxu0 %v4279_v46 }
 0x296   :  { %v14249_v52 = vpop.f32.mrf.mxu0  ;;  %v14251_v53 = vpop.f32.mrf.mxu1 }
 0x297   :  { %v14253_v9 = vpop.f32.mrf.mxu2 }
 0x298   :  { %v14255_v63 = vpop.f32.mrf.mxu3 }
 0x29e   :  { %v14257_v34 = vpop.f32.mrf.mxu0  ;;  %v14259_v61 = vpop.f32.mrf.mxu1 }
 0x29f   :  { %v14261_v28 = vpop.f32.mrf.mxu2 }
 0x2a0   :  { %v14263_v62 = vpop.f32.mrf.mxu3 }
 0x2a6   :  { %v14265_v12 = vpop.f32.mrf.mxu0  ;;  %v14267_v38 = vpop.f32.mrf.mxu1 }
 0x2a7   :  { %v14269_v29 = vpop.f32.mrf.mxu2 }
 0x2a8   :  { %v14271_v35 = vpop.f32.mrf.mxu3 }
 0x2ae   :  { %v14273_v59 = vpop.f32.mrf.mxu0  ;;  %v2864_v8 = vpop.f32.mrf.mxu1 }
 0x2af   :  { %v14275_v22 = vpop.f32.mrf.mxu2 }
 0x2b0   :  { %16555 = vst [vmem:[#allocation8_spill] sm:$0xff] %v14275_v22  ;;  %v14277_v32 = vpop.f32.mrf.mxu3 }
 0x2b1   :  { %16556 = vst [vmem:[#allocation9_spill] sm:$0xff] %v14277_v32 }
 0x2b6   :  { %v2838_v5 = vpop.f32.mrf.mxu0  ;;  %v2958_v42 = vpop.f32.mrf.mxu1 }
 0x2b7   :  { %v2865_v1 = vadd.f32 %v2864_v8, %v2838_v5  ;;  %v2888_v30 = vpop.f32.mrf.mxu2 }
 0x2b8   :  { %v2912_v37 = vpop.f32.mrf.mxu3 }
 0x2b9   :  { %v2889_v60 = vadd.f32 %v2888_v30, %v2865_v1 }
 0x2bb   :  { %v2913_v39 = vadd.f32 %v2912_v37, %v2889_v60 }
 0x2be   :  { %v2936_v54 = vpop.f32.mrf.mxu0  ;;  %v3064_v19 = vpop.f32.mrf.mxu1 }
 0x2bf   :  { %v2937_v23 = vadd.f32 %v2936_v54, %v2913_v39  ;;  %v2990_v26 = vpop.f32.mrf.mxu2 }
 0x2c0   :  { %v3016_v46 = vpop.f32.mrf.mxu3 }
 0x2c1   :  { %v2959_v17 = vadd.f32 %v2958_v42, %v2937_v23  ;;  %v3017_v50 = vadd.f32 %v3016_v46, %v2990_v26 }
 0x2c3   :  { %v4025_v57 = vmul.f32 0.35355338, %v2959_v17 }
 0x2c5   :  { %v14285_v27 = vadd.f32 %v4025_v57, %v14282_v7 }
 0x2c6   :  { %v3040_v48 = vpop.f32.mrf.mxu0  ;;  %v3168_v16 = vpop.f32.mrf.mxu1 }
 0x2c7   :  { %v3041_v40 = vadd.f32 %v3040_v48, %v3017_v50  ;;  %v3088_v41 = vpop.f32.mrf.mxu2  ;;  %v4041_v8 = vsel %vm2808_vm8, %v14285_v27, -inf }
 0x2c8   :  { %4042 = vmax.xlane.f32.xlu2 %v4041_v8  ;;  %v3110_v5 = vpop.f32.mrf.mxu3 }
 0x2c9   :  { %v3065_v42 = vadd.f32 %v3064_v19, %v3041_v40 }
 0x2cb   :  { %v3089_v1 = vadd.f32 %v3088_v41, %v3065_v42 }
 0x2cd   :  { %v3111_v30 = vadd.f32 %v3110_v5, %v3089_v1 }
 0x2ce   :  { %v3142_v37 = vpop.f32.mrf.mxu0  ;;  %v3262_v23 = vpop.f32.mrf.mxu1 }
 0x2cf   :  { %v4026_v60 = vmul.f32 0.35355338, %v3111_v30  ;;  %v3169_v39 = vadd.f32 %v3168_v16, %v3142_v37  ;;  %v3192_v54 = vpop.f32.mrf.mxu2 }
 0x2d0   :  { %v3216_v26 = vpop.f32.mrf.mxu3 }
 0x2d1   :  { %v3193_v46 = vadd.f32 %v3192_v54, %v3169_v39  ;;  %v14290_v17 = vadd.f32 %v4026_v60, %v14282_v7 }
 0x2d3   :  { %v4044_v57 = vsel %vm2808_vm8, %v14290_v17, -inf  ;;  %v3217_v50 = vadd.f32 %v3216_v26, %v3193_v46 }
 0x2d4   :  { %4045 = vmax.xlane.f32.xlu2 %v4044_v57 }
 0x2d6   :  { %v3240_v48 = vpop.f32.mrf.mxu0  ;;  %v3368_v5 = vpop.f32.mrf.mxu1 }
 0x2d7   :  { %v3241_v8 = vadd.f32 %v3240_v48, %v3217_v50  ;;  %v3294_v19 = vpop.f32.mrf.mxu2 }
 0x2d8   :  { %v3320_v40 = vpop.f32.mrf.mxu3 }
 0x2d9   :  { %v3263_v41 = vadd.f32 %v3262_v23, %v3241_v8  ;;  %v3321_v16 = vadd.f32 %v3320_v40, %v3294_v19 }
 0x2db   :  { %v4027_v42 = vmul.f32 0.35355338, %v3263_v41 }
 0x2dd   :  { %v14295_v1 = vadd.f32 %v4027_v42, %v14282_v7 }
 0x2de   :  { %v3344_v30 = vpop.f32.mrf.mxu0  ;;  %v3472_v57 = vpop.f32.mrf.mxu1 }
 0x2df   :  { %v3345_v37 = vadd.f32 %v3344_v30, %v3321_v16  ;;  %v3392_v60 = vpop.f32.mrf.mxu2  ;;  %v4047_v39 = vsel %vm2808_vm8, %v14295_v1, -inf }
 0x2e0   :  { %v3414_v54 = vpop.f32.mrf.mxu3  ;;  %4048 = vmax.xlane.f32.xlu0 %v4047_v39 }
 0x2e1   :  { %v3369_v26 = vadd.f32 %v3368_v5, %v3345_v37 }
 0x2e3   :  { %v3393_v46 = vadd.f32 %v3392_v60, %v3369_v26 }
 0x2e5   :  { %v3415_v50 = vadd.f32 %v3414_v54, %v3393_v46 }
 0x2e6   :  { %v3446_v48 = vpop.f32.mrf.mxu0  ;;  %v3566_v49 = vpop.f32.mrf.mxu1 }
 0x2e7   :  { %v4028_v23 = vmul.f32 0.35355338, %v3415_v50  ;;  %v3473_v8 = vadd.f32 %v3472_v57, %v3446_v48  ;;  %v3496_v41 = vpop.f32.mrf.mxu2 }
 0x2e8   :  { %v3520_v19 = vpop.f32.mrf.mxu3 }
 0x2e9   :  { %v3497_v40 = vadd.f32 %v3496_v41, %v3473_v8  ;;  %v14300_v42 = vadd.f32 %v4028_v23, %v14282_v7 }
 0x2eb   :  { %v4050_v16 = vsel %vm2808_vm8, %v14300_v42, -inf  ;;  %v3521_v30 = vadd.f32 %v3520_v19, %v3497_v40 }
 0x2ec   :  { %4051 = vmax.xlane.f32.xlu1 %v4050_v16 }
 0x2ee   :  { %v3544_v39 = vpop.f32.mrf.mxu0  ;;  %v3672_v8 = vpop.f32.mrf.mxu1 }
 0x2ef   :  { %v3545_v5 = vadd.f32 %v3544_v39, %v3521_v30  ;;  %v3598_v37 = vpop.f32.mrf.mxu2 }
 0x2f0   :  { %v3624_v54 = vpop.f32.mrf.mxu3 }
 0x2f1   :  { %v3567_v60 = vadd.f32 %v3566_v49, %v3545_v5  ;;  %v3625_v46 = vadd.f32 %v3624_v54, %v3598_v37 }
 0x2f3   :  { %v4029_v26 = vmul.f32 0.35355338, %v3567_v60 }
 0x2f5   :  { %v14305_v57 = vadd.f32 %v4029_v26, %v14282_v7 }
 0x2f6   :  { %v3648_v50 = vpop.f32.mrf.mxu0  ;;  %v3776_v60 = vpop.f32.mrf.mxu1 }
 0x2f7   :  { %v3649_v48 = vadd.f32 %v3648_v50, %v3625_v46  ;;  %v4053_v23 = vsel %vm2808_vm8, %v14305_v57, -inf  ;;  %v3696_v19 = vpop.f32.mrf.mxu2 }
 0x2f8   :  { %4054 = vmax.xlane.f32.xlu2 %v4053_v23  ;;  %v3718_v16 = vpop.f32.mrf.mxu3 }
 0x2f9   :  { %v3673_v41 = vadd.f32 %v3672_v8, %v3649_v48 }
 0x2fb   :  { %v3697_v40 = vadd.f32 %v3696_v19, %v3673_v41 }
 0x2fd   :  { %v3719_v30 = vadd.f32 %v3718_v16, %v3697_v40 }
 0x2fe   :  { %v3750_v37 = vpop.f32.mrf.mxu0  ;;  %v3870_v8 = vpop.f32.mrf.mxu1 }
 0x2ff   :  { %v4030_v39 = vmul.f32 0.35355338, %v3719_v30  ;;  %v3777_v26 = vadd.f32 %v3776_v60, %v3750_v37  ;;  %v3800_v46 = vpop.f32.mrf.mxu2 }
 0x300   :  { %v3824_v54 = vpop.f32.mrf.mxu3 }
 0x301   :  { %v14310_v49 = vadd.f32 %v4030_v39, %v14282_v7  ;;  %v3801_v23 = vadd.f32 %v3800_v46, %v3777_v26 }
 0x303   :  { %v4056_v5 = vsel %vm2808_vm8, %v14310_v49, -inf  ;;  %v3825_v19 = vadd.f32 %v3824_v54, %v3801_v23 }
 0x304   :  { %4057 = vmax.xlane.f32.xlu1 %v4056_v5 }
 0x306   :  { %v3848_v50 = vpop.f32.mrf.mxu0  ;;  %v3976_v37 = vpop.f32.mrf.mxu1 }
 0x307   :  { %v3849_v30 = vadd.f32 %v3848_v50, %v3825_v19  ;;  %v3902_v39 = vpop.f32.mrf.mxu2 }
 0x308   :  { %v3928_v40 = vpop.f32.mrf.mxu3 }
 0x309   :  { %v3929_v44 = vadd.f32 %v3928_v40, %v3902_v39  ;;  %v3871_v5 = vadd.f32 %v3870_v8, %v3849_v30 }
 0x30b   :  { %v4031_v60 = vmul.f32 0.35355338, %v3871_v5 }
 0x30e   :  { %v3952_v10 = vpop.f32.mrf.mxu0 }
 0x30f   :  { %v3953_v31 = vadd.f32 %v3952_v10, %v3929_v44  ;;  %v4000_v54 = vpop.f32.mrf.mxu2 }
 0x310   :  { %v4022_v8 = vpop.f32.mrf.mxu3 }
 0x311   :  { %v3977_v22 = vadd.f32 %v3976_v37, %v3953_v31 }
 0x313   :  { %v4001_v23 = vadd.f32 %v4000_v54, %v3977_v22 }
 0x315   :  { %v4023_v10 = vadd.f32 %v4022_v8, %v4001_v23 }
 0x317   :  { %v4032_v31 = vmul.f32 0.35355338, %v4023_v10 }
 0x319   :  { %v14328_v22 = vadd.f32 %v4032_v31, %v14282_v7 }
 0x31b   :  { %v4062_v30 = vsel %vm2808_vm8, %v14328_v22, -inf }
 0x33b   :  { %v4043_v48 = vpop.xlane.xlu2 %4042 }
 0x33c   :  { %v4065_v41 = vsub.f32 %v14285_v27, %v4043_v48  ;;  %v4039_v48 = vadd.f32 %v4031_v60, %v14282_v7 }
 0x33e   :  { %v4073_v16 = vmul.f32 1.442695, %v4065_v41  ;;  %v4059_v44 = vsel %vm2808_vm8, %v4039_v48, -inf }
 0x340   :  { %12854 = vpow2.f32 %v4073_v16 }
 0x346   :  { %v14315_v32 = vpop.eup %12854 }
 0x347   :  { %v4046_v26 = vpop.xlane.xlu2 %4045  ;;  %v4089_v46 = vsel %vm2808_vm8, %v14315_v32, 0.0 }
 0x348   :  { %v4066_v27 = vsub.f32 %v14290_v17, %v4046_v26  ;;  %4090 = vadd.xlane.f32.xlu0 %v4089_v46 }
 0x34a   :  { %v4075_v50 = vmul.f32 1.442695, %v4066_v27 }
 0x34c   :  { %12856 = vpow2.f32 %v4075_v50 }
 0x350   :  { %4060 = vmax.xlane.f32.xlu0 %v4059_v44 }
 0x352   :  { %v14322_v41 = vpop.eup %12856 }
 0x353   :  { %v4049_v19 = vpop.xlane.xlu0 %4048  ;;  %v4092_v40 = vsel %vm2808_vm8, %v14322_v41, 0.0 }
 0x354   :  { %v4067_v17 = vsub.f32 %v14295_v1, %v4049_v19  ;;  %4093 = vadd.xlane.f32.xlu2 %v4092_v40 }
 0x356   :  { %v4077_v16 = vmul.f32 1.442695, %v4067_v17 }
 0x358   :  { %12858 = vpow2.f32 %v4077_v16 }
 0x35c   :  { %4063 = vmax.xlane.f32.xlu2 %v4062_v30 }
 0x35e   :  { %v14332_v39 = vpop.eup %12858 }
 0x35f   :  { %v4052_v5 = vpop.xlane.xlu1 %4051  ;;  %v4095_v37 = vsel %vm2808_vm8, %v14332_v39, 0.0 }
 0x360   :  { %v4068_v60 = vsub.f32 %v14300_v42, %v4052_v5  ;;  %4096 = vadd.xlane.f32.xlu1 %v4095_v37  ;;  %v2239_v37 = vadd.f32 %v14181_v13, %v14179_v21 }
 0x362   :  { %v4079_v1 = vmul.f32 1.442695, %v4068_v60 }
 0x364   :  { %12860 = vpow2.f32 %v4079_v1 }
 0x36a   :  { %v14337_v26 = vpop.eup %12860 }
 0x36b   :  { %v4055_v7 = vpop.xlane.xlu2 %4054  ;;  %v4098_v46 = vsel %vm2808_vm8, %v14337_v26, 0.0 }
 0x36c   :  { %v4069_v27 = vsub.f32 %v14305_v57, %v4055_v7  ;;  %4099 = vadd.xlane.f32.xlu0 %v4098_v46  ;;  %v2235_v57 = vadd.f32 %v14165_v3, %v14160_v20  ;;  %v2274_v20 = vadd.f32 %v14212_v47, %v2239_v37 }
 0x36e   :  { %v4081_v54 = vmul.f32 1.442695, %v4069_v27  ;;  %v2269_v19 = vadd.f32 %v14195_v56, %v2235_v57  ;;  %v2307_v21 = vadd.f32 %v14197_v14, %v2274_v20 }
 0x370   :  { %12862 = vpow2.f32 %v4081_v54  ;;  %v2301_v17 = vadd.f32 %v14177_v0, %v2269_v19 }
 0x376   :  { %v14342_v50 = vpop.eup %12862 }
 0x377   :  { %v4058_v23 = vpop.xlane.xlu1 %4057  ;;  %v4101_v42 = vsel %vm2808_vm8, %v14342_v50, 0.0 }
 0x378   :  { %v4070_v8 = vsub.f32 %v14310_v49, %v4058_v23  ;;  %4102 = vadd.xlane.f32.xlu1 %v4101_v42  ;;  %v2340_v49 = vadd.f32 %v14199_v25, %v2301_v17 }
 0x37a   :  { %v4083_v10 = vmul.f32 1.442695, %v4070_v8  ;;  %v2369_v1 = vadd.f32 %v14201_v58, %v2340_v49  ;;  %v2344_v8 = vadd.f32 %v14216_v33, %v2307_v21 }
 0x37c   :  { %12864 = vpow2.f32 %v4083_v10  ;;  %v14360_v25 = vand.u32 4294901760, %v2369_v1  ;;  %v2373_v33 = vadd.f32 %v14221_v4, %v2344_v8  ;;  %v16557_v4 = vand.u32 4294901760, %v14219_v45 }
 0x37e   :  { %v14364_v47 = vsub.f32 %v2369_v1, %v14360_v25 }
 0x382   :  { %v14347_v44 = vpop.eup %12864 }
 0x383   :  { %v4104_v31 = vsel %vm2808_vm8, %v14347_v44, 0.0 }
 0x384   :  { %4105 = vadd.xlane.f32.xlu2 %v4104_v31  ;;  %v2451_v31 = vadd.f32 %v14214_v36, %v14227_v43 }
 0x386   :  { %v2485_v43 = vadd.f32 %v14231_v11, %v2451_v31 }
 0x3bb   :  { %v4091_v40 = vpop.xlane.xlu0 %4090 }
 0x3bc   :  { %12866 = vrcp.f32 %v4091_v40  ;;  %v4124_v3 = vand.u32 2147483648, %v4091_v40  ;;  %v4122_v27 = vand.u32 2147483647, %v4091_v40  ;;  %vm4118_vm10 = vweird.f32 %v4091_v40 }
 0x3be   :  { %v4125_v13 = vor.u32 1.1754944e-38, %v4124_v3  ;;  %vm4123_vm12 = vcmp.eq.f32.partialorder %v4122_v27, 8.507059e+37 }
 0x3c2   :  { %v12867_v16 = vpop.eup %12866 }
 0x3c3   :  { %v4114_v30 = vmul.f32 %v12867_v16, %v4091_v40  ;;  %v4061_v5 = vpop.xlane.xlu0 %4060  ;;  %vm4119_vm9 = vweird.f32 %v12867_v16 }
 0x3c4   :  { %v4071_v60 = vsub.f32 %v4039_v48, %v4061_v5  ;;  %vm4120_vm11 = vmor %vm4118_vm10, %vm4119_vm9 }
 0x3c5   :  { %v4115_v7 = vsub.f32 1.0, %v4114_v30 }
 0x3c6   :  { %v4085_v56 = vmul.f32 1.442695, %v4071_v60 }
 0x3c7   :  { %v4116_v46 = vmul.f32 %v12867_v16, %v4115_v7  ;;  %v4094_v0 = vpop.xlane.xlu2 %4093  ;;  %v14392_v7 = vand.u32 4294901760, %v2373_v33 }
 0x3c8   :  { %12868 = vpow2.f32 %v4085_v56  ;;  %v4139_v5 = vand.u32 2147483648, %v4094_v0  ;;  %v4137_v60 = vand.u32 2147483647, %v4094_v0  ;;  %vm4133_vm14 = vweird.f32 %v4094_v0 }
 0x3c9   :  { %v4117_v54 = vadd.f32 %v12867_v16, %v4116_v46  ;;  %12870 = vrcp.f32 %v4094_v0  ;;  %v2517_v46 = vadd.f32 %v14233_v6, %v2485_v43  ;;  %v2455_v6 = vadd.f32 %v14229_v51, %v14241_v55 }
 0x3ca   :  { %v4140_v3 = vor.u32 1.1754944e-38, %v4139_v5  ;;  %vm4138_vm1 = vcmp.eq.f32.partialorder %v4137_v60, 8.507059e+37 }
 0x3cb   :  { %v4121_v58 = vsel %vm4120_vm11, %v12867_v16, %v4117_v54  ;;  %v2490_v51 = vadd.f32 %v14245_v15, %v2455_v6 }
 0x3cc   :  { %v4126_v48 = vsel %vm4123_vm12, %v4125_v13, %v4121_v58 }
 0x3cd   :  { %v4127_v23 = vmul.f32 %v14315_v32, %v4126_v48  ;;  %v4577_v32 = vand.u32 4294901760, %v14364_v47  ;;  %v14399_v48 = vsub.f32 %v2373_v33, %v14392_v7 }
 0x3ce   :  { %v14367_v42 = vpop.eup %12868 }
 0x3cf   :  { %v12871_v10 = vpop.eup %12870  ;;  %v4064_v57 = vpop.xlane.xlu2 %4063  ;;  %v4107_v14 = vsel %vm2808_vm8, %v14367_v42, 0.0  ;;  %v4234_v19 = vsel %vm2808_vm8, %v4127_v23, 0  ;;  %v4578_v11 = vsub.f32 %v14364_v47, %v4577_v32 }
 0x3d0   :  { %v4129_v40 = vmul.f32 %v12871_v10, %v4094_v0  ;;  %v4072_v17 = vsub.f32 %v14328_v22, %v4064_v57  ;;  %4108 = vadd.xlane.f32.xlu0 %v4107_v14  ;;  %v14376_v49 = vand.u32 4294901760, %v4234_v19  ;;  %vm4134_vm13 = vweird.f32 %v12871_v10 }
 0x3d1   :  { %vm4135_vm15 = vmor %vm4133_vm14, %vm4134_vm13  ;;  %v4579_v13 = vand.u32 4294901760, %v4578_v11  ;;  %v2556_v0 = vadd.f32 %v14249_v52, %v2517_v46 }
 0x3d2   :  { %v4130_v16 = vsub.f32 1.0, %v4129_v40  ;;  %v4087_v30 = vmul.f32 1.442695, %v4072_v17  ;;  %4284 = vmatmul.f32.vlgmr.msra.gmra.mxu1 %v14376_v49  ;;  %v4254_v36 = vsub.f32 %v4234_v19, %v14376_v49 }
 0x3d3   :  { %4477 = vmatpush.msra.mxu1 %v14208_v2  ;;  %v14384_v37 = vpop.xlane.xlu1 %4096  ;;  %v2585_v57 = vadd.f32 %v14243_v18, %v2556_v0 }
 0x3d4   :  { %v4131_v22 = vmul.f32 %v12871_v10, %v4130_v16  ;;  %12872 = vpow2.f32 %v4087_v30  ;;  %4308 = vmatmul.f32.vlgmr.msra.gmra.mxu2 %v4254_v36  ;;  %v4255_v1 = vand.u32 4294901760, %v4254_v36  ;;  %v4154_v55 = vand.u32 2147483648, %v14384_v37 }
 0x3d5   :  { %12874 = vrcp.f32 %v14384_v37  ;;  %4503 = vmatpush.msra.mxu2 %v16557_v4  ;;  %v4152_v17 = vand.u32 2147483647, %v14384_v37  ;;  %v14421_v16 = vand.u32 4294901760, %v2585_v57  ;;  %vm4148_vm3 = vweird.f32 %v14384_v37 }
 0x3d6   :  { %v4132_v20 = vadd.f32 %v12871_v10, %v4131_v22  ;;  %4332 = vmatmul.f32.vlgmr.msra.gmra.mxu3 %v4255_v1  ;;  %v4256_v56 = vsub.f32 %v4254_v36, %v4255_v1  ;;  %v2523_v30 = vadd.f32 %v14247_v24, %v2490_v51  ;;  %v4155_v36 = vor.u32 1.1754944e-38, %v4154_v55 }
 0x3d7   :  { %4525 = vmatpush.msra.mxu3 %v14208_v2  ;;  %vm4153_vm5 = vcmp.eq.f32.partialorder %v4152_v17, 8.507059e+37  ;;  %v14433_v1 = vsub.f32 %v2585_v57, %v14421_v16  ;;  %v2671_v55 = vadd.f32 %v14263_v62, %v14261_v28 }
 0x3d8   :  { %v4136_v27 = vsel %vm4135_vm15, %v12871_v10, %v4132_v20  ;;  %v4257_v21 = vand.u32 4294901760, %v4256_v56  ;;  %v2667_v20 = vadd.f32 %v14255_v63, %v14253_v9 }
 0x3d9   :  { %v4141_v54 = vsel %vm4138_vm1, %v4140_v3, %v4136_v27  ;;  %v4875_v27 = vand.u32 4294901760, %v14433_v1 }
 0x3da   :  { %v14396_v58 = vpop.eup %12872  ;;  %v4142_v23 = vmul.f32 %v14322_v41, %v4141_v54  ;;  %4378 = vmatmul.f32.vlgmr.msrb.gmra.mxu1 %v14376_v49  ;;  %4258 = vmatmul.f32.vlgmr.msra.gmra.mxu0 %v4257_v21  ;;  %v4726_v41 = vand.u32 4294901760, %v14399_v48 }
 0x3db   :  { %v12875_v8 = vpop.eup %12874  ;;  %4580 = vmatpush.msrb.mxu1 %v4579_v13  ;;  %v4110_v2 = vsel %vm2808_vm8, %v14396_v58, 0.0  ;;  %4454 = vmatpush.msra.mxu0 %v14219_v45 }
 0x3dc   :  { %v4144_v10 = vmul.f32 %v12875_v8, %v14384_v37  ;;  %4111 = vadd.xlane.f32.xlu1 %v4110_v2  ;;  %v4383_v52 = vsel %vm2808_vm8, %v4142_v23, 0  ;;  %vm4149_vm2 = vweird.f32 %v12875_v8  ;;  %v4727_v15 = vsub.f32 %v14399_v48, %v4726_v41 }
 0x3dd   :  { %v14411_v31 = vand.u32 4294901760, %v4383_v52  ;;  %vm4150_vm4 = vmor %vm4148_vm3, %vm4149_vm2  ;;  %v2560_v37 = vadd.f32 %v14257_v34, %v2523_v30 }
 0x3de   :  { %v4145_v14 = vsub.f32 1.0, %v4144_v10  ;;  %v4728_v11 = vand.u32 4294901760, %v4727_v15 }
 0x3df   :  { %v4403_v19 = vsub.f32 %v4383_v52, %v14411_v31  ;;  %4433 = vmatmul.f32.vlgmr.msrb.gmra.mxu3 %v14411_v31  ;;  %v4100_v40 = vpop.xlane.xlu0 %4099 }
 0x3e0   :  { %v4146_v45 = vmul.f32 %v12875_v8, %v4145_v14  ;;  %4626 = vmatpush.msrb.mxu3 %v14360_v25  ;;  %12876 = vrcp.f32 %v4100_v40  ;;  %v4169_v46 = vand.u32 2147483648, %v4100_v40  ;;  %v4167_v21 = vand.u32 2147483647, %v4100_v40 }
 0x3e1   :  { %v4404_v33 = vand.u32 4294901760, %v4403_v19  ;;  %vm4163_vm7 = vweird.f32 %v4100_v40 }
 0x3e2   :  { %v4147_v18 = vadd.f32 %v12875_v8, %v4146_v45  ;;  %4356 = vmatmul.f32.vlgmr.msrb.gmra.mxu0 %v14376_v49  ;;  %v4170_v23 = vor.u32 1.1754944e-38, %v4169_v46  ;;  %vm4168_vm10 = vcmp.eq.f32.partialorder %v4167_v21, 8.507059e+37 }
 0x3e3   :  { %4481 = vmatmul.f32.vlgmr.msra.gmra.mxu1 %v4404_v33  ;;  %v4405_v43 = vsub.f32 %v4403_v19, %v4404_v33  ;;  %4550 = vmatpush.msrb.mxu0 %v14360_v25 }
 0x3e4   :  { %v4151_v5 = vsel %vm4150_vm4, %v12875_v8, %v4147_v18  ;;  %4674 = vmatpush.msra.mxu1 %v14360_v25  ;;  %v2589_v25 = vadd.f32 %v14251_v53, %v2560_v37  ;;  %v4876_v8 = vsub.f32 %v14433_v1, %v4875_v27 }
 0x3e5   :  { %v4156_v22 = vsel %vm4153_vm5, %v4155_v36, %v4151_v5  ;;  %v4406_v60 = vand.u32 4294901760, %v4405_v43 }
 0x3e6   :  { %v12877_v4 = vpop.eup %12876  ;;  %v4157_v24 = vmul.f32 %v14332_v39, %v4156_v22  ;;  %v2701_v39 = vadd.f32 %v14265_v12, %v2667_v20  ;;  %v14451_v53 = vand.u32 4294901760, %v2589_v25  ;;  %v4877_v14 = vand.u32 4294901760, %v4876_v8 }
 0x3e7   :  { %v4159_v49 = vmul.f32 %v12877_v4, %v4100_v40  ;;  %4407 = vmatmul.f32.vlgmr.msrb.gmra.mxu2 %v4406_v60  ;;  %4527 = vmatmul.f32.vlgmr.msra.gmra.mxu3 %v14411_v31  ;;  %vm4164_vm6 = vweird.f32 %v12877_v4  ;;  %v2706_v40 = vadd.f32 %v14273_v59, %v2671_v55  ;;  %v16558_v60 = vld [vmem:[#allocation8_spill] sm:$0xff]  ;;  %v143_v55 = vld [vmem:[%s16527_s6] sm:$0xff] }
 0x3e8   :  { %4603 = vmatpush.msrb.mxu2 %v14364_v47  ;;  %4729 = vmatpush.msra.mxu3 %v4728_v11  ;;  %v4532_v34 = vsel %vm2808_vm8, %v4157_v24, 0  ;;  %v2733_v0 = vadd.f32 %v14259_v61, %v2701_v39  ;;  %vm4165_vm9 = vmor %vm4163_vm7, %vm4164_vm6  ;;  %v14461_v2 = vsub.f32 %v2589_v25, %v14451_v53 }
 0x3e9   :  { %v4160_v3 = vsub.f32 1.0, %v4159_v49  ;;  %v14442_v56 = vand.u32 4294901760, %v4532_v34  ;;  %v2739_v15 = vadd.f32 %v14267_v38, %v2706_v40 }
 0x3ea   :  { %4457 = vmatmul.f32.vlgmr.msra.gmra.mxu0 %v4403_v19  ;;  %v2772_v57 = vadd.f32 %v14269_v29, %v2733_v0  ;;  %v5024_v19 = vand.u32 4294901760, %v14461_v2 }
 0x3eb   :  { %v4161_v54 = vmul.f32 %v12877_v4, %v4160_v3  ;;  %v4552_v9 = vsub.f32 %v4532_v34, %v14442_v56  ;;  %4582 = vmatmul.f32.vlgmr.msrb.gmra.mxu1 %v14442_v56  ;;  %v4103_v63 = vpop.xlane.xlu1 %4102  ;;  %4652 = vmatpush.msra.mxu0 %v4577_v32  ;;  %v16559_v34 = vld [vmem:[#allocation9_spill] sm:$0xff] }
 0x3ec   :  { %4775 = vmatpush.msrb.mxu1 %v14392_v7  ;;  %12878 = vrcp.f32 %v4103_v63  ;;  %v2801_v29 = vadd.f32 %v14271_v35, %v2772_v57  ;;  %v4184_v45 = vand.u32 2147483648, %v4103_v63  ;;  %v4182_v18 = vand.u32 2147483647, %v4103_v63 }
 0x3ed   :  { %v4162_v12 = vadd.f32 %v12877_v4, %v4161_v54  ;;  %v4553_v13 = vand.u32 4294901760, %v4552_v9  ;;  %vm4178_vm12 = vweird.f32 %v4103_v63  ;;  %v5025_v36 = vsub.f32 %v14461_v2, %v5024_v19 }
 0x3ee   :  { %v14480_v59 = vand.u32 4294901760, %v2801_v29  ;;  %v4185_v30 = vor.u32 1.1754944e-38, %v4184_v45  ;;  %vm4183_vm14 = vcmp.eq.f32.partialorder %v4182_v18, 8.507059e+37 }
 0x3ef   :  { %v4166_v6 = vsel %vm4165_vm9, %v12877_v4, %v4162_v12  ;;  %4505 = vmatmul.f32.vlgmr.msra.gmra.mxu2 %v14411_v31  ;;  %4630 = vmatmul.f32.vlgmr.msrb.gmra.mxu3 %v4553_v13  ;;  %v4554_v47 = vsub.f32 %v4552_v9, %v4553_v13  ;;  %v2776_v4 = vadd.f32 %v16558_v60, %v2739_v15  ;;  %v5026_v24 = vand.u32 4294901760, %v5025_v36 }
 0x3f0   :  { %v4171_v32 = vsel %vm4168_vm10, %v4170_v23, %v4166_v6  ;;  %4699 = vmatpush.msra.mxu2 %v14392_v7  ;;  %4823 = vmatpush.msrb.mxu3 %v14392_v7  ;;  %v14491_v22 = vsub.f32 %v2801_v29, %v14480_v59 }
 0x3f1   :  { %v4172_v61 = vmul.f32 %v14337_v26, %v4171_v32  ;;  %v4555_v10 = vand.u32 4294901760, %v4554_v47  ;;  %v2805_v25 = vadd.f32 %v16559_v34, %v2776_v4 }
 0x3f2   :  { %v12879_v52 = vpop.eup %12878 }
 0x3f3   :  { %v4174_v51 = vmul.f32 %v12879_v52, %v4103_v63  ;;  %4556 = vmatmul.f32.vlgmr.msrb.gmra.mxu0 %v4555_v10  ;;  %4676 = vmatmul.f32.vlgmr.msra.gmra.mxu1 %v14442_v56  ;;  %v4681_v31 = vsel %vm2808_vm8, %v4172_v61, 0  ;;  %vm4179_vm11 = vweird.f32 %v12879_v52 }
 0x3f4   :  { %4752 = vmatpush.msrb.mxu0 %v14399_v48  ;;  %4878 = vmatpush.msra.mxu1 %v4877_v14  ;;  %v14470_v7 = vand.u32 4294901760, %v4681_v31  ;;  %vm4180_vm13 = vmor %vm4178_vm12, %vm4179_vm11 }
 0x3f5   :  { %v4175_v26 = vsub.f32 1.0, %v4174_v51 }
 0x3f6   :  { %v4701_v17 = vsub.f32 %v4681_v31, %v14470_v7 }
 0x3f7   :  { %v4176_v33 = vmul.f32 %v12879_v52, %v4175_v26  ;;  %4606 = vmatmul.f32.vlgmr.msrb.gmra.mxu2 %v4552_v9  ;;  %4731 = vmatmul.f32.vlgmr.msra.gmra.mxu3 %v14470_v7  ;;  %v4106_v28 = vpop.xlane.xlu2 %4105  ;;  %v14502_v9 = vand.u32 4294901760, %v2805_v25 }
 0x3f8   :  { %4801 = vmatpush.msrb.mxu2 %v4726_v41  ;;  %4924 = vmatpush.msra.mxu3 %v14421_v16  ;;  %12880 = vrcp.f32 %v4106_v28  ;;  %v4702_v35 = vand.u32 4294901760, %v4701_v17  ;;  %v4199_v3 = vand.u32 2147483648, %v4106_v28  ;;  %v4197_v46 = vand.u32 2147483647, %v4106_v28 }
 0x3f9   :  { %v4177_v62 = vadd.f32 %v12879_v52, %v4176_v33  ;;  %vm4193_vm1 = vweird.f32 %v4106_v28  ;;  %v14510_v8 = vsub.f32 %v2805_v25, %v14502_v9 }
 0x3fa   :  { %v4703_v48 = vsub.f32 %v4701_v17, %v4702_v35  ;;  %v4200_v63 = vor.u32 1.1754944e-38, %v4199_v3  ;;  %vm4198_vm3 = vcmp.eq.f32.partialorder %v4197_v46, 8.507059e+37 }
 0x3fb   :  { %v4181_v43 = vsel %vm4180_vm13, %v12879_v52, %v4177_v62  ;;  %4654 = vmatmul.f32.vlgmr.msra.gmra.mxu0 %v14442_v56  ;;  %4779 = vmatmul.f32.vlgmr.msrb.gmra.mxu1 %v4702_v35  ;;  %v5322_v61 = vand.u32 4294901760, %v14510_v8 }
 0x3fc   :  { %v4186_v41 = vsel %vm4183_vm14, %v4185_v30, %v4181_v43  ;;  %4848 = vmatpush.msra.mxu0 %v14421_v16  ;;  %4972 = vmatpush.msrb.mxu1 %v14421_v16  ;;  %v4704_v38 = vand.u32 4294901760, %v4703_v48 }
 0x3fd   :  { %v4187_v5 = vmul.f32 %v14342_v50, %v4186_v41  ;;  %v5173_v50 = vand.u32 4294901760, %v14491_v22  ;;  %v5323_v52 = vsub.f32 %v14510_v8, %v5322_v61 }
 0x3fe   :  { %v12881_v37 = vpop.eup %12880 }
 0x3ff   :  { %v4189_v11 = vmul.f32 %v12881_v37, %v4106_v28  ;;  %4705 = vmatmul.f32.vlgmr.msra.gmra.mxu2 %v4704_v38  ;;  %4825 = vmatmul.f32.vlgmr.msrb.gmra.mxu3 %v14470_v7  ;;  %v4830_v49 = vsel %vm2808_vm8, %v4187_v5, 0  ;;  %vm4194_vm15 = vweird.f32 %v12881_v37  ;;  %v5174_v13 = vsub.f32 %v14491_v22, %v5173_v50 }
 0x400   :  { %4901 = vmatpush.msra.mxu2 %v14433_v1  ;;  %5027 = vmatpush.msrb.mxu3 %v5026_v24  ;;  %v4849_v16 = vand.u32 4294901760, %v4830_v49  ;;  %vm4195_vm2 = vmor %vm4193_vm1, %vm4194_vm15  ;;  %v5324_v14 = vand.u32 4294901760, %v5323_v52 }
 0x401   :  { %v4190_v20 = vsub.f32 1.0, %v4189_v11  ;;  %v5175_v6 = vand.u32 4294901760, %v5174_v13 }
 0x402   :  { %v4850_v56 = vsub.f32 %v4830_v49, %v4849_v16 }
 0x403   :  { %v4191_v39 = vmul.f32 %v12881_v37, %v4190_v20  ;;  %4755 = vmatmul.f32.vlgmr.msrb.gmra.mxu0 %v4701_v17  ;;  %4880 = vmatmul.f32.vlgmr.msra.gmra.mxu1 %v4849_v16 }
 0x404   :  { %4950 = vmatpush.msrb.mxu0 %v4875_v27  ;;  %5073 = vmatpush.msra.mxu1 %v14451_v53  ;;  %v4851_v54 = vand.u32 4294901760, %v4850_v56 }
 0x405   :  { %v4192_v21 = vadd.f32 %v12881_v37, %v4191_v39 }
 0x406   :  { %v4852_v12 = vsub.f32 %v4850_v56, %v4851_v54 }
 0x407   :  { %v4196_v0 = vsel %vm4195_vm2, %v12881_v37, %v4192_v21  ;;  %4803 = vmatmul.f32.vlgmr.msrb.gmra.mxu2 %v14470_v7  ;;  %4928 = vmatmul.f32.vlgmr.msra.gmra.mxu3 %v4851_v54 }
 0x408   :  { %v4201_v23 = vsel %vm4198_vm3, %v4200_v63, %v4196_v0  ;;  %4997 = vmatpush.msrb.mxu2 %v14451_v53  ;;  %5121 = vmatpush.msra.mxu3 %v14451_v53  ;;  %v4853_v1 = vand.u32 4294901760, %v4852_v12 }
 0x409   :  { %v4202_v27 = vmul.f32 %v14347_v44, %v4201_v23 }
 0x40b   :  { %4854 = vmatmul.f32.vlgmr.msra.gmra.mxu0 %v4853_v1  ;;  %4974 = vmatmul.f32.vlgmr.msrb.gmra.mxu1 %v4849_v16  ;;  %v4979_v47 = vsel %vm2808_vm8, %v4202_v27, 0 }
 0x40c   :  { %5050 = vmatpush.msra.mxu0 %v14461_v2  ;;  %5176 = vmatpush.msrb.mxu1 %v5175_v6  ;;  %v4998_v32 = vand.u32 4294901760, %v4979_v47 }
 0x40e   :  { %v4999_v10 = vsub.f32 %v4979_v47, %v4998_v32 }
 0x40f   :  { %4904 = vmatmul.f32.vlgmr.msra.gmra.mxu2 %v4850_v56  ;;  %5029 = vmatmul.f32.vlgmr.msrb.gmra.mxu3 %v4998_v32 }
 0x410   :  { %5099 = vmatpush.msra.mxu2 %v5024_v19  ;;  %5222 = vmatpush.msrb.mxu3 %v14480_v59  ;;  %v5000_v44 = vand.u32 4294901760, %v4999_v10  ;;  %v14528_v19 = vand.u32 4294901760, %v143_v55 }
 0x412   :  { %v5001_v53 = vsub.f32 %v4999_v10, %v5000_v44  ;;  %v14531_v28 = vsub.f32 %v143_v55, %v14528_v19 }
 0x413   :  { %4952 = vmatmul.f32.vlgmr.msrb.gmra.mxu0 %v4849_v16  ;;  %5077 = vmatmul.f32.vlgmr.msra.gmra.mxu1 %v5000_v44 }
 0x414   :  { %5146 = vmatpush.msrb.mxu0 %v14480_v59  ;;  %5270 = vmatpush.msra.mxu1 %v14480_v59  ;;  %v5002_v57 = vand.u32 4294901760, %v5001_v53  ;;  %v5482_v30 = vand.u32 4294901760, %v14531_v28 }
 0x417   :  { %5003 = vmatmul.f32.vlgmr.msrb.gmra.mxu2 %v5002_v57  ;;  %5123 = vmatmul.f32.vlgmr.msra.gmra.mxu3 %v4998_v32 }
 0x418   :  { %5199 = vmatpush.msrb.mxu2 %v14491_v22  ;;  %5325 = vmatpush.msra.mxu3 %v5324_v14 }
 0x41b   :  { %5053 = vmatmul.f32.vlgmr.msra.gmra.mxu0 %v4999_v10 }
 0x41c   :  { %5248 = vmatpush.msra.mxu0 %v5173_v50  ;;  %v144_v50 = vld [vmem:[%s16527_s6 + $0x8] sm:$0xff] }
 0x41d   :  { %v14545_v25 = vand.u32 4294901760, %v144_v50 }
 0x41f   :  { %5101 = vmatmul.f32.vlgmr.msra.gmra.mxu2 %v4998_v32  ;;  %v14549_v21 = vsub.f32 %v144_v50, %v14545_v25 }
 0x420   :  { %5295 = vmatpush.msra.mxu2 %v14502_v9 }
 0x443   :  { %v4109_v2 = vpop.xlane.xlu0 %4108 }
 0x444   :  { %12882 = vrcp.f32 %v4109_v2  ;;  %v4214_v26 = vand.u32 2147483648, %v4109_v2  ;;  %v4212_v40 = vand.u32 2147483647, %v4109_v2  ;;  %vm4208_vm5 = vweird.f32 %v4109_v2 }
 0x446   :  { %v4215_v18 = vor.u32 1.1754944e-38, %v4214_v26  ;;  %vm4213_vm7 = vcmp.eq.f32.partialorder %v4212_v40, 8.507059e+37 }
 0x44a   :  { %v12883_v51 = vpop.eup %12882 }
 0x44b   :  { %v4204_v31 = vmul.f32 %v12883_v51, %v4109_v2  ;;  %vm4209_vm4 = vweird.f32 %v12883_v51 }
 0x44c   :  { %vm4210_vm6 = vmor %vm4208_vm5, %vm4209_vm4 }
 0x44d   :  { %v4205_v7 = vsub.f32 1.0, %v4204_v31 }
 0x44f   :  { %v4206_v29 = vmul.f32 %v12883_v51, %v4205_v7  ;;  %v4112_v45 = vpop.xlane.xlu1 %4111  ;;  %v4285_v17 = vpop.f32.mrf.mxu1 }
 0x450   :  { %12884 = vrcp.f32 %v4112_v45  ;;  %v4229_v22 = vand.u32 2147483648, %v4112_v45  ;;  %v4227_v49 = vand.u32 2147483647, %v4112_v45  ;;  %vm4223_vm10 = vweird.f32 %v4112_v45 }
 0x451   :  { %v4207_v33 = vadd.f32 %v12883_v51, %v4206_v29 }
 0x452   :  { %v4230_v3 = vor.u32 1.1754944e-38, %v4229_v22  ;;  %vm4228_vm12 = vcmp.eq.f32.partialorder %v4227_v49, 8.507059e+37 }
 0x453   :  { %v4211_v62 = vsel %vm4210_vm6, %v12883_v51, %v4207_v33 }
 0x454   :  { %v4216_v35 = vsel %vm4213_vm7, %v4215_v18, %v4211_v62 }
 0x455   :  { %v4217_v59 = vmul.f32 %v14367_v42, %v4216_v35  ;;  %v5483_v42 = vsub.f32 %v14531_v28, %v5482_v30 }
 0x456   :  { %v12885_v15 = vpop.eup %12884 }
 0x457   :  { %v4219_v36 = vmul.f32 %v12885_v15, %v4112_v45  ;;  %v5128_v43 = vsel %vm2808_vm8, %v4217_v59, 0  ;;  %v4259_v48 = vpop.f32.mrf.mxu0  ;;  %v4309_v37 = vpop.f32.mrf.mxu2  ;;  %vm4224_vm9 = vweird.f32 %v12885_v15  ;;  %v5484_v39 = vand.u32 4294901760, %v5483_v42 }
 0x458   :  { %v5147_v41 = vand.u32 4294901760, %v5128_v43  ;;  %v4286_v38 = vadd.f32 %v4285_v17, %v4259_v48  ;;  %v4379_v60 = vpop.f32.mrf.mxu1  ;;  %vm4225_vm11 = vmor %vm4223_vm10, %vm4224_vm9 }
 0x459   :  { %v4220_v5 = vsub.f32 1.0, %v4219_v36  ;;  %v4333_v4 = vpop.f32.mrf.mxu3 }
 0x45a   :  { %5178 = vmatmul.f32.vlgmr.msrb.gmra.mxu1 %v5147_v41  ;;  %v5148_v24 = vsub.f32 %v5128_v43, %v5147_v41  ;;  %v4310_v16 = vadd.f32 %v4309_v37, %v4286_v38 }
 0x45b   :  { %v4221_v11 = vmul.f32 %v12885_v15, %v4220_v5  ;;  %5371 = vmatpush.msrb.mxu1 %v14502_v9 }
 0x45c   :  { %5202 = vmatmul.f32.vlgmr.msrb.gmra.mxu2 %v5148_v24  ;;  %v5149_v20 = vand.u32 4294901760, %v5148_v24  ;;  %v4334_v54 = vadd.f32 %v4333_v4, %v4310_v16 }
 0x45d   :  { %v4222_v34 = vadd.f32 %v12885_v15, %v4221_v11  ;;  %5397 = vmatpush.msrb.mxu2 %v5322_v61 }
 0x45e   :  { %5226 = vmatmul.f32.vlgmr.msrb.gmra.mxu3 %v5149_v20  ;;  %v5150_v56 = vsub.f32 %v5148_v24, %v5149_v20 }
 0x45f   :  { %v4226_v46 = vsel %vm4225_vm11, %v12885_v15, %v4222_v34  ;;  %5419 = vmatpush.msrb.mxu3 %v14502_v9  ;;  %v4357_v12 = vpop.f32.mrf.mxu0  ;;  %v5665_v9 = vand.u32 4294901760, %v14549_v21 }
 0x460   :  { %v4231_v63 = vsel %vm4228_vm12, %v4230_v3, %v4226_v46  ;;  %v5151_v13 = vand.u32 4294901760, %v5150_v56  ;;  %v4358_v23 = vadd.f32 %v4357_v12, %v4334_v54  ;;  %v4482_v47 = vpop.f32.mrf.mxu1 }
 0x461   :  { %v4232_v0 = vmul.f32 %v14396_v58, %v4231_v63  ;;  %v5666_v58 = vsub.f32 %v14549_v21, %v5665_v9 }
 0x462   :  { %v4434_v1 = vpop.f32.mrf.mxu3  ;;  %5152 = vmatmul.f32.vlgmr.msrb.gmra.mxu0 %v5151_v13  ;;  %5272 = vmatmul.f32.vlgmr.msra.gmra.mxu1 %v5147_v41  ;;  %v4380_v27 = vadd.f32 %v4379_v60, %v4358_v23 }
 0x463   :  { %5348 = vmatpush.msrb.mxu0 %v14510_v8  ;;  %v5277_v6 = vsel %vm2808_vm8, %v4232_v0, 0  ;;  %5485 = vmatpush.msra.mxu1 %v5484_v39  ;;  %v5667_v51 = vand.u32 4294901760, %v5666_v58 }
 0x464   :  { %v5296_v32 = vand.u32 4294901760, %v5277_v6  ;;  %v5426_v61 = vsel %vm2808_vm8, %v4380_v27, 0 }
 0x465   :  { %v14560_v44 = vand.u32 4294901760, %v5426_v61 }
 0x466   :  { %v5297_v10 = vsub.f32 %v5277_v6, %v5296_v32  ;;  %5327 = vmatmul.f32.vlgmr.msra.gmra.mxu3 %v5296_v32 }
 0x467   :  { %5540 = vmatpush.msra.mxu3 %v14528_v19  ;;  %v4458_v8 = vpop.f32.mrf.mxu0  ;;  %v5449_v31 = vsub.f32 %v5426_v61, %v14560_v44 }
 0x468   :  { %v5298_v53 = vand.u32 4294901760, %v5297_v10  ;;  %v4583_v26 = vpop.f32.mrf.mxu1 }
 0x469   :  { %v5450_v29 = vand.u32 4294901760, %v5449_v31 }
 0x46a   :  { %v4408_v52 = vpop.f32.mrf.mxu2  ;;  %v4528_v57 = vpop.f32.mrf.mxu3  ;;  %5250 = vmatmul.f32.vlgmr.msra.gmra.mxu0 %v5147_v41  ;;  %5375 = vmatmul.f32.vlgmr.msrb.gmra.mxu1 %v5298_v53  ;;  %v5299_v14 = vsub.f32 %v5297_v10, %v5298_v53 }
 0x46b   :  { %v4435_v2 = vadd.f32 %v4434_v1, %v4408_v52  ;;  %5447 = vmatpush.msra.mxu0 %v14528_v19  ;;  %5598 = vmatpush.msrb.mxu1 %v14528_v19  ;;  %v5451_v18 = vsub.f32 %v5449_v31, %v5450_v29 }
 0x46c   :  { %v5300_v55 = vand.u32 4294901760, %v5299_v14 }
 0x46d   :  { %v4459_v7 = vadd.f32 %v4458_v8, %v4435_v2  ;;  %v5452_v59 = vand.u32 4294901760, %v5451_v18 }
 0x46e   :  { %5301 = vmatmul.f32.vlgmr.msra.gmra.mxu2 %v5300_v55  ;;  %5421 = vmatmul.f32.vlgmr.msrb.gmra.mxu3 %v5296_v32 }
 0x46f   :  { %5512 = vmatpush.msra.mxu2 %v14531_v28  ;;  %5668 = vmatpush.msrb.mxu3 %v5667_v51  ;;  %v4483_v45 = vadd.f32 %v4482_v47, %v4459_v7  ;;  %v145_v28 = vld [vmem:[%s16527_s6 + $0x10] sm:$0xff] }
 0x470   :  { %v4557_v40 = vpop.f32.mrf.mxu0  ;;  %v4677_v15 = vpop.f32.mrf.mxu1  ;;  %v5812_v48 = vand.u32 4294901760, %v145_v28 }
 0x472   :  { %v4506_v17 = vpop.f32.mrf.mxu2  ;;  %v4631_v33 = vpop.f32.mrf.mxu3  ;;  %5351 = vmatmul.f32.vlgmr.msrb.gmra.mxu0 %v5297_v10  ;;  %5487 = vmatmul.f32.vlgmr.msra.gmra.mxu1 %v14560_v44  ;;  %v14577_v37 = vsub.f32 %v145_v28, %v5812_v48 }
 0x473   :  { %v4507_v19 = vadd.f32 %v4506_v17, %v4483_v45  ;;  %5572 = vmatpush.msrb.mxu0 %v5482_v30  ;;  %5723 = vmatpush.msra.mxu1 %v14545_v25  ;;  %v4584_v30 = vadd.f32 %v4583_v26, %v4557_v40 }
 0x474   :  { %v5848_v24 = vand.u32 4294901760, %v14577_v37 }
 0x475   :  { %v4529_v62 = vadd.f32 %v4528_v57, %v4507_v19 }
 0x476   :  { %5399 = vmatmul.f32.vlgmr.msrb.gmra.mxu2 %v5296_v32  ;;  %5544 = vmatmul.f32.vlgmr.msra.gmra.mxu3 %v5450_v29  ;;  %v5849_v49 = vsub.f32 %v14577_v37, %v5848_v24 }
 0x477   :  { %v5429_v35 = vsel %vm2808_vm8, %v4529_v62, 0  ;;  %5630 = vmatpush.msrb.mxu2 %v14545_v25  ;;  %5781 = vmatpush.msra.mxu3 %v14545_v25 }
 0x478   :  { %v5456_v36 = vand.u32 4294901760, %v5429_v35  ;;  %v4655_v43 = vpop.f32.mrf.mxu0  ;;  %v5850_v34 = vand.u32 4294901760, %v5849_v49  ;;  %v4780_v25 = vpop.f32.mrf.mxu1 }
 0x47a   :  { %v5457_v41 = vsub.f32 %v5429_v35, %v5456_v36  ;;  %v4607_v5 = vpop.f32.mrf.mxu2  ;;  %5453 = vmatmul.f32.vlgmr.msra.gmra.mxu0 %v5452_v59  ;;  %5491 = vmatmul.f32.gmra.mxu1 %v5456_v36  ;;  %v4732_v22 = vpop.f32.mrf.mxu3 }
 0x47b   :  { %v4608_v38 = vadd.f32 %v4607_v5, %v4584_v30  ;;  %5695 = vmatpush.msra.mxu0 %v14549_v21 }
 0x47c   :  { %v5458_v60 = vand.u32 4294901760, %v5457_v41 }
 0x47d   :  { %v4632_v4 = vadd.f32 %v4631_v33, %v4608_v38 }
 0x47e   :  { %5515 = vmatmul.f32.vlgmr.msra.gmra.mxu2 %v5449_v31  ;;  %5550 = vmatmul.f32.gmra.mxu3 %v5458_v60  ;;  %v5459_v42 = vsub.f32 %v5457_v41, %v5458_v60 }
 0x47f   :  { %v4656_v11 = vadd.f32 %v4655_v43, %v4632_v4  ;;  %5755 = vmatpush.msra.mxu2 %v5665_v9  ;;  %v146_v4 = vld [vmem:[%s16527_s6 + $0x18] sm:$0xff] }
 0x480   :  { %v4756_v16 = vpop.f32.mrf.mxu0  ;;  %v5460_v20 = vand.u32 4294901760, %v5459_v42  ;;  %v4881_v6 = vpop.f32.mrf.mxu1 }
 0x481   :  { %v4678_v50 = vadd.f32 %v4677_v15, %v4656_v11 }
 0x482   :  { %v4706_v3 = vpop.f32.mrf.mxu2  ;;  %5461 = vmatmul.f32.gmra.mxu0 %v5460_v20  ;;  %5600 = vmatmul.f32.vlgmr.msrb.gmra.mxu1 %v14560_v44  ;;  %v4826_v63 = vpop.f32.mrf.mxu3 }
 0x483   :  { %v5609_v56 = vsel %vm2808_vm8, %v4678_v50, 0  ;;  %v4733_v39 = vadd.f32 %v4732_v22, %v4706_v3  ;;  %5851 = vmatpush.msrb.mxu1 %v5850_v34 }
 0x484   :  { %v5631_v46 = vand.u32 4294901760, %v5609_v56 }
 0x485   :  { %v4757_v54 = vadd.f32 %v4756_v16, %v4733_v39 }
 0x486   :  { %v5632_v21 = vsub.f32 %v5609_v56, %v5631_v46  ;;  %5520 = vmatmul.f32.gmra.mxu2 %v5457_v41  ;;  %5670 = vmatmul.f32.vlgmr.msrb.gmra.mxu3 %v5631_v46 }
 0x487   :  { %5906 = vmatpush.msrb.mxu3 %v5812_v48  ;;  %v4781_v0 = vadd.f32 %v4780_v25, %v4757_v54 }
 0x488   :  { %v4855_v12 = vpop.f32.mrf.mxu0  ;;  %v5633_v13 = vand.u32 4294901760, %v5632_v21  ;;  %v4975_v2 = vpop.f32.mrf.mxu1 }
 0x489   :  { %v4882_v58 = vadd.f32 %v4881_v6, %v4855_v12 }
 0x48a   :  { %v4804_v23 = vpop.f32.mrf.mxu2  ;;  %5574 = vmatmul.f32.vlgmr.msrb.gmra.mxu0 %v14560_v44  ;;  %5604 = vmatmul.f32.gmra.mxu1 %v5456_v36  ;;  %v5634_v1 = vsub.f32 %v5632_v21, %v5633_v13  ;;  %v4929_v10 = vpop.f32.mrf.mxu3 }
 0x48b   :  { %v4805_v27 = vadd.f32 %v4804_v23, %v4781_v0  ;;  %5813 = vmatpush.msrb.mxu0 %v5812_v48 }
 0x48c   :  { %v5635_v9 = vand.u32 4294901760, %v5634_v1 }
 0x48d   :  { %v4827_v47 = vadd.f32 %v4826_v63, %v4805_v27 }
 0x48e   :  { %5636 = vmatmul.f32.vlgmr.msrb.gmra.mxu2 %v5635_v9 }
 0x48f   :  { %v5612_v32 = vsel %vm2808_vm8, %v4827_v47, 0  ;;  %5878 = vmatpush.msrb.mxu2 %v14577_v37 }
 0x490   :  { %v5639_v61 = vand.u32 4294901760, %v5612_v32  ;;  %v4953_v53 = vpop.f32.mrf.mxu0  ;;  %v5078_v62 = vpop.f32.mrf.mxu1 }
 0x492   :  { %v5640_v8 = vsub.f32 %v5612_v32, %v5639_v61  ;;  %v4905_v52 = vpop.f32.mrf.mxu2  ;;  %5674 = vmatmul.f32.gmra.mxu3 %v5639_v61  ;;  %5578 = vmatmul.f32.gmra.mxu0 %v5456_v36  ;;  %v5030_v26 = vpop.f32.mrf.mxu3 }
 0x493   :  { %v4906_v44 = vadd.f32 %v4905_v52, %v4882_v58  ;;  %5727 = vmatmul.f32.vlgmr.msra.gmra.mxu1 %v5633_v13 }
 0x494   :  { %v5641_v57 = vand.u32 4294901760, %v5640_v8  ;;  %5964 = vmatpush.msra.mxu1 %v5812_v48 }
 0x495   :  { %v4930_v14 = vadd.f32 %v4929_v10, %v4906_v44 }
 0x496   :  { %v5642_v51 = vsub.f32 %v5640_v8, %v5641_v57 }
 0x497   :  { %v4954_v31 = vadd.f32 %v4953_v53, %v4930_v14 }
 0x498   :  { %v5643_v55 = vand.u32 4294901760, %v5642_v51  ;;  %v5054_v33 = vpop.f32.mrf.mxu0 }
 0x499   :  { %v4976_v7 = vadd.f32 %v4975_v2, %v4954_v31 }
 0x49a   :  { %v5004_v29 = vpop.f32.mrf.mxu2  ;;  %5644 = vmatmul.f32.gmra.mxu2 %v5643_v55  ;;  %5783 = vmatmul.f32.vlgmr.msra.gmra.mxu3 %v5631_v46  ;;  %v5124_v43 = vpop.f32.mrf.mxu3 }
 0x49b   :  { %v5792_v40 = vsel %vm2808_vm8, %v4976_v7, 0  ;;  %v5031_v45 = vadd.f32 %v5030_v26, %v5004_v29  ;;  %5698 = vmatmul.f32.vlgmr.msra.gmra.mxu0 %v5632_v21  ;;  %5733 = vmatmul.f32.gmra.mxu1 %v5641_v57 }
 0x49c   :  { %v5814_v17 = vand.u32 4294901760, %v5792_v40  ;;  %5938 = vmatpush.msra.mxu0 %v5848_v24  ;;  %v5995_v24 = vand.u32 4294901760, %v146_v4 }
 0x49d   :  { %v5055_v19 = vadd.f32 %v5054_v33, %v5031_v45 }
 0x49e   :  { %v5815_v18 = vsub.f32 %v5792_v40, %v5814_v17  ;;  %v6030_v42 = vsub.f32 %v146_v4, %v5995_v24 }
 0x49f   :  { %v5079_v35 = vadd.f32 %v5078_v62, %v5055_v19 }
 0x4a0   :  { %v5816_v59 = vand.u32 4294901760, %v5815_v18  ;;  %v6031_v11 = vand.u32 4294901760, %v6030_v42 }
 0x4a2   :  { %v5102_v15 = vpop.f32.mrf.mxu2  ;;  %5757 = vmatmul.f32.vlgmr.msra.gmra.mxu2 %v5631_v46  ;;  %5787 = vmatmul.f32.gmra.mxu3 %v5639_v61  ;;  %v5817_v30 = vsub.f32 %v5815_v18, %v5816_v59  ;;  %v6032_v49 = vsub.f32 %v6030_v42, %v6031_v11 }
 0x4a3   :  { %v5103_v36 = vadd.f32 %v5102_v15, %v5079_v35  ;;  %5703 = vmatmul.f32.gmra.mxu0 %v5640_v8  ;;  %5853 = vmatmul.f32.vlgmr.msrb.gmra.mxu1 %v5814_v17 }
 0x4a4   :  { %v5818_v5 = vand.u32 4294901760, %v5817_v30  ;;  %5996 = vmatpush.msra.mxu2 %v5995_v24  ;;  %6089 = vmatpush.msrb.mxu1 %v5995_v24  ;;  %v6033_v16 = vand.u32 4294901760, %v6032_v49 }
 0x4a5   :  { %v5125_v28 = vadd.f32 %v5124_v43, %v5103_v36 }
 0x4a6   :  { %6034 = vmatpush.msra.mxu3 %v6033_v16 }
 0x4a7   :  { %v5795_v48 = vsel %vm2808_vm8, %v5125_v28, 0 }
 0x4a8   :  { %v5822_v41 = vand.u32 4294901760, %v5795_v48 }
 0x4aa   :  { %v5823_v38 = vsub.f32 %v5795_v48, %v5822_v41  ;;  %5761 = vmatmul.f32.gmra.mxu2 %v5639_v61  ;;  %5910 = vmatmul.f32.vlgmr.msrb.gmra.mxu3 %v5816_v59 }
 0x4ab   :  { %5819 = vmatmul.f32.vlgmr.msrb.gmra.mxu0 %v5818_v5  ;;  %5857 = vmatmul.f32.gmra.mxu1 %v5822_v41 }
 0x4ac   :  { %v5824_v37 = vand.u32 4294901760, %v5823_v38  ;;  %6061 = vmatpush.msrb.mxu0 %v6030_v42  ;;  %6147 = vmatpush.msrb.mxu3 %v5995_v24 }
 0x4ae   :  { %v5825_v22 = vsub.f32 %v5823_v38, %v5824_v37 }
 0x4b0   :  { %v5826_v60 = vand.u32 4294901760, %v5825_v22 }
 0x4b2   :  { %5881 = vmatmul.f32.vlgmr.msrb.gmra.mxu2 %v5815_v18  ;;  %5916 = vmatmul.f32.gmra.mxu3 %v5824_v37 }
 0x4b3   :  { %5827 = vmatmul.f32.gmra.mxu0 %v5826_v60  ;;  %5966 = vmatmul.f32.vlgmr.msra.gmra.mxu1 %v5814_v17 }
 0x4b4   :  { %6121 = vmatpush.msrb.mxu2 %v6031_v11 }
 0x4ba   :  { %5886 = vmatmul.f32.gmra.mxu2 %v5823_v38 }
 0x4bb   :  { %5940 = vmatmul.f32.vlgmr.msra.gmra.mxu0 %v5814_v17  ;;  %5970 = vmatmul.f32.gmra.mxu1 %v5822_v41 }
 0x4c3   :  { %5944 = vmatmul.f32.gmra.mxu0 %v5822_v41 }
 0x4d7   :  { %v5179_v20 = vpop.f32.mrf.mxu1 }
 0x4df   :  { %v5153_v50 = vpop.f32.mrf.mxu0  ;;  %v5203_v25 = vpop.f32.mrf.mxu2 }
 0x4e0   :  { %v5180_v34 = vadd.f32 %v5179_v20, %v5153_v50  ;;  %v5273_v21 = vpop.f32.mrf.mxu1 }
 0x4e1   :  { %v5227_v56 = vpop.f32.mrf.mxu3 }
 0x4e2   :  { %v5204_v3 = vadd.f32 %v5203_v25, %v5180_v34 }
 0x4e4   :  { %v5228_v39 = vadd.f32 %v5227_v56, %v5204_v3 }
 0x4e7   :  { %v5251_v46 = vpop.f32.mrf.mxu0 }
 0x4e8   :  { %v5252_v54 = vadd.f32 %v5251_v46, %v5228_v39  ;;  %v5376_v10 = vpop.f32.mrf.mxu1 }
 0x4e9   :  { %v5328_v1 = vpop.f32.mrf.mxu3 }
 0x4ea   :  { %v5274_v63 = vadd.f32 %v5273_v21, %v5252_v54 }
 0x4ec   :  { %v5975_v12 = vsel %vm2808_vm8, %v5274_v63, 0 }
 0x4ed   :  { %v5997_v13 = vand.u32 4294901760, %v5975_v12 }
 0x4ef   :  { %v5998_v0 = vsub.f32 %v5975_v12, %v5997_v13  ;;  %6036 = vmatmul.f32.vlgmr.msra.gmra.mxu3 %v5997_v13  ;;  %v5352_v47 = vpop.f32.mrf.mxu0 }
 0x4f0   :  { %v5488_v26 = vpop.f32.mrf.mxu1 }
 0x4f1   :  { %v5999_v23 = vand.u32 4294901760, %v5998_v0  ;;  %v5302_v27 = vpop.f32.mrf.mxu2  ;;  %6064 = vmatmul.f32.vlgmr.msrb.gmra.mxu0 %v5998_v0  ;;  %v5422_v52 = vpop.f32.mrf.mxu3 }
 0x4f2   :  { %v5329_v6 = vadd.f32 %v5328_v1, %v5302_v27 }
 0x4f3   :  { %v6000_v9 = vsub.f32 %v5998_v0, %v5999_v23  ;;  %6093 = vmatmul.f32.vlgmr.msrb.gmra.mxu1 %v5999_v23 }
 0x4f4   :  { %v5353_v32 = vadd.f32 %v5352_v47, %v5329_v6 }
 0x4f5   :  { %v6001_v61 = vand.u32 4294901760, %v6000_v9 }
 0x4f6   :  { %v5377_v58 = vadd.f32 %v5376_v10, %v5353_v32 }
 0x4f7   :  { %6002 = vmatmul.f32.vlgmr.msra.gmra.mxu2 %v6001_v61  ;;  %v5454_v7 = vpop.f32.mrf.mxu0 }
 0x4f8   :  { %v5492_v17 = vpop.f32.mrf.mxu1  ;;  %v5489_v54 = vadd.f32 %v5488_v26, %v5454_v7 }
 0x4f9   :  { %v5400_v8 = vpop.f32.mrf.mxu2  ;;  %v5545_v29 = vpop.f32.mrf.mxu3 }
 0x4fa   :  { %v5401_v53 = vadd.f32 %v5400_v8, %v5377_v58 }
 0x4fc   :  { %v5423_v44 = vadd.f32 %v5422_v52, %v5401_v53 }
 0x4fe   :  { %v5978_v57 = vsel %vm2808_vm8, %v5423_v44, 0 }
 0x4ff   :  { %v6005_v14 = vand.u32 4294901760, %v5978_v57  ;;  %v5462_v40 = vpop.f32.mrf.mxu0 }
 0x500   :  { %v5601_v62 = vpop.f32.mrf.mxu1  ;;  %v5493_v58 = vadd.f32 %v5492_v17, %v5462_v40 }
 0x501   :  { %6040 = vmatmul.f32.gmra.mxu3 %v6005_v14  ;;  %v6006_v2 = vsub.f32 %v5978_v57, %v6005_v14  ;;  %v5516_v45 = vpop.f32.mrf.mxu2  ;;  %v14599_v33 = vpop.f32.mrf.mxu3 }
 0x503   :  { %6069 = vmatmul.f32.gmra.mxu0 %v6006_v2  ;;  %v6007_v51 = vand.u32 4294901760, %v6006_v2 }
 0x505   :  { %6099 = vmatmul.f32.gmra.mxu1 %v6007_v51  ;;  %v6008_v31 = vsub.f32 %v6006_v2, %v6007_v51 }
 0x507   :  { %v6009_v55 = vand.u32 4294901760, %v6008_v31  ;;  %v5575_v19 = vpop.f32.mrf.mxu0 }
 0x508   :  { %v14603_v36 = vpop.f32.mrf.mxu1 }
 0x509   :  { %6010 = vmatmul.f32.gmra.mxu2 %v6009_v55  ;;  %6149 = vmatmul.f32.vlgmr.msrb.gmra.mxu3 %v5997_v13  ;;  %v5521_v18 = vpop.f32.mrf.mxu2  ;;  %v5671_v35 = vpop.f32.mrf.mxu3 }
 0x50a   :  { %v5522_v2 = vadd.f32 %v5521_v18, %v5493_v58 }
 0x50f   :  { %v14601_v59 = vpop.f32.mrf.mxu0 }
 0x510   :  { %v5728_v48 = vpop.f32.mrf.mxu1 }
 0x511   :  { %6123 = vmatmul.f32.vlgmr.msrb.gmra.mxu2 %v5997_v13  ;;  %6153 = vmatmul.f32.gmra.mxu3 %v6005_v14  ;;  %v5637_v15 = vpop.f32.mrf.mxu2  ;;  %v5517_v13 = vadd.f32 %v5516_v45, %v5489_v54 }
 0x512   :  { %v5672_v39 = vadd.f32 %v5671_v35, %v5637_v15 }
 0x513   :  { %v5546_v47 = vadd.f32 %v5545_v29, %v5517_v13  ;;  %v5552_v29 = vadd.f32 %v14599_v33, %v5522_v2  ;;  %v16560_v33 = vld [vmem:[#allocation6_spill] sm:$0xff] }
 0x515   :  { %v5675_v43 = vpop.f32.mrf.mxu3  ;;  %v5576_v8 = vadd.f32 %v5575_v19, %v5546_v47 }
 0x517   :  { %v5602_v31 = vadd.f32 %v5601_v62, %v5576_v8 }
 0x518   :  { %v5699_v28 = vpop.f32.mrf.mxu0  ;;  %v5734_v37 = vpop.f32.mrf.mxu1 }
 0x519   :  { %6127 = vmatmul.f32.gmra.mxu2 %v6005_v14  ;;  %v5700_v63 = vadd.f32 %v5699_v28, %v5672_v39 }
 0x51b   :  { %v5729_v27 = vadd.f32 %v5728_v48, %v5700_v63 }
 0x51d   :  { %v5645_v30 = vpop.f32.mrf.mxu2  ;;  %v5784_v41 = vpop.f32.mrf.mxu3 }
 0x51e   :  { %v5676_v0 = vadd.f32 %v5675_v43, %v5645_v30  ;;  %v5580_v30 = vadd.f32 %v14601_v59, %v5552_v29 }
 0x520   :  { %v5704_v5 = vpop.f32.mrf.mxu0  ;;  %v5854_v24 = vpop.f32.mrf.mxu1 }
 0x521   :  { %v5705_v53 = vadd.f32 %v5704_v5, %v5676_v0 }
 0x523   :  { %v5735_v55 = vadd.f32 %v5734_v37, %v5705_v53 }
 0x525   :  { %v5758_v38 = vpop.f32.mrf.mxu2  ;;  %v5788_v22 = vpop.f32.mrf.mxu3 }
 0x526   :  { %v5759_v61 = vadd.f32 %v5758_v38, %v5729_v27  ;;  %v14626_v27 = vld [vmem:[%s16522_s1 + $0x8] sm:$0xff] }
 0x528   :  { %v5820_v60 = vpop.f32.mrf.mxu0  ;;  %v5858_v16 = vpop.f32.mrf.mxu1  ;;  %v5785_v51 = vadd.f32 %v5784_v41, %v5759_v61 }
 0x529   :  { %v5855_v46 = vadd.f32 %v5854_v24, %v5820_v60  ;;  %v5606_v24 = vadd.f32 %v14603_v36, %v5580_v30  ;;  %v41_v36 = vld [vmem:[%s16522_s1] sm:$0xff] }
 0x52a   :  { %v6157_v40 = vadd.f32 %v5785_v51, %v5602_v31  ;;  %v96_v51 = vld [vmem:[%s16526_s5 + $0x188] sm:$0xff] }
 0x52d   :  { %v5762_v4 = vpop.f32.mrf.mxu2  ;;  %v5911_v42 = vpop.f32.mrf.mxu3 }
 0x52e   :  { %v5763_v17 = vadd.f32 %v5762_v4, %v5735_v55 }
 0x530   :  { %v5828_v11 = vpop.f32.mrf.mxu0  ;;  %v5967_v25 = vpop.f32.mrf.mxu1  ;;  %v5789_v38 = vadd.f32 %v5788_v22, %v5763_v17 }
 0x531   :  { %v5859_v10 = vadd.f32 %v5858_v16, %v5828_v11 }
 0x535   :  { %v5882_v49 = vpop.f32.mrf.mxu2  ;;  %v5917_v20 = vpop.f32.mrf.mxu3 }
 0x536   :  { %v5883_v12 = vadd.f32 %v5882_v49, %v5855_v46  ;;  %v6215_v46 = vsel %vm151_vm0, %v41_v36, 0.0 }
 0x538   :  { %v5941_v50 = vpop.f32.mrf.mxu0  ;;  %v5971_v23 = vpop.f32.mrf.mxu1  ;;  %v5912_v6 = vadd.f32 %v5911_v42, %v5883_v12 }
 0x53a   :  { %v5942_v44 = vadd.f32 %v5941_v50, %v5912_v6 }
 0x53c   :  { %v5968_v26 = vadd.f32 %v5967_v25, %v5942_v44 }
 0x53d   :  { %v5887_v34 = vpop.f32.mrf.mxu2 }
 0x53e   :  { %v5888_v57 = vadd.f32 %v5887_v34, %v5859_v10  ;;  %v6159_v5 = vadd.f32 %v6157_v40, %v5968_v26  ;;  %v95_v26 = vld [vmem:[%s16526_s5 + $0x180] sm:$0xff] }
 0x53f   :  { %v6289_v29 = vand.u32 4294901760, %v95_v26 }
 0x540   :  { %v5945_v21 = vpop.f32.mrf.mxu0  ;;  %v5918_v45 = vadd.f32 %v5917_v20, %v5888_v57  ;;  %v6158_v20 = vadd.f32 %v5789_v38, %v5606_v24  ;;  %v97_v57 = vld [vmem:[%s16526_s5 + $0x190] sm:$0xff] }
 0x541   :  { %v6285_v2 = vand.u32 4294901760, %v97_v57  ;;  %v6339_v17 = vsub.f32 %v95_v26, %v6289_v29 }
 0x542   :  { %v5946_v18 = vadd.f32 %v5945_v21, %v5918_v45  ;;  %v16562_v21 = vld [vmem:[#allocation5_spill] sm:$0xff] }
 0x543   :  { %v6327_v55 = vsub.f32 %v97_v57, %v6285_v2 }
 0x544   :  { %v5972_v42 = vadd.f32 %v5971_v23, %v5946_v18 }
 0x546   :  { %v6160_v34 = vadd.f32 %v6158_v20, %v5972_v42  ;;  %v101_v42 = vld [vmem:[%s16526_s5 + $0x1b0] sm:$0xff]  ;;  %v100_v20 = vld [vmem:[%s16526_s5 + $0x1a8] sm:$0xff] }
 0x56e   :  { %v6065_v52 = vpop.f32.mrf.mxu0 }
 0x570   :  { %v6094_v7 = vpop.f32.mrf.mxu1 }
 0x572   :  { %v6037_v3 = vpop.f32.mrf.mxu3 }
 0x57a   :  { %v6003_v56 = vpop.f32.mrf.mxu2 }
 0x57b   :  { %v6038_v9 = vadd.f32 %v6037_v3, %v6003_v56  ;;  %v16561_v56 = vld [vmem:[#allocation7_spill] sm:$0xff] }
 0x57d   :  { %v6066_v14 = vadd.f32 %v6065_v52, %v6038_v9  ;;  %v6218_v9 = vsel %vm151_vm0, %v14626_v27, 0.0  ;;  %v98_v52 = vld [vmem:[%s16526_s5 + $0x198] sm:$0xff] }
 0x57e   :  { %v6283_v44 = vand.u32 4294901760, %v98_v52 }
 0x57f   :  { %v6095_v15 = vadd.f32 %v6094_v7, %v6066_v14  ;;  %v6287_v7 = vand.u32 4294901760, %v96_v51 }
 0x580   :  { %v6070_v48 = vpop.f32.mrf.mxu0  ;;  %v6321_v14 = vsub.f32 %v98_v52, %v6283_v44  ;;  %6401 = vmatpush.msra.mxu3 %v6283_v44  ;;  %6284 = vmatpush.msra.mxu0 %v6283_v44  ;;  %v44_v52 = vld [vmem:[%s16525_s4 + $0x2] sm:$0x3] }
 0x582   :  { %v6100_v60 = vpop.f32.mrf.mxu1  ;;  %v6322_v31 = vand.u32 4294901760, %v6321_v14  ;;  %6367 = vmatpush.msra.mxu2 %v6321_v14  ;;  %6403 = vmatpush.msra.mxu3 %v6285_v2 }
 0x583   :  { %6286 = vmatpush.msra.mxu0 %v6285_v2 }
 0x584   :  { %v6041_v1 = vpop.f32.mrf.mxu3  ;;  %v6323_v45 = vsub.f32 %v6321_v14, %v6322_v31  ;;  %6370 = vmatpush.msra.mxu2 %v6327_v55  ;;  %6405 = vmatpush.msra.mxu3 %v6287_v7 }
 0x585   :  { %6288 = vmatpush.msra.mxu0 %v6287_v7 }
 0x586   :  { %6407 = vmatpush.msra.mxu3 %v6289_v29 }
 0x587   :  { %6290 = vmatpush.msra.mxu0 %v6289_v29 }
 0x589   :  { %6436 = vmatpush.msrb.mxu0 %v6322_v31 }
 0x58c   :  { %v6011_v32 = vpop.f32.mrf.mxu2  ;;  %v6150_v43 = vpop.f32.mrf.mxu3 }
 0x58d   :  { %v6042_v35 = vadd.f32 %v6041_v1, %v6011_v32 }
 0x58f   :  { %v6071_v41 = vadd.f32 %v6070_v48, %v6042_v35  ;;  %v6328_v35 = vand.u32 4294901760, %v6327_v55  ;;  %v6340_v48 = vand.u32 4294901760, %v6339_v17 }
 0x591   :  { %v6101_v11 = vadd.f32 %v6100_v60, %v6071_v41  ;;  %v6341_v18 = vsub.f32 %v6339_v17, %v6340_v48  ;;  %6440 = vmatpush.msrb.mxu0 %v6328_v35  ;;  %v102_v60 = vld [vmem:[%s16526_s5 + $0x1b8] sm:$0xff] }
 0x592   :  { %v14657_v24 = vand.u32 4294901760, %v102_v60 }
 0x593   :  { %v6342_v41 = vand.u32 4294901760, %v6341_v18  ;;  %v106_v18 = vld [vmem:[%s16526_s5 + $0x1d8] sm:$0xff] }
 0x594   :  { %v6124_v28 = vpop.f32.mrf.mxu2  ;;  %v6154_v59 = vpop.f32.mrf.mxu3 }
 0x595   :  { %v6125_v19 = vadd.f32 %v6124_v28, %v6095_v15  ;;  %v6333_v15 = vsub.f32 %v96_v51, %v6287_v7  ;;  %v6329_v28 = vsub.f32 %v6327_v55, %v6328_v35  ;;  %v6212_v35 = vperm.slane %v44_v52, 1 }
 0x597   :  { %v6151_v62 = vadd.f32 %v6150_v43, %v6125_v19  ;;  %v6324_v43 = vand.u32 4294901760, %v6323_v45  ;;  %v6334_v40 = vand.u32 4294901760, %v6333_v15  ;;  %6373 = vmatpush.msra.mxu2 %v6333_v15  ;;  %v6330_v19 = vand.u32 4294901760, %v6329_v28 }
 0x599   :  { %v6161_v37 = vadd.f32 %v6159_v5, %v6151_v62  ;;  %6325 = vmatpush.msra.mxu1 %v6324_v43  ;;  %v6335_v30 = vsub.f32 %v6333_v15, %v6334_v40  ;;  %6376 = vmatpush.msra.mxu2 %v6339_v17 }
 0x59a   :  { %6444 = vmatpush.msrb.mxu0 %v6334_v40 }
 0x59b   :  { %v6163_v49 = vadd.f32 %v6161_v37, %v16560_v33  ;;  %6331 = vmatpush.msra.mxu1 %v6330_v19  ;;  %v6336_v5 = vand.u32 4294901760, %v6335_v30  ;;  %6500 = vmatpush.msrb.mxu2 %v14657_v24  ;;  %v14666_v33 = vand.u32 4294901760, %v101_v42 }
 0x59c   :  { %v6128_v16 = vpop.f32.mrf.mxu2  ;;  %6448 = vmatpush.msrb.mxu0 %v6340_v48 }
 0x59d   :  { %v6129_v4 = vadd.f32 %v6128_v16, %v6101_v11  ;;  %v6165_v50 = vsel %vm151_vm0, %v6163_v49, 0.0  ;;  %6337 = vmatpush.msra.mxu1 %v6336_v5  ;;  %v14664_v11 = vsub.f32 %v102_v60, %v14657_v24  ;;  %6502 = vmatpush.msrb.mxu2 %v14666_v33 }
 0x59e   :  { %6166 = vadd.xlane.f32.xlu2 %v6165_v50 }
 0x59f   :  { %v6155_v25 = vadd.f32 %v6154_v59, %v6129_v4  ;;  %6343 = vmatpush.msra.mxu1 %v6342_v41  ;;  %v6538_v59 = vand.u32 4294901760, %v14664_v11 }
 0x5a1   :  { %v6162_v3 = vadd.f32 %v6160_v34, %v6155_v25  ;;  %6471 = vmatpush.msrb.mxu1 %v6283_v44  ;;  %v14675_v34 = vand.u32 4294901760, %v100_v20  ;;  %v14678_v25 = vsub.f32 %v101_v42, %v14666_v33 }
 0x5a3   :  { %v6164_v22 = vadd.f32 %v6162_v3, %v16561_v56  ;;  %6473 = vmatpush.msrb.mxu1 %v6285_v2  ;;  %v99_v3 = vld [vmem:[%s16526_s5 + $0x1a0] sm:$0xff]  ;;  %6504 = vmatpush.msrb.mxu2 %v14675_v34 }
 0x5a5   :  { %v6168_v39 = vsel %vm151_vm0, %v6164_v22, 0.0  ;;  %6475 = vmatpush.msrb.mxu1 %v6287_v7  ;;  %v6209_v7 = vperm.slane %v44_v52, 0 }
 0x5a6   :  { %6169 = vadd.xlane.f32.xlu0 %v6168_v39 }
 0x5a7   :  { %6477 = vmatpush.msrb.mxu1 %v6289_v29 }
 0x5ae   :  { %6216 = vadd.xlane.f32.xlu0 %v6215_v46 }
 0x611   :  { %v6167_v54 = vpop.xlane.xlu2 %6166 }
 0x612   :  { %v6171_v63 = vmul.f32 %v6167_v54, %v16562_v21  ;;  %v6539_v54 = vsub.f32 %v14664_v11, %v6538_v59 }
 0x614   :  { %v14617_v12 = vsub.f32 %v6163_v49, %v6171_v63  ;;  %v6544_v63 = vand.u32 4294901760, %v14678_v25 }
 0x616   :  { %v6175_v13 = vmul.f32 %v14617_v12, %v14617_v12 }
 0x618   :  { %v6177_v0 = vsel %vm151_vm0, %v6175_v13, 0.0 }
 0x619   :  { %6178 = vadd.xlane.f32.xlu1 %v6177_v0  ;;  %v6170_v23 = vpop.xlane.xlu0 %6169  ;;  %v14696_v0 = vsub.f32 %v100_v20, %v14675_v34 }
 0x61a   :  { %v6172_v1 = vmul.f32 %v6170_v23, %v16562_v21 }
 0x61c   :  { %v14628_v6 = vsub.f32 %v6164_v22, %v6172_v1  ;;  %v6540_v1 = vand.u32 4294901760, %v6539_v54 }
 0x61e   :  { %v6176_v47 = vmul.f32 %v14628_v6, %v14628_v6  ;;  %6541 = vmatpush.msrb.mxu3 %v6540_v1 }
 0x620   :  { %v6180_v32 = vsel %vm151_vm0, %v6176_v47, 0.0 }
 0x621   :  { %6219 = vadd.xlane.f32.xlu1 %v6218_v9  ;;  %6181 = vadd.xlane.f32.xlu2 %v6180_v32  ;;  %v6217_v61 = vpop.xlane.xlu0 %6216  ;;  %v6550_v32 = vand.u32 4294901760, %v14696_v0 }
 0x622   :  { %v6221_v10 = vmul.f32 %v6217_v61, %v16562_v21 }
 0x624   :  { %v14636_v58 = vsub.f32 %v41_v36, %v6221_v10  ;;  %v14686_v36 = vand.u32 4294901760, %v99_v3 }
 0x626   :  { %v6225_v8 = vmul.f32 %v14636_v58, %v14636_v58  ;;  %6506 = vmatpush.msrb.mxu2 %v14686_v36  ;;  %v14703_v9 = vsub.f32 %v99_v3, %v14686_v36 }
 0x628   :  { %v6227_v53 = vsel %vm151_vm0, %v6225_v8, 0.0  ;;  %v6556_v8 = vand.u32 4294901760, %v14703_v9 }
 0x629   :  { %6228 = vadd.xlane.f32.xlu2 %v6227_v53  ;;  %v6551_v53 = vsub.f32 %v14696_v0, %v6550_v32 }
 0x62a   :  { %v6557_v57 = vsub.f32 %v14703_v9, %v6556_v8 }
 0x62b   :  { %v6552_v2 = vand.u32 4294901760, %v6551_v53 }
 0x62c   :  { %v6558_v55 = vand.u32 4294901760, %v6557_v57  ;;  %v108_v57 = vld [vmem:[%s16526_s5 + $0x1e8] sm:$0xff] }
 0x68c   :  { %v6179_v62 = vpop.xlane.xlu1 %6178 }
 0x68d   :  { %v6183_v38 = vmul.f32 %v6179_v62, %v16562_v21  ;;  %v14733_v62 = vand.u32 4294901760, %v106_v18 }
 0x68f   :  { %v6185_v37 = vadd.f32 1e-05, %v6183_v38  ;;  %v14748_v60 = vsub.f32 %v106_v18, %v14733_v62 }
 0x691   :  { %12886 = vrsqrt.f32 %v6185_v37  ;;  %vm6193_vm14 = vweird.f32 %v6185_v37 }
 0x694   :  { %v6220_v49 = vpop.xlane.xlu1 %6219  ;;  %v6182_v16 = vpop.xlane.xlu2 %6181 }
 0x695   :  { %v6222_v4 = vmul.f32 %v6220_v49, %v16562_v21  ;;  %v6184_v50 = vmul.f32 %v6182_v16, %v16562_v21  ;;  %v104_v16 = vld [vmem:[%s16526_s5 + $0x1c8] sm:$0xff] }
 0x697   :  { %v12887_v56 = vpop.eup %12886  ;;  %v14684_v22 = vsub.f32 %v14626_v27, %v6222_v4  ;;  %v6186_v39 = vadd.f32 1e-05, %v6184_v50  ;;  %v6545_v27 = vsub.f32 %v14678_v25, %v6544_v63  ;;  %v6754_v4 = vand.u32 4294901760, %v14748_v60 }
 0x698   :  { %v6188_v46 = vmul.f32 %v12887_v56, %v6185_v37  ;;  %vm6194_vm13 = vweird.f32 %v12887_v56 }
 0x699   :  { %12888 = vrsqrt.f32 %v6186_v39  ;;  %v6226_v13 = vmul.f32 %v14684_v22, %v14684_v22  ;;  %v6546_v10 = vand.u32 4294901760, %v6545_v27  ;;  %vm6195_vm15 = vmor %vm6193_vm14, %vm6194_vm13  ;;  %vm6203_vm2 = vweird.f32 %v6186_v39 }
 0x69a   :  { %v6189_v23 = vmul.f32 %v12887_v56, %v6188_v46 }
 0x69b   :  { %v6230_v47 = vsel %vm151_vm0, %v6226_v13, 0.0  ;;  %6547 = vmatpush.msrb.mxu3 %v6546_v10  ;;  %v6755_v13 = vsub.f32 %v14748_v60, %v6754_v4 }
 0x69c   :  { %v6190_v61 = vmul.f32 0.5, %v6189_v23  ;;  %6231 = vadd.xlane.f32.xlu0 %v6230_v47 }
 0x69d   :  { %6553 = vmatpush.msrb.mxu3 %v6552_v2 }
 0x69e   :  { %v6191_v44 = vsub.f32 1.5, %v6190_v61 }
 0x69f   :  { %v12889_v14 = vpop.eup %12888  ;;  %6559 = vmatpush.msrb.mxu3 %v6558_v55  ;;  %v6229_v55 = vpop.xlane.xlu2 %6228 }
 0x6a0   :  { %v6192_v51 = vmul.f32 %v12887_v56, %v6191_v44  ;;  %v6198_v31 = vmul.f32 %v12889_v14, %v6186_v39  ;;  %vm6204_vm1 = vweird.f32 %v12889_v14  ;;  %v103_v39 = vld [vmem:[%s16526_s5 + $0x1c0] sm:$0xff] }
 0x6a1   :  { %vm6205_vm3 = vmor %vm6203_vm2, %vm6204_vm1 }
 0x6a2   :  { %v6196_v26 = vsel %vm6195_vm15, %v12887_v56, %v6192_v51  ;;  %v6199_v45 = vmul.f32 %v12889_v14, %v6198_v31  ;;  %v107_v31 = vld [vmem:[%s16526_s5 + $0x1e0] sm:$0xff] }
 0x6a3   :  { %v6207_v15 = vmul.f32 %v6196_v26, %v14617_v12 }
 0x6a4   :  { %v6200_v29 = vmul.f32 0.5, %v6199_v45 }
 0x6a5   :  { %v6210_v43 = vmul.f32 %v6209_v7, %v6207_v15  ;;  %v6233_v15 = vmul.f32 %v6229_v55, %v16562_v21 }
 0x6a6   :  { %v6201_v28 = vsub.f32 1.5, %v6200_v29 }
 0x6a7   :  { %v14718_v40 = vadd.f32 %v6212_v35, %v6210_v43 }
 0x6a8   :  { %v6202_v17 = vmul.f32 %v12889_v14, %v6201_v28 }
 0x6a9   :  { %16563 = vst [vmem:[#allocation8_spill] sm:$0xff] %v14718_v40  ;;  %v6266_v19 = vsel %vm151_vm0, %v14718_v40, 0  ;;  %v135_v40 = vld [vmem:[%s16526_s5 + $0x2c0] sm:$0xff] }
 0x6aa   :  { %v14722_v30 = vand.u32 4294901760, %v6266_v19  ;;  %v6206_v48 = vsel %vm6205_vm3, %v12889_v14, %v6202_v17  ;;  %v14854_v14 = vand.u32 4294901760, %v108_v57 }
 0x6ab   :  { %v6208_v5 = vmul.f32 %v6206_v48, %v14628_v6  ;;  %v105_v6 = vld [vmem:[%s16526_s5 + $0x1d0] sm:$0xff] }
 0x6ac   :  { %v14726_v12 = vsub.f32 %v6266_v19, %v14722_v30  ;;  %6345 = vmatmul.f32.vlgmr.msra.gmra.mxu1 %v14722_v30  ;;  %v14750_v42 = vand.u32 4294901760, %v105_v6  ;;  %v14869_v26 = vsub.f32 %v108_v57, %v14854_v14  ;;  %v14888_v19 = vadd.f32 1e-05, %v6233_v15 }
 0x6ad   :  { %v6211_v41 = vmul.f32 %v6209_v7, %v6208_v5  ;;  %6617 = vmatpush.msra.mxu1 %v14657_v24  ;;  %v14866_v7 = vand.u32 4294901760, %v107_v31 }
 0x6ae   :  { %6379 = vmatmul.f32.vlgmr.msra.gmra.mxu2 %v14726_v12  ;;  %v14737_v38 = vand.u32 4294901760, %v14726_v12  ;;  %v14765_v50 = vsub.f32 %v105_v6, %v14750_v42  ;;  %v6982_v43 = vand.u32 4294901760, %v14869_v26  ;;  %12890 = vrsqrt.f32 %v14888_v19 }
 0x6af   :  { %v14742_v37 = vadd.f32 %v6212_v35, %v6211_v41  ;;  %6619 = vmatpush.msra.mxu1 %v14666_v33  ;;  %6652 = vmatpush.msra.mxu2 %v6538_v59  ;;  %v14767_v59 = vand.u32 4294901760, %v104_v16  ;;  %v14876_v35 = vsub.f32 %v107_v31, %v14866_v7  ;;  %vm6243_vm4 = vweird.f32 %v14888_v19 }
 0x6b0   :  { %6411 = vmatmul.f32.vlgmr.msra.gmra.mxu3 %v14737_v38  ;;  %v6294_v49 = vsub.f32 %v14726_v12, %v14737_v38  ;;  %v6760_v46 = vand.u32 4294901760, %v14765_v50  ;;  %v6983_v5 = vsub.f32 %v14869_v26, %v6982_v43 }
 0x6b1   :  { %16564 = vst [vmem:[#allocation9_spill] sm:$0xff] %v14742_v37  ;;  %v6269_v20 = vsel %vm151_vm0, %v14742_v37, 0  ;;  %6621 = vmatpush.msra.mxu1 %v14675_v34  ;;  %6656 = vmatpush.msra.mxu2 %v6544_v63  ;;  %v14782_v54 = vsub.f32 %v104_v16, %v14767_v59  ;;  %v6988_v17 = vand.u32 4294901760, %v14876_v35 }
 0x6b2   :  { %v14769_v3 = vand.u32 4294901760, %v6269_v20  ;;  %v14771_v56 = vand.u32 4294901760, %v6294_v49  ;;  %6687 = vmatpush.msra.mxu3 %v14657_v24  ;;  %v14789_v24 = vand.u32 4294901760, %v103_v39  ;;  %v114_v49 = vld [vmem:[%s16526_s5 + $0x218] sm:$0xff] }
 0x6b3   :  { %6623 = vmatpush.msra.mxu1 %v14686_v36  ;;  %6660 = vmatpush.msra.mxu2 %v6550_v32  ;;  %v6766_v23 = vand.u32 4294901760, %v14782_v54  ;;  %v6756_v32 = vand.u32 4294901760, %v6755_v13  ;;  %v6989_v41 = vsub.f32 %v14876_v35, %v6988_v17  ;;  %v14926_v16 = vand.u32 4294901760, %v114_v49  ;;  %v111_v13 = vld [vmem:[%s16526_s5 + $0x200] sm:$0xff] }
 0x6b4   :  { %v14785_v63 = vsub.f32 %v6269_v20, %v14769_v3  ;;  %6296 = vmatmul.f32.vlgmr.msra.gmra.mxu0 %v14771_v56  ;;  %6349 = vmatmul.f32.gmra.mxu1 %v14769_v3  ;;  %v14802_v27 = vsub.f32 %v103_v39, %v14789_v24  ;;  %v113_v20 = vld [vmem:[%s16526_s5 + $0x210] sm:$0xff]  ;;  %v112_v39 = vld [vmem:[%s16526_s5 + $0x208] sm:$0xff] }
 0x6b5   :  { %6689 = vmatpush.msra.mxu3 %v14666_v33  ;;  %6583 = vmatpush.msra.mxu0 %v14664_v11  ;;  %v6761_v11 = vsub.f32 %v14765_v50, %v6760_v46  ;;  %v6990_v6 = vand.u32 4294901760, %v6989_v41 }
 0x6b6   :  { %6384 = vmatmul.f32.gmra.mxu2 %v14785_v63  ;;  %v14799_v1 = vand.u32 4294901760, %v14785_v63  ;;  %v6772_v47 = vand.u32 4294901760, %v14802_v27 }
 0x6b7   :  { %6664 = vmatpush.msra.mxu2 %v6556_v8  ;;  %6691 = vmatpush.msra.mxu3 %v14675_v34  ;;  %v6767_v34 = vsub.f32 %v14782_v54, %v6766_v23  ;;  %v6762_v10 = vand.u32 4294901760, %v6761_v11 }
 0x6b8   :  { %6417 = vmatmul.f32.gmra.mxu3 %v14799_v1  ;;  %v6302_v33 = vsub.f32 %v14785_v63, %v14799_v1  ;;  %6586 = vmatpush.msra.mxu0 %v14678_v25  ;;  %v6773_v8 = vsub.f32 %v14802_v27, %v6772_v47 }
 0x6b9   :  { %6693 = vmatpush.msra.mxu3 %v14686_v36  ;;  %v6768_v25 = vand.u32 4294901760, %v6767_v34 }
 0x6ba   :  { %v14819_v61 = vand.u32 4294901760, %v6302_v33  ;;  %6589 = vmatpush.msra.mxu0 %v14696_v0  ;;  %v6774_v36 = vand.u32 4294901760, %v6773_v8  ;;  %v110_v0 = vld [vmem:[%s16526_s5 + $0x1f8] sm:$0xff]  ;;  %v14959_v33 = vand.u32 4294901760, %v111_v13 }
 0x6bb   :  { %v14835_v53 = vand.u32 4294901760, %v110_v0 }
 0x6bc   :  { %6304 = vmatmul.f32.gmra.mxu0 %v14819_v61  ;;  %6479 = vmatmul.f32.vlgmr.msrb.gmra.mxu1 %v14722_v30  ;;  %v14970_v34 = vsub.f32 %v111_v13, %v14959_v33 }
 0x6bd   :  { %6592 = vmatpush.msra.mxu0 %v14703_v9  ;;  %6757 = vmatpush.msrb.mxu1 %v6756_v32  ;;  %v109_v9 = vld [vmem:[%s16526_s5 + $0x1f0] sm:$0xff]  ;;  %v14843_v52 = vsub.f32 %v110_v0, %v14835_v53 }
 0x6be   :  { %6512 = vmatmul.f32.vlgmr.msrb.gmra.mxu2 %v14771_v56  ;;  %v14845_v44 = vand.u32 4294901760, %v109_v9 }
 0x6bf   :  { %6763 = vmatpush.msrb.mxu1 %v6762_v10  ;;  %6799 = vmatpush.msrb.mxu2 %v14748_v60  ;;  %v6970_v51 = vand.u32 4294901760, %v14843_v52 }
 0x6c0   :  { %6561 = vmatmul.f32.vlgmr.msrb.gmra.mxu3 %v14722_v30  ;;  %v14857_v2 = vsub.f32 %v109_v9, %v14845_v44 }
 0x6c1   :  { %6769 = vmatpush.msrb.mxu1 %v6768_v25  ;;  %6802 = vmatpush.msrb.mxu2 %v14765_v50  ;;  %v6971_v29 = vsub.f32 %v14843_v52, %v6970_v51  ;;  %v14935_v50 = vsub.f32 %v114_v49, %v14926_v16  ;;  %v7210_v25 = vand.u32 4294901760, %v14970_v34 }
 0x6c2   :  { %6833 = vmatpush.msrb.mxu3 %v14733_v62  ;;  %v6976_v45 = vand.u32 4294901760, %v14857_v2 }
 0x6c3   :  { %6775 = vmatpush.msrb.mxu1 %v6774_v36  ;;  %6805 = vmatpush.msrb.mxu2 %v14782_v54  ;;  %v6972_v48 = vand.u32 4294901760, %v6971_v29 }
 0x6c4   :  { %6450 = vmatmul.f32.vlgmr.msrb.gmra.mxu0 %v14722_v30  ;;  %6483 = vmatmul.f32.gmra.mxu1 %v14769_v3  ;;  %v6977_v28 = vsub.f32 %v14857_v2, %v6976_v45 }
 0x6c5   :  { %6835 = vmatpush.msrb.mxu3 %v14750_v42  ;;  %6716 = vmatpush.msrb.mxu0 %v14733_v62 }
 0x6c6   :  { %6520 = vmatmul.f32.gmra.mxu2 %v14819_v61  ;;  %v6978_v18 = vand.u32 4294901760, %v6977_v28 }
 0x6c7   :  { %6808 = vmatpush.msrb.mxu2 %v14802_v27  ;;  %6837 = vmatpush.msrb.mxu3 %v14767_v59 }
 0x6c8   :  { %6565 = vmatmul.f32.gmra.mxu3 %v14769_v3  ;;  %6718 = vmatpush.msrb.mxu0 %v14750_v42 }
 0x6c9   :  { %6839 = vmatpush.msrb.mxu3 %v14789_v24 }
 0x6ca   :  { %6720 = vmatpush.msrb.mxu0 %v14767_v59 }
 0x6cc   :  { %6454 = vmatmul.f32.gmra.mxu0 %v14769_v3  ;;  %6627 = vmatmul.f32.vlgmr.msra.gmra.mxu1 %v14737_v38 }
 0x6cd   :  { %6722 = vmatpush.msrb.mxu0 %v14789_v24  ;;  %6903 = vmatpush.msra.mxu1 %v14733_v62  ;;  %v6984_v62 = vand.u32 4294901760, %v6983_v5  ;;  %v115_v5 = vld [vmem:[%s16526_s5 + $0x220] sm:$0xff] }
 0x6ce   :  { %6666 = vmatmul.f32.vlgmr.msra.gmra.mxu2 %v14722_v30 }
 0x6cf   :  { %6905 = vmatpush.msra.mxu1 %v14750_v42  ;;  %6932 = vmatpush.msra.mxu2 %v14835_v53  ;;  %v14909_v42 = vpop.eup %12890 }
 0x6d0   :  { %6695 = vmatmul.f32.vlgmr.msra.gmra.mxu3 %v14722_v30  ;;  %v6238_v60 = vmul.f32 %v14909_v42, %v14888_v19  ;;  %vm6244_vm5 = vweird.f32 %v14909_v42 }
 0x6d1   :  { %6907 = vmatpush.msra.mxu1 %v14767_v59  ;;  %6934 = vmatpush.msra.mxu2 %v14845_v44  ;;  %v14937_v59 = vand.u32 4294901760, %v113_v20  ;;  %vm14993_vm6 = vmor %vm6243_vm4, %vm6244_vm5 }
 0x6d2   :  { %6973 = vmatpush.msra.mxu3 %v6972_v48 }
 0x6d3   :  { %6909 = vmatpush.msra.mxu1 %v14789_v24  ;;  %6936 = vmatpush.msra.mxu2 %v14854_v14  ;;  %v14946_v54 = vsub.f32 %v113_v20, %v14937_v59  ;;  %v14948_v24 = vand.u32 4294901760, %v112_v39 }
 0x6d4   :  { %6595 = vmatmul.f32.vlgmr.msra.gmra.mxu0 %v14726_v12  ;;  %6633 = vmatmul.f32.gmra.mxu1 %v14799_v1 }
 0x6d5   :  { %6979 = vmatpush.msra.mxu3 %v6978_v18  ;;  %6868 = vmatpush.msra.mxu0 %v6754_v4  ;;  %v6239_v4 = vmul.f32 %v14909_v42, %v6238_v60  ;;  %v7198_v27 = vand.u32 4294901760, %v14946_v54  ;;  %v14957_v11 = vsub.f32 %v112_v39, %v14948_v24 }
 0x6d6   :  { %6670 = vmatmul.f32.gmra.mxu2 %v14769_v3 }
 0x6d7   :  { %6938 = vmatpush.msra.mxu2 %v14866_v7  ;;  %6985 = vmatpush.msra.mxu3 %v6984_v62  ;;  %v7204_v32 = vand.u32 4294901760, %v14957_v11  ;;  %v7199_v8 = vsub.f32 %v14946_v54, %v7198_v27 }
 0x6d8   :  { %6699 = vmatmul.f32.gmra.mxu3 %v14769_v3  ;;  %6872 = vmatpush.msra.mxu0 %v6760_v46  ;;  %v7192_v46 = vand.u32 4294901760, %v14935_v50 }
 0x6d9   :  { %6991 = vmatpush.msra.mxu3 %v6990_v6  ;;  %v7205_v0 = vsub.f32 %v14957_v11, %v7204_v32  ;;  %v7200_v9 = vand.u32 4294901760, %v7199_v8 }
 0x6da   :  { %6876 = vmatpush.msra.mxu0 %v6766_v23  ;;  %v6240_v23 = vmul.f32 0.5, %v6239_v4 }
 0x6db   :  { %v7206_v57 = vand.u32 4294901760, %v7205_v0 }
 0x6dc   :  { %6600 = vmatmul.f32.gmra.mxu0 %v14785_v63  ;;  %6777 = vmatmul.f32.vlgmr.msrb.gmra.mxu1 %v14722_v30  ;;  %v6241_v10 = vsub.f32 1.5, %v6240_v23 }
 0x6dd   :  { %6880 = vmatpush.msra.mxu0 %v6772_v47  ;;  %7049 = vmatpush.msrb.mxu1 %v14835_v53  ;;  %v7193_v47 = vsub.f32 %v14935_v50, %v7192_v46 }
 0x6de   :  { %6811 = vmatmul.f32.vlgmr.msrb.gmra.mxu2 %v14726_v12 }
 0x6df   :  { %7051 = vmatpush.msrb.mxu1 %v14845_v44  ;;  %7084 = vmatpush.msrb.mxu2 %v6970_v51  ;;  %v7194_v36 = vand.u32 4294901760, %v7193_v47 }
 0x6e0   :  { %6843 = vmatmul.f32.vlgmr.msrb.gmra.mxu3 %v14737_v38 }
 0x6e1   :  { %7053 = vmatpush.msrb.mxu1 %v14854_v14  ;;  %7088 = vmatpush.msrb.mxu2 %v6976_v45  ;;  %v117_v45 = vld [vmem:[%s16526_s5 + $0x230] sm:$0xff] }
 0x6e2   :  { %7119 = vmatpush.msrb.mxu3 %v14835_v53  ;;  %v6242_v53 = vmul.f32 %v14909_v42, %v6241_v10  ;;  %v7371_v15 = vand.u32 4294901760, %v117_v45 }
 0x6e3   :  { %7055 = vmatpush.msrb.mxu1 %v14866_v7  ;;  %7092 = vmatpush.msrb.mxu2 %v6982_v43 }
 0x6e4   :  { %6728 = vmatmul.f32.vlgmr.msrb.gmra.mxu0 %v14771_v56  ;;  %6781 = vmatmul.f32.gmra.mxu1 %v14769_v3 }
 0x6e5   :  { %7121 = vmatpush.msrb.mxu3 %v14845_v44  ;;  %7015 = vmatpush.msrb.mxu0 %v14843_v52  ;;  %v7211_v52 = vsub.f32 %v14970_v34, %v7210_v25 }
 0x6e6   :  { %6816 = vmatmul.f32.gmra.mxu2 %v14785_v63 }
 0x6e7   :  { %7096 = vmatpush.msrb.mxu2 %v6988_v17  ;;  %7123 = vmatpush.msrb.mxu3 %v14854_v14  ;;  %v15004_v14 = vld [vmem:[%s16525_s4 + $0x4] sm:$0x3]  ;;  %v7212_v51 = vand.u32 4294901760, %v7211_v52  ;;  %v7413_v17 = vsub.f32 %v117_v45, %v7371_v15 }
 0x6e8   :  { %6849 = vmatmul.f32.gmra.mxu3 %v14799_v1  ;;  %7018 = vmatpush.msrb.mxu0 %v14857_v2  ;;  %v6246_v2 = vsel %vm14993_vm6, %v14909_v42, %v6242_v53  ;;  %v6262_v55 = vperm.slane %v15004_v14, 1  ;;  %v7375_v42 = vand.u32 4294901760, %v115_v5  ;;  %v120_v53 = vld [vmem:[%s16526_s5 + $0x248] sm:$0xff] }
 0x6e9   :  { %7125 = vmatpush.msrb.mxu3 %v14866_v7  ;;  %v6257_v31 = vmul.f32 %v6246_v2, %v14636_v58  ;;  %v7414_v62 = vand.u32 4294901760, %v7413_v17 }
 0x6ea   :  { %7021 = vmatpush.msrb.mxu0 %v14869_v26  ;;  %v7425_v20 = vsub.f32 %v115_v5, %v7375_v42 }
 0x6eb   :  { %v7415_v49 = vsub.f32 %v7413_v17, %v7414_v62 }
 0x6ec   :  { %6736 = vmatmul.f32.gmra.mxu0 %v14819_v61  ;;  %6911 = vmatmul.f32.vlgmr.msra.gmra.mxu1 %v14722_v30 }
 0x6ed   :  { %7024 = vmatpush.msrb.mxu0 %v14876_v35  ;;  %7195 = vmatpush.msra.mxu1 %v7194_v36  ;;  %v7416_v4 = vand.u32 4294901760, %v7415_v49  ;;  %v125_v49 = vld [vmem:[%s16526_s5 + $0x270] sm:$0xff] }
 0x6ee   :  { %6944 = vmatmul.f32.vlgmr.msra.gmra.mxu2 %v14771_v56  ;;  %v6259_v56 = vperm.slane %v15004_v14, 0  ;;  %v15112_v14 = vand.u32 4294901760, %v120_v53 }
 0x6ef   :  { %7201 = vmatpush.msra.mxu1 %v7200_v9  ;;  %7237 = vmatpush.msra.mxu2 %v14935_v50 }
 0x6f0   :  { %6993 = vmatmul.f32.vlgmr.msra.gmra.mxu3 %v14722_v30  ;;  %v6260_v7 = vmul.f32 %v6259_v56, %v6257_v31  ;;  %v15121_v31 = vsub.f32 %v120_v53, %v15112_v14 }
 0x6f1   :  { %7207 = vmatpush.msra.mxu1 %v7206_v57  ;;  %7240 = vmatpush.msra.mxu2 %v14946_v54 }
 0x6f2   :  { %7271 = vmatpush.msra.mxu3 %v14926_v16  ;;  %v6263_v58 = vadd.f32 %v6262_v55, %v6260_v7 }
 0x6f3   :  { %7213 = vmatpush.msra.mxu1 %v7212_v51  ;;  %7243 = vmatpush.msra.mxu2 %v14957_v11  ;;  %v119_v51 = vld [vmem:[%s16526_s5 + $0x240] sm:$0xff] }
 0x6f4   :  { %6882 = vmatmul.f32.vlgmr.msra.gmra.mxu0 %v14722_v30  ;;  %6915 = vmatmul.f32.gmra.mxu1 %v14769_v3 }
 0x6f5   :  { %7273 = vmatpush.msra.mxu3 %v14937_v59  ;;  %7154 = vmatpush.msra.mxu0 %v14926_v16 }
 0x6f6   :  { %6952 = vmatmul.f32.gmra.mxu2 %v14819_v61  ;;  %v7136_v61 = vsel %vm151_vm0, %v6263_v58, 0 }
 0x6f7   :  { %7246 = vmatpush.msra.mxu2 %v14970_v34  ;;  %7275 = vmatpush.msra.mxu3 %v14948_v24  ;;  %v15040_v26 = vand.u32 4294901760, %v7136_v61  ;;  %v122_v34 = vld [vmem:[%s16526_s5 + $0x258] sm:$0xff] }
 0x6f8   :  { %6997 = vmatmul.f32.gmra.mxu3 %v14769_v3  ;;  %7156 = vmatpush.msra.mxu0 %v14937_v59  ;;  %v15090_v8 = vand.u32 4294901760, %v122_v34 }
 0x6f9   :  { %7277 = vmatpush.msra.mxu3 %v14959_v33 }
 0x6fa   :  { %7158 = vmatpush.msra.mxu0 %v14948_v24  ;;  %v15098_v0 = vsub.f32 %v122_v34, %v15090_v8 }
 0x6fc   :  { %6886 = vmatmul.f32.gmra.mxu0 %v14769_v3  ;;  %7059 = vmatmul.f32.vlgmr.msrb.gmra.mxu1 %v14737_v38  ;;  %v15047_v38 = vsub.f32 %v7136_v61, %v15040_v26  ;;  %v7624_v44 = vand.u32 4294901760, %v15098_v0 }
 0x6fd   :  { %7160 = vmatpush.msra.mxu0 %v14959_v33  ;;  %7341 = vmatpush.msrb.mxu1 %v14926_v16 }
 0x6fe   :  { %7098 = vmatmul.f32.vlgmr.msrb.gmra.mxu2 %v14722_v30  ;;  %v7625_v58 = vsub.f32 %v15098_v0, %v7624_v44 }
 0x6ff   :  { %7343 = vmatpush.msrb.mxu1 %v14937_v59  ;;  %v7426_v59 = vand.u32 4294901760, %v7425_v20 }
 0x700   :  { %7127 = vmatmul.f32.vlgmr.msrb.gmra.mxu3 %v14722_v30  ;;  %v15056_v30 = vand.u32 4294901760, %v15047_v38 }
 0x701   :  { %7345 = vmatpush.msrb.mxu1 %v14948_v24 }
 0x703   :  { %7347 = vmatpush.msrb.mxu1 %v14959_v33 }
 0x704   :  { %7027 = vmatmul.f32.vlgmr.msrb.gmra.mxu0 %v14726_v12  ;;  %7065 = vmatmul.f32.gmra.mxu1 %v14799_v1  ;;  %v118_v12 = vld [vmem:[%s16526_s5 + $0x238] sm:$0xff] }
 0x705   :  { %7306 = vmatpush.msrb.mxu0 %v7192_v46  ;;  %v7369_v1 = vand.u32 4294901760, %v118_v12  ;;  %v7427_v46 = vsub.f32 %v7425_v20, %v7426_v59 }
 0x706   :  { %7102 = vmatmul.f32.gmra.mxu2 %v14769_v3 }
 0x707   :  { %7310 = vmatpush.msrb.mxu0 %v7198_v27  ;;  %v7407_v35 = vsub.f32 %v118_v12, %v7369_v1  ;;  %7370 = vmatpush.msrb.mxu2 %v7369_v1  ;;  %v7428_v13 = vand.u32 4294901760, %v7427_v46 }
 0x708   :  { %7131 = vmatmul.f32.gmra.mxu3 %v14769_v3  ;;  %v7164_v3 = vsub.f32 %v15047_v38, %v15056_v30 }
 0x709   :  { %7314 = vmatpush.msrb.mxu0 %v7204_v32  ;;  %v7408_v28 = vand.u32 4294901760, %v7407_v35  ;;  %7372 = vmatpush.msrb.mxu2 %v7371_v15 }
 0x70a   :  { %v15078_v48 = vand.u32 4294901760, %v7164_v3 }
 0x70b   :  { %7318 = vmatpush.msrb.mxu0 %v7210_v25  ;;  %v7409_v41 = vsub.f32 %v7407_v35, %v7408_v28  ;;  %v121_v25 = vld [vmem:[%s16526_s5 + $0x250] sm:$0xff] }
 0x70c   :  { %7032 = vmatmul.f32.gmra.mxu0 %v14785_v63  ;;  %7215 = vmatmul.f32.vlgmr.msra.gmra.mxu1 %v15040_v26  ;;  %v116_v63 = vld [vmem:[%s16526_s5 + $0x228] sm:$0xff] }
 0x70d   :  { %7487 = vmatpush.msra.mxu1 %v7369_v1  ;;  %v7373_v19 = vand.u32 4294901760, %v116_v63  ;;  %v7410_v60 = vand.u32 4294901760, %v7409_v41 }
 0x70e   :  { %7249 = vmatmul.f32.vlgmr.msra.gmra.mxu2 %v15047_v38 }
 0x70f   :  { %v6232_v29 = vpop.xlane.xlu0 %6231  ;;  %7489 = vmatpush.msra.mxu1 %v7371_v15  ;;  %v7419_v6 = vsub.f32 %v116_v63, %v7373_v19  ;;  %7374 = vmatpush.msrb.mxu2 %v7373_v19 }
 0x710   :  { %v6234_v43 = vmul.f32 %v6232_v29, %v16562_v21  ;;  %7281 = vmatmul.f32.vlgmr.msra.gmra.mxu3 %v15056_v30  ;;  %v7626_v29 = vand.u32 4294901760, %v7625_v58 }
 0x711   :  { %7491 = vmatpush.msra.mxu1 %v7373_v19  ;;  %v7420_v16 = vand.u32 4294901760, %v7419_v6  ;;  %7376 = vmatpush.msrb.mxu2 %v7375_v42 }
 0x712   :  { %v6236_v18 = vadd.f32 1e-05, %v6234_v43  ;;  %7411 = vmatpush.msrb.mxu3 %v7410_v60 }
 0x713   :  { %7522 = vmatpush.msra.mxu2 %v7408_v28  ;;  %v7421_v50 = vsub.f32 %v7419_v6, %v7420_v16  ;;  %7493 = vmatpush.msra.mxu1 %v7375_v42 }
 0x714   :  { %12892 = vrsqrt.f32 %v6236_v18  ;;  %7166 = vmatmul.f32.vlgmr.msra.gmra.mxu0 %v15078_v48  ;;  %7417 = vmatpush.msrb.mxu3 %v7416_v4  ;;  %vm6253_vm9 = vweird.f32 %v6236_v18  ;;  %v15187_v4 = vand.u32 4294901760, %v125_v49 }
 0x715   :  { %7453 = vmatpush.msra.mxu0 %v7407_v35  ;;  %7526 = vmatpush.msra.mxu2 %v7414_v62  ;;  %v7422_v39 = vand.u32 4294901760, %v7421_v50  ;;  %v126_v62 = vld [vmem:[%s16526_s5 + $0x278] sm:$0xff]  ;;  %v124_v50 = vld [vmem:[%s16526_s5 + $0x268] sm:$0xff] }
 0x717   :  { %7456 = vmatpush.msra.mxu0 %v7413_v17  ;;  %7530 = vmatpush.msra.mxu2 %v7420_v16 }
 0x718   :  { %7423 = vmatpush.msrb.mxu3 %v7422_v39 }
 0x719   :  { %7459 = vmatpush.msra.mxu0 %v7419_v6  ;;  %7534 = vmatpush.msra.mxu2 %v7426_v59 }
 0x71a   :  { %v12893_v54 = vpop.eup %12892  ;;  %7429 = vmatpush.msrb.mxu3 %v7428_v13  ;;  %v123_v13 = vld [vmem:[%s16526_s5 + $0x260] sm:$0xff] }
 0x71b   :  { %v6248_v24 = vmul.f32 %v12893_v54, %v6236_v18  ;;  %7462 = vmatpush.msra.mxu0 %v7425_v20  ;;  %vm6254_vm7 = vweird.f32 %v12893_v54 }
 0x71c   :  { %7557 = vmatpush.msra.mxu3 %v7369_v1  ;;  %vm6255_vm10 = vmor %vm6253_vm9, %vm6254_vm7  ;;  %v7636_v1 = vand.u32 4294901760, %v15121_v31 }
 0x71d   :  { %v6249_v23 = vmul.f32 %v12893_v54, %v6248_v24  ;;  %v15203_v24 = vand.u32 4294901760, %v124_v50 }
 0x71e   :  { %7559 = vmatpush.msra.mxu3 %v7371_v15  ;;  %v7637_v28 = vsub.f32 %v15121_v31, %v7636_v1 }
 0x71f   :  { %v6250_v27 = vmul.f32 0.5, %v6249_v23 }
 0x720   :  { %7561 = vmatpush.msra.mxu3 %v7373_v19  ;;  %v7638_v41 = vand.u32 4294901760, %v7637_v28 }
 0x721   :  { %v6251_v11 = vsub.f32 1.5, %v6250_v27  ;;  %v15214_v27 = vsub.f32 %v124_v50, %v15203_v24 }
 0x722   :  { %7563 = vmatpush.msra.mxu3 %v7375_v42  ;;  %v15173_v42 = vand.u32 4294901760, %v126_v62 }
 0x723   :  { %v6252_v33 = vmul.f32 %v12893_v54, %v6251_v11  ;;  %v15217_v11 = vand.u32 4294901760, %v123_v13 }
 0x724   :  { %v15185_v20 = vsub.f32 %v126_v62, %v15173_v42  ;;  %v127_v62 = vld [vmem:[%s16526_s5 + $0x280] sm:$0xff] }
 0x725   :  { %v6256_v47 = vsel %vm6255_vm10, %v12893_v54, %v6252_v33  ;;  %v15201_v54 = vsub.f32 %v125_v49, %v15187_v4 }
 0x726   :  { %v6258_v32 = vmul.f32 %v6256_v47, %v14684_v22  ;;  %v15100_v22 = vand.u32 4294901760, %v121_v25  ;;  %v7840_v46 = vand.u32 4294901760, %v15185_v20  ;;  %v7852_v47 = vand.u32 4294901760, %v15214_v27 }
 0x727   :  { %v7846_v23 = vand.u32 4294901760, %v15201_v54 }
 0x728   :  { %v6261_v10 = vmul.f32 %v6259_v56, %v6258_v32  ;;  %v15110_v57 = vsub.f32 %v121_v25, %v15100_v22  ;;  %v7841_v33 = vsub.f32 %v15185_v20, %v7840_v46  ;;  %v15226_v32 = vsub.f32 %v123_v13, %v15217_v11 }
 0x729   :  { %v15106_v52 = vpop.f32.mrf.mxu1  ;;  %v7847_v34 = vsub.f32 %v15201_v54, %v7846_v23 }
 0x72a   :  { %v6264_v36 = vadd.f32 %v6262_v55, %v6261_v10  ;;  %v7630_v56 = vand.u32 4294901760, %v15110_v57  ;;  %v15123_v55 = vand.u32 4294901760, %v119_v51  ;;  %v7858_v53 = vand.u32 4294901760, %v15226_v32 }
 0x72c   :  { %v7139_v9 = vsel %vm151_vm0, %v6264_v36, 0  ;;  %v15133_v61 = vsub.f32 %v119_v51, %v15123_v55  ;;  %v7631_v3 = vsub.f32 %v15110_v57, %v7630_v56  ;;  %v7842_v36 = vand.u32 4294901760, %v7841_v33 }
 0x72d   :  { %v15114_v2 = vand.u32 4294901760, %v7139_v9 }
 0x72e   :  { %v7642_v63 = vand.u32 4294901760, %v15133_v61  ;;  %v7632_v5 = vand.u32 4294901760, %v7631_v3  ;;  %v7848_v3 = vand.u32 4294901760, %v7847_v34 }
 0x72f   :  { %v15126_v7 = vsub.f32 %v7139_v9, %v15114_v2  ;;  %7219 = vmatmul.f32.gmra.mxu1 %v15114_v2  ;;  %v7853_v9 = vsub.f32 %v15214_v27, %v7852_v47 }
 0x730   :  { %v7643_v18 = vsub.f32 %v15133_v61, %v7642_v63 }
 0x731   :  { %7254 = vmatmul.f32.gmra.mxu2 %v15126_v7  ;;  %v15137_v12 = vand.u32 4294901760, %v15126_v7  ;;  %v15143_v45 = vpop.f32.mrf.mxu0  ;;  %v15148_v15 = vpop.f32.mrf.mxu2 }
 0x732   :  { %v15156_v17 = vpop.f32.mrf.mxu1  ;;  %v7644_v6 = vand.u32 4294901760, %v7643_v18 }
 0x733   :  { %7287 = vmatmul.f32.gmra.mxu3 %v15137_v12  ;;  %v7172_v35 = vsub.f32 %v15126_v7, %v15137_v12  ;;  %v15158_v19 = vpop.f32.mrf.mxu3 }
 0x735   :  { %v15151_v43 = vand.u32 4294901760, %v7172_v35  ;;  %v7854_v35 = vand.u32 4294901760, %v7853_v9 }
 0x737   :  { %7174 = vmatmul.f32.gmra.mxu0 %v15151_v43  ;;  %7349 = vmatmul.f32.vlgmr.msrb.gmra.mxu1 %v15040_v26 }
 0x738   :  { %7627 = vmatpush.msrb.mxu1 %v7626_v29 }
 0x739   :  { %7382 = vmatmul.f32.vlgmr.msrb.gmra.mxu2 %v15078_v48  ;;  %v15175_v60 = vpop.f32.mrf.mxu0  ;;  %v15180_v16 = vpop.f32.mrf.mxu2 }
 0x73a   :  { %7669 = vmatpush.msrb.mxu2 %v15098_v0  ;;  %7633 = vmatpush.msrb.mxu1 %v7632_v5  ;;  %v15194_v59 = vpop.f32.mrf.mxu1 }
 0x73b   :  { %7431 = vmatmul.f32.vlgmr.msrb.gmra.mxu3 %v15040_v26  ;;  %v15196_v39 = vpop.f32.mrf.mxu3 }
 0x73c   :  { %7703 = vmatpush.msrb.mxu3 %v15090_v8  ;;  %7672 = vmatpush.msrb.mxu2 %v15110_v57 }
 0x73d   :  { %7639 = vmatpush.msrb.mxu1 %v7638_v41 }
 0x73e   :  { %7705 = vmatpush.msrb.mxu3 %v15100_v22  ;;  %7675 = vmatpush.msrb.mxu2 %v15121_v31 }
 0x73f   :  { %7320 = vmatmul.f32.vlgmr.msrb.gmra.mxu0 %v15040_v26  ;;  %7353 = vmatmul.f32.gmra.mxu1 %v15114_v2 }
 0x740   :  { %7586 = vmatpush.msrb.mxu0 %v15090_v8  ;;  %7645 = vmatpush.msrb.mxu1 %v7644_v6 }
 0x741   :  { %7390 = vmatmul.f32.gmra.mxu2 %v15151_v43  ;;  %7707 = vmatpush.msrb.mxu3 %v15112_v14  ;;  %v15232_v10 = vpop.f32.mrf.mxu0  ;;  %v15236_v25 = vpop.f32.mrf.mxu2 }
 0x742   :  { %7588 = vmatpush.msrb.mxu0 %v15100_v22  ;;  %7678 = vmatpush.msrb.mxu2 %v15133_v61  ;;  %v15244_v51 = vpop.f32.mrf.mxu1 }
 0x743   :  { %7435 = vmatmul.f32.gmra.mxu3 %v15114_v2  ;;  %v15246_v58 = vpop.f32.mrf.mxu3 }
 0x744   :  { %7590 = vmatpush.msrb.mxu0 %v15112_v14  ;;  %7709 = vmatpush.msrb.mxu3 %v15123_v55 }
 0x746   :  { %7592 = vmatpush.msrb.mxu0 %v15123_v55 }
 0x747   :  { %7324 = vmatmul.f32.gmra.mxu0 %v15114_v2  ;;  %7497 = vmatmul.f32.vlgmr.msra.gmra.mxu1 %v15056_v30 }
 0x748   :  { %7773 = vmatpush.msra.mxu1 %v15090_v8  ;;  %v7859_v8 = vsub.f32 %v15226_v32, %v7858_v53 }
 0x749   :  { %7536 = vmatmul.f32.vlgmr.msra.gmra.mxu2 %v15040_v26  ;;  %v15262_v29 = vpop.f32.mrf.mxu0 }
 0x74a   :  { %7802 = vmatpush.msra.mxu2 %v15173_v42  ;;  %7775 = vmatpush.msra.mxu1 %v15100_v22  ;;  %v7860_v22 = vand.u32 4294901760, %v7859_v8  ;;  %v15271_v28 = vpop.f32.mrf.mxu1 }
 0x74b   :  { %7565 = vmatmul.f32.vlgmr.msra.gmra.mxu3 %v15040_v26  ;;  %v15273_v0 = vpop.f32.mrf.mxu3 }
 0x74c   :  { %7843 = vmatpush.msra.mxu3 %v7842_v36  ;;  %7804 = vmatpush.msra.mxu2 %v15187_v4 }
 0x74d   :  { %7777 = vmatpush.msra.mxu1 %v15112_v14  ;;  %v15265_v14 = vpop.f32.mrf.mxu2 }
 0x74e   :  { %7849 = vmatpush.msra.mxu3 %v7848_v3  ;;  %7806 = vmatpush.msra.mxu2 %v15203_v24 }
 0x74f   :  { %7465 = vmatmul.f32.vlgmr.msra.gmra.mxu0 %v15047_v38  ;;  %7503 = vmatmul.f32.gmra.mxu1 %v15137_v12 }
 0x750   :  { %7738 = vmatpush.msra.mxu0 %v7624_v44  ;;  %7779 = vmatpush.msra.mxu1 %v15123_v55  ;;  %v130_v44 = vld [vmem:[%s16526_s5 + $0x298] sm:$0xff] }
 0x751   :  { %7540 = vmatmul.f32.gmra.mxu2 %v15114_v2  ;;  %7855 = vmatpush.msra.mxu3 %v7854_v35  ;;  %v15285_v57 = vand.u32 4294901760, %v130_v44  ;;  %v15299_v61 = vpop.f32.mrf.mxu0  ;;  %v133_v35 = vld [vmem:[%s16526_s5 + $0x2b0] sm:$0xff] }
 0x752   :  { %7742 = vmatpush.msra.mxu0 %v7630_v56  ;;  %7808 = vmatpush.msra.mxu2 %v15217_v11  ;;  %v129_v56 = vld [vmem:[%s16526_s5 + $0x290] sm:$0xff]  ;;  %v15320_v6 = vpop.f32.mrf.mxu1 }
 0x753   :  { %7569 = vmatmul.f32.gmra.mxu3 %v15114_v2  ;;  %v15295_v31 = vsub.f32 %v130_v44, %v15285_v57  ;;  %v15297_v55 = vand.u32 4294901760, %v129_v56  ;;  %v15322_v49 = vpop.f32.mrf.mxu3  ;;  %v15391_v44 = vand.u32 4294901760, %v133_v35 }
 0x754   :  { %7746 = vmatpush.msra.mxu0 %v7636_v1  ;;  %7861 = vmatpush.msra.mxu3 %v7860_v22  ;;  %v128_v1 = vld [vmem:[%s16526_s5 + $0x288] sm:$0xff] }
 0x755   :  { %v16542_v5 = vand.u32 4294901760, %v15295_v31  ;;  %v15312_v18 = vsub.f32 %v129_v56, %v15297_v55  ;;  %v15314_v41 = vand.u32 4294901760, %v128_v1 }
 0x756   :  { %7750 = vmatpush.msra.mxu0 %v7642_v63  ;;  %v15305_v63 = vpop.f32.mrf.mxu2 }
 0x757   :  { %7470 = vmatmul.f32.gmra.mxu0 %v15126_v7  ;;  %7647 = vmatmul.f32.vlgmr.msrb.gmra.mxu1 %v15040_v26  ;;  %v15329_v50 = vsub.f32 %v128_v1, %v15314_v41  ;;  %v132_v1 = vld [vmem:[%s16526_s5 + $0x2a8] sm:$0xff] }
 0x758   :  { %7919 = vmatpush.msrb.mxu1 %v15173_v42 }
 0x759   :  { %7681 = vmatmul.f32.vlgmr.msrb.gmra.mxu2 %v15047_v38  ;;  %v16539_v13 = vand.u32 4294901760, %v15329_v50 }
 0x75a   :  { %7954 = vmatpush.msrb.mxu2 %v7840_v46  ;;  %7921 = vmatpush.msrb.mxu1 %v15187_v4  ;;  %v15333_v46 = vand.u32 4294901760, %v127_v62 }
 0x75b   :  { %7713 = vmatmul.f32.vlgmr.msrb.gmra.mxu3 %v15056_v30 }
 0x75c   :  { %7989 = vmatpush.msrb.mxu3 %v15173_v42  ;;  %7958 = vmatpush.msrb.mxu2 %v7846_v23  ;;  %v16540_v42 = vand.u32 4294901760, %v15312_v18  ;;  %v15344_v23 = vsub.f32 %v127_v62, %v15333_v46 }
 0x75d   :  { %7923 = vmatpush.msrb.mxu1 %v15203_v24 }
 0x75e   :  { %7991 = vmatpush.msrb.mxu3 %v15187_v4  ;;  %7962 = vmatpush.msrb.mxu2 %v7852_v47  ;;  %v8057_v4 = vsub.f32 %v15295_v31, %v16542_v5  ;;  %v16538_v33 = vand.u32 4294901760, %v15344_v23  ;;  %v15356_v47 = vpop.f32.mrf.mxu0  ;;  %v15361_v34 = vpop.f32.mrf.mxu2 }
 0x75f   :  { %7598 = vmatmul.f32.vlgmr.msrb.gmra.mxu0 %v15078_v48  ;;  %7651 = vmatmul.f32.gmra.mxu1 %v15114_v2 }
 0x760   :  { %7885 = vmatpush.msrb.mxu0 %v15185_v20  ;;  %7925 = vmatpush.msrb.mxu1 %v15217_v11  ;;  %v8063_v20 = vsub.f32 %v15312_v18, %v16540_v42 }
 0x761   :  { %7686 = vmatmul.f32.gmra.mxu2 %v15126_v7  ;;  %7993 = vmatpush.msrb.mxu3 %v15203_v24  ;;  %v8058_v24 = vand.u32 4294901760, %v8057_v4 }
 0x762   :  { %7888 = vmatpush.msrb.mxu0 %v15201_v54  ;;  %7966 = vmatpush.msrb.mxu2 %v7858_v53  ;;  %v8069_v54 = vsub.f32 %v15329_v50, %v16539_v13  ;;  %v8064_v36 = vand.u32 4294901760, %v8063_v20  ;;  %v8075_v53 = vsub.f32 %v15344_v23, %v16538_v33  ;;  %v15405_v20 = vsub.f32 %v133_v35, %v15391_v44 }
 0x763   :  { %7719 = vmatmul.f32.gmra.mxu3 %v15137_v12 }
 0x764   :  { %7891 = vmatpush.msrb.mxu0 %v15214_v27  ;;  %7995 = vmatpush.msrb.mxu3 %v15217_v11  ;;  %v15366_v27 = vpop.f32.mrf.mxu1  ;;  %v15368_v11 = vpop.f32.mrf.mxu3  ;;  %v8070_v9 = vand.u32 4294901760, %v8069_v54  ;;  %v8076_v3 = vand.u32 4294901760, %v8075_v53  ;;  %v131_v54 = vld [vmem:[%s16526_s5 + $0x2a0] sm:$0xff] }
 0x766   :  { %7894 = vmatpush.msrb.mxu0 %v15226_v32  ;;  %v134_v32 = vld [vmem:[%s16526_s5 + $0x2b8] sm:$0xff]  ;;  %v15393_v56 = vpop.f32.mrf.mxu0  ;;  %v15400_v62 = vpop.f32.mrf.mxu2 }
 0x767   :  { %7606 = vmatmul.f32.gmra.mxu0 %v15151_v43  ;;  %7781 = vmatmul.f32.vlgmr.msra.gmra.mxu1 %v15040_v26  ;;  %v15381_v8 = vand.u32 4294901760, %v134_v32  ;;  %16567 = vst [vmem:[#allocation6_spill] sm:$0xff] %v15400_v62 }
 0x768   :  { %8059 = vmatpush.msra.mxu1 %v8058_v24  ;;  %v15407_v24 = vand.u32 4294901760, %v132_v1 }
 0x769   :  { %7814 = vmatmul.f32.vlgmr.msra.gmra.mxu2 %v15078_v48  ;;  %v15389_v22 = vsub.f32 %v134_v32, %v15381_v8 }
 0x76a   :  { %8101 = vmatpush.msra.mxu2 %v15295_v31  ;;  %8065 = vmatpush.msra.mxu1 %v8064_v36  ;;  %v15422_v32 = vsub.f32 %v132_v1, %v15407_v24 }
 0x76b   :  { %7863 = vmatmul.f32.vlgmr.msra.gmra.mxu3 %v15040_v26  ;;  %v16541_v4 = vand.u32 4294901760, %v15389_v22 }
 0x76c   :  { %8135 = vmatpush.msra.mxu3 %v15285_v57  ;;  %8104 = vmatpush.msra.mxu2 %v15312_v18  ;;  %v15414_v36 = vpop.f32.mrf.mxu1  ;;  %v15416_v53 = vpop.f32.mrf.mxu3  ;;  %v16545_v33 = vand.u32 4294901760, %v15422_v32 }
 0x76d   :  { %8071 = vmatpush.msra.mxu1 %v8070_v9  ;;  %16568 = vst [vmem:[#allocation7_spill] sm:$0xff] %v15414_v36  ;;  %v16544_v9 = vand.u32 4294901760, %v15405_v20  ;;  %v8273_v35 = vsub.f32 %v15389_v22, %v16541_v4 }
 0x76e   :  { %8137 = vmatpush.msra.mxu3 %v15297_v55  ;;  %8107 = vmatpush.msra.mxu2 %v15329_v50  ;;  %16569 = vst [vmem:[#allocation10_spill] sm:$0xff] %v15416_v53  ;;  %v15444_v5 = vpop.f32.mrf.mxu0  ;;  %v15450_v21 = vpop.f32.mrf.mxu2 }
 0x76f   :  { %7752 = vmatmul.f32.vlgmr.msra.gmra.mxu0 %v15040_v26  ;;  %7785 = vmatmul.f32.gmra.mxu1 %v15114_v2  ;;  %v8279_v1 = vsub.f32 %v15405_v20, %v16544_v9  ;;  %v8274_v42 = vand.u32 4294901760, %v8273_v35  ;;  %16570 = vst [vmem:[#allocation11_spill] sm:$0xff] %v15444_v5 }
 0x770   :  { %8018 = vmatpush.msra.mxu0 %v15285_v57  ;;  %8077 = vmatpush.msra.mxu1 %v8076_v3  ;;  %v15425_v3 = vand.u32 4294901760, %v131_v54  ;;  %16571 = vst [vmem:[#allocation12_spill] sm:$0xff] %v15450_v21 }
 0x771   :  { %7822 = vmatmul.f32.gmra.mxu2 %v15151_v43  ;;  %8139 = vmatpush.msra.mxu3 %v15314_v41  ;;  %v8280_v9 = vand.u32 4294901760, %v8279_v1  ;;  %v16575_v1 = vand.u32 4294901760, %v15312_v18  ;;  %v138_v18 = vld [vmem:[%s16526_s5 + $0x2d8] sm:$0xff] }
 0x772   :  { %8020 = vmatpush.msra.mxu0 %v15297_v55  ;;  %8110 = vmatpush.msra.mxu2 %v15344_v23  ;;  %v15434_v13 = vsub.f32 %v131_v54, %v15425_v3  ;;  %v8285_v54 = vsub.f32 %v15422_v32, %v16545_v33 }
 0x773   :  { %7867 = vmatmul.f32.gmra.mxu3 %v15114_v2 }
 0x774   :  { %8022 = vmatpush.msra.mxu0 %v15314_v41  ;;  %8141 = vmatpush.msra.mxu3 %v15333_v46  ;;  %v16547_v4 = vand.u32 4294901760, %v15434_v13  ;;  %v15457_v35 = vpop.f32.mrf.mxu3  ;;  %v8286_v37 = vand.u32 4294901760, %v8285_v54  ;;  %v137_v54 = vld [vmem:[%s16526_s5 + $0x2d0] sm:$0xff] }
 0x775   :  { %16573 = vst [vmem:[#allocation14_spill] sm:$0xff] %v15457_v35 }
 0x776   :  { %8024 = vmatpush.msra.mxu0 %v15333_v46  ;;  %v8291_v33 = vsub.f32 %v15434_v13, %v16547_v4 }
 0x777   :  { %7756 = vmatmul.f32.gmra.mxu0 %v15114_v2  ;;  %7929 = vmatmul.f32.vlgmr.msrb.gmra.mxu1 %v15056_v30 }
 0x778   :  { %8205 = vmatpush.msrb.mxu1 %v15285_v57  ;;  %v15455_v57 = vpop.f32.mrf.mxu1 }
 0x779   :  { %7968 = vmatmul.f32.vlgmr.msrb.gmra.mxu2 %v15040_v26  ;;  %16572 = vst [vmem:[#allocation13_spill] sm:$0xff] %v15455_v57 }
 0x77a   :  { %8234 = vmatpush.msrb.mxu2 %v15381_v8  ;;  %8207 = vmatpush.msrb.mxu1 %v15297_v55  ;;  %v16574_v55 = vand.u32 4294901760, %v15295_v31  ;;  %v16578_v31 = vand.u32 4294901760, %v15329_v50  ;;  %v15493_v50 = vand.u32 4294901760, %v138_v18 }
 0x77b   :  { %7997 = vmatmul.f32.vlgmr.msrb.gmra.mxu3 %v15040_v26 }
 0x77c   :  { %8275 = vmatpush.msrb.mxu3 %v8274_v42  ;;  %8236 = vmatpush.msrb.mxu2 %v15391_v44  ;;  %v8292_v42 = vand.u32 4294901760, %v8291_v33  ;;  %v15483_v33 = vpop.f32.mrf.mxu3 }
 0x77d   :  { %8209 = vmatpush.msrb.mxu1 %v15314_v41  ;;  %v15474_v41 = vpop.f32.mrf.mxu0  ;;  %16580 = vst [vmem:[#allocation18_spill] sm:$0xff] %v15483_v33 }
 0x77e   :  { %8281 = vmatpush.msrb.mxu3 %v8280_v9  ;;  %8238 = vmatpush.msrb.mxu2 %v15407_v24  ;;  %16576 = vst [vmem:[#allocation15_spill] sm:$0xff] %v15474_v41  ;;  %v15477_v9 = vpop.f32.mrf.mxu2 }
 0x77f   :  { %7897 = vmatmul.f32.vlgmr.msrb.gmra.mxu0 %v15047_v38  ;;  %7935 = vmatmul.f32.gmra.mxu1 %v15137_v12  ;;  %16577 = vst [vmem:[#allocation16_spill] sm:$0xff] %v15477_v9 }
 0x780   :  { %8170 = vmatpush.msrb.mxu0 %v16574_v55  ;;  %8211 = vmatpush.msrb.mxu1 %v15333_v46  ;;  %v15481_v46 = vpop.f32.mrf.mxu1  ;;  %v15503_v55 = vsub.f32 %v138_v18, %v15493_v50 }
 0x781   :  { %7972 = vmatmul.f32.gmra.mxu2 %v15114_v2  ;;  %8287 = vmatpush.msrb.mxu3 %v8286_v37  ;;  %16579 = vst [vmem:[#allocation17_spill] sm:$0xff] %v15481_v46  ;;  %v16581_v37 = vand.u32 4294901760, %v15344_v23  ;;  %v16582_v23 = vand.u32 4294901760, %v15389_v22 }
 0x782   :  { %8174 = vmatpush.msrb.mxu0 %v16575_v1  ;;  %8240 = vmatpush.msrb.mxu2 %v15425_v3  ;;  %v136_v1 = vld [vmem:[%s16526_s5 + $0x2c8] sm:$0xff] }
 0x783   :  { %8001 = vmatmul.f32.gmra.mxu3 %v15114_v2  ;;  %v15518_v18 = vand.u32 4294901760, %v136_v1 }
 0x784   :  { %8178 = vmatpush.msrb.mxu0 %v16578_v31  ;;  %8293 = vmatpush.msrb.mxu3 %v8292_v42  ;;  %v15505_v42 = vand.u32 4294901760, %v137_v54  ;;  %v16583_v31 = vand.u32 4294901760, %v15405_v20  ;;  %v15541_v46 = vpop.f32.mrf.mxu3 }
 0x785   :  { %v15520_v4 = vpop.f32.mrf.mxu0  ;;  %16588 = vst [vmem:[#allocation22_spill] sm:$0xff] %v15541_v46 }
 0x786   :  { %8182 = vmatpush.msrb.mxu0 %v16581_v37  ;;  %16584 = vst [vmem:[#allocation19_spill] sm:$0xff] %v15520_v4  ;;  %v15526_v33 = vpop.f32.mrf.mxu2  ;;  %v15537_v37 = vand.u32 4294901760, %v135_v40 }
 0x787   :  { %7902 = vmatmul.f32.gmra.mxu0 %v15126_v7  ;;  %8079 = vmatmul.f32.vlgmr.msra.gmra.mxu1 %v15040_v26  ;;  %16585 = vst [vmem:[#allocation20_spill] sm:$0xff] %v15526_v33 }
 0x788   :  { %8351 = vmatpush.msra.mxu1 %v15381_v8  ;;  %v15539_v9 = vpop.f32.mrf.mxu1 }
 0x789   :  { %8113 = vmatmul.f32.vlgmr.msra.gmra.mxu2 %v15047_v38  ;;  %16587 = vst [vmem:[#allocation21_spill] sm:$0xff] %v15539_v9  ;;  %v16590_v9 = vand.u32 4294901760, %v15434_v13 }
 0x78a   :  { %8386 = vmatpush.msra.mxu2 %v16582_v23  ;;  %8353 = vmatpush.msra.mxu1 %v15391_v44  ;;  %v15516_v23 = vsub.f32 %v137_v54, %v15505_v42  ;;  %v15552_v54 = vsub.f32 %v135_v40, %v15537_v37 }
 0x78b   :  { %8145 = vmatmul.f32.vlgmr.msra.gmra.mxu3 %v15056_v30 }
 0x78c   :  { %8421 = vmatpush.msra.mxu3 %v15381_v8  ;;  %8390 = vmatpush.msra.mxu2 %v16583_v31  ;;  %v16586_v8 = vand.u32 4294901760, %v15422_v32  ;;  %v15533_v31 = vsub.f32 %v136_v1, %v15518_v18 }
 0x78d   :  { %8355 = vmatpush.msra.mxu1 %v15407_v24 }
 0x78e   :  { %8423 = vmatpush.msra.mxu3 %v15391_v44  ;;  %8394 = vmatpush.msra.mxu2 %v16586_v8  ;;  %v16589_v44 = vand.u32 4294901760, %v15503_v55  ;;  %v16549_v1 = vand.u32 4294901760, %v15533_v31 }
 0x78f   :  { %8030 = vmatmul.f32.vlgmr.msra.gmra.mxu0 %v15078_v48  ;;  %8083 = vmatmul.f32.gmra.mxu1 %v15114_v2 }
 0x790   :  { %8317 = vmatpush.msra.mxu0 %v15389_v22  ;;  %8357 = vmatpush.msra.mxu1 %v15425_v3  ;;  %v8489_v8 = vsub.f32 %v15503_v55, %v16589_v44  ;;  %v16591_v22 = vand.u32 4294901760, %v15516_v23  ;;  %v16550_v44 = vand.u32 4294901760, %v15552_v54  ;;  %v8501_v40 = vsub.f32 %v15533_v31, %v16549_v1 }
 0x791   :  { %8118 = vmatmul.f32.gmra.mxu2 %v15126_v7  ;;  %8425 = vmatpush.msra.mxu3 %v15407_v24 }
 0x792   :  { %8320 = vmatpush.msra.mxu0 %v15405_v20  ;;  %8398 = vmatpush.msra.mxu2 %v16590_v9  ;;  %v8495_v46 = vsub.f32 %v15516_v23, %v16591_v22  ;;  %v8490_v24 = vand.u32 4294901760, %v8489_v8  ;;  %v142_v20 = vld [vmem:[%s16526_s5 + $0x2f8] sm:$0xff]  ;;  %v15571_v22 = vpop.f32.mrf.mxu0  ;;  %v8507_v8 = vsub.f32 %v15552_v54, %v16550_v44 }
 0x793   :  { %8151 = vmatmul.f32.gmra.mxu3 %v15137_v12  ;;  %16592 = vst [vmem:[#allocation23_spill] sm:$0xff] %v15571_v22  ;;  %v15583_v1 = vand.u32 4294901760, %v142_v20  ;;  %v15588_v22 = vpop.f32.mrf.mxu3 }
 0x794   :  { %8323 = vmatpush.msra.mxu0 %v15422_v32  ;;  %8427 = vmatpush.msra.mxu3 %v15425_v3  ;;  %v8496_v9 = vand.u32 4294901760, %v8495_v46  ;;  %v141_v32 = vld [vmem:[%s16526_s5 + $0x2f0] sm:$0xff]  ;;  %v15578_v3 = vpop.f32.mrf.mxu2  ;;  %v15586_v46 = vpop.f32.mrf.mxu1  ;;  %16595 = vst [vmem:[#allocation26_spill] sm:$0xff] %v15588_v22 }
 0x795   :  { %16593 = vst [vmem:[#allocation24_spill] sm:$0xff] %v15578_v3  ;;  %v15591_v33 = vand.u32 4294901760, %v141_v32  ;;  %v15600_v44 = vsub.f32 %v142_v20, %v15583_v1 }
 0x796   :  { %8326 = vmatpush.msra.mxu0 %v15434_v13  ;;  %v8502_v13 = vand.u32 4294901760, %v8501_v40  ;;  %16594 = vst [vmem:[#allocation25_spill] sm:$0xff] %v15586_v46  ;;  %v8508_v40 = vand.u32 4294901760, %v8507_v8 }
 0x797   :  { %8038 = vmatmul.f32.gmra.mxu0 %v15151_v43  ;;  %8213 = vmatmul.f32.vlgmr.msrb.gmra.mxu1 %v15040_v26  ;;  %v15610_v3 = vsub.f32 %v141_v32, %v15591_v33 }
 0x798   :  { %8491 = vmatpush.msrb.mxu1 %v8490_v24  ;;  %v140_v24 = vld [vmem:[%s16526_s5 + $0x2e8] sm:$0xff] }
 0x799   :  { %8246 = vmatmul.f32.vlgmr.msrb.gmra.mxu2 %v15078_v48  ;;  %v15602_v22 = vand.u32 4294901760, %v140_v24 }
 0x79a   :  { %8533 = vmatpush.msrb.mxu2 %v15503_v55  ;;  %8497 = vmatpush.msrb.mxu1 %v8496_v9  ;;  %v139_v9 = vld [vmem:[%s16526_s5 + $0x2e0] sm:$0xff] }
 0x79b   :  { %8295 = vmatmul.f32.vlgmr.msrb.gmra.mxu3 %v15040_v26  ;;  %v15616_v8 = vand.u32 4294901760, %v139_v9  ;;  %v15623_v32 = vsub.f32 %v140_v24, %v15602_v22  ;;  %v15631_v57 = vpop.f32.mrf.mxu3  ;;  %v16599_v24 = vand.u32 4294901760, %v15600_v44 }
 0x79c   :  { %8567 = vmatpush.msrb.mxu3 %v15493_v50  ;;  %8536 = vmatpush.msrb.mxu2 %v15516_v23  ;;  %v15625_v46 = vpop.f32.mrf.mxu2  ;;  %v7216_v20 = vpop.f32.mrf.mxu1  ;;  %16598 = vst [vmem:[#allocation29_spill] sm:$0xff] %v15631_v57 }
 0x79d   :  { %8503 = vmatpush.msrb.mxu1 %v8502_v13  ;;  %v15618_v13 = vpop.f32.mrf.mxu0  ;;  %16597 = vst [vmem:[#allocation28_spill] sm:$0xff] %v15625_v46  ;;  %v15639_v46 = vsub.f32 %v139_v9, %v15616_v8  ;;  %v8716_v4 = vand.u32 4294901760, %v15623_v32 }
 0x79e   :  { %8569 = vmatpush.msrb.mxu3 %v15505_v42  ;;  %8539 = vmatpush.msrb.mxu2 %v15533_v31  ;;  %16596 = vst [vmem:[#allocation27_spill] sm:$0xff] %v15618_v13  ;;  %v8705_v13 = vsub.f32 %v15600_v44, %v16599_v24 }
 0x79f   :  { %8184 = vmatmul.f32.vlgmr.msrb.gmra.mxu0 %v15040_v26  ;;  %8217 = vmatmul.f32.gmra.mxu1 %v15114_v2  ;;  %v8722_v35 = vand.u32 4294901760, %v15639_v46  ;;  %v8717_v9 = vsub.f32 %v15623_v32, %v8716_v4 }
 0x7a0   :  { %8450 = vmatpush.msrb.mxu0 %v15493_v50  ;;  %8509 = vmatpush.msrb.mxu1 %v8508_v40  ;;  %v8710_v40 = vand.u32 4294901760, %v15610_v3  ;;  %v8706_v57 = vand.u32 4294901760, %v8705_v13 }
 0x7a1   :  { %8254 = vmatmul.f32.gmra.mxu2 %v15151_v43  ;;  %8571 = vmatpush.msrb.mxu3 %v15518_v18  ;;  %v8718_v13 = vand.u32 4294901760, %v8717_v9 }
 0x7a2   :  { %8452 = vmatpush.msrb.mxu0 %v15505_v42  ;;  %8542 = vmatpush.msrb.mxu2 %v15552_v54  ;;  %v8711_v41 = vsub.f32 %v15610_v3, %v8710_v40 }
 0x7a3   :  { %8299 = vmatmul.f32.gmra.mxu3 %v15114_v2  ;;  %v7282_v36 = vpop.f32.mrf.mxu3 }
 0x7a4   :  { %8454 = vmatpush.msrb.mxu0 %v15518_v18  ;;  %8573 = vmatpush.msrb.mxu3 %v15537_v37  ;;  %v8712_v24 = vand.u32 4294901760, %v8711_v41  ;;  %v7250_v21 = vpop.f32.mrf.mxu2  ;;  %v16600_v41 = vand.u32 4294901760, %v15503_v55  ;;  %v16602_v55 = vand.u32 4294901760, %v15533_v31 }
 0x7a5   :  { %v7167_v53 = vpop.f32.mrf.mxu0 }
 0x7a6   :  { %8456 = vmatpush.msrb.mxu0 %v15537_v37 }
 0x7a7   :  { %8188 = vmatmul.f32.gmra.mxu0 %v15114_v2  ;;  %8361 = vmatmul.f32.vlgmr.msra.gmra.mxu1 %v15056_v30 }
 0x7a8   :  { %8637 = vmatpush.msra.mxu1 %v15493_v50  ;;  %v8723_v50 = vsub.f32 %v15639_v46, %v8722_v35 }
 0x7a9   :  { %8400 = vmatmul.f32.vlgmr.msra.gmra.mxu2 %v15040_v26 }
 0x7aa   :  { %8666 = vmatpush.msra.mxu2 %v15583_v1  ;;  %8639 = vmatpush.msra.mxu1 %v15505_v42  ;;  %v8724_v42 = vand.u32 4294901760, %v8723_v50  ;;  %v16603_v50 = vand.u32 4294901760, %v15552_v54 }
 0x7ab   :  { %8429 = vmatmul.f32.vlgmr.msra.gmra.mxu3 %v15040_v26 }
 0x7ac   :  { %v7220_v62 = vpop.f32.mrf.mxu1  ;;  %8668 = vmatpush.msra.mxu2 %v15591_v33  ;;  %8707 = vmatpush.msra.mxu3 %v8706_v57  ;;  %v16601_v57 = vand.u32 4294901760, %v15516_v23 }
 0x7ad   :  { %8641 = vmatpush.msra.mxu1 %v15518_v18  ;;  %v7217_v18 = vadd.f32 %v7216_v20, %v7167_v53  ;;  %v16604_v53 = vand.u32 4294901760, %v15600_v44 }
 0x7ae   :  { %8670 = vmatpush.msra.mxu2 %v15602_v22  ;;  %8713 = vmatpush.msra.mxu3 %v8712_v24 }
 0x7af   :  { %8329 = vmatmul.f32.vlgmr.msra.gmra.mxu0 %v15047_v38  ;;  %8367 = vmatmul.f32.gmra.mxu1 %v15137_v12 }
 0x7b0   :  { %8602 = vmatpush.msra.mxu0 %v16600_v41  ;;  %8672 = vmatpush.msra.mxu2 %v15616_v8 }
 0x7b1   :  { %8404 = vmatmul.f32.gmra.mxu2 %v15114_v2  ;;  %8719 = vmatpush.msra.mxu3 %v8718_v13  ;;  %v7251_v13 = vadd.f32 %v7250_v21, %v7217_v18 }
 0x7b2   :  { %8606 = vmatpush.msra.mxu0 %v16601_v57  ;;  %8643 = vmatpush.msra.mxu1 %v15537_v37 }
 0x7b3   :  { %8433 = vmatmul.f32.gmra.mxu3 %v15114_v2  ;;  %v7283_v37 = vadd.f32 %v7282_v36, %v7251_v13 }
 0x7b4   :  { %v7175_v9 = vpop.f32.mrf.mxu0  ;;  %v7255_v24 = vpop.f32.mrf.mxu2  ;;  %8725 = vmatpush.msra.mxu3 %v8724_v42  ;;  %8610 = vmatpush.msra.mxu0 %v16602_v55 }
 0x7b5   :  { %v7350_v41 = vpop.f32.mrf.mxu1  ;;  %v7221_v23 = vadd.f32 %v7220_v62, %v7175_v9 }
 0x7b6   :  { %v7288_v5 = vpop.f32.mrf.mxu3  ;;  %8614 = vmatpush.msra.mxu0 %v16603_v50 }
 0x7b7   :  { %8334 = vmatmul.f32.gmra.mxu0 %v15126_v7  ;;  %8511 = vmatmul.f32.vlgmr.msrb.gmra.mxu1 %v15040_v26  ;;  %v7256_v57 = vadd.f32 %v7255_v24, %v7221_v23  ;;  %v6351_v24 = vadd.f32 %v15156_v17, %v15175_v60 }
 0x7b8   :  { %8783 = vmatpush.msrb.mxu1 %v15583_v1 }
 0x7b9   :  { %8545 = vmatmul.f32.vlgmr.msrb.gmra.mxu2 %v15047_v38 }
 0x7ba   :  { %8818 = vmatpush.msrb.mxu2 %v16604_v53  ;;  %8785 = vmatpush.msrb.mxu1 %v15591_v33 }
 0x7bb   :  { %8577 = vmatmul.f32.vlgmr.msrb.gmra.mxu3 %v15056_v30 }
 0x7bc   :  { %v7321_v54 = vpop.f32.mrf.mxu0  ;;  %v7383_v31 = vpop.f32.mrf.mxu2  ;;  %8822 = vmatpush.msrb.mxu2 %v8710_v40  ;;  %8853 = vmatpush.msrb.mxu3 %v15583_v1 }
 0x7bd   :  { %v7322_v21 = vadd.f32 %v7321_v54, %v7283_v37  ;;  %v7354_v20 = vpop.f32.mrf.mxu1  ;;  %8787 = vmatpush.msrb.mxu1 %v15602_v22 }
 0x7be   :  { %v7432_v42 = vpop.f32.mrf.mxu3  ;;  %8826 = vmatpush.msrb.mxu2 %v8716_v4  ;;  %8855 = vmatpush.msrb.mxu3 %v15591_v33  ;;  %v7289_v4 = vadd.f32 %v7288_v5, %v7256_v57  ;;  %v6347_v5 = vadd.f32 %v15106_v52, %v15143_v45 }
 0x7bf   :  { %v7351_v18 = vadd.f32 %v7350_v41, %v7322_v21  ;;  %8462 = vmatmul.f32.vlgmr.msrb.gmra.mxu0 %v15078_v48  ;;  %8515 = vmatmul.f32.gmra.mxu1 %v15114_v2  ;;  %v7433_v41 = vadd.f32 %v7432_v42, %v7383_v31 }
 0x7c0   :  { %8749 = vmatpush.msrb.mxu0 %v15600_v44  ;;  %8830 = vmatpush.msrb.mxu2 %v8722_v35  ;;  %v6381_v52 = vadd.f32 %v15148_v15, %v6347_v5 }
 0x7c1   :  { %v8875_v62 = vsel %vm2808_vm8, %v7351_v18, 0  ;;  %8550 = vmatmul.f32.gmra.mxu2 %v15126_v7  ;;  %8857 = vmatpush.msrb.mxu3 %v15602_v22 }
 0x7c2   :  { %v8892_v36 = vand.u32 4294901760, %v8875_v62  ;;  %8752 = vmatpush.msrb.mxu0 %v15610_v3  ;;  %8789 = vmatpush.msrb.mxu1 %v15616_v8  ;;  %v6413_v23 = vadd.f32 %v15158_v19, %v6381_v52 }
 0x7c3   :  { %8583 = vmatmul.f32.gmra.mxu3 %v15137_v12 }
 0x7c4   :  { %v15691_v33 = vsub.f32 %v8875_v62, %v8892_v36  ;;  %v7325_v1 = vpop.f32.mrf.mxu0  ;;  %v7391_v40 = vpop.f32.mrf.mxu2  ;;  %8859 = vmatpush.msrb.mxu3 %v15616_v8  ;;  %8755 = vmatpush.msrb.mxu0 %v15623_v32  ;;  %v6452_v54 = vadd.f32 %v15232_v10, %v6413_v23 }
 0x7c5   :  { %v7326_v35 = vadd.f32 %v7325_v1, %v7289_v4  ;;  %v7498_v44 = vpop.f32.mrf.mxu1 }
 0x7c6   :  { %v7436_v9 = vpop.f32.mrf.mxu3  ;;  %v8920_v22 = vand.u32 4294901760, %v15691_v33  ;;  %8758 = vmatpush.msrb.mxu0 %v15639_v46  ;;  %v6481_v19 = vadd.f32 %v15194_v59, %v6452_v54 }
 0x7c7   :  { %v7355_v3 = vadd.f32 %v7354_v20, %v7326_v35  ;;  %8470 = vmatmul.f32.gmra.mxu0 %v15151_v43  ;;  %8645 = vmatmul.f32.vlgmr.msra.gmra.mxu1 %v15040_v26  ;;  %v7437_v57 = vadd.f32 %v7436_v9, %v7391_v40 }
 0x7c8   :  { %v8921_v8 = vsub.f32 %v15691_v33, %v8920_v22 }
 0x7c9   :  { %v9027_v32 = vsel %vm2808_vm8, %v7355_v3, 0  ;;  %8678 = vmatmul.f32.vlgmr.msra.gmra.mxu2 %v15078_v48  ;;  %v6386_v48 = vadd.f32 %v15180_v16, %v6351_v24  ;;  %v6567_v24 = vadd.f32 %v15273_v0, %v15265_v14 }
 0x7ca   :  { %v15708_v46 = vand.u32 4294901760, %v9027_v32  ;;  %8946 = vmatpush.xpose.msra.mxu2 %v15691_v33  ;;  %v8922_v55 = vand.u32 4294901760, %v8921_v8 }
 0x7cb   :  { %8727 = vmatmul.f32.vlgmr.msra.gmra.mxu3 %v15040_v26  ;;  %v6419_v15 = vadd.f32 %v15196_v39, %v6386_v48 }
 0x7cc   :  { %8969 = vmatpush.xpose.msra.mxu3 %v8892_v36  ;;  %v7466_v45 = vpop.f32.mrf.mxu0  ;;  %v7537_v50 = vpop.f32.mrf.mxu2  ;;  %8923 = vmatpush.xpose.msra.mxu1 %v8922_v55  ;;  %v15715_v17 = vsub.f32 %v9027_v32, %v15708_v46 }
 0x7cd   :  { %v7467_v13 = vadd.f32 %v7466_v45, %v7433_v41  ;;  %v7504_v53 = vpop.f32.mrf.mxu1  ;;  %v6456_v21 = vadd.f32 %v15262_v29, %v6419_v15  ;;  %v8872_v29 = vsel %vm2808_vm8, %v6481_v19, 0 }
 0x7ce   :  { %v7566_v60 = vpop.f32.mrf.mxu3  ;;  %v9072_v16 = vand.u32 4294901760, %v15715_v17  ;;  %v15739_v9 = vand.u32 4294901760, %v8872_v29 }
 0x7cf   :  { %v7499_v37 = vadd.f32 %v7498_v44, %v7467_v13  ;;  %8616 = vmatmul.f32.vlgmr.msra.gmra.mxu0 %v15040_v26  ;;  %8649 = vmatmul.f32.gmra.mxu1 %v15114_v2  ;;  %v6485_v4 = vadd.f32 %v15244_v51, %v6456_v21 }
 0x7d0   :  { %8893 = vmatpush.xpose.msra.mxu0 %v8892_v36  ;;  %v8895_v32 = vsub.f32 %v8872_v29, %v15739_v9 }
 0x7d1   :  { %8686 = vmatmul.f32.gmra.mxu2 %v15151_v43  ;;  %v7538_v31 = vadd.f32 %v7537_v50, %v7499_v37  ;;  %v9073_v43 = vsub.f32 %v15715_v17, %v9072_v16  ;;  %v9024_v35 = vsel %vm2808_vm8, %v6485_v4, 0 }
 0x7d2   :  { %v15743_v5 = vand.u32 4294901760, %v9024_v35  ;;  %v8896_v52 = vand.u32 4294901760, %v8895_v32 }
 0x7d3   :  { %8731 = vmatmul.f32.gmra.mxu3 %v15114_v2  ;;  %v7567_v39 = vadd.f32 %v7566_v60, %v7538_v31  ;;  %v9074_v59 = vand.u32 4294901760, %v9073_v43 }
 0x7d4   :  { %v7471_v20 = vpop.f32.mrf.mxu0  ;;  %v7541_v42 = vpop.f32.mrf.mxu2 }
 0x7d5   :  { %v7648_v18 = vpop.f32.mrf.mxu1  ;;  %v7472_v10 = vadd.f32 %v7471_v20, %v7437_v57  ;;  %v9179_v1 = vsel %vm2808_vm8, %v7567_v39, 0 }
 0x7d6   :  { %v7570_v62 = vpop.f32.mrf.mxu3 }
 0x7d7   :  { %8620 = vmatmul.f32.gmra.mxu0 %v15114_v2  ;;  %8793 = vmatmul.f32.vlgmr.msrb.gmra.mxu1 %v15056_v30  ;;  %v7505_v40 = vadd.f32 %v7504_v53, %v7472_v10 }
 0x7d8   :  { %9017 = vmatpush.xpose.msrb.mxu1 %v8892_v36  ;;  %v15741_v36 = vand.u32 4294901760, %v9179_v1 }
 0x7d9   :  { %8832 = vmatmul.f32.vlgmr.msrb.gmra.mxu2 %v15040_v26  ;;  %v7542_v8 = vadd.f32 %v7541_v42, %v7505_v40 }
 0x7da   :  { %9045 = vmatpush.xpose.msrb.mxu2 %v15708_v46  ;;  %v15757_v41 = vsub.f32 %v9179_v1, %v15741_v36 }
 0x7db   :  { %8861 = vmatmul.f32.vlgmr.msrb.gmra.mxu3 %v15040_v26  ;;  %v6563_v26 = vadd.f32 %v15246_v58, %v15236_v25  ;;  %v6602_v58 = vadd.f32 %v15356_v47, %v6567_v24  ;;  %v8897_v47 = vsub.f32 %v8895_v32, %v8896_v52 }
 0x7dc   :  { %9075 = vmatpush.xpose.msrb.mxu3 %v9074_v59  ;;  %v7599_v44 = vpop.f32.mrf.mxu0  ;;  %v7682_v30 = vpop.f32.mrf.mxu2  ;;  %v9224_v0 = vand.u32 4294901760, %v15757_v41 }
 0x7dd   :  { %v7652_v51 = vpop.f32.mrf.mxu1  ;;  %v6597_v55 = vadd.f32 %v15299_v61, %v6563_v26  ;;  %v7649_v25 = vadd.f32 %v7648_v18, %v7599_v44 }
 0x7de   :  { %v7714_v3 = vpop.f32.mrf.mxu3  ;;  %v9225_v60 = vsub.f32 %v15757_v41, %v9224_v0 }
 0x7df   :  { %8761 = vmatmul.f32.vlgmr.msrb.gmra.mxu0 %v15047_v38  ;;  %8799 = vmatmul.f32.gmra.mxu1 %v15137_v12  ;;  %v15760_v38 = vsub.f32 %v9024_v35, %v15743_v5  ;;  %v7571_v12 = vadd.f32 %v7570_v62, %v7542_v8  ;;  %v6629_v14 = vadd.f32 %v15271_v28, %v6597_v55  ;;  %v16606_v8 = vld [vmem:[#allocation7_spill] sm:$0xff] }
 0x7e0   :  { %8995 = vmatpush.xpose.msrb.mxu0 %v8920_v22  ;;  %v7683_v53 = vadd.f32 %v7682_v30, %v7649_v25  ;;  %v9226_v57 = vand.u32 4294901760, %v9225_v60  ;;  %v6779_v30 = vadd.f32 %v15366_v27, %v15393_v56 }
 0x7e1   :  { %8836 = vmatmul.f32.gmra.mxu2 %v15114_v2  ;;  %v9048_v50 = vand.u32 4294901760, %v15760_v38  ;;  %v9331_v13 = vsel %vm2808_vm8, %v7571_v12, 0  ;;  %v6668_v28 = vadd.f32 %v15305_v63, %v6629_v14  ;;  %v8898_v63 = vand.u32 4294901760, %v8897_v47 }
 0x7e2   :  { %v15773_v48 = vand.u32 4294901760, %v9331_v13  ;;  %v7715_v37 = vadd.f32 %v7714_v3, %v7683_v53  ;;  %v16605_v3 = vld [vmem:[#allocation11_spill] sm:$0xff] }
 0x7e3   :  { %8865 = vmatmul.f32.gmra.mxu3 %v15114_v2  ;;  %v6635_v2 = vadd.f32 %v15320_v6, %v6602_v58  ;;  %v6783_v26 = vadd.f32 %v16606_v8, %v16605_v3 }
 0x7e4   :  { %v7607_v33 = vpop.f32.mrf.mxu0  ;;  %v7687_v22 = vpop.f32.mrf.mxu2  ;;  %v15785_v20 = vsub.f32 %v9331_v13, %v15773_v48 }
 0x7e5   :  { %v7782_v45 = vpop.f32.mrf.mxu1  ;;  %v6672_v6 = vadd.f32 %v15361_v34, %v6635_v2  ;;  %v7653_v54 = vadd.f32 %v7652_v51, %v7607_v33 }
 0x7e6   :  { %v7720_v61 = vpop.f32.mrf.mxu3 }
 0x7e7   :  { %8766 = vmatmul.f32.gmra.mxu0 %v15126_v7  ;;  %8925 = vmatmul.f32.vlgmr.msra.gmra.mxu1 %v15739_v9  ;;  %v9049_v7 = vsub.f32 %v15760_v38, %v9048_v50  ;;  %v6701_v34 = vadd.f32 %v15368_v11, %v6672_v6 }
 0x7e8   :  { %9121 = vmatpush.xpose.msra.mxu1 %v15708_v46 }
 0x7e9   :  { %8949 = vmatmul.f32.vlgmr.msra.gmra.mxu2 %v8895_v32  ;;  %v9050_v18 = vand.u32 4294901760, %v9049_v7  ;;  %v9328_v39 = vsel %vm2808_vm8, %v6701_v34, 0  ;;  %v16611_v7 = vld [vmem:[#allocation15_spill] sm:$0xff] }
 0x7ea   :  { %9147 = vmatpush.xpose.msra.mxu2 %v9072_v16  ;;  %v6697_v16 = vadd.f32 %v15322_v49, %v6668_v28  ;;  %v9376_v49 = vand.u32 4294901760, %v15785_v20  ;;  %v15802_v35 = vand.u32 4294901760, %v9328_v39  ;;  %v16610_v28 = vld [vmem:[#allocation14_spill] sm:$0xff] }
 0x7eb   :  { %8973 = vmatmul.f32.vlgmr.msra.gmra.mxu3 %v8896_v52  ;;  %v16608_v52 = vld [vmem:[#allocation12_spill] sm:$0xff] }
 0x7ec   :  { %9169 = vmatpush.xpose.msra.mxu3 %v15708_v46  ;;  %v7753_v23 = vpop.f32.mrf.mxu0  ;;  %v7815_v15 = vpop.f32.mrf.mxu2  ;;  %v7688_v46 = vadd.f32 %v7687_v22, %v7653_v54  ;;  %v9176_v62 = vsel %vm2808_vm8, %v6697_v16, 0  ;;  %v9377_v40 = vsub.f32 %v15785_v20, %v9376_v49  ;;  %v15818_v24 = vsub.f32 %v9328_v39, %v15802_v35 }
 0x7ed   :  { %v7754_v31 = vadd.f32 %v7753_v23, %v7715_v37  ;;  %v7786_v21 = vpop.f32.mrf.mxu1 }
 0x7ee   :  { %v7864_v42 = vpop.f32.mrf.mxu3  ;;  %v7721_v4 = vadd.f32 %v7720_v61, %v7688_v46 }
 0x7ef   :  { %v7783_v19 = vadd.f32 %v7782_v45, %v7754_v31  ;;  %8899 = vmatmul.f32.vlgmr.msra.gmra.mxu0 %v8898_v63  ;;  %9019 = vmatmul.f32.vlgmr.msrb.gmra.mxu1 %v15739_v9  ;;  %v7865_v27 = vadd.f32 %v7864_v42, %v7815_v15  ;;  %v6818_v45 = vadd.f32 %v16608_v52, %v6783_v26  ;;  %v16613_v42 = vld [vmem:[#allocation13_spill] sm:$0xff] }
 0x7f0   :  { %9098 = vmatpush.xpose.msra.mxu0 %v15715_v17  ;;  %9227 = vmatpush.xpose.msrb.mxu1 %v9226_v57  ;;  %v15797_v17 = vand.u32 4294901760, %v9176_v62 }
 0x7f1   :  { %9051 = vmatmul.f32.vlgmr.msrb.gmra.mxu2 %v9050_v18  ;;  %v9483_v43 = vsel %vm2808_vm8, %v7783_v19, 0  ;;  %v6851_v60 = vadd.f32 %v16610_v28, %v6818_v45 }
 0x7f2   :  { %9250 = vmatpush.xpose.msrb.mxu2 %v15757_v41  ;;  %v15799_v59 = vand.u32 4294901760, %v9483_v43  ;;  %v9199_v51 = vsub.f32 %v9176_v62, %v15797_v17  ;;  %v16612_v41 = vld [vmem:[#allocation19_spill] sm:$0xff] }
 0x7f3   :  { %9077 = vmatmul.f32.vlgmr.msrb.gmra.mxu3 %v15743_v5 }
 0x7f4   :  { %9273 = vmatpush.xpose.msrb.mxu3 %v15741_v36  ;;  %v7757_v11 = vpop.f32.mrf.mxu0  ;;  %v7823_v10 = vpop.f32.mrf.mxu2  ;;  %v15814_v32 = vsub.f32 %v9483_v43, %v15799_v59  ;;  %v9200_v58 = vand.u32 4294901760, %v9199_v51  ;;  %v16614_v43 = vld [vmem:[#allocation17_spill] sm:$0xff] }
 0x7f5   :  { %v7930_v29 = vpop.f32.mrf.mxu1  ;;  %v7758_v44 = vadd.f32 %v7757_v11, %v7721_v4 }
 0x7f6   :  { %v7868_v1 = vpop.f32.mrf.mxu3  ;;  %v9528_v61 = vand.u32 4294901760, %v15814_v32  ;;  %v9201_v47 = vsub.f32 %v9199_v51, %v9200_v58 }
 0x7f7   :  { %8997 = vmatmul.f32.vlgmr.msrb.gmra.mxu0 %v15739_v9  ;;  %9125 = vmatmul.f32.vlgmr.msra.gmra.mxu1 %v9048_v50  ;;  %v9378_v9 = vand.u32 4294901760, %v9377_v40  ;;  %v7787_v56 = vadd.f32 %v7786_v21, %v7758_v44  ;;  %v9352_v50 = vand.u32 4294901760, %v15818_v24  ;;  %v7869_v21 = vadd.f32 %v7868_v1, %v7823_v10 }
 0x7f8   :  { %9197 = vmatpush.xpose.msrb.mxu0 %v15741_v36  ;;  %9321 = vmatpush.xpose.msra.mxu1 %v15741_v36  ;;  %v16607_v36 = vld [vmem:[#allocation6_spill] sm:$0xff]  ;;  %v9202_v31 = vand.u32 4294901760, %v9201_v47  ;;  %v16621_v47 = vld [vmem:[#allocation21_spill] sm:$0xff] }
 0x7f9   :  { %9149 = vmatmul.f32.vlgmr.msra.gmra.mxu2 %v15743_v5  ;;  %v6813_v55 = vadd.f32 %v16607_v36, %v6779_v30  ;;  %v9635_v13 = vsel %vm2808_vm8, %v7787_v56, 0  ;;  %v9353_v23 = vsub.f32 %v15818_v24, %v9352_v50 }
 0x7fa   :  { %9349 = vmatpush.xpose.msra.mxu2 %v15773_v48  ;;  %v15834_v6 = vand.u32 4294901760, %v9635_v13 }
 0x7fb   :  { %9171 = vmatmul.f32.vlgmr.msra.gmra.mxu3 %v15743_v5  ;;  %v16609_v5 = vld [vmem:[#allocation10_spill] sm:$0xff]  ;;  %v9354_v46 = vand.u32 4294901760, %v9353_v23 }
 0x7fc   :  { %9379 = vmatpush.xpose.msra.mxu3 %v9378_v9  ;;  %v7898_v12 = vpop.f32.mrf.mxu0  ;;  %v7969_v25 = vpop.f32.mrf.mxu2  ;;  %v6845_v2 = vadd.f32 %v16609_v5, %v6813_v55  ;;  %v15844_v18 = vsub.f32 %v9635_v13, %v15834_v6  ;;  %v16615_v9 = vld [vmem:[#allocation16_spill] sm:$0xff] }
 0x7fd   :  { %v7899_v33 = vadd.f32 %v7898_v12, %v7865_v27  ;;  %v7936_v22 = vpop.f32.mrf.mxu1  ;;  %v16616_v27 = vld [vmem:[#allocation18_spill] sm:$0xff]  ;;  %v16617_v55 = vld [vmem:[#allocation20_spill] sm:$0xff] }
 0x7fe   :  { %v7998_v14 = vpop.f32.mrf.mxu3  ;;  %v6884_v37 = vadd.f32 %v16611_v7, %v6845_v2  ;;  %v9680_v11 = vand.u32 4294901760, %v15844_v18  ;;  %v6995_v56 = vadd.f32 %v16616_v27, %v16615_v9  ;;  %v16618_v12 = vld [vmem:[#allocation22_spill] sm:$0xff] }
 0x7ff   :  { %v7931_v53 = vadd.f32 %v7930_v29, %v7899_v33  ;;  %9101 = vmatmul.f32.vlgmr.msra.gmra.mxu0 %v15760_v38  ;;  %9229 = vmatmul.f32.vlgmr.msrb.gmra.mxu1 %v15797_v17  ;;  %v9529_v38 = vsub.f32 %v15814_v32, %v9528_v61 }
 0x800   :  { %9299 = vmatpush.xpose.msra.mxu0 %v9224_v0  ;;  %9425 = vmatpush.xpose.msrb.mxu1 %v15773_v48  ;;  %v6888_v0 = vadd.f32 %v16612_v41, %v6851_v60  ;;  %v6913_v57 = vadd.f32 %v16613_v42, %v6884_v37  ;;  %v9681_v3 = vsub.f32 %v15844_v18, %v9680_v11 }
 0x801   :  { %9253 = vmatmul.f32.vlgmr.msrb.gmra.mxu2 %v9199_v51  ;;  %v7970_v15 = vadd.f32 %v7969_v25, %v7931_v53  ;;  %v9530_v34 = vand.u32 4294901760, %v9529_v38  ;;  %v6999_v25 = vadd.f32 %v16618_v12, %v16617_v55 }
 0x802   :  { %9451 = vmatpush.xpose.msrb.mxu2 %v9376_v49  ;;  %v9480_v39 = vsel %vm2808_vm8, %v6913_v57, 0 }
 0x803   :  { %9277 = vmatmul.f32.vlgmr.msrb.gmra.mxu3 %v9200_v58  ;;  %v7999_v62 = vadd.f32 %v7998_v14, %v7970_v15  ;;  %v16619_v58 = vld [vmem:[#allocation23_spill] sm:$0xff] }
 0x804   :  { %9473 = vmatpush.xpose.msrb.mxu3 %v15773_v48  ;;  %v7903_v63 = vpop.f32.mrf.mxu0  ;;  %v7973_v54 = vpop.f32.mrf.mxu2  ;;  %v6917_v48 = vadd.f32 %v16614_v43, %v6888_v0  ;;  %v7029_v33 = vadd.f32 %v16619_v58, %v6995_v56  ;;  %v16623_v0 = vld [vmem:[#allocation24_spill] sm:$0xff] }
 0x805   :  { %v8080_v16 = vpop.f32.mrf.mxu1  ;;  %v7904_v49 = vadd.f32 %v7903_v63, %v7869_v21  ;;  %v9787_v10 = vsel %vm2808_vm8, %v7999_v62, 0  ;;  %v16624_v21 = vld [vmem:[#allocation28_spill] sm:$0xff] }
 0x806   :  { %v8002_v19 = vpop.f32.mrf.mxu3  ;;  %v9632_v29 = vsel %vm2808_vm8, %v6917_v48, 0  ;;  %v15860_v30 = vand.u32 4294901760, %v9787_v10  ;;  %v7061_v28 = vadd.f32 %v16621_v47, %v7029_v33 }
 0x807   :  { %9203 = vmatmul.f32.vlgmr.msrb.gmra.mxu0 %v9202_v31  ;;  %9323 = vmatmul.f32.vlgmr.msra.gmra.mxu1 %v15797_v17  ;;  %v7937_v4 = vadd.f32 %v7936_v22, %v7904_v49  ;;  %v15863_v8 = vand.u32 4294901760, %v9632_v29 }
 0x808   :  { %9402 = vmatpush.xpose.msrb.mxu0 %v15785_v20  ;;  %9531 = vmatpush.xpose.msra.mxu1 %v9530_v34  ;;  %v15856_v20 = vand.u32 4294901760, %v9480_v39  ;;  %v15876_v22 = vsub.f32 %v9787_v10, %v15860_v30  ;;  %v7100_v63 = vadd.f32 %v16623_v0, %v7061_v28  ;;  %v16625_v34 = vld [vmem:[#allocation26_spill] sm:$0xff] }
 0x809   :  { %9355 = vmatmul.f32.vlgmr.msra.gmra.mxu2 %v9354_v46  ;;  %v7974_v26 = vadd.f32 %v7973_v54, %v7937_v4  ;;  %v15880_v52 = vsub.f32 %v9632_v29, %v15863_v8 }
 0x80a   :  { %9554 = vmatpush.xpose.msra.mxu2 %v15814_v32  ;;  %v9503_v36 = vsub.f32 %v9480_v39, %v15856_v20  ;;  %v9832_v60 = vand.u32 4294901760, %v15876_v22  ;;  %v7129_v46 = vadd.f32 %v16625_v34, %v7100_v63 }
 0x80b   :  { %9381 = vmatmul.f32.vlgmr.msra.gmra.mxu3 %v15802_v35  ;;  %v8003_v45 = vadd.f32 %v8002_v19, %v7974_v26  ;;  %v9656_v37 = vand.u32 4294901760, %v15880_v52 }
 0x80c   :  { %9577 = vmatpush.xpose.msra.mxu3 %v15799_v59  ;;  %v8031_v1 = vpop.f32.mrf.mxu0  ;;  %v8114_v40 = vpop.f32.mrf.mxu2  ;;  %v9504_v5 = vand.u32 4294901760, %v9503_v36  ;;  %v9784_v4 = vsel %vm2808_vm8, %v7129_v46, 0 }
 0x80d   :  { %v15858_v44 = vpop.f32.mrf.mxu1  ;;  %v9939_v38 = vsel %vm2808_vm8, %v8003_v45, 0  ;;  %v9657_v31 = vsub.f32 %v15880_v52, %v9656_v37 }
 0x80e   :  { %v8146_v51 = vpop.f32.mrf.mxu3  ;;  %v9505_v41 = vsub.f32 %v9503_v36, %v9504_v5  ;;  %v15895_v54 = vand.u32 4294901760, %v9939_v38 }
 0x80f   :  { %9301 = vmatmul.f32.vlgmr.msra.gmra.mxu0 %v15797_v17  ;;  %9429 = vmatmul.f32.vlgmr.msrb.gmra.mxu1 %v9352_v50  ;;  %v9682_v17 = vand.u32 4294901760, %v9681_v3  ;;  %v8081_v50 = vadd.f32 %v8080_v16, %v8031_v1  ;;  %v9658_v39 = vand.u32 4294901760, %v9657_v31 }
 0x810   :  { %9501 = vmatpush.xpose.msra.mxu0 %v15799_v59  ;;  %9625 = vmatpush.xpose.msrb.mxu1 %v15799_v59  ;;  %v16620_v59 = vld [vmem:[#allocation27_spill] sm:$0xff]  ;;  %v9506_v57 = vand.u32 4294901760, %v9505_v41  ;;  %v15907_v62 = vsub.f32 %v9939_v38, %v15895_v54 }
 0x811   :  { %9453 = vmatmul.f32.vlgmr.msrb.gmra.mxu2 %v15802_v35  ;;  %v7034_v14 = vadd.f32 %v16620_v59, %v6999_v25  ;;  %v8115_v15 = vadd.f32 %v8114_v40, %v8081_v50 }
 0x812   :  { %9653 = vmatpush.xpose.msrb.mxu2 %v15834_v6  ;;  %v9984_v29 = vand.u32 4294901760, %v15907_v62 }
 0x813   :  { %9475 = vmatmul.f32.vlgmr.msrb.gmra.mxu3 %v15802_v35  ;;  %v16622_v35 = vld [vmem:[#allocation25_spill] sm:$0xff]  ;;  %v8147_v32 = vadd.f32 %v8146_v51, %v8115_v15 }
 0x814   :  { %9683 = vmatpush.xpose.msrb.mxu3 %v9682_v17  ;;  %v8039_v13 = vpop.f32.mrf.mxu0  ;;  %v8119_v53 = vpop.f32.mrf.mxu2  ;;  %v7067_v23 = vadd.f32 %v16622_v35, %v7034_v14  ;;  %v9985_v56 = vsub.f32 %v15907_v62, %v9984_v29 }
 0x815   :  { %v8214_v2 = vpop.f32.mrf.mxu1  ;;  %v8085_v10 = vadd.f32 %v15858_v44, %v8039_v13 }
 0x816   :  { %v8152_v7 = vpop.f32.mrf.mxu3  ;;  %v7104_v16 = vadd.f32 %v16624_v21, %v7067_v23  ;;  %v9986_v33 = vand.u32 4294901760, %v9985_v56 }
 0x817   :  { %9405 = vmatmul.f32.vlgmr.msrb.gmra.mxu0 %v15818_v24  ;;  %9533 = vmatmul.f32.vlgmr.msra.gmra.mxu1 %v15856_v20  ;;  %v9833_v24 = vsub.f32 %v15876_v22, %v9832_v60  ;;  %v8120_v51 = vadd.f32 %v8119_v53, %v8085_v10 }
 0x818   :  { %9603 = vmatpush.xpose.msrb.mxu0 %v9528_v61  ;;  %9729 = vmatpush.xpose.msra.mxu1 %v15834_v6 }
 0x819   :  { %9557 = vmatmul.f32.vlgmr.msra.gmra.mxu2 %v9503_v36  ;;  %v9834_v48 = vand.u32 4294901760, %v9833_v24  ;;  %v8153_v55 = vadd.f32 %v8152_v7, %v8120_v51 }
 0x81a   :  { %9755 = vmatpush.xpose.msra.mxu2 %v9680_v11  ;;  %v16626_v11 = vld [vmem:[#allocation29_spill] sm:$0xff] }
 0x81b   :  { %9581 = vmatmul.f32.vlgmr.msra.gmra.mxu3 %v9504_v5 }
 0x81c   :  { %9777 = vmatpush.xpose.msra.mxu3 %v15834_v6  ;;  %v8185_v61 = vpop.f32.mrf.mxu0  ;;  %v15903_v42 = vpop.f32.mrf.mxu2  ;;  %v7133_v6 = vadd.f32 %v16626_v11, %v7104_v16 }
 0x81d   :  { %v8218_v19 = vpop.f32.mrf.mxu1  ;;  %v8186_v49 = vadd.f32 %v8185_v61, %v8147_v32 }
 0x81e   :  { %v15909_v43 = vpop.f32.mrf.mxu3  ;;  %v9936_v40 = vsel %vm2808_vm8, %v7133_v6, 0 }
 0x81f   :  { %9507 = vmatmul.f32.vlgmr.msra.gmra.mxu0 %v9506_v57  ;;  %9627 = vmatmul.f32.vlgmr.msrb.gmra.mxu1 %v15856_v20  ;;  %v8215_v1 = vadd.f32 %v8214_v2, %v8186_v49  ;;  %v15928_v36 = vand.u32 4294901760, %v9936_v40 }
 0x820   :  { %9706 = vmatpush.xpose.msra.mxu0 %v15844_v18  ;;  %9835 = vmatpush.xpose.msrb.mxu1 %v9834_v48  ;;  %v9806_v18 = vand.u32 4294901760, %v9784_v4 }
 0x821   :  { %9659 = vmatmul.f32.vlgmr.msrb.gmra.mxu2 %v9658_v39  ;;  %v10319_v9 = vand.u32 4294901760, %v8215_v1  ;;  %v9959_v17 = vsub.f32 %v9936_v40, %v15928_v36 }
 0x822   :  { %9858 = vmatpush.xpose.msrb.mxu2 %v15876_v22  ;;  %v9807_v12 = vsub.f32 %v9784_v4, %v9806_v18 }
 0x823   :  { %9685 = vmatmul.f32.vlgmr.msrb.gmra.mxu3 %v15863_v8  ;;  %v15934_v25 = vsub.f32 %v8215_v1, %v10319_v9  ;;  %v9960_v53 = vand.u32 4294901760, %v9959_v17 }
 0x824   :  { %9881 = vmatpush.xpose.msrb.mxu3 %v15860_v30  ;;  %v8189_v3 = vpop.f32.mrf.mxu0  ;;  %v15921_v44 = vpop.f32.mrf.mxu2  ;;  %v9808_v59 = vand.u32 4294901760, %v9807_v12 }
 0x825   :  { %v15923_v26 = vpop.f32.mrf.mxu1  ;;  %v8190_v58 = vadd.f32 %v8189_v3, %v8153_v55  ;;  %v10347_v13 = vand.u32 4294901760, %v15934_v25  ;;  %v9961_v47 = vsub.f32 %v9959_v17, %v9960_v53 }
 0x826   :  { %v15925_v27 = vpop.f32.mrf.mxu3 }
 0x827   :  { %9605 = vmatmul.f32.vlgmr.msrb.gmra.mxu0 %v15856_v20  ;;  %9733 = vmatmul.f32.vlgmr.msra.gmra.mxu1 %v9656_v37  ;;  %v8219_v14 = vadd.f32 %v8218_v19, %v8190_v58  ;;  %v10348_v2 = vsub.f32 %v15934_v25, %v10347_v13  ;;  %v9962_v35 = vand.u32 4294901760, %v9961_v47 }
 0x828   :  { %9805 = vmatpush.xpose.msrb.mxu0 %v15860_v30  ;;  %9929 = vmatpush.xpose.msra.mxu1 %v15860_v30 }
 0x829   :  { %9757 = vmatmul.f32.vlgmr.msra.gmra.mxu2 %v15863_v8  ;;  %v15952_v5 = vand.u32 4294901760, %v8219_v14  ;;  %v10349_v38 = vand.u32 4294901760, %v10348_v2 }
 0x82a   :  { %9957 = vmatpush.xpose.msra.mxu2 %v15895_v54 }
 0x82b   :  { %9779 = vmatmul.f32.vlgmr.msra.gmra.mxu3 %v15863_v8  ;;  %v9809_v8 = vsub.f32 %v9807_v12, %v9808_v59 }
 0x82c   :  { %9987 = vmatpush.xpose.msra.mxu3 %v9986_v33  ;;  %v15939_v20 = vpop.f32.mrf.mxu0  ;;  %v15941_v45 = vpop.f32.mrf.mxu2 }
 0x82d   :  { %v15943_v30 = vpop.f32.mrf.mxu1  ;;  %v9810_v7 = vand.u32 4294901760, %v9809_v8 }
 0x82e   :  { %v15945_v50 = vpop.f32.mrf.mxu3 }
 0x82f   :  { %9709 = vmatmul.f32.vlgmr.msra.gmra.mxu0 %v15880_v52  ;;  %9837 = vmatmul.f32.vlgmr.msrb.gmra.mxu1 %v9806_v18 }
 0x830   :  { %9907 = vmatpush.xpose.msra.mxu0 %v9832_v60  ;;  %10033 = vmatpush.xpose.msrb.mxu1 %v15895_v54  ;;  %v15963_v60 = vsub.f32 %v8219_v14, %v15952_v5  ;;  %v16026_v14 = vld [vmem:[%s16523_s2] ss:$0 sm:$0xff] }
 0x831   :  { %9861 = vmatmul.f32.vlgmr.msrb.gmra.mxu2 %v9807_v12 }
 0x832   :  { %10059 = vmatpush.xpose.msrb.mxu2 %v9984_v29  ;;  %v16551_v23 = vand.u32 4294901760, %v15963_v60 }
 0x833   :  { %9885 = vmatmul.f32.vlgmr.msrb.gmra.mxu3 %v9808_v59 }
 0x834   :  { %10081 = vmatpush.xpose.msrb.mxu3 %v15895_v54  ;;  %v15956_v28 = vpop.f32.mrf.mxu0  ;;  %v15958_v52 = vpop.f32.mrf.mxu2  ;;  %v10497_v54 = vsub.f32 %v15963_v60, %v16551_v23 }
 0x835   :  { %v15960_v22 = vpop.f32.mrf.mxu1 }
 0x836   :  { %v15965_v37 = vpop.f32.mrf.mxu3  ;;  %v10498_v24 = vand.u32 4294901760, %v10497_v54 }
 0x837   :  { %9811 = vmatmul.f32.vlgmr.msrb.gmra.mxu0 %v9810_v7  ;;  %9931 = vmatmul.f32.vlgmr.msra.gmra.mxu1 %v9806_v18 }
 0x838   :  { %10010 = vmatpush.xpose.msrb.mxu0 %v15907_v62  ;;  %10350 = vmatpush.msra.mxu1 %v10349_v38 }
 0x839   :  { %9963 = vmatmul.f32.vlgmr.msra.gmra.mxu2 %v9962_v35 }
 0x83a   :  { %10373 = vmatpush.msra.mxu2 %v15934_v25 }
 0x83b   :  { %9989 = vmatmul.f32.vlgmr.msra.gmra.mxu3 %v15928_v36 }
 0x83c   :  { %10396 = vmatpush.msra.mxu3 %v10319_v9  ;;  %v15971_v15 = vpop.f32.mrf.mxu0  ;;  %v15973_v41 = vpop.f32.mrf.mxu2 }
 0x83d   :  { %v15975_v0 = vpop.f32.mrf.mxu1 }
 0x83e   :  { %v15977_v63 = vpop.f32.mrf.mxu3 }
 0x83f   :  { %9909 = vmatmul.f32.vlgmr.msra.gmra.mxu0 %v9806_v18  ;;  %10037 = vmatmul.f32.vlgmr.msrb.gmra.mxu1 %v9960_v53 }
 0x840   :  { %10320 = vmatpush.msra.mxu0 %v10319_v9  ;;  %10444 = vmatpush.msrb.mxu1 %v10319_v9 }
 0x841   :  { %10061 = vmatmul.f32.vlgmr.msrb.gmra.mxu2 %v15928_v36 }
 0x842   :  { %10469 = vmatpush.msrb.mxu2 %v15952_v5 }
 0x843   :  { %10083 = vmatmul.f32.vlgmr.msrb.gmra.mxu3 %v15928_v36 }
 0x844   :  { %10499 = vmatpush.msrb.mxu3 %v10498_v24  ;;  %v15985_v31 = vpop.f32.mrf.mxu0  ;;  %v15987_v21 = vpop.f32.mrf.mxu2 }
 0x845   :  { %v15989_v16 = vpop.f32.mrf.mxu1 }
 0x846   :  { %v15991_v32 = vpop.f32.mrf.mxu3 }
 0x847   :  { %10013 = vmatmul.f32.vlgmr.msrb.gmra.mxu0 %v9959_v17 }
 0x848   :  { %10422 = vmatpush.msrb.mxu0 %v10347_v13 }
 0x84c   :  { %v15993_v61 = vpop.f32.mrf.mxu0  ;;  %v15995_v57 = vpop.f32.mrf.mxu2 }
 0x84d   :  { %v15997_v19 = vpop.f32.mrf.mxu1 }
 0x84e   :  { %v15999_v34 = vpop.f32.mrf.mxu3 }
 0x854   :  { %v16001_v46 = vpop.f32.mrf.mxu0  ;;  %v16003_v62 = vpop.f32.mrf.mxu2 }
 0x855   :  { %v16005_v49 = vpop.f32.mrf.mxu1 }
 0x856   :  { %v16007_v48 = vpop.f32.mrf.mxu3 }
 0x85c   :  { %v16009_v39 = vpop.f32.mrf.mxu0  ;;  %v16011_v11 = vpop.f32.mrf.mxu2 }
 0x85d   :  { %v16013_v6 = vpop.f32.mrf.mxu1 }
 0x85e   :  { %16627 = vst [vmem:[#allocation11_spill] sm:$0xff] %v16013_v6  ;;  %v16015_v10 = vpop.f32.mrf.mxu3 }
 0x864   :  { %v16017_v4 = vpop.f32.mrf.mxu0  ;;  %v16019_v29 = vpop.f32.mrf.mxu2 }
 0x865   :  { %16628 = vst [vmem:[#allocation7_spill] sm:$0xff] %v16019_v29  ;;  %v8926_v1 = vpop.f32.mrf.mxu1 }
 0x866   :  { %v16021_v40 = vpop.f32.mrf.mxu3 }
 0x867   :  { %16629 = vst [vmem:[#allocation6_spill] sm:$0xff] %v16021_v40 }
 0x86c   :  { %v8900_v51 = vpop.f32.mrf.mxu0  ;;  %v8950_v3 = vpop.f32.mrf.mxu2 }
 0x86d   :  { %v8927_v18 = vadd.f32 %v8926_v1, %v8900_v51  ;;  %v9020_v9 = vpop.f32.mrf.mxu1 }
 0x86e   :  { %v8974_v56 = vpop.f32.mrf.mxu3 }
 0x86f   :  { %v8951_v36 = vadd.f32 %v8950_v3, %v8927_v18  ;;  %v16036_v3 = vld [vmem:[%s16523_s2 + $0x1] ss:$0 sm:$0xff] }
 0x871   :  { %v8975_v55 = vadd.f32 %v8974_v56, %v8951_v36 }
 0x874   :  { %v8998_v12 = vpop.f32.mrf.mxu0  ;;  %v9052_v25 = vpop.f32.mrf.mxu2 }
 0x875   :  { %v8999_v58 = vadd.f32 %v8998_v12, %v8975_v55  ;;  %v9126_v33 = vpop.f32.mrf.mxu1 }
 0x876   :  { %v9078_v17 = vpop.f32.mrf.mxu3 }
 0x877   :  { %v9021_v59 = vadd.f32 %v9020_v9, %v8999_v58  ;;  %v9079_v53 = vadd.f32 %v9078_v17, %v9052_v25 }
 0x879   :  { %v10087_v13 = vmul.f32 0.35355338, %v9021_v59 }
 0x87b   :  { %v16029_v8 = vadd.f32 %v16026_v14, %v10087_v13 }
 0x87c   :  { %v9102_v2 = vpop.f32.mrf.mxu0  ;;  %v9150_v47 = vpop.f32.mrf.mxu2 }
 0x87d   :  { %v9103_v7 = vadd.f32 %v9102_v2, %v9079_v53  ;;  %v9230_v38 = vpop.f32.mrf.mxu1  ;;  %v10109_v35 = vsel %vm2808_vm8, %v16029_v8, -inf }
 0x87e   :  { %10110 = vmax.xlane.f32.xlu1 %v10109_v35  ;;  %v9172_v54 = vpop.f32.mrf.mxu3 }
 0x87f   :  { %v9127_v24 = vadd.f32 %v9126_v33, %v9103_v7 }
 0x881   :  { %v9151_v1 = vadd.f32 %v9150_v47, %v9127_v24 }
 0x883   :  { %v9173_v51 = vadd.f32 %v9172_v54, %v9151_v1 }
 0x884   :  { %v9204_v18 = vpop.f32.mrf.mxu0  ;;  %v9254_v9 = vpop.f32.mrf.mxu2 }
 0x885   :  { %v10088_v56 = vmul.f32 0.35355338, %v9173_v51  ;;  %v9231_v36 = vadd.f32 %v9230_v38, %v9204_v18  ;;  %v9324_v55 = vpop.f32.mrf.mxu1 }
 0x886   :  { %v9278_v12 = vpop.f32.mrf.mxu3 }
 0x887   :  { %v9255_v25 = vadd.f32 %v9254_v9, %v9231_v36  ;;  %v16039_v58 = vadd.f32 %v16036_v3, %v10088_v56 }
 0x889   :  { %v10112_v33 = vsel %vm2808_vm8, %v16039_v58, -inf  ;;  %v9279_v17 = vadd.f32 %v9278_v12, %v9255_v25 }
 0x88a   :  { %10113 = vmax.xlane.f32.xlu2 %v10112_v33 }
 0x88c   :  { %v9302_v59 = vpop.f32.mrf.mxu0  ;;  %v9356_v13 = vpop.f32.mrf.mxu2 }
 0x88d   :  { %v9303_v53 = vadd.f32 %v9302_v59, %v9279_v17  ;;  %v9430_v7 = vpop.f32.mrf.mxu1 }
 0x88e   :  { %v9382_v2 = vpop.f32.mrf.mxu3 }
 0x88f   :  { %v9325_v47 = vadd.f32 %v9324_v55, %v9303_v53  ;;  %v9383_v54 = vadd.f32 %v9382_v2, %v9356_v13 }
 0x891   :  { %v10089_v35 = vmul.f32 0.35355338, %v9325_v47 }
 0x893   :  { %v16044_v38 = vadd.f32 %v16026_v14, %v10089_v35 }
 0x894   :  { %v9406_v24 = vpop.f32.mrf.mxu0  ;;  %v9454_v1 = vpop.f32.mrf.mxu2 }
 0x895   :  { %v9407_v51 = vadd.f32 %v9406_v24, %v9383_v54  ;;  %v10115_v18 = vsel %vm2808_vm8, %v16044_v38, -inf  ;;  %v9534_v12 = vpop.f32.mrf.mxu1 }
 0x896   :  { %v9476_v9 = vpop.f32.mrf.mxu3  ;;  %10116 = vmax.xlane.f32.xlu0 %v10115_v18 }
 0x897   :  { %v9431_v56 = vadd.f32 %v9430_v7, %v9407_v51 }
 0x899   :  { %v9455_v36 = vadd.f32 %v9454_v1, %v9431_v56 }
 0x89b   :  { %v9477_v25 = vadd.f32 %v9476_v9, %v9455_v36 }
 0x89c   :  { %v9508_v33 = vpop.f32.mrf.mxu0  ;;  %v9558_v55 = vpop.f32.mrf.mxu2 }
 0x89d   :  { %v10090_v17 = vmul.f32 0.35355338, %v9477_v25  ;;  %v9535_v59 = vadd.f32 %v9534_v12, %v9508_v33  ;;  %v9628_v54 = vpop.f32.mrf.mxu1 }
 0x89e   :  { %v9582_v13 = vpop.f32.mrf.mxu3 }
 0x89f   :  { %v9559_v53 = vadd.f32 %v9558_v55, %v9535_v59  ;;  %v16049_v2 = vadd.f32 %v16036_v3, %v10090_v17 }
 0x8a1   :  { %v10118_v47 = vsel %vm2808_vm8, %v16049_v2, -inf  ;;  %v9583_v35 = vadd.f32 %v9582_v13, %v9559_v53 }
 0x8a2   :  { %10119 = vmax.xlane.f32.xlu1 %v10118_v47 }
 0x8a4   :  { %v9606_v24 = vpop.f32.mrf.mxu0  ;;  %v9660_v1 = vpop.f32.mrf.mxu2 }
 0x8a5   :  { %v9607_v7 = vadd.f32 %v9606_v24, %v9583_v35  ;;  %v9734_v55 = vpop.f32.mrf.mxu1 }
 0x8a6   :  { %v9686_v18 = vpop.f32.mrf.mxu3 }
 0x8a7   :  { %v9629_v51 = vadd.f32 %v9628_v54, %v9607_v7  ;;  %v9687_v56 = vadd.f32 %v9686_v18, %v9660_v1 }
 0x8a9   :  { %v10091_v9 = vmul.f32 0.35355338, %v9629_v51 }
 0x8ab   :  { %v16054_v36 = vadd.f32 %v16026_v14, %v10091_v9 }
 0x8ac   :  { %v9710_v12 = vpop.f32.mrf.mxu0  ;;  %v9758_v59 = vpop.f32.mrf.mxu2 }
 0x8ad   :  { %v9711_v25 = vadd.f32 %v9710_v12, %v9687_v56  ;;  %v10121_v33 = vsel %vm2808_vm8, %v16054_v36, -inf  ;;  %v9838_v1 = vpop.f32.mrf.mxu1 }
 0x8ae   :  { %10122 = vmax.xlane.f32.xlu2 %v10121_v33  ;;  %v9780_v53 = vpop.f32.mrf.mxu3 }
 0x8af   :  { %v9735_v17 = vadd.f32 %v9734_v55, %v9711_v25 }
 0x8b1   :  { %v9759_v13 = vadd.f32 %v9758_v59, %v9735_v17 }
 0x8b3   :  { %v9781_v47 = vadd.f32 %v9780_v53, %v9759_v13 }
 0x8b4   :  { %v9812_v7 = vpop.f32.mrf.mxu0  ;;  %v9862_v9 = vpop.f32.mrf.mxu2 }
 0x8b5   :  { %v10092_v35 = vmul.f32 0.35355338, %v9781_v47  ;;  %v9839_v18 = vadd.f32 %v9838_v1, %v9812_v7  ;;  %v9932_v33 = vpop.f32.mrf.mxu1 }
 0x8b6   :  { %v9886_v51 = vpop.f32.mrf.mxu3 }
 0x8b7   :  { %v16059_v54 = vadd.f32 %v16036_v3, %v10092_v35  ;;  %v9863_v12 = vadd.f32 %v9862_v9, %v9839_v18 }
 0x8b9   :  { %v10124_v24 = vsel %vm2808_vm8, %v16059_v54, -inf  ;;  %v9887_v17 = vadd.f32 %v9886_v51, %v9863_v12 }
 0x8ba   :  { %10125 = vmax.xlane.f32.xlu1 %v10124_v24 }
 0x8bc   :  { %v9910_v56 = vpop.f32.mrf.mxu0  ;;  %v9964_v47 = vpop.f32.mrf.mxu2 }
 0x8bd   :  { %v9911_v53 = vadd.f32 %v9910_v56, %v9887_v17  ;;  %v10038_v7 = vpop.f32.mrf.mxu1 }
 0x8be   :  { %v9990_v59 = vpop.f32.mrf.mxu3 }
 0x8bf   :  { %v9991_v23 = vadd.f32 %v9990_v59, %v9964_v47  ;;  %v9933_v24 = vadd.f32 %v9932_v33, %v9911_v53 }
 0x8c1   :  { %v10093_v1 = vmul.f32 0.35355338, %v9933_v24 }
 0x8c4   :  { %v10014_v35 = vpop.f32.mrf.mxu0  ;;  %v10062_v51 = vpop.f32.mrf.mxu2 }
 0x8c5   :  { %v10015_v40 = vadd.f32 %v10014_v35, %v9991_v23 }
 0x8c6   :  { %v10084_v33 = vpop.f32.mrf.mxu3 }
 0x8c7   :  { %v10039_v6 = vadd.f32 %v10038_v7, %v10015_v40 }
 0x8c9   :  { %v10063_v12 = vadd.f32 %v10062_v51, %v10039_v6 }
 0x8cb   :  { %v10085_v23 = vadd.f32 %v10084_v33, %v10063_v12 }
 0x8cd   :  { %v10094_v40 = vmul.f32 0.35355338, %v10085_v23 }
 0x8cf   :  { %v16077_v6 = vadd.f32 %v16036_v3, %v10094_v40 }
 0x8f1   :  { %v10111_v25 = vpop.xlane.xlu1 %10110 }
 0x8f2   :  { %v10133_v55 = vsub.f32 %v16029_v8, %v10111_v25  ;;  %v10107_v25 = vadd.f32 %v16026_v14, %v10093_v1  ;;  %v10130_v14 = vsel %vm2808_vm8, %v16077_v6, -inf }
 0x8f4   :  { %v10141_v13 = vmul.f32 1.442695, %v10133_v55  ;;  %v10127_v55 = vsel %vm2808_vm8, %v10107_v25, -inf }
 0x8f6   :  { %12894 = vpow2.f32 %v10141_v13 }
 0x8fc   :  { %v16064_v29 = vpop.eup %12894 }
 0x8fd   :  { %v10114_v18 = vpop.xlane.xlu2 %10113  ;;  %v10157_v9 = vsel %vm2808_vm8, %v16064_v29, 0.0 }
 0x8fe   :  { %v10134_v8 = vsub.f32 %v16039_v58, %v10114_v18  ;;  %10158 = vadd.xlane.f32.xlu0 %v10157_v9 }
 0x900   :  { %v10143_v56 = vmul.f32 1.442695, %v10134_v8 }
 0x902   :  { %12896 = vpow2.f32 %v10143_v56 }
 0x906   :  { %10128 = vmax.xlane.f32.xlu0 %v10127_v55 }
 0x908   :  { %v16071_v17 = vpop.eup %12896 }
 0x909   :  { %v10117_v59 = vpop.xlane.xlu0 %10116  ;;  %v10160_v13 = vsel %vm2808_vm8, %v16071_v17, 0.0 }
 0x90a   :  { %v10135_v58 = vsub.f32 %v16044_v38, %v10117_v59  ;;  %10161 = vadd.xlane.f32.xlu2 %v10160_v13 }
 0x90c   :  { %v10145_v53 = vmul.f32 1.442695, %v10135_v58 }
 0x90e   :  { %12898 = vpow2.f32 %v10145_v53 }
 0x912   :  { %10131 = vmax.xlane.f32.xlu2 %v10130_v14 }
 0x914   :  { %v16081_v47 = vpop.eup %12898 }
 0x915   :  { %v10120_v35 = vpop.xlane.xlu1 %10119  ;;  %v10163_v24 = vsel %vm2808_vm8, %v16081_v47, 0.0 }
 0x916   :  { %v10136_v7 = vsub.f32 %v16049_v2, %v10120_v35  ;;  %10164 = vadd.xlane.f32.xlu1 %v10163_v24  ;;  %v8301_v35 = vadd.f32 %v15925_v27, %v15921_v44 }
 0x918   :  { %v10147_v38 = vmul.f32 1.442695, %v10136_v7 }
 0x91a   :  { %12900 = vpow2.f32 %v10147_v38 }
 0x920   :  { %v16086_v1 = vpop.eup %12900 }
 0x921   :  { %v10123_v3 = vpop.xlane.xlu2 %10122  ;;  %v10166_v18 = vsel %vm2808_vm8, %v16086_v1, 0.0 }
 0x922   :  { %v10137_v9 = vsub.f32 %v16054_v36, %v10123_v3  ;;  %10167 = vadd.xlane.f32.xlu0 %v10166_v18  ;;  %v8297_v36 = vadd.f32 %v15909_v43, %v15903_v42  ;;  %v8336_v42 = vadd.f32 %v15956_v28, %v8301_v35 }
 0x924   :  { %v10149_v8 = vmul.f32 1.442695, %v10137_v9  ;;  %v8331_v40 = vadd.f32 %v15939_v20, %v8297_v36  ;;  %v8369_v44 = vadd.f32 %v15943_v30, %v8336_v42 }
 0x926   :  { %12902 = vpow2.f32 %v10149_v8  ;;  %v8363_v13 = vadd.f32 %v15923_v26, %v8331_v40 }
 0x92c   :  { %v16091_v51 = vpop.eup %12902 }
 0x92d   :  { %v10126_v56 = vpop.xlane.xlu1 %10125  ;;  %v10169_v2 = vsel %vm2808_vm8, %v16091_v51, 0.0 }
 0x92e   :  { %v10138_v12 = vsub.f32 %v16059_v54, %v10126_v56  ;;  %10170 = vadd.xlane.f32.xlu1 %v10169_v2  ;;  %v8402_v54 = vadd.f32 %v15941_v45, %v8363_v13  ;;  %v8406_v2 = vadd.f32 %v15958_v52, %v8369_v44 }
 0x930   :  { %v10151_v33 = vmul.f32 1.442695, %v10138_v12  ;;  %v8431_v7 = vadd.f32 %v15945_v50, %v8402_v54  ;;  %v8435_v52 = vadd.f32 %v15965_v37, %v8406_v2  ;;  %v16630_v37 = vand.u32 4294901760, %v15963_v60 }
 0x932   :  { %12904 = vpow2.f32 %v10151_v33  ;;  %v16109_v45 = vand.u32 4294901760, %v8431_v7  ;;  %v8513_v33 = vadd.f32 %v15960_v22, %v15971_v15 }
 0x934   :  { %v16113_v28 = vsub.f32 %v8431_v7, %v16109_v45  ;;  %v8547_v15 = vadd.f32 %v15973_v41, %v8513_v33  ;;  %v16141_v7 = vand.u32 4294901760, %v8435_v52 }
 0x938   :  { %v16096_v23 = vpop.eup %12904 }
 0x939   :  { %v10172_v55 = vsel %vm2808_vm8, %v16096_v23, 0.0 }
 0x93a   :  { %10173 = vadd.xlane.f32.xlu2 %v10172_v55 }
 0x971   :  { %v10159_v59 = vpop.xlane.xlu0 %10158 }
 0x972   :  { %12906 = vrcp.f32 %v10159_v59  ;;  %v10192_v43 = vand.u32 2147483648, %v10159_v59  ;;  %v10190_v18 = vand.u32 2147483647, %v10159_v59  ;;  %vm10186_vm12 = vweird.f32 %v10159_v59 }
 0x974   :  { %v10193_v27 = vor.u32 1.1754944e-38, %v10192_v43  ;;  %vm10191_vm14 = vcmp.eq.f32.partialorder %v10190_v18, 8.507059e+37 }
 0x978   :  { %v12907_v58 = vpop.eup %12906 }
 0x979   :  { %v10182_v53 = vmul.f32 %v12907_v58, %v10159_v59  ;;  %v10129_v14 = vpop.xlane.xlu0 %10128  ;;  %vm10187_vm11 = vweird.f32 %v12907_v58 }
 0x97a   :  { %v10139_v24 = vsub.f32 %v10107_v25, %v10129_v14  ;;  %vm10188_vm13 = vmor %vm10186_vm12, %vm10187_vm11 }
 0x97b   :  { %v10183_v38 = vsub.f32 1.0, %v10182_v53 }
 0x97c   :  { %v10153_v20 = vmul.f32 1.442695, %v10139_v24 }
 0x97d   :  { %v10184_v3 = vmul.f32 %v12907_v58, %v10183_v38  ;;  %v10162_v26 = vpop.xlane.xlu2 %10161 }
 0x97e   :  { %12908 = vpow2.f32 %v10153_v20  ;;  %v10207_v53 = vand.u32 2147483648, %v10162_v26  ;;  %v10205_v35 = vand.u32 2147483647, %v10162_v26  ;;  %vm10201_vm1 = vweird.f32 %v10162_v26 }
 0x97f   :  { %v10185_v9 = vadd.f32 %v12907_v58, %v10184_v3  ;;  %12910 = vrcp.f32 %v10162_v26  ;;  %v8579_v20 = vadd.f32 %v15977_v63, %v8547_v15  ;;  %v8517_v63 = vadd.f32 %v15975_v0, %v15985_v31 }
 0x980   :  { %v10208_v42 = vor.u32 1.1754944e-38, %v10207_v53  ;;  %vm10206_vm3 = vcmp.eq.f32.partialorder %v10205_v35, 8.507059e+37 }
 0x981   :  { %v10189_v50 = vsel %vm10188_vm13, %v12907_v58, %v10185_v9  ;;  %v8552_v0 = vadd.f32 %v15987_v21, %v8517_v63 }
 0x982   :  { %v10194_v25 = vsel %vm10191_vm14, %v10193_v27, %v10189_v50  ;;  %v16148_v50 = vsub.f32 %v8435_v52, %v16141_v7 }
 0x983   :  { %v10195_v8 = vmul.f32 %v16064_v29, %v10194_v25  ;;  %v10645_v29 = vand.u32 4294901760, %v16113_v28 }
 0x984   :  { %v16116_v56 = vpop.eup %12908 }
 0x985   :  { %v12911_v12 = vpop.eup %12910  ;;  %v10132_v55 = vpop.xlane.xlu2 %10131  ;;  %v10175_v30 = vsel %vm2808_vm8, %v16116_v56, 0.0  ;;  %v10302_v36 = vsel %vm2808_vm8, %v10195_v8, 0  ;;  %v10646_v41 = vsub.f32 %v16113_v28, %v10645_v29 }
 0x986   :  { %v10197_v40 = vmul.f32 %v12911_v12, %v10162_v26  ;;  %v10140_v59 = vsub.f32 %v16077_v6, %v10132_v55  ;;  %10176 = vadd.xlane.f32.xlu0 %v10175_v30  ;;  %v16125_v13 = vand.u32 4294901760, %v10302_v36  ;;  %vm10202_vm15 = vweird.f32 %v12911_v12 }
 0x987   :  { %vm10203_vm2 = vmor %vm10201_vm1, %vm10202_vm15  ;;  %v10647_v44 = vand.u32 4294901760, %v10646_v41  ;;  %v8618_v26 = vadd.f32 %v15993_v61, %v8579_v20  ;;  %v8729_v41 = vadd.f32 %v15999_v34, %v15995_v57 }
 0x988   :  { %v10198_v54 = vsub.f32 1.0, %v10197_v40  ;;  %v10155_v58 = vmul.f32 1.442695, %v10140_v59  ;;  %10352 = vmatmul.f32.vlgmr.msra.gmra.mxu1 %v16125_v13  ;;  %v10322_v22 = vsub.f32 %v10302_v36, %v16125_v13 }
 0x989   :  { %10545 = vmatpush.msra.mxu1 %v15952_v5  ;;  %v16133_v14 = vpop.xlane.xlu1 %10164  ;;  %v8647_v33 = vadd.f32 %v15989_v16, %v8618_v26 }
 0x98a   :  { %v10199_v6 = vmul.f32 %v12911_v12, %v10198_v54  ;;  %12912 = vpow2.f32 %v10155_v58  ;;  %10376 = vmatmul.f32.vlgmr.msra.gmra.mxu2 %v10322_v22  ;;  %v10323_v24 = vand.u32 4294901760, %v10322_v22  ;;  %v10222_v31 = vand.u32 2147483648, %v16133_v14 }
 0x98b   :  { %12914 = vrcp.f32 %v16133_v14  ;;  %10571 = vmatpush.msra.mxu2 %v16630_v37  ;;  %v10220_v40 = vand.u32 2147483647, %v16133_v14  ;;  %v16170_v52 = vand.u32 4294901760, %v8647_v33  ;;  %vm10216_vm5 = vweird.f32 %v16133_v14 }
 0x98c   :  { %v10200_v38 = vadd.f32 %v12911_v12, %v10199_v6  ;;  %10400 = vmatmul.f32.vlgmr.msra.gmra.mxu3 %v10323_v24  ;;  %v10324_v43 = vsub.f32 %v10322_v22, %v10323_v24  ;;  %v8585_v54 = vadd.f32 %v15991_v32, %v8552_v0  ;;  %v10223_v58 = vor.u32 1.1754944e-38, %v10222_v31 }
 0x98d   :  { %10593 = vmatpush.msra.mxu3 %v15952_v5  ;;  %vm10221_vm7 = vcmp.eq.f32.partialorder %v10220_v40, 8.507059e+37  ;;  %v16182_v37 = vsub.f32 %v8647_v33, %v16170_v52  ;;  %v8733_v0 = vadd.f32 %v16007_v48, %v16003_v62 }
 0x98e   :  { %v10204_v3 = vsel %vm10203_vm2, %v12911_v12, %v10200_v38  ;;  %v10325_v9 = vand.u32 4294901760, %v10324_v43  ;;  %v8622_v53 = vadd.f32 %v16001_v46, %v8585_v54 }
 0x98f   :  { %v10209_v18 = vsel %vm10206_vm3, %v10208_v42, %v10204_v3  ;;  %v10943_v20 = vand.u32 4294901760, %v16182_v37 }
 0x990   :  { %v16145_v27 = vpop.eup %12912  ;;  %v10210_v25 = vmul.f32 %v16071_v17, %v10209_v18  ;;  %10446 = vmatmul.f32.vlgmr.msrb.gmra.mxu1 %v16125_v13  ;;  %10326 = vmatmul.f32.vlgmr.msra.gmra.mxu0 %v10325_v9  ;;  %v10794_v17 = vand.u32 4294901760, %v16148_v50 }
 0x991   :  { %v12915_v8 = vpop.eup %12914  ;;  %10648 = vmatpush.msrb.mxu1 %v10647_v44  ;;  %v10178_v5 = vsel %vm2808_vm8, %v16145_v27, 0.0  ;;  %10522 = vmatpush.msra.mxu0 %v15963_v60 }
 0x992   :  { %v10212_v2 = vmul.f32 %v12915_v8, %v16133_v14  ;;  %10179 = vadd.xlane.f32.xlu1 %v10178_v5  ;;  %v10451_v61 = vsel %vm2808_vm8, %v10210_v25, 0  ;;  %vm10217_vm4 = vweird.f32 %v12915_v8  ;;  %v10795_v21 = vsub.f32 %v16148_v50, %v10794_v17 }
 0x993   :  { %v16160_v12 = vand.u32 4294901760, %v10451_v61  ;;  %vm10218_vm6 = vmor %vm10216_vm5, %vm10217_vm4  ;;  %v10944_v25 = vsub.f32 %v16182_v37, %v10943_v20 }
 0x994   :  { %v10213_v55 = vsub.f32 1.0, %v10212_v2  ;;  %v10796_v24 = vand.u32 4294901760, %v10795_v21 }
 0x995   :  { %v10471_v30 = vsub.f32 %v10451_v61, %v16160_v12  ;;  %10501 = vmatmul.f32.vlgmr.msrb.gmra.mxu3 %v16160_v12  ;;  %v10168_v36 = vpop.xlane.xlu0 %10167  ;;  %v10945_v33 = vand.u32 4294901760, %v10944_v25 }
 0x996   :  { %v10214_v60 = vmul.f32 %v12915_v8, %v10213_v55  ;;  %10694 = vmatpush.msrb.mxu3 %v16109_v45  ;;  %12916 = vrcp.f32 %v10168_v36  ;;  %v10237_v43 = vand.u32 2147483648, %v10168_v36  ;;  %v10235_v18 = vand.u32 2147483647, %v10168_v36 }
 0x997   :  { %v10472_v59 = vand.u32 4294901760, %v10471_v30  ;;  %vm10231_vm10 = vweird.f32 %v10168_v36 }
 0x998   :  { %v10215_v16 = vadd.f32 %v12915_v8, %v10214_v60  ;;  %10424 = vmatmul.f32.vlgmr.msrb.gmra.mxu0 %v16125_v13  ;;  %v10238_v26 = vor.u32 1.1754944e-38, %v10237_v43  ;;  %vm10236_vm12 = vcmp.eq.f32.partialorder %v10235_v18, 8.507059e+37 }
 0x999   :  { %10549 = vmatmul.f32.vlgmr.msra.gmra.mxu1 %v10472_v59  ;;  %v10473_v22 = vsub.f32 %v10471_v30, %v10472_v59  ;;  %10618 = vmatpush.msrb.mxu0 %v16109_v45 }
 0x99a   :  { %v10219_v15 = vsel %vm10218_vm6, %v12915_v8, %v10215_v16  ;;  %10742 = vmatpush.msra.mxu1 %v16109_v45  ;;  %v8651_v45 = vadd.f32 %v15997_v19, %v8622_v53  ;;  %v16631_v16 = vld [vmem:[#allocation11_spill] sm:$0xff] }
 0x99b   :  { %v10224_v14 = vsel %vm10221_vm7, %v10223_v58, %v10219_v15  ;;  %v10474_v6 = vand.u32 4294901760, %v10473_v22 }
 0x99c   :  { %v12917_v35 = vpop.eup %12916  ;;  %v10225_v32 = vmul.f32 %v16081_v47, %v10224_v14  ;;  %v8763_v47 = vadd.f32 %v16009_v39, %v8729_v41  ;;  %v16200_v19 = vand.u32 4294901760, %v8651_v45 }
 0x99d   :  { %v10227_v13 = vmul.f32 %v12917_v35, %v10168_v36  ;;  %10475 = vmatmul.f32.vlgmr.msrb.gmra.mxu2 %v10474_v6  ;;  %10595 = vmatmul.f32.vlgmr.msra.gmra.mxu3 %v16160_v12  ;;  %vm10232_vm9 = vweird.f32 %v12917_v35 }
 0x99e   :  { %10671 = vmatpush.msrb.mxu2 %v16113_v28  ;;  %10797 = vmatpush.msra.mxu3 %v10796_v24  ;;  %v10600_v46 = vsel %vm2808_vm8, %v10225_v32, 0  ;;  %v8795_v44 = vadd.f32 %v16005_v49, %v8763_v47  ;;  %vm10233_vm11 = vmor %vm10231_vm10, %vm10232_vm9  ;;  %v16210_v63 = vsub.f32 %v8651_v45, %v16200_v19  ;;  %v16633_v45 = vld [vmem:[#allocation6_spill] sm:$0xff] }
 0x99f   :  { %v10228_v38 = vsub.f32 1.0, %v10227_v13  ;;  %v16191_v42 = vand.u32 4294901760, %v10600_v46 }
 0x9a0   :  { %10525 = vmatmul.f32.vlgmr.msra.gmra.mxu0 %v10471_v30  ;;  %v8834_v61 = vadd.f32 %v16011_v11, %v8795_v44  ;;  %v11092_v31 = vand.u32 4294901760, %v16210_v63  ;;  %v8768_v30 = vadd.f32 %v16017_v4, %v8733_v0 }
 0x9a1   :  { %v10229_v3 = vmul.f32 %v12917_v35, %v10228_v38  ;;  %v10620_v57 = vsub.f32 %v10600_v46, %v16191_v42  ;;  %10650 = vmatmul.f32.vlgmr.msrb.gmra.mxu1 %v16191_v42  ;;  %v10171_v34 = vpop.xlane.xlu1 %10170  ;;  %10720 = vmatpush.msra.mxu0 %v10645_v29 }
 0x9a2   :  { %10843 = vmatpush.msrb.mxu1 %v16141_v7  ;;  %12918 = vrcp.f32 %v10171_v34  ;;  %v8863_v11 = vadd.f32 %v16015_v10, %v8834_v61  ;;  %v10252_v36 = vand.u32 2147483648, %v10171_v34  ;;  %v10250_v59 = vand.u32 2147483647, %v10171_v34 }
 0x9a3   :  { %v10230_v39 = vadd.f32 %v12917_v35, %v10229_v3  ;;  %v10621_v9 = vand.u32 4294901760, %v10620_v57  ;;  %vm10246_vm14 = vweird.f32 %v10171_v34  ;;  %v8801_v21 = vadd.f32 %v16631_v16, %v8768_v30 }
 0x9a4   :  { %v16229_v4 = vand.u32 4294901760, %v8863_v11  ;;  %v10253_v54 = vor.u32 1.1754944e-38, %v10252_v36  ;;  %v11093_v58 = vsub.f32 %v16210_v63, %v11092_v31  ;;  %vm10251_vm1 = vcmp.eq.f32.partialorder %v10250_v59, 8.507059e+37 }
 0x9a5   :  { %v10234_v8 = vsel %vm10233_vm11, %v12917_v35, %v10230_v39  ;;  %10573 = vmatmul.f32.vlgmr.msra.gmra.mxu2 %v16160_v12  ;;  %10698 = vmatmul.f32.vlgmr.msrb.gmra.mxu3 %v10621_v9  ;;  %v10622_v28 = vsub.f32 %v10620_v57, %v10621_v9  ;;  %v16632_v35 = vld [vmem:[#allocation7_spill] sm:$0xff] }
 0x9a6   :  { %v10239_v29 = vsel %vm10236_vm12, %v10238_v26, %v10234_v8  ;;  %10767 = vmatpush.msra.mxu2 %v16141_v7  ;;  %10891 = vmatpush.msrb.mxu3 %v16141_v7  ;;  %v16240_v6 = vsub.f32 %v8863_v11, %v16229_v4  ;;  %v8838_v32 = vadd.f32 %v16632_v35, %v8801_v21  ;;  %v11094_v24 = vand.u32 4294901760, %v11093_v58 }
 0x9a7   :  { %v10240_v49 = vmul.f32 %v16086_v1, %v10239_v29  ;;  %v10623_v5 = vand.u32 4294901760, %v10622_v28 }
 0x9a8   :  { %v12919_v2 = vpop.eup %12918  ;;  %v8867_v38 = vadd.f32 %v16633_v45, %v8838_v32 }
 0x9a9   :  { %v10242_v55 = vmul.f32 %v12919_v2, %v10171_v34  ;;  %10624 = vmatmul.f32.vlgmr.msrb.gmra.mxu0 %v10623_v5  ;;  %10744 = vmatmul.f32.vlgmr.msra.gmra.mxu1 %v16191_v42  ;;  %v10749_v12 = vsel %vm2808_vm8, %v10240_v49, 0  ;;  %vm10247_vm13 = vweird.f32 %v12919_v2 }
 0x9aa   :  { %10820 = vmatpush.msrb.mxu0 %v16148_v50  ;;  %10946 = vmatpush.msra.mxu1 %v10945_v33  ;;  %v16219_v7 = vand.u32 4294901760, %v10749_v12  ;;  %vm10248_vm15 = vmor %vm10246_vm14, %vm10247_vm13  ;;  %v16251_v34 = vand.u32 4294901760, %v8867_v38 }
 0x9ab   :  { %v10243_v1 = vsub.f32 1.0, %v10242_v55 }
 0x9ac   :  { %v10769_v60 = vsub.f32 %v10749_v12, %v16219_v7  ;;  %v16259_v8 = vsub.f32 %v8867_v38, %v16251_v34 }
 0x9ad   :  { %v10244_v40 = vmul.f32 %v12919_v2, %v10243_v1  ;;  %10674 = vmatmul.f32.vlgmr.msrb.gmra.mxu2 %v10620_v57  ;;  %10799 = vmatmul.f32.vlgmr.msra.gmra.mxu3 %v16219_v7  ;;  %v10174_v62 = vpop.xlane.xlu2 %10173 }
 0x9ae   :  { %10869 = vmatpush.msrb.mxu2 %v10794_v17  ;;  %10992 = vmatpush.msra.mxu3 %v16170_v52  ;;  %12920 = vrcp.f32 %v10174_v62  ;;  %v10770_v10 = vand.u32 4294901760, %v10769_v60  ;;  %v10265_v3 = vand.u32 2147483647, %v10174_v62  ;;  %vm10261_vm3 = vweird.f32 %v10174_v62 }
 0x9af   :  { %v10245_v48 = vadd.f32 %v12919_v2, %v10244_v40  ;;  %v11390_v5 = vand.u32 4294901760, %v16259_v8 }
 0x9b0   :  { %v10771_v50 = vsub.f32 %v10769_v60, %v10770_v10  ;;  %vm10266_vm5 = vcmp.eq.f32.partialorder %v10265_v3, 8.507059e+37 }
 0x9b1   :  { %v10249_v22 = vsel %vm10248_vm15, %v12919_v2, %v10245_v48  ;;  %10722 = vmatmul.f32.vlgmr.msra.gmra.mxu0 %v16191_v42  ;;  %10847 = vmatmul.f32.vlgmr.msrb.gmra.mxu1 %v10770_v10  ;;  %v10267_v42 = vand.u32 2147483648, %v10174_v62  ;;  %v11391_v61 = vsub.f32 %v16259_v8, %v11390_v5 }
 0x9b2   :  { %v10254_v17 = vsel %vm10251_vm1, %v10253_v54, %v10249_v22  ;;  %10916 = vmatpush.msra.mxu0 %v16170_v52  ;;  %11040 = vmatpush.msrb.mxu1 %v16170_v52  ;;  %v10772_v53 = vand.u32 4294901760, %v10771_v50 }
 0x9b3   :  { %v10255_v15 = vmul.f32 %v16091_v51, %v10254_v17  ;;  %v11241_v51 = vand.u32 4294901760, %v16240_v6  ;;  %v10268_v39 = vor.u32 1.1754944e-38, %v10267_v42  ;;  %v11392_v55 = vand.u32 4294901760, %v11391_v61 }
 0x9b4   :  { %v12921_v14 = vpop.eup %12920 }
 0x9b5   :  { %v10257_v13 = vmul.f32 %v12921_v14, %v10174_v62  ;;  %10773 = vmatmul.f32.vlgmr.msra.gmra.mxu2 %v10772_v53  ;;  %10893 = vmatmul.f32.vlgmr.msrb.gmra.mxu3 %v16219_v7  ;;  %v10898_v41 = vsel %vm2808_vm8, %v10255_v15, 0  ;;  %vm10262_vm2 = vweird.f32 %v12921_v14  ;;  %v11242_v44 = vsub.f32 %v16240_v6, %v11241_v51 }
 0x9b6   :  { %10969 = vmatpush.msra.mxu2 %v16182_v37  ;;  %11095 = vmatpush.msrb.mxu3 %v11094_v24  ;;  %v10917_v52 = vand.u32 4294901760, %v10898_v41  ;;  %vm10263_vm4 = vmor %vm10261_vm3, %vm10262_vm2 }
 0x9b7   :  { %v10258_v46 = vsub.f32 1.0, %v10257_v13  ;;  %v11243_v28 = vand.u32 4294901760, %v11242_v44 }
 0x9b8   :  { %v10918_v47 = vsub.f32 %v10898_v41, %v10917_v52 }
 0x9b9   :  { %v10259_v43 = vmul.f32 %v12921_v14, %v10258_v46  ;;  %10823 = vmatmul.f32.vlgmr.msrb.gmra.mxu0 %v10769_v60  ;;  %10948 = vmatmul.f32.vlgmr.msra.gmra.mxu1 %v10917_v52 }
 0x9ba   :  { %11018 = vmatpush.msrb.mxu0 %v10943_v20  ;;  %11141 = vmatpush.msra.mxu1 %v16200_v19  ;;  %v10919_v18 = vand.u32 4294901760, %v10918_v47 }
 0x9bb   :  { %v10260_v57 = vadd.f32 %v12921_v14, %v10259_v43 }
 0x9bc   :  { %v10920_v9 = vsub.f32 %v10918_v47, %v10919_v18 }
 0x9bd   :  { %v10264_v26 = vsel %vm10263_vm4, %v12921_v14, %v10260_v57  ;;  %10871 = vmatmul.f32.vlgmr.msrb.gmra.mxu2 %v16219_v7  ;;  %10996 = vmatmul.f32.vlgmr.msra.gmra.mxu3 %v10919_v18  ;;  %v147_v7 = vld [vmem:[%s16527_s6 + $0x20] sm:$0xff] }
 0x9be   :  { %v10269_v25 = vsel %vm10266_vm5, %v10268_v39, %v10264_v26  ;;  %11065 = vmatpush.msrb.mxu2 %v16200_v19  ;;  %11189 = vmatpush.msra.mxu3 %v16200_v19  ;;  %v10921_v37 = vand.u32 4294901760, %v10920_v9  ;;  %v16277_v11 = vand.u32 4294901760, %v147_v7  ;;  %vm12543_vm5 = vcmask 523264  }
 0x9bf   :  { %v10270_v20 = vmul.f32 %v16096_v23, %v10269_v25 }
 0x9c0   :  { %v16280_v48 = vsub.f32 %v147_v7, %v16277_v11 }
 0x9c1   :  { %10922 = vmatmul.f32.vlgmr.msra.gmra.mxu0 %v10921_v37  ;;  %11042 = vmatmul.f32.vlgmr.msrb.gmra.mxu1 %v10917_v52  ;;  %v11047_v29 = vsel %vm2808_vm8, %v10270_v20, 0 }
 0x9c2   :  { %11118 = vmatpush.msra.mxu0 %v16210_v63  ;;  %11244 = vmatpush.msrb.mxu1 %v11243_v28  ;;  %v11066_v49 = vand.u32 4294901760, %v11047_v29  ;;  %v11550_v54 = vand.u32 4294901760, %v16280_v48 }
 0x9c4   :  { %v11067_v2 = vsub.f32 %v11047_v29, %v11066_v49 }
 0x9c5   :  { %10972 = vmatmul.f32.vlgmr.msra.gmra.mxu2 %v10918_v47  ;;  %11097 = vmatmul.f32.vlgmr.msrb.gmra.mxu3 %v11066_v49 }
 0x9c6   :  { %11167 = vmatpush.msra.mxu2 %v11092_v31  ;;  %11290 = vmatpush.msrb.mxu3 %v16229_v4  ;;  %v11068_v23 = vand.u32 4294901760, %v11067_v2 }
 0x9c8   :  { %v11069_v19 = vsub.f32 %v11067_v2, %v11068_v23 }
 0x9c9   :  { %11020 = vmatmul.f32.vlgmr.msrb.gmra.mxu0 %v10917_v52  ;;  %11145 = vmatmul.f32.vlgmr.msra.gmra.mxu1 %v11068_v23 }
 0x9ca   :  { %11214 = vmatpush.msrb.mxu0 %v16229_v4  ;;  %11338 = vmatpush.msra.mxu1 %v16229_v4  ;;  %v11070_v33 = vand.u32 4294901760, %v11069_v19 }
 0x9cd   :  { %11071 = vmatmul.f32.vlgmr.msrb.gmra.mxu2 %v11070_v33  ;;  %11191 = vmatmul.f32.vlgmr.msra.gmra.mxu3 %v11066_v49 }
 0x9ce   :  { %11267 = vmatpush.msrb.mxu2 %v16240_v6  ;;  %11393 = vmatpush.msra.mxu3 %v11392_v55 }
 0x9d1   :  { %11121 = vmatmul.f32.vlgmr.msra.gmra.mxu0 %v11067_v2 }
 0x9d2   :  { %11316 = vmatpush.msra.mxu0 %v11241_v51  ;;  %v148_v51 = vld [vmem:[%s16527_s6 + $0x28] sm:$0xff] }
 0x9d3   :  { %v16294_v38 = vand.u32 4294901760, %v148_v51 }
 0x9d5   :  { %11169 = vmatmul.f32.vlgmr.msra.gmra.mxu2 %v11066_v49  ;;  %v16298_v57 = vsub.f32 %v148_v51, %v16294_v38 }
 0x9d6   :  { %11363 = vmatpush.msra.mxu2 %v16251_v34 }
 0x9f9   :  { %v10177_v63 = vpop.xlane.xlu0 %10176 }
 0x9fa   :  { %12922 = vrcp.f32 %v10177_v63  ;;  %v10282_v31 = vand.u32 2147483648, %v10177_v63  ;;  %v10280_v36 = vand.u32 2147483647, %v10177_v63  ;;  %vm10276_vm7 = vweird.f32 %v10177_v63 }
 0x9fc   :  { %v10283_v62 = vor.u32 1.1754944e-38, %v10282_v31  ;;  %vm10281_vm10 = vcmp.eq.f32.partialorder %v10280_v36, 8.507059e+37 }
 0xa00   :  { %v12923_v12 = vpop.eup %12922 }
 0xa01   :  { %v10272_v0 = vmul.f32 %v12923_v12, %v10177_v63  ;;  %vm10277_vm6 = vweird.f32 %v12923_v12 }
 0xa02   :  { %vm10278_vm9 = vmor %vm10276_vm7, %vm10277_vm6 }
 0xa03   :  { %v10273_v1 = vsub.f32 1.0, %v10272_v0 }
 0xa05   :  { %v10274_v30 = vmul.f32 %v12923_v12, %v10273_v1  ;;  %v10180_v60 = vpop.xlane.xlu1 %10179  ;;  %v10353_v40 = vpop.f32.mrf.mxu1 }
 0xa06   :  { %12924 = vrcp.f32 %v10180_v60  ;;  %v10297_v6 = vand.u32 2147483648, %v10180_v60  ;;  %v10295_v41 = vand.u32 2147483647, %v10180_v60  ;;  %vm10291_vm12 = vweird.f32 %v10180_v60 }
 0xa07   :  { %v10275_v59 = vadd.f32 %v12923_v12, %v10274_v30 }
 0xa08   :  { %v10298_v42 = vor.u32 1.1754944e-38, %v10297_v6  ;;  %vm10296_vm14 = vcmp.eq.f32.partialorder %v10295_v41, 8.507059e+37 }
 0xa09   :  { %v10279_v10 = vsel %vm10278_vm9, %v12923_v12, %v10275_v59 }
 0xa0a   :  { %v10284_v4 = vsel %vm10281_vm10, %v10283_v62, %v10279_v10 }
 0xa0b   :  { %v10285_v16 = vmul.f32 %v16116_v56, %v10284_v4  ;;  %v11551_v56 = vsub.f32 %v16280_v48, %v11550_v54 }
 0xa0c   :  { %v12925_v21 = vpop.eup %12924 }
 0xa0d   :  { %v10287_v58 = vmul.f32 %v12925_v21, %v10180_v60  ;;  %v11196_v22 = vsel %vm2808_vm8, %v10285_v16, 0  ;;  %v10327_v50 = vpop.f32.mrf.mxu0  ;;  %v10377_v14 = vpop.f32.mrf.mxu2  ;;  %vm10292_vm11 = vweird.f32 %v12925_v21  ;;  %v11552_v43 = vand.u32 4294901760, %v11551_v56 }
 0xa0e   :  { %v11215_v17 = vand.u32 4294901760, %v11196_v22  ;;  %v10354_v53 = vadd.f32 %v10353_v40, %v10327_v50  ;;  %v10447_v35 = vpop.f32.mrf.mxu1  ;;  %vm10293_vm13 = vmor %vm10291_vm12, %vm10292_vm11 }
 0xa0f   :  { %v10288_v15 = vsub.f32 1.0, %v10287_v58  ;;  %v10401_v32 = vpop.f32.mrf.mxu3 }
 0xa10   :  { %11246 = vmatmul.f32.vlgmr.msrb.gmra.mxu1 %v11215_v17  ;;  %v11216_v24 = vsub.f32 %v11196_v22, %v11215_v17  ;;  %v10378_v52 = vadd.f32 %v10377_v14, %v10354_v53 }
 0xa11   :  { %v10289_v13 = vmul.f32 %v12925_v21, %v10288_v15  ;;  %11439 = vmatpush.msrb.mxu1 %v16251_v34 }
 0xa12   :  { %11270 = vmatmul.f32.vlgmr.msrb.gmra.mxu2 %v11216_v24  ;;  %v11217_v46 = vand.u32 4294901760, %v11216_v24  ;;  %v10402_v18 = vadd.f32 %v10401_v32, %v10378_v52 }
 0xa13   :  { %v10290_v45 = vadd.f32 %v12925_v21, %v10289_v13  ;;  %11465 = vmatpush.msrb.mxu2 %v11390_v5 }
 0xa14   :  { %11294 = vmatmul.f32.vlgmr.msrb.gmra.mxu3 %v11217_v46  ;;  %v11218_v47 = vsub.f32 %v11216_v24, %v11217_v46 }
 0xa15   :  { %v10294_v3 = vsel %vm10293_vm13, %v12925_v21, %v10290_v45  ;;  %11487 = vmatpush.msrb.mxu3 %v16251_v34  ;;  %v10425_v9 = vpop.f32.mrf.mxu0  ;;  %v11733_v34 = vand.u32 4294901760, %v16298_v57 }
 0xa16   :  { %v10299_v39 = vsel %vm10296_vm14, %v10298_v42, %v10294_v3  ;;  %v11219_v44 = vand.u32 4294901760, %v11218_v47  ;;  %v10426_v25 = vadd.f32 %v10425_v9, %v10402_v18  ;;  %v10550_v29 = vpop.f32.mrf.mxu1 }
 0xa17   :  { %v10300_v26 = vmul.f32 %v16145_v27, %v10299_v39  ;;  %v11734_v27 = vsub.f32 %v16298_v57, %v11733_v34 }
 0xa18   :  { %v10502_v37 = vpop.f32.mrf.mxu3  ;;  %11220 = vmatmul.f32.vlgmr.msrb.gmra.mxu0 %v11219_v44  ;;  %11340 = vmatmul.f32.vlgmr.msra.gmra.mxu1 %v11215_v17  ;;  %v10448_v20 = vadd.f32 %v10447_v35, %v10426_v25 }
 0xa19   :  { %11416 = vmatpush.msrb.mxu0 %v16259_v8  ;;  %v11345_v28 = vsel %vm2808_vm8, %v10300_v26, 0  ;;  %11553 = vmatpush.msra.mxu1 %v11552_v43  ;;  %v11735_v12 = vand.u32 4294901760, %v11734_v27 }
 0xa1a   :  { %v11364_v49 = vand.u32 4294901760, %v11345_v28  ;;  %v11494_v5 = vsel %vm2808_vm8, %v10448_v20, 0 }
 0xa1b   :  { %v16309_v23 = vand.u32 4294901760, %v11494_v5 }
 0xa1c   :  { %v11365_v2 = vsub.f32 %v11345_v28, %v11364_v49  ;;  %11395 = vmatmul.f32.vlgmr.msra.gmra.mxu3 %v11364_v49 }
 0xa1d   :  { %11608 = vmatpush.msra.mxu3 %v16277_v11  ;;  %v10526_v8 = vpop.f32.mrf.mxu0  ;;  %v11517_v0 = vsub.f32 %v11494_v5, %v16309_v23 }
 0xa1e   :  { %v11366_v19 = vand.u32 4294901760, %v11365_v2  ;;  %v10651_v31 = vpop.f32.mrf.mxu1 }
 0xa1f   :  { %v11518_v30 = vand.u32 4294901760, %v11517_v0 }
 0xa20   :  { %v10476_v61 = vpop.f32.mrf.mxu2  ;;  %v10596_v33 = vpop.f32.mrf.mxu3  ;;  %11318 = vmatmul.f32.vlgmr.msra.gmra.mxu0 %v11215_v17  ;;  %11443 = vmatmul.f32.vlgmr.msrb.gmra.mxu1 %v11366_v19  ;;  %v11367_v55 = vsub.f32 %v11365_v2, %v11366_v19 }
 0xa21   :  { %v10503_v63 = vadd.f32 %v10502_v37, %v10476_v61  ;;  %11515 = vmatpush.msra.mxu0 %v16277_v11  ;;  %11666 = vmatpush.msrb.mxu1 %v16277_v11  ;;  %v11519_v62 = vsub.f32 %v11517_v0, %v11518_v30 }
 0xa22   :  { %v11368_v7 = vand.u32 4294901760, %v11367_v55 }
 0xa23   :  { %v10527_v1 = vadd.f32 %v10526_v8, %v10503_v63  ;;  %v11520_v16 = vand.u32 4294901760, %v11519_v62 }
 0xa24   :  { %11369 = vmatmul.f32.vlgmr.msra.gmra.mxu2 %v11368_v7  ;;  %11489 = vmatmul.f32.vlgmr.msrb.gmra.mxu3 %v11364_v49 }
 0xa25   :  { %11580 = vmatpush.msra.mxu2 %v16280_v48  ;;  %11736 = vmatpush.msrb.mxu3 %v11735_v12  ;;  %v10551_v60 = vadd.f32 %v10550_v29, %v10527_v1  ;;  %v149_v48 = vld [vmem:[%s16527_s6 + $0x30] sm:$0xff] }
 0xa26   :  { %v10625_v36 = vpop.f32.mrf.mxu0  ;;  %v10745_v21 = vpop.f32.mrf.mxu1  ;;  %v11880_v50 = vand.u32 4294901760, %v149_v48 }
 0xa28   :  { %v10574_v40 = vpop.f32.mrf.mxu2  ;;  %v10699_v59 = vpop.f32.mrf.mxu3  ;;  %11419 = vmatmul.f32.vlgmr.msrb.gmra.mxu0 %v11365_v2  ;;  %11555 = vmatmul.f32.vlgmr.msra.gmra.mxu1 %v16309_v23  ;;  %v16326_v14 = vsub.f32 %v149_v48, %v11880_v50 }
 0xa29   :  { %v10575_v11 = vadd.f32 %v10574_v40, %v10551_v60  ;;  %11640 = vmatpush.msrb.mxu0 %v11550_v54  ;;  %11791 = vmatpush.msra.mxu1 %v16294_v38  ;;  %v10652_v54 = vadd.f32 %v10651_v31, %v10625_v36 }
 0xa2a   :  { %v11916_v24 = vand.u32 4294901760, %v16326_v14 }
 0xa2b   :  { %v10597_v10 = vadd.f32 %v10596_v33, %v10575_v11 }
 0xa2c   :  { %11467 = vmatmul.f32.vlgmr.msrb.gmra.mxu2 %v11364_v49  ;;  %11612 = vmatmul.f32.vlgmr.msra.gmra.mxu3 %v11518_v30  ;;  %v11917_v41 = vsub.f32 %v16326_v14, %v11916_v24 }
 0xa2d   :  { %v11497_v4 = vsel %vm2808_vm8, %v10597_v10, 0  ;;  %11698 = vmatpush.msrb.mxu2 %v16294_v38  ;;  %11849 = vmatpush.msra.mxu3 %v16294_v38 }
 0xa2e   :  { %v11524_v58 = vand.u32 4294901760, %v11497_v4  ;;  %v10723_v22 = vpop.f32.mrf.mxu0  ;;  %v11918_v45 = vand.u32 4294901760, %v11917_v41  ;;  %v10848_v38 = vpop.f32.mrf.mxu1 }
 0xa30   :  { %v11525_v17 = vsub.f32 %v11497_v4, %v11524_v58  ;;  %v10675_v15 = vpop.f32.mrf.mxu2  ;;  %11521 = vmatmul.f32.vlgmr.msra.gmra.mxu0 %v11520_v16  ;;  %11559 = vmatmul.f32.gmra.mxu1 %v11524_v58  ;;  %v10800_v6 = vpop.f32.mrf.mxu3 }
 0xa31   :  { %v10676_v53 = vadd.f32 %v10675_v15, %v10652_v54  ;;  %11763 = vmatpush.msra.mxu0 %v16298_v57 }
 0xa32   :  { %v11526_v35 = vand.u32 4294901760, %v11525_v17 }
 0xa33   :  { %v10700_v32 = vadd.f32 %v10699_v59, %v10676_v53 }
 0xa34   :  { %11583 = vmatmul.f32.vlgmr.msra.gmra.mxu2 %v11517_v0  ;;  %11618 = vmatmul.f32.gmra.mxu3 %v11526_v35  ;;  %v11527_v56 = vsub.f32 %v11525_v17, %v11526_v35 }
 0xa35   :  { %v10724_v13 = vadd.f32 %v10723_v22, %v10700_v32  ;;  %11823 = vmatpush.msra.mxu2 %v11733_v34  ;;  %v150_v32 = vld [vmem:[%s16527_s6 + $0x38] sm:$0xff] }
 0xa36   :  { %v10824_v52 = vpop.f32.mrf.mxu0  ;;  %v11528_v46 = vand.u32 4294901760, %v11527_v56  ;;  %v10949_v28 = vpop.f32.mrf.mxu1 }
 0xa37   :  { %v10746_v51 = vadd.f32 %v10745_v21, %v10724_v13 }
 0xa38   :  { %v10774_v42 = vpop.f32.mrf.mxu2  ;;  %11529 = vmatmul.f32.gmra.mxu0 %v11528_v46  ;;  %11668 = vmatmul.f32.vlgmr.msrb.gmra.mxu1 %v16309_v23  ;;  %v10894_v39 = vpop.f32.mrf.mxu3 }
 0xa39   :  { %v11677_v47 = vsel %vm2808_vm8, %v10746_v51, 0  ;;  %v10801_v43 = vadd.f32 %v10800_v6, %v10774_v42  ;;  %11919 = vmatpush.msrb.mxu1 %v11918_v45 }
 0xa3a   :  { %v11699_v3 = vand.u32 4294901760, %v11677_v47 }
 0xa3b   :  { %v10825_v18 = vadd.f32 %v10824_v52, %v10801_v43 }
 0xa3c   :  { %v11700_v57 = vsub.f32 %v11677_v47, %v11699_v3  ;;  %11588 = vmatmul.f32.gmra.mxu2 %v11525_v17  ;;  %11738 = vmatmul.f32.vlgmr.msrb.gmra.mxu3 %v11699_v3 }
 0xa3d   :  { %11974 = vmatpush.msrb.mxu3 %v11880_v50  ;;  %v10849_v26 = vadd.f32 %v10848_v38, %v10825_v18 }
 0xa3e   :  { %v10923_v9 = vpop.f32.mrf.mxu0  ;;  %v11701_v44 = vand.u32 4294901760, %v11700_v57  ;;  %v11043_v63 = vpop.f32.mrf.mxu1 }
 0xa3f   :  { %v10950_v27 = vadd.f32 %v10949_v28, %v10923_v9 }
 0xa40   :  { %v10872_v25 = vpop.f32.mrf.mxu2  ;;  %11642 = vmatmul.f32.vlgmr.msrb.gmra.mxu0 %v16309_v23  ;;  %11672 = vmatmul.f32.gmra.mxu1 %v11524_v58  ;;  %v11702_v37 = vsub.f32 %v11700_v57, %v11701_v44  ;;  %v10997_v2 = vpop.f32.mrf.mxu3 }
 0xa41   :  { %v10873_v20 = vadd.f32 %v10872_v25, %v10849_v26  ;;  %11881 = vmatpush.msrb.mxu0 %v11880_v50 }
 0xa42   :  { %v11703_v34 = vand.u32 4294901760, %v11702_v37 }
 0xa43   :  { %v10895_v29 = vadd.f32 %v10894_v39, %v10873_v20 }
 0xa44   :  { %11704 = vmatmul.f32.vlgmr.msrb.gmra.mxu2 %v11703_v34 }
 0xa45   :  { %v11680_v49 = vsel %vm2808_vm8, %v10895_v29, 0  ;;  %11946 = vmatpush.msrb.mxu2 %v16326_v14 }
 0xa46   :  { %v11707_v5 = vand.u32 4294901760, %v11680_v49  ;;  %v11021_v19 = vpop.f32.mrf.mxu0  ;;  %v11146_v10 = vpop.f32.mrf.mxu1 }
 0xa48   :  { %v11708_v8 = vsub.f32 %v11680_v49, %v11707_v5  ;;  %v10973_v61 = vpop.f32.mrf.mxu2  ;;  %11742 = vmatmul.f32.gmra.mxu3 %v11707_v5  ;;  %11646 = vmatmul.f32.gmra.mxu0 %v11524_v58  ;;  %v11098_v31 = vpop.f32.mrf.mxu3 }
 0xa49   :  { %v10974_v23 = vadd.f32 %v10973_v61, %v10950_v27  ;;  %11795 = vmatmul.f32.vlgmr.msra.gmra.mxu1 %v11701_v44 }
 0xa4a   :  { %v11709_v33 = vand.u32 4294901760, %v11708_v8  ;;  %12032 = vmatpush.msra.mxu1 %v11880_v50 }
 0xa4b   :  { %v10998_v55 = vadd.f32 %v10997_v2, %v10974_v23 }
 0xa4c   :  { %v11710_v12 = vsub.f32 %v11708_v8, %v11709_v33 }
 0xa4d   :  { %v11022_v0 = vadd.f32 %v11021_v19, %v10998_v55 }
 0xa4e   :  { %v11711_v7 = vand.u32 4294901760, %v11710_v12  ;;  %v11122_v59 = vpop.f32.mrf.mxu0 }
 0xa4f   :  { %v11044_v1 = vadd.f32 %v11043_v63, %v11022_v0 }
 0xa50   :  { %v11072_v30 = vpop.f32.mrf.mxu2  ;;  %11712 = vmatmul.f32.gmra.mxu2 %v11711_v7  ;;  %11851 = vmatmul.f32.vlgmr.msra.gmra.mxu3 %v11699_v3  ;;  %v11192_v22 = vpop.f32.mrf.mxu3 }
 0xa51   :  { %v11860_v36 = vsel %vm2808_vm8, %v11044_v1, 0  ;;  %v11099_v60 = vadd.f32 %v11098_v31, %v11072_v30  ;;  %11766 = vmatmul.f32.vlgmr.msra.gmra.mxu0 %v11700_v57  ;;  %11801 = vmatmul.f32.gmra.mxu1 %v11709_v33 }
 0xa52   :  { %v11882_v40 = vand.u32 4294901760, %v11860_v36  ;;  %12006 = vmatpush.msra.mxu0 %v11916_v24  ;;  %v12063_v24 = vand.u32 4294901760, %v150_v32 }
 0xa53   :  { %v11123_v11 = vadd.f32 %v11122_v59, %v11099_v60 }
 0xa54   :  { %v11883_v62 = vsub.f32 %v11860_v36, %v11882_v40  ;;  %v12098_v56 = vsub.f32 %v150_v32, %v12063_v24 }
 0xa55   :  { %v11147_v4 = vadd.f32 %v11146_v10, %v11123_v11 }
 0xa56   :  { %v11884_v16 = vand.u32 4294901760, %v11883_v62  ;;  %v12099_v13 = vand.u32 4294901760, %v12098_v56 }
 0xa58   :  { %v11170_v21 = vpop.f32.mrf.mxu2  ;;  %11825 = vmatmul.f32.vlgmr.msra.gmra.mxu2 %v11699_v3  ;;  %11855 = vmatmul.f32.gmra.mxu3 %v11707_v5  ;;  %v11885_v54 = vsub.f32 %v11883_v62, %v11884_v16  ;;  %v12100_v41 = vsub.f32 %v12098_v56, %v12099_v13 }
 0xa59   :  { %v11171_v58 = vadd.f32 %v11170_v21, %v11147_v4  ;;  %11771 = vmatmul.f32.gmra.mxu0 %v11708_v8  ;;  %11921 = vmatmul.f32.vlgmr.msrb.gmra.mxu1 %v11882_v40 }
 0xa5a   :  { %v11886_v15 = vand.u32 4294901760, %v11885_v54  ;;  %12064 = vmatpush.msra.mxu2 %v12063_v24  ;;  %12157 = vmatpush.msrb.mxu1 %v12063_v24  ;;  %v12101_v52 = vand.u32 4294901760, %v12100_v41 }
 0xa5b   :  { %v11193_v48 = vadd.f32 %v11192_v22, %v11171_v58 }
 0xa5c   :  { %12102 = vmatpush.msra.mxu3 %v12101_v52 }
 0xa5d   :  { %v11863_v50 = vsel %vm2808_vm8, %v11193_v48, 0 }
 0xa5e   :  { %v11890_v17 = vand.u32 4294901760, %v11863_v50 }
 0xa60   :  { %v11891_v53 = vsub.f32 %v11863_v50, %v11890_v17  ;;  %11829 = vmatmul.f32.gmra.mxu2 %v11707_v5  ;;  %11978 = vmatmul.f32.vlgmr.msrb.gmra.mxu3 %v11884_v16 }
 0xa61   :  { %11887 = vmatmul.f32.vlgmr.msrb.gmra.mxu0 %v11886_v15  ;;  %11925 = vmatmul.f32.gmra.mxu1 %v11890_v17 }
 0xa62   :  { %v11892_v14 = vand.u32 4294901760, %v11891_v53  ;;  %12129 = vmatpush.msrb.mxu0 %v12098_v56  ;;  %12215 = vmatpush.msrb.mxu3 %v12063_v24 }
 0xa64   :  { %v11893_v6 = vsub.f32 %v11891_v53, %v11892_v14 }
 0xa66   :  { %v11894_v35 = vand.u32 4294901760, %v11893_v6 }
 0xa68   :  { %11949 = vmatmul.f32.vlgmr.msrb.gmra.mxu2 %v11883_v62  ;;  %11984 = vmatmul.f32.gmra.mxu3 %v11892_v14 }
 0xa69   :  { %11895 = vmatmul.f32.gmra.mxu0 %v11894_v35  ;;  %12034 = vmatmul.f32.vlgmr.msra.gmra.mxu1 %v11882_v40 }
 0xa6a   :  { %12189 = vmatpush.msrb.mxu2 %v12099_v13 }
 0xa70   :  { %11954 = vmatmul.f32.gmra.mxu2 %v11891_v53 }
 0xa71   :  { %12008 = vmatmul.f32.vlgmr.msra.gmra.mxu0 %v11882_v40  ;;  %12038 = vmatmul.f32.gmra.mxu1 %v11890_v17 }
 0xa79   :  { %12012 = vmatmul.f32.gmra.mxu0 %v11890_v17 }
 0xa8d   :  { %v11247_v46 = vpop.f32.mrf.mxu1 }
 0xa95   :  { %v11221_v51 = vpop.f32.mrf.mxu0  ;;  %v11341_v38 = vpop.f32.mrf.mxu1 }
 0xa96   :  { %v11248_v45 = vadd.f32 %v11247_v46, %v11221_v51  ;;  %v11271_v42 = vpop.f32.mrf.mxu2 }
 0xa97   :  { %v11295_v43 = vpop.f32.mrf.mxu3 }
 0xa98   :  { %v11272_v47 = vadd.f32 %v11271_v42, %v11248_v45 }
 0xa9a   :  { %v11296_v3 = vadd.f32 %v11295_v43, %v11272_v47 }
 0xa9d   :  { %v11319_v18 = vpop.f32.mrf.mxu0  ;;  %v11444_v39 = vpop.f32.mrf.mxu1 }
 0xa9e   :  { %v11320_v57 = vadd.f32 %v11319_v18, %v11296_v3 }
 0xa9f   :  { %v11396_v25 = vpop.f32.mrf.mxu3 }
 0xaa0   :  { %v11342_v9 = vadd.f32 %v11341_v38, %v11320_v57 }
 0xaa2   :  { %v12043_v44 = vsel %vm2808_vm8, %v11342_v9, 0 }
 0xaa3   :  { %v12065_v26 = vand.u32 4294901760, %v12043_v44 }
 0xaa5   :  { %v12066_v37 = vsub.f32 %v12043_v44, %v12065_v26  ;;  %v11420_v20 = vpop.f32.mrf.mxu0  ;;  %12104 = vmatmul.f32.vlgmr.msra.gmra.mxu3 %v12065_v26  ;;  %v11556_v5 = vpop.f32.mrf.mxu1 }
 0xaa7   :  { %v12067_v28 = vand.u32 4294901760, %v12066_v37  ;;  %v11370_v34 = vpop.f32.mrf.mxu2  ;;  %12132 = vmatmul.f32.vlgmr.msrb.gmra.mxu0 %v12066_v37  ;;  %v11490_v8 = vpop.f32.mrf.mxu3 }
 0xaa8   :  { %v11397_v29 = vadd.f32 %v11396_v25, %v11370_v34 }
 0xaa9   :  { %v12068_v49 = vsub.f32 %v12066_v37, %v12067_v28  ;;  %12161 = vmatmul.f32.vlgmr.msrb.gmra.mxu1 %v12067_v28 }
 0xaaa   :  { %v11421_v2 = vadd.f32 %v11420_v20, %v11397_v29 }
 0xaab   :  { %v12069_v27 = vand.u32 4294901760, %v12068_v49 }
 0xaac   :  { %v11445_v23 = vadd.f32 %v11444_v39, %v11421_v2 }
 0xaad   :  { %v11522_v19 = vpop.f32.mrf.mxu0  ;;  %12070 = vmatmul.f32.vlgmr.msra.gmra.mxu2 %v12069_v27  ;;  %v11560_v12 = vpop.f32.mrf.mxu1 }
 0xaae   :  { %v11557_v61 = vadd.f32 %v11556_v5, %v11522_v19 }
 0xaaf   :  { %v11468_v33 = vpop.f32.mrf.mxu2  ;;  %v11613_v30 = vpop.f32.mrf.mxu3 }
 0xab0   :  { %v11469_v55 = vadd.f32 %v11468_v33, %v11445_v23 }
 0xab2   :  { %v11491_v63 = vadd.f32 %v11490_v8, %v11469_v55 }
 0xab4   :  { %v12046_v0 = vsel %vm2808_vm8, %v11491_v63, 0 }
 0xab5   :  { %v12073_v7 = vand.u32 4294901760, %v12046_v0  ;;  %v11530_v1 = vpop.f32.mrf.mxu0  ;;  %v11669_v10 = vpop.f32.mrf.mxu1 }
 0xab6   :  { %v11561_v31 = vadd.f32 %v11560_v12, %v11530_v1 }
 0xab7   :  { %v11584_v36 = vpop.f32.mrf.mxu2  ;;  %12108 = vmatmul.f32.gmra.mxu3 %v12073_v7  ;;  %v12074_v60 = vsub.f32 %v12046_v0, %v12073_v7  ;;  %v11619_v54 = vpop.f32.mrf.mxu3 }
 0xab8   :  { %v11585_v40 = vadd.f32 %v11584_v36, %v11557_v61 }
 0xab9   :  { %12137 = vmatmul.f32.gmra.mxu0 %v12074_v60  ;;  %v12075_v59 = vand.u32 4294901760, %v12074_v60 }
 0xaba   :  { %v11614_v11 = vadd.f32 %v11613_v30, %v11585_v40 }
 0xabb   :  { %12167 = vmatmul.f32.gmra.mxu1 %v12075_v59  ;;  %v12076_v62 = vsub.f32 %v12074_v60, %v12075_v59 }
 0xabd   :  { %v11643_v4 = vpop.f32.mrf.mxu0  ;;  %v12077_v16 = vand.u32 4294901760, %v12076_v62  ;;  %v11673_v53 = vpop.f32.mrf.mxu1 }
 0xabe   :  { %v11644_v21 = vadd.f32 %v11643_v4, %v11614_v11 }
 0xabf   :  { %v11589_v58 = vpop.f32.mrf.mxu2  ;;  %12078 = vmatmul.f32.gmra.mxu2 %v12077_v16  ;;  %12217 = vmatmul.f32.vlgmr.msrb.gmra.mxu3 %v12065_v26  ;;  %v11739_v6 = vpop.f32.mrf.mxu3 }
 0xac0   :  { %v16348_v22 = vadd.f32 %v11669_v10, %v11644_v21  ;;  %v11590_v48 = vadd.f32 %v11589_v58, %v11561_v31 }
 0xac2   :  { %v11620_v50 = vadd.f32 %v11619_v54, %v11590_v48 }
 0xac5   :  { %v11647_v17 = vpop.f32.mrf.mxu0 }
 0xac6   :  { %v11648_v15 = vadd.f32 %v11647_v17, %v11620_v50  ;;  %v11796_v13 = vpop.f32.mrf.mxu1 }
 0xac7   :  { %12191 = vmatmul.f32.vlgmr.msrb.gmra.mxu2 %v12065_v26  ;;  %12221 = vmatmul.f32.gmra.mxu3 %v12073_v7  ;;  %v11705_v35 = vpop.f32.mrf.mxu2 }
 0xac8   :  { %v16350_v14 = vadd.f32 %v11673_v53, %v11648_v15  ;;  %v11740_v20 = vadd.f32 %v11739_v6, %v11705_v35 }
 0xacb   :  { %v11743_v32 = vpop.f32.mrf.mxu3 }
 0xace   :  { %v11767_v24 = vpop.f32.mrf.mxu0  ;;  %v11802_v51 = vpop.f32.mrf.mxu1 }
 0xacf   :  { %12195 = vmatmul.f32.gmra.mxu2 %v12073_v7  ;;  %v11768_v29 = vadd.f32 %v11767_v24, %v11740_v20  ;;  %v16634_v24 = vld [vmem:[#allocation8_spill] sm:$0xff] }
 0xad1   :  { %v11797_v8 = vadd.f32 %v11796_v13, %v11768_v29  ;;  %v12285_v29 = vld [vmem:[%s16528_s7 + $0x10] sm:$0xff] }
 0xad3   :  { %v11713_v56 = vpop.f32.mrf.mxu2  ;;  %v11852_v41 = vpop.f32.mrf.mxu3 }
 0xad4   :  { %v11744_v5 = vadd.f32 %v11743_v32, %v11713_v56 }
 0xad6   :  { %v11772_v52 = vpop.f32.mrf.mxu0  ;;  %v11922_v47 = vpop.f32.mrf.mxu1 }
 0xad7   :  { %v11773_v63 = vadd.f32 %v11772_v52, %v11744_v5  ;;  %v12311_v5 = vand.u32 4294901760, %v12285_v29 }
 0xad9   :  { %v11803_v30 = vadd.f32 %v11802_v51, %v11773_v63 }
 0xadb   :  { %v11826_v46 = vpop.f32.mrf.mxu2  ;;  %v11856_v45 = vpop.f32.mrf.mxu3 }
 0xadc   :  { %v11827_v33 = vadd.f32 %v11826_v46, %v11797_v8  ;;  %v12353_v8 = vsub.f32 %v12285_v29, %v12311_v5 }
 0xade   :  { %v11888_v38 = vpop.f32.mrf.mxu0  ;;  %v11926_v57 = vpop.f32.mrf.mxu1  ;;  %v11853_v31 = vadd.f32 %v11852_v41, %v11827_v33  ;;  %v12354_v33 = vand.u32 4294901760, %v12353_v8 }
 0xadf   :  { %v11923_v28 = vadd.f32 %v11922_v47, %v11888_v38 }
 0xae0   :  { %v12225_v4 = vadd.f32 %v11853_v31, %v16348_v22 }
 0xae3   :  { %v11830_v42 = vpop.f32.mrf.mxu2  ;;  %v11979_v43 = vpop.f32.mrf.mxu3 }
 0xae4   :  { %v11831_v16 = vadd.f32 %v11830_v42, %v11803_v30 }
 0xae6   :  { %v11896_v3 = vpop.f32.mrf.mxu0  ;;  %v12035_v26 = vpop.f32.mrf.mxu1  ;;  %v11857_v15 = vadd.f32 %v11856_v45, %v11831_v16  ;;  %v16635_v45 = vld [vmem:[#allocation9_spill] sm:$0xff] }
 0xae7   :  { %v11927_v55 = vadd.f32 %v11926_v57, %v11896_v3 }
 0xae8   :  { %v12226_v41 = vadd.f32 %v11857_v15, %v16350_v14 }
 0xaeb   :  { %v11950_v18 = vpop.f32.mrf.mxu2  ;;  %v11985_v39 = vpop.f32.mrf.mxu3 }
 0xaec   :  { %v11951_v49 = vadd.f32 %v11950_v18, %v11923_v28  ;;  %v16636_v18 = vld [vmem:[#allocation5_spill] sm:$0xff]  ;;  %v12286_v28 = vld [vmem:[%s16528_s7 + $0x18] sm:$0xff] }
 0xaee   :  { %v12009_v9 = vpop.f32.mrf.mxu0  ;;  %v12039_v2 = vpop.f32.mrf.mxu1  ;;  %v11980_v19 = vadd.f32 %v11979_v43, %v11951_v49 }
 0xaf0   :  { %v12010_v0 = vadd.f32 %v12009_v9, %v11980_v19 }
 0xaf2   :  { %v12036_v60 = vadd.f32 %v12035_v26, %v12010_v0  ;;  %v12355_v0 = vsub.f32 %v12353_v8, %v12354_v33 }
 0xaf3   :  { %v11955_v44 = vpop.f32.mrf.mxu2 }
 0xaf4   :  { %v11956_v7 = vadd.f32 %v11955_v44, %v11927_v55  ;;  %v12227_v48 = vadd.f32 %v12225_v4, %v12036_v60  ;;  %v12356_v31 = vand.u32 4294901760, %v12355_v0 }
 0xaf6   :  { %v12013_v34 = vpop.f32.mrf.mxu0  ;;  %v11986_v40 = vadd.f32 %v11985_v39, %v11956_v7 }
 0xaf8   :  { %v12014_v54 = vadd.f32 %v12013_v34, %v11986_v40  ;;  %v12309_v34 = vand.u32 4294901760, %v12286_v28 }
 0xafa   :  { %v12040_v35 = vadd.f32 %v12039_v2, %v12014_v54  ;;  %12310 = vmatpush.msra.mxu0 %v12309_v34  ;;  %v12347_v49 = vsub.f32 %v12286_v28, %v12309_v34  ;;  %12427 = vmatpush.msra.mxu3 %v12309_v34  ;;  %v12284_v2 = vld [vmem:[%s16528_s7 + $0x8] sm:$0xff] }
 0xafb   :  { %v12313_v19 = vand.u32 4294901760, %v12284_v2 }
 0xafc   :  { %v12228_v51 = vadd.f32 %v12226_v41, %v12040_v35  ;;  %12393 = vmatpush.msra.mxu2 %v12347_v49  ;;  %12312 = vmatpush.msra.mxu0 %v12311_v5 }
 0xafd   :  { %12429 = vmatpush.msra.mxu3 %v12311_v5  ;;  %v12359_v55 = vsub.f32 %v12284_v2, %v12313_v19  ;;  %v12537_v2 = vld [vmem:[%s16530_s9 + $0x30] sm:$0xff] }
 0xafe   :  { %12396 = vmatpush.msra.mxu2 %v12353_v8  ;;  %12314 = vmatpush.msra.mxu0 %v12313_v19  ;;  %v16410_v8 = vand.u32 4294901760, %v12537_v2 }
 0xaff   :  { %12431 = vmatpush.msra.mxu3 %v12313_v19  ;;  %v12360_v7 = vand.u32 4294901760, %v12359_v55 }
 0xb00   :  { %12399 = vmatpush.msra.mxu2 %v12359_v55 }
 0xb01   :  { %v12361_v30 = vsub.f32 %v12359_v55, %v12360_v7 }
 0xb03   :  { %v12362_v60 = vand.u32 4294901760, %v12361_v30  ;;  %v12534_v30 = vld [vmem:[%s16530_s9 + $0x18] sm:$0xff] }
 0xb24   :  { %v12133_v12 = vpop.f32.mrf.mxu0 }
 0xb26   :  { %v12162_v36 = vpop.f32.mrf.mxu1 }
 0xb28   :  { %v12105_v25 = vpop.f32.mrf.mxu3 }
 0xb30   :  { %v12071_v37 = vpop.f32.mrf.mxu2 }
 0xb31   :  { %v12106_v61 = vadd.f32 %v12105_v25, %v12071_v37 }
 0xb33   :  { %v12134_v1 = vadd.f32 %v12133_v12, %v12106_v61  ;;  %v12283_v61 = vld [vmem:[%s16528_s7] sm:$0xff] }
 0xb34   :  { %v12315_v63 = vand.u32 4294901760, %v12283_v61 }
 0xb35   :  { %v12163_v11 = vadd.f32 %v12162_v36, %v12134_v1 }
 0xb36   :  { %v12138_v58 = vpop.f32.mrf.mxu0  ;;  %v12365_v1 = vsub.f32 %v12283_v61, %v12315_v63  ;;  %12316 = vmatpush.msra.mxu0 %v12315_v63  ;;  %12433 = vmatpush.msra.mxu3 %v12315_v63 }
 0xb38   :  { %v12168_v6 = vpop.f32.mrf.mxu1  ;;  %v12366_v36 = vand.u32 4294901760, %v12365_v1  ;;  %12402 = vmatpush.msra.mxu2 %v12365_v1 }
 0xb3a   :  { %v12109_v27 = vpop.f32.mrf.mxu3  ;;  %v12367_v40 = vsub.f32 %v12365_v1, %v12366_v36 }
 0xb42   :  { %v12079_v23 = vpop.f32.mrf.mxu2  ;;  %v12218_v62 = vpop.f32.mrf.mxu3 }
 0xb43   :  { %v12110_v59 = vadd.f32 %v12109_v27, %v12079_v23  ;;  %v12348_v27 = vand.u32 4294901760, %v12347_v49 }
 0xb45   :  { %v12139_v50 = vadd.f32 %v12138_v58, %v12110_v59  ;;  %v12349_v23 = vsub.f32 %v12347_v49, %v12348_v27  ;;  %12462 = vmatpush.msrb.mxu0 %v12348_v27  ;;  %v12368_v59 = vand.u32 4294901760, %v12367_v40  ;;  %v12538_v49 = vld [vmem:[%s16530_s9 + $0x38] sm:$0xff] }
 0xb47   :  { %v12169_v32 = vadd.f32 %v12168_v6, %v12139_v50  ;;  %v12350_v12 = vand.u32 4294901760, %v12349_v23  ;;  %12466 = vmatpush.msrb.mxu0 %v12354_v33  ;;  %v16419_v33 = vsub.f32 %v12537_v2, %v16410_v8 }
 0xb49   :  { %12351 = vmatpush.msra.mxu1 %v12350_v12  ;;  %12470 = vmatpush.msrb.mxu0 %v12360_v7  ;;  %v12607_v0 = vand.u32 4294901760, %v16419_v33 }
 0xb4a   :  { %v12192_v10 = vpop.f32.mrf.mxu2  ;;  %v12222_v46 = vpop.f32.mrf.mxu3 }
 0xb4b   :  { %v12193_v21 = vadd.f32 %v12192_v10, %v12163_v11  ;;  %12357 = vmatpush.msra.mxu1 %v12356_v31  ;;  %12474 = vmatpush.msrb.mxu0 %v12366_v36  ;;  %v12846_v31 = vld [vmem:[%s16529_s8] ss:$0 sm:$0xff]  ;;  %v12608_v40 = vsub.f32 %v16419_v33, %v12607_v0 }
 0xb4d   :  { %v12219_v17 = vadd.f32 %v12218_v62, %v12193_v21  ;;  %12363 = vmatpush.msra.mxu1 %v12362_v60 }
 0xb4f   :  { %v12229_v53 = vadd.f32 %v12227_v48, %v12219_v17  ;;  %12369 = vmatpush.msra.mxu1 %v12368_v59  ;;  %v46_v17 = vld [vmem:[%s16525_s4 + $0x6] sm:$0x3] }
 0xb50   :  { %v12280_v41 = vperm.slane %v46_v17, 1 }
 0xb51   :  { %v16354_v56 = vadd.f32 %v12229_v53, %v16634_v24  ;;  %12497 = vmatpush.msrb.mxu1 %v12309_v34 }
 0xb52   :  { %v12196_v13 = vpop.f32.mrf.mxu2 }
 0xb53   :  { %v12197_v52 = vadd.f32 %v12196_v13, %v12169_v32  ;;  %v12233_v22 = vsel %vm151_vm0, %v16354_v56, 0.0  ;;  %12499 = vmatpush.msrb.mxu1 %v12311_v5  ;;  %v12277_v32 = vperm.slane %v46_v17, 0  ;;  %v16402_v5 = vand.u32 4294901760, %v12538_v49 }
 0xb54   :  { %12234 = vadd.xlane.f32.xlu2 %v12233_v22 }
 0xb55   :  { %v12223_v38 = vadd.f32 %v12222_v46, %v12197_v52  ;;  %12501 = vmatpush.msrb.mxu1 %v12313_v19  ;;  %v16408_v27 = vsub.f32 %v12538_v49, %v16402_v5  ;;  %12559 = vmatpush.msrb.mxu2 %v16402_v5  ;;  %v12536_v19 = vld [vmem:[%s16530_s9 + $0x28] sm:$0xff] }
 0xb56   :  { %v16422_v55 = vand.u32 4294901760, %v12536_v19 }
 0xb57   :  { %v12230_v42 = vadd.f32 %v12228_v51, %v12223_v38  ;;  %12503 = vmatpush.msrb.mxu1 %v12315_v63  ;;  %v12601_v23 = vand.u32 4294901760, %v16408_v27  ;;  %v12535_v63 = vld [vmem:[%s16530_s9 + $0x20] sm:$0xff]  ;;  %12561 = vmatpush.msrb.mxu2 %v16410_v8 }
 0xb58   :  { %v16434_v7 = vsub.f32 %v12536_v19, %v16422_v55  ;;  %v16437_v1 = vand.u32 4294901760, %v12535_v63 }
 0xb59   :  { %v16360_v47 = vadd.f32 %v12230_v42, %v16635_v45  ;;  %v12602_v12 = vsub.f32 %v16408_v27, %v12601_v23  ;;  %12563 = vmatpush.msrb.mxu2 %v16422_v55 }
 0xb5a   :  { %v12613_v59 = vand.u32 4294901760, %v16434_v7 }
 0xb5b   :  { %v12236_v43 = vsel %vm151_vm0, %v16360_v47, 0.0  ;;  %v12603_v60 = vand.u32 4294901760, %v12602_v12  ;;  %12565 = vmatpush.msrb.mxu2 %v16437_v1 }
 0xb5c   :  { %12237 = vadd.xlane.f32.xlu0 %v12236_v43 }
 0xb5d   :  { %12604 = vmatpush.msrb.mxu3 %v12603_v60 }
 0xbc7   :  { %v12235_v3 = vpop.xlane.xlu2 %12234 }
 0xbc8   :  { %v12239_v57 = vmul.f32 %v12235_v3, %v16636_v18 }
 0xbca   :  { %v16366_v14 = vsub.f32 %v16354_v56, %v12239_v57 }
 0xbcc   :  { %v12243_v39 = vmul.f32 %v16366_v14, %v16366_v14 }
 0xbce   :  { %v12245_v9 = vsel %vm151_vm0, %v12243_v39, 0.0 }
 0xbcf   :  { %12246 = vadd.xlane.f32.xlu1 %v12245_v9  ;;  %v12238_v44 = vpop.xlane.xlu0 %12237 }
 0xbd0   :  { %v12240_v26 = vmul.f32 %v12238_v44, %v16636_v18 }
 0xbd2   :  { %v16373_v25 = vsub.f32 %v16360_v47, %v12240_v26 }
 0xbd4   :  { %v12244_v37 = vmul.f32 %v16373_v25, %v16373_v25 }
 0xbd6   :  { %v12248_v20 = vsel %vm151_vm0, %v12244_v37, 0.0 }
 0xbd7   :  { %12249 = vadd.xlane.f32.xlu2 %v12248_v20 }
 0xc42   :  { %v12247_v11 = vpop.xlane.xlu1 %12246 }
 0xc43   :  { %v12251_v62 = vmul.f32 %v12247_v11, %v16636_v18  ;;  %v16452_v11 = vsub.f32 %v12535_v63, %v16437_v1 }
 0xc45   :  { %v12253_v10 = vadd.f32 1e-05, %v12251_v62  ;;  %v16456_v62 = vand.u32 4294901760, %v12534_v30 }
 0xc47   :  { %12926 = vrsqrt.f32 %v12253_v10  ;;  %vm12261_vm15 = vweird.f32 %v12253_v10  ;;  %12567 = vmatpush.msrb.mxu2 %v16456_v62 }
 0xc4a   :  { %v12250_v4 = vpop.xlane.xlu2 %12249 }
 0xc4b   :  { %v12252_v16 = vmul.f32 %v12250_v4, %v16636_v18  ;;  %v12609_v4 = vand.u32 4294901760, %v12608_v40 }
 0xc4d   :  { %v12927_v21 = vpop.eup %12926  ;;  %v12254_v58 = vadd.f32 1e-05, %v12252_v16  ;;  %v12614_v16 = vsub.f32 %v16434_v7, %v12613_v59  ;;  %12610 = vmatpush.msrb.mxu3 %v12609_v4 }
 0xc4e   :  { %v12256_v48 = vmul.f32 %v12927_v21, %v12253_v10  ;;  %vm12262_vm8 = vweird.f32 %v12927_v21  ;;  %v12533_v10 = vld [vmem:[%s16530_s9 + $0x10] sm:$0xff] }
 0xc4f   :  { %12928 = vrsqrt.f32 %v12254_v58  ;;  %vm12263_vm1 = vmor %vm12261_vm15, %vm12262_vm8  ;;  %vm12271_vm3 = vweird.f32 %v12254_v58  ;;  %v12615_v17 = vand.u32 4294901760, %v12614_v16 }
 0xc50   :  { %v12257_v54 = vmul.f32 %v12927_v21, %v12256_v48 }
 0xc51   :  { %12616 = vmatpush.msrb.mxu3 %v12615_v17 }
 0xc52   :  { %v12258_v50 = vmul.f32 0.5, %v12257_v54  ;;  %v16470_v54 = vsub.f32 %v12534_v30, %v16456_v62 }
 0xc54   :  { %v12259_v15 = vsub.f32 1.5, %v12258_v50  ;;  %v12532_v50 = vld [vmem:[%s16530_s9 + $0x8] sm:$0xff] }
 0xc55   :  { %v12929_v53 = vpop.eup %12928 }
 0xc56   :  { %v12260_v6 = vmul.f32 %v12927_v21, %v12259_v15  ;;  %v12266_v35 = vmul.f32 %v12929_v53, %v12254_v58  ;;  %vm12272_vm2 = vweird.f32 %v12929_v53  ;;  %v16467_v58 = vand.u32 4294901760, %v12533_v10 }
 0xc57   :  { %vm12273_vm4 = vmor %vm12271_vm3, %vm12272_vm2 }
 0xc58   :  { %v12264_v24 = vsel %vm12263_vm1, %v12927_v21, %v12260_v6  ;;  %v12267_v13 = vmul.f32 %v12929_v53, %v12266_v35  ;;  %v12619_v21 = vand.u32 4294901760, %v16452_v11  ;;  %v16479_v6 = vand.u32 4294901760, %v12532_v50  ;;  %12569 = vmatpush.msrb.mxu2 %v16467_v58 }
 0xc59   :  { %v12275_v52 = vmul.f32 %v12264_v24, %v16366_v14  ;;  %v12625_v35 = vand.u32 4294901760, %v16470_v54 }
 0xc5a   :  { %v12268_v22 = vmul.f32 0.5, %v12267_v13  ;;  %v12620_v15 = vsub.f32 %v16452_v11, %v12619_v21  ;;  %12571 = vmatpush.msrb.mxu2 %v16479_v6 }
 0xc5b   :  { %v12278_v46 = vmul.f32 %v12277_v32, %v12275_v52  ;;  %v12636_v52 = vsub.f32 %v12532_v50, %v16479_v6 }
 0xc5c   :  { %v12269_v51 = vsub.f32 1.5, %v12268_v22  ;;  %v12621_v13 = vand.u32 4294901760, %v12620_v15 }
 0xc5d   :  { %v12281_v38 = vadd.f32 %v12280_v41, %v12278_v46 }
 0xc5e   :  { %v12270_v42 = vmul.f32 %v12929_v53, %v12269_v51  ;;  %v12626_v51 = vsub.f32 %v16470_v54, %v12625_v35  ;;  %12622 = vmatpush.msrb.mxu3 %v12621_v13 }
 0xc5f   :  { %v12292_v45 = vsel %vm151_vm0, %v12281_v38, 0 }
 0xc60   :  { %v12274_v43 = vsel %vm12273_vm4, %v12929_v53, %v12270_v42  ;;  %v12317_v3 = vand.u32 4294901760, %v12292_v45  ;;  %v12630_v53 = vsub.f32 %v12533_v10, %v16467_v58 }
 0xc61   :  { %v12276_v18 = vmul.f32 %v12274_v43, %v16373_v25  ;;  %v12637_v43 = vand.u32 4294901760, %v12636_v52 }
 0xc62   :  { %12371 = vmatmul.f32.vlgmr.msra.gmra.mxu1 %v12317_v3  ;;  %v12318_v57 = vsub.f32 %v12292_v45, %v12317_v3 }
 0xc63   :  { %v12279_v39 = vmul.f32 %v12277_v32, %v12276_v18  ;;  %12708 = vmatpush.msra.mxu1 %v16402_v5  ;;  %v12531_v32 = vld [vmem:[%s16530_s9] sm:$0xff]  ;;  %v12627_v18 = vand.u32 4294901760, %v12626_v51 }
 0xc64   :  { %12405 = vmatmul.f32.vlgmr.msra.gmra.mxu2 %v12318_v57  ;;  %v12319_v9 = vand.u32 4294901760, %v12318_v57  ;;  %v16488_v22 = vand.u32 4294901760, %v12531_v32 }
 0xc65   :  { %v12282_v14 = vadd.f32 %v12280_v41, %v12279_v39  ;;  %12710 = vmatpush.msra.mxu1 %v16410_v8  ;;  %v12631_v41 = vand.u32 4294901760, %v12630_v53  ;;  %v12638_v39 = vsub.f32 %v12636_v52, %v12637_v43  ;;  %12628 = vmatpush.msrb.mxu3 %v12627_v18 }
 0xc66   :  { %12437 = vmatmul.f32.vlgmr.msra.gmra.mxu3 %v12319_v9  ;;  %v12320_v44 = vsub.f32 %v12318_v57, %v12319_v9  ;;  %12573 = vmatpush.msrb.mxu2 %v16488_v22 }
 0xc67   :  { %v12295_v26 = vsel %vm151_vm0, %v12282_v14, 0  ;;  %12712 = vmatpush.msra.mxu1 %v16422_v55  ;;  %v12632_v45 = vsub.f32 %v12630_v53, %v12631_v41 }
 0xc68   :  { %v12321_v37 = vand.u32 4294901760, %v12320_v44  ;;  %v12325_v20 = vand.u32 4294901760, %v12295_v26  ;;  %12747 = vmatpush.msra.mxu2 %v12601_v23 }
 0xc69   :  { %12714 = vmatpush.msra.mxu1 %v16437_v1  ;;  %v12633_v57 = vand.u32 4294901760, %v12632_v45 }
 0xc6a   :  { %12322 = vmatmul.f32.vlgmr.msra.gmra.mxu0 %v12321_v37  ;;  %12375 = vmatmul.f32.gmra.mxu1 %v12325_v20  ;;  %v12326_v28 = vsub.f32 %v12295_v26, %v12325_v20  ;;  %v12639_v37 = vand.u32 4294901760, %v12638_v39 }
 0xc6b   :  { %12666 = vmatpush.msra.mxu0 %v16408_v27  ;;  %12716 = vmatpush.msra.mxu1 %v16456_v62 }
 0xc6c   :  { %12410 = vmatmul.f32.gmra.mxu2 %v12326_v28  ;;  %v12327_v34 = vand.u32 4294901760, %v12326_v28  ;;  %12634 = vmatpush.msrb.mxu3 %v12633_v57 }
 0xc6d   :  { %12669 = vmatpush.msra.mxu0 %v16419_v33  ;;  %12718 = vmatpush.msra.mxu1 %v16467_v58 }
 0xc6e   :  { %12443 = vmatmul.f32.gmra.mxu3 %v12327_v34  ;;  %v12328_v29 = vsub.f32 %v12326_v28, %v12327_v34  ;;  %12751 = vmatpush.msra.mxu2 %v12607_v0 }
 0xc6f   :  { %12672 = vmatpush.msra.mxu0 %v16434_v7  ;;  %12720 = vmatpush.msra.mxu1 %v16479_v6 }
 0xc70   :  { %v12329_v25 = vand.u32 4294901760, %v12328_v29  ;;  %12640 = vmatpush.msrb.mxu3 %v12639_v37  ;;  %12755 = vmatpush.msra.mxu2 %v12613_v59 }
 0xc71   :  { %12675 = vmatpush.msra.mxu0 %v16452_v11  ;;  %12722 = vmatpush.msra.mxu1 %v16488_v22 }
 0xc72   :  { %12330 = vmatmul.f32.gmra.mxu0 %v12329_v25  ;;  %12505 = vmatmul.f32.vlgmr.msrb.gmra.mxu1 %v12317_v3 }
 0xc73   :  { %12678 = vmatpush.msra.mxu0 %v16470_v54  ;;  %12759 = vmatpush.msra.mxu2 %v12619_v21 }
 0xc75   :  { %12681 = vmatpush.msra.mxu0 %v12630_v53  ;;  %12763 = vmatpush.msra.mxu2 %v12625_v35 }
 0xc77   :  { %12684 = vmatpush.msra.mxu0 %v12636_v52  ;;  %12767 = vmatpush.msra.mxu2 %v12631_v41 }
 0xc79   :  { %12771 = vmatpush.msra.mxu2 %v12637_v43 }
 0xc7a   :  { %12476 = vmatmul.f32.vlgmr.msrb.gmra.mxu0 %v12317_v3  ;;  %12509 = vmatmul.f32.gmra.mxu1 %v12325_v20  ;;  %v12642_v3 = vsub.f32 %v12531_v32, %v16488_v22 }
 0xc7c   :  { %v12643_v9 = vand.u32 4294901760, %v12642_v3  ;;  %12687 = vmatpush.msra.mxu0 %v12642_v3 }
 0xc7e   :  { %12775 = vmatpush.msra.mxu2 %v12643_v9 }
 0xc82   :  { %12480 = vmatmul.f32.gmra.mxu0 %v12325_v20  ;;  %v12644_v20 = vsub.f32 %v12642_v3, %v12643_v9 }
 0xc84   :  { %v12645_v28 = vand.u32 4294901760, %v12644_v20 }
 0xc86   :  { %12646 = vmatpush.msrb.mxu3 %v12645_v28 }
 0xc88   :  { %12794 = vmatpush.msra.mxu3 %v16402_v5 }
 0xc8a   :  { %12796 = vmatpush.msra.mxu3 %v16410_v8 }
 0xc8c   :  { %12798 = vmatpush.msra.mxu3 %v16422_v55 }
 0xc8e   :  { %12800 = vmatpush.msra.mxu3 %v16437_v1 }
 0xc90   :  { %12802 = vmatpush.msra.mxu3 %v16456_v62 }
 0xc92   :  { %12804 = vmatpush.msra.mxu3 %v16467_v58 }
 0xc94   :  { %12806 = vmatpush.msra.mxu3 %v16479_v6 }
 0xc96   :  { %12808 = vmatpush.msra.mxu3 %v16488_v22 }
 0xcdf   :  { %v12372_v61 = vpop.f32.mrf.mxu1 }
 0xce7   :  { %v12323_v36 = vpop.f32.mrf.mxu0  ;;  %v12376_v24 = vpop.f32.mrf.mxu1 }
 0xce8   :  { %v12324_v48 = vadd.f32 %v12846_v31, %v12323_v36  ;;  %v12406_v38 = vpop.f32.mrf.mxu2 }
 0xce9   :  { %v12438_v26 = vpop.f32.mrf.mxu3 }
 0xcea   :  { %v12373_v46 = vadd.f32 %v12372_v61, %v12324_v48 }
 0xcec   :  { %v12407_v14 = vadd.f32 %v12406_v38, %v12373_v46  ;;  %v12847_v46 = vld [vmem:[%s16531_s10] ss:$0 sm:$0xff]  ;;  %s12961_s10 = smov [#allocation2]  }
 0xced   :  { %s12826_s1 = sshll.u32 %s12961_s10, 4  ;;  %s12827_s1 = int_to_ptr.vmem [resolvable:$true] %s12826_s1 }
 0xcee   :  { %v12439_v34 = vadd.f32 %v12438_v26, %v12407_v14 }
 0xcef   :  { %v12331_v42 = vpop.f32.mrf.mxu0  ;;  %v12506_v25 = vpop.f32.mrf.mxu1 }
 0xcf0   :  { %v12332_v44 = vadd.f32 %v12846_v31, %v12331_v42  ;;  %v12411_v19 = vpop.f32.mrf.mxu2 }
 0xcf1   :  { %v12444_v33 = vpop.f32.mrf.mxu3 }
 0xcf2   :  { %v12377_v29 = vadd.f32 %v12376_v24, %v12332_v44 }
 0xcf4   :  { %v12412_v27 = vadd.f32 %v12411_v19, %v12377_v29 }
 0xcf6   :  { %v12445_v63 = vadd.f32 %v12444_v33, %v12412_v27 }
 0xcf7   :  { %v12477_v49 = vpop.f32.mrf.mxu0  ;;  %v12510_v5 = vpop.f32.mrf.mxu1 }
 0xcf8   :  { %v12478_v2 = vadd.f32 %v12477_v49, %v12439_v34 }
 0xcfa   :  { %v12507_v61 = vadd.f32 %v12506_v25, %v12478_v2 }
 0xcfc   :  { %v12513_v23 = vmul.f32 %v12507_v61, %v12507_v61 }
 0xcfe   :  { %v12515_v12 = vmul.f32 %v12513_v23, %v12507_v61 }
 0xcff   :  { %v12481_v0 = vpop.f32.mrf.mxu0 }
 0xd00   :  { %v12517_v7 = vmul.f32 0.044715, %v12515_v12  ;;  %v12482_v31 = vadd.f32 %v12481_v0, %v12445_v63 }
 0xd02   :  { %v12519_v30 = vadd.f32 %v12517_v7, %v12507_v61  ;;  %v12511_v8 = vadd.f32 %v12510_v5, %v12482_v31 }
 0xd04   :  { %v12521_v36 = vmul.f32 0.7978846, %v12519_v30  ;;  %v12514_v60 = vmul.f32 %v12511_v8, %v12511_v8 }
 0xd06   :  { %12930 = vtanh.f32 %v12521_v36  ;;  %v12516_v55 = vmul.f32 %v12514_v60, %v12511_v8 }
 0xd08   :  { %v12518_v1 = vmul.f32 0.044715, %v12516_v55 }
 0xd0a   :  { %v12520_v40 = vadd.f32 %v12518_v1, %v12511_v8 }
 0xd0c   :  { %v12931_v59 = vpop.eup %12930  ;;  %v12522_v11 = vmul.f32 0.7978846, %v12520_v40 }
 0xd0d   :  { %v12525_v10 = vadd.f32 1.0, %v12931_v59 }
 0xd0e   :  { %12932 = vtanh.f32 %v12522_v11 }
 0xd0f   :  { %v12527_v62 = vmul.f32 0.5, %v12525_v10 }
 0xd11   :  { %v12529_v4 = vmul.f32 %v12527_v62, %v12507_v61 }
 0xd13   :  { %v12545_v16 = vsel %vm12543_vm5, %v12529_v4, 0 }
 0xd14   :  { %v12933_v21 = vpop.eup %12932  ;;  %v12574_v58 = vand.u32 4294901760, %v12545_v16 }
 0xd15   :  { %v12526_v48 = vadd.f32 1.0, %v12933_v21 }
 0xd16   :  { %12648 = vmatmul.f32.vlgmr.msrb.gmra.mxu3 %v12574_v58  ;;  %v12575_v54 = vsub.f32 %v12545_v16, %v12574_v58 }
 0xd17   :  { %v12528_v50 = vmul.f32 0.5, %v12526_v48 }
 0xd18   :  { %12690 = vmatmul.f32.vlgmr.msra.gmra.mxu0 %v12575_v54  ;;  %v12576_v17 = vand.u32 4294901760, %v12575_v54 }
 0xd19   :  { %v12530_v15 = vmul.f32 %v12528_v50, %v12511_v8 }
 0xd1a   :  { %12726 = vmatmul.f32.vlgmr.msra.gmra.mxu1 %v12576_v17  ;;  %v12577_v53 = vsub.f32 %v12575_v54, %v12576_v17 }
 0xd1b   :  { %v12548_v6 = vsel %vm12543_vm5, %v12530_v15, 0 }
 0xd1c   :  { %v12578_v35 = vand.u32 4294901760, %v12577_v53  ;;  %v12582_v32 = vand.u32 4294901760, %v12548_v6 }
 0xd1e   :  { %12579 = vmatmul.f32.vlgmr.msrb.gmra.mxu2 %v12578_v35  ;;  %12652 = vmatmul.f32.gmra.mxu3 %v12582_v32  ;;  %v12583_v24 = vsub.f32 %v12548_v6, %v12582_v32 }
 0xd20   :  { %12695 = vmatmul.f32.gmra.mxu0 %v12583_v24  ;;  %v12584_v13 = vand.u32 4294901760, %v12583_v24 }
 0xd22   :  { %12732 = vmatmul.f32.gmra.mxu1 %v12584_v13  ;;  %v12585_v41 = vsub.f32 %v12583_v24, %v12584_v13 }
 0xd24   :  { %v12586_v52 = vand.u32 4294901760, %v12585_v41 }
 0xd26   :  { %12587 = vmatmul.f32.gmra.mxu2 %v12586_v52  ;;  %12810 = vmatmul.f32.vlgmr.msra.gmra.mxu3 %v12574_v58 }
 0xd2e   :  { %12777 = vmatmul.f32.vlgmr.msra.gmra.mxu2 %v12574_v58  ;;  %12814 = vmatmul.f32.gmra.mxu3 %v12582_v32 }
 0xd36   :  { %12781 = vmatmul.f32.gmra.mxu2 %v12582_v32 }
 0xd95   :  { %v12691_v43 = vpop.f32.mrf.mxu0 }
 0xd97   :  { %v12727_v39 = vpop.f32.mrf.mxu1 }
 0xd99   :  { %v12649_v22 = vpop.f32.mrf.mxu3 }
 0xd9d   :  { %v12696_v20 = vpop.f32.mrf.mxu0 }
 0xd9f   :  { %v12733_v25 = vpop.f32.mrf.mxu1 }
 0xda1   :  { %v12580_v51 = vpop.f32.mrf.mxu2  ;;  %v12653_v42 = vpop.f32.mrf.mxu3 }
 0xda2   :  { %v12581_v38 = vadd.f32 %v12847_v46, %v12580_v51 }
 0xda4   :  { %v12650_v45 = vadd.f32 %v12649_v22, %v12581_v38 }
 0xda6   :  { %v12692_v57 = vadd.f32 %v12691_v43, %v12650_v45 }
 0xda8   :  { %v12728_v14 = vadd.f32 %v12727_v39, %v12692_v57 }
 0xda9   :  { %v12588_v3 = vpop.f32.mrf.mxu2  ;;  %v12811_v44 = vpop.f32.mrf.mxu3 }
 0xdaa   :  { %v12589_v18 = vadd.f32 %v12847_v46, %v12588_v3 }
 0xdac   :  { %v12654_v9 = vadd.f32 %v12653_v42, %v12589_v18 }
 0xdae   :  { %v12697_v34 = vadd.f32 %v12696_v20, %v12654_v9 }
 0xdb0   :  { %v12734_v49 = vadd.f32 %v12733_v25, %v12697_v34 }
 0xdb1   :  { %v12778_v26 = vpop.f32.mrf.mxu2  ;;  %v12815_v27 = vpop.f32.mrf.mxu3 }
 0xdb2   :  { %v12779_v37 = vadd.f32 %v12778_v26, %v12728_v14 }
 0xdb4   :  { %v12812_v28 = vadd.f32 %v12811_v44, %v12779_v37 }
 0xdb6   :  { %v12818_v29 = vadd.f32 %v12812_v28, %v16354_v56 }
 0xdb8   :  { %12820 = vst.msk [vmem:[#allocation2] sm:$0xff] %vm151_vm0, %v12818_v29 }
 0xdb9   :  { %v12782_v2 = vpop.f32.mrf.mxu2 }
 0xdba   :  { %v12783_v19 = vadd.f32 %v12782_v2, %v12734_v49 }
 0xdbc   :  { %v12816_v61 = vadd.f32 %v12815_v27, %v12783_v19 }
 0xdbe   :  { %v12819_v23 = vadd.f32 %v12816_v61, %v16360_v47 }
 0xdc0   :  { %12821 = vst.msk [vmem:[#allocation2 + $0x8] sm:$0xff] %vm151_vm0, %v12819_v23 }
 0xdc1   :  { %12834 = dma.vmem_to_hbm [thread:$0]  %s12827_s1, 256, %s12829_s14, [#allocation3], %s12962_s15, %s12962_s15, %s12963_s16  }
 0xdc2   :  { %12958 = dma.done.wait [#allocation3], 256  }
 0xdc3   :  { %12959 = vsyncadd [#allocation3], 4294967040 }
 0xdc4   :  { %12839 = vsyncpa [#allocation3], 1 }

</bundles_post_ra>
